<compile_context>
chip_gen: v7x
topology: tpu7x:2x2x1
jax: 0.10.0
libtpu: 0.0.40
codegen_flags: <defaults>
</compile_context>

<pallas_src>
import functools

import jax
import jax.numpy as jnp
import numpy as np
from jax import lax
from jax.experimental import pallas as pl
from jax.experimental.pallas import tpu as pltpu


_PREP_ORDER = ("t1", "c1b", "t2", "c2b", "t3", "c3b",
               "f1w", "f1b", "f2w", "f2b", "f3w", "f3b")


# ----------------------------------------------------------------------------
# Fused forward kernel: one grid step = one block of B images.
# ----------------------------------------------------------------------------
def _net_kernel(x_ref, t1_ref, c1b_ref, t2_ref, c2b_ref, t3_ref, c3b_ref,
                f1w_ref, f1b_ref, f2w_ref, f2b_ref, f3w_ref, f3b_ref,
                o_ref, *, B):
    mm = functools.partial(jnp.dot, preferred_element_type=jnp.float32)

    def conv_colpool(lhs, t_ref, b_ref, h_out):
        # lhs: ((h_out+2)*B, K) bf16, rows interleaved as h*B + b.
        # t_ref: (2, 3, K, Wp*10) bf16 -- two Toeplitz sets, one per element of
        # each 2x2-pool column window.  Returns ReLU(conv+bias) already pooled
        # along columns: (h_out*B, Wp*10) f32.
        def half(s):
            a = mm(lhs[0 * B:(h_out + 0) * B, :], t_ref[s, 0])
            a = a + mm(lhs[1 * B:(h_out + 1) * B, :], t_ref[s, 1])
            a = a + mm(lhs[2 * B:(h_out + 2) * B, :], t_ref[s, 2])
            return a
        m = jnp.maximum(half(0), half(1))            # column 2->1 max-pool
        return jnp.maximum(m + b_ref[...], 0.0)      # bias + ReLU

    def row_pool(y, h_in, pad):
        # Row half of the 2x2 max-pool on interleaved rows (row = h*B + b).
        n = y.shape[-1]
        if pad:                                      # clamp-pad border rows
            y = jnp.concatenate([y[:B], y, y[(h_in - 1) * B:]], axis=0)
            h_in += 2
        y = y.reshape(h_in // 2, 2 * B, n)
        y = jnp.maximum(y[:, :B, :], y[:, B:, :])
        return y.reshape((h_in // 2) * B, n)

    x = x_ref[...]                                                    # (50B,150)
    p = row_pool(conv_colpool(x, t1_ref, c1b_ref, 48), 48, 0)         # (24B,240)
    p = row_pool(conv_colpool(p.astype(jnp.bfloat16),
                              t2_ref, c2b_ref, 22), 22, 1)            # (12B,120)
    p = row_pool(conv_colpool(p.astype(jnp.bfloat16),
                              t3_ref, c3b_ref, 10), 10, 1)            # (6B, 60)
    p = p.astype(jnp.bfloat16)

    # fc1 (360->100) + ReLU; CHW-flatten permutation folded into f1w.
    acc = mm(p[0:B, :], f1w_ref[0])
    for h in range(1, 6):
        acc = acc + mm(p[h * B:(h + 1) * B, :], f1w_ref[h])
    h1 = jnp.maximum(acc + f1b_ref[...], 0.0).astype(jnp.bfloat16)    # (B,100)

    # fc2 (100->30) + ReLU, fc3 (30->10, padded to 128 lanes).
    h2 = jnp.maximum(mm(h1, f2w_ref[...]) + f2b_ref[...], 0.0)
    h2 = h2.astype(jnp.bfloat16)                                      # (B, 30)
    o_ref[...] = (mm(h2, f3w_ref[...]) + f3b_ref[...]).astype(o_ref.dtype)


def _const_index_map(nd):
    def imap(g):
        return (0,) * nd
    return imap


def net_best_forward(x_nchw, prep, *, block_b=16):
    """x_nchw: (N, 3, 50, 50) float; prep: output of prepare_params()."""
    N = x_nchw.shape[0]
    B = max(8, (int(block_b) // 8) * 8)       # images per grid step (mult of 8)
    G = -(-N // B)
    Np = G * B

    x = x_nchw.astype(jnp.bfloat16)
    if Np != N:
        x = jnp.pad(x, ((0, Np - N), (0, 0), (0, 0), (0, 0)))
    # NCHW -> lane = w*3 + c; rows batch-interleaved as ((g*50 + h)*B + b).
    x = x.transpose(0, 2, 3, 1).reshape(Np, 50, 150)
    x = x.reshape(G, B, 50, 150).transpose(0, 2, 1, 3).reshape(G * 50 * B, 150)

    in_specs = [pl.BlockSpec((50 * B, 150), lambda g: (g, 0))]
    in_specs += [pl.BlockSpec(prep[k].shape, _const_index_map(prep[k].ndim))
                 for k in _PREP_ORDER]

    out = pl.pallas_call(
        functools.partial(_net_kernel, B=B),
        out_shape=jax.ShapeDtypeStruct((Np, 128), jnp.float32),
        grid=(G,),
        in_specs=in_specs,
        out_specs=pl.BlockSpec((B, 128), lambda g: (g, 0)),
        compiler_params=pltpu.CompilerParams(
            dimension_semantics=("parallel",)),
    )(x, *[prep[k] for k in _PREP_ORDER])
    return out[:N, :10]


# ----------------------------------------------------------------------------
# One-time host-side weight preparation (all layout work hoisted out of the
# forward pass).  MXU operands are stored in bfloat16; biases stay float32.
# ----------------------------------------------------------------------------
def prepare_params(params):
    C = 10

    def split_toeplitz(w, w_in, pool_pad):
        # Two Toeplitz weight sets -- one per element of each 2x2-pool column
        # window.  They act on rows whose lanes are (input_col*Cin + ci) and
        # emit the conv output for their window element at lane
        # (pooled_col*Cout + co).  Border clamping duplicates the edge column,
        # reproducing max with the pool's -inf padding (activations are >= 0).
        w = np.asarray(w, np.float32)
        cout, cin, KH, KW = w.shape
        w_conv = w_in - KW + 1
        wp = (w_conv + 2 * pool_pad - 2) // 2 + 1
        T = np.zeros((2, KH, w_in * cin, wp * cout), np.float32)
        for j in range(wp):
            cols = (min(max(2 * j - pool_pad, 0), w_conv - 1),
                    min(max(2 * j + 1 - pool_pad, 0), w_conv - 1))
            for s, ow in enumerate(cols):
                for kh in range(KH):
                    for kw in range(KW):
                        wi = ow + kw
                        T[s, kh, wi * cin:(wi + 1) * cin,
                          j * cout:(j + 1) * cout] = w[:, :, kh, kw].T
        return T

    def brow(b, rep):
        return np.tile(np.asarray(b, np.float32), rep)[None, :]

    # fc1: PyTorch flattens (10, 6, 6) as c*36 + h*6 + j; the pooled map keeps
    # element (c, h, j) at interleaved row h and lane j*10 + c.
    fc1 = np.asarray(params["fc1_w"], np.float32).reshape(100, C, 6, 6)
    f1w = np.zeros((6, 6 * C, 100), np.float32)
    for h in range(6):
        for j in range(6):
            f1w[h, j * C:(j + 1) * C, :] = fc1[:, :, h, j].T

    f3w = np.zeros((30, 128), np.float32)        # pad classes -> lane-dense out
    f3w[:, :C] = np.asarray(params["fc3_w"], np.float32).T
    f3b = np.zeros((1, 128), np.float32)
    f3b[0, :C] = np.asarray(params["fc3_b"], np.float32)

    bf = functools.partial(jnp.asarray, dtype=jnp.bfloat16)
    f32 = functools.partial(jnp.asarray, dtype=jnp.float32)
    return {
        "t1": bf(split_toeplitz(params["conv1_w"], 50, 0)),   # (2,3,150,240)
        "c1b": f32(brow(params["conv1_b"], 24)),
        "t2": bf(split_toeplitz(params["conv2_w"], 24, 1)),   # (2,3,240,120)
        "c2b": f32(brow(params["conv2_b"], 12)),
        "t3": bf(split_toeplitz(params["conv3_w"], 12, 1)),   # (2,3,120, 60)
        "c3b": f32(brow(params["conv3_b"], 6)),
        "f1w": bf(f1w),
        "f1b": f32(np.asarray(params["fc1_b"], np.float32)[None, :]),
        "f2w": bf(np.asarray(params["fc2_w"], np.float32).T),
        "f2b": f32(np.asarray(params["fc2_b"], np.float32)[None, :]),
        "f3w": bf(f3w),
        "f3b": f32(f3b),
    }


# ----------------------------------------------------------------------------
# Deterministic synthetic parameters (PyTorch-convention shapes).
# ----------------------------------------------------------------------------
def init_params(key):
    ks = jax.random.split(key, 12)

    def w_init(k, shape, fan_in):
        return jax.random.normal(k, shape, jnp.float32) / np.sqrt(fan_in)

    def b_init(k, shape, fan_in):
        return jax.random.uniform(k, shape, jnp.float32, -1.0, 1.0) / np.sqrt(fan_in)

    return {
        "conv1_w": w_init(ks[0], (10, 3, 3, 3), 27),
        "conv1_b": b_init(ks[1], (10,), 27),
        "conv2_w": w_init(ks[2], (10, 10, 3, 3), 90),
        "conv2_b": b_init(ks[3], (10,), 90),
        "conv3_w": w_init(ks[4], (10, 10, 3, 3), 90),
        "conv3_b": b_init(ks[5], (10,), 90),
        "fc1_w": w_init(ks[6], (100, 360), 360),
        "fc1_b": b_init(ks[7], (100,), 360),
        "fc2_w": w_init(ks[8], (30, 100), 100),
        "fc2_b": b_init(ks[9], (30,), 100),
        "fc3_w": w_init(ks[10], (10, 30), 30),
        "fc3_b": b_init(ks[11], (10,), 30),
    }


# ----------------------------------------------------------------------------
# Pure-JAX reference (mirrors the PyTorch forward exactly) for verification.
# ----------------------------------------------------------------------------
def reference_forward(x, params):
    def conv(y, w, b):
        y = lax.conv_general_dilated(y, w, (1, 1), "VALID",
                                     dimension_numbers=("NCHW", "OIHW", "NCHW"),
                                     precision=lax.Precision.HIGHEST)
        return jax.nn.relu(y + b[None, :, None, None])

    def pool(y, pad):
        return lax.reduce_window(y, -jnp.inf, lax.max,
                                 (1, 1, 2, 2), (1, 1, 2, 2),
                                 [(0, 0), (0, 0), (pad, pad), (pad, pad)])

    y = pool(conv(x, params["conv1_w"], params["conv1_b"]), 0)
    y = pool(conv(y, params["conv2_w"], params["conv2_b"]), 1)
    y = pool(conv(y, params["conv3_w"], params["conv3_b"]), 1)
    y = y.reshape(y.shape[0], -1)                               # CHW flatten
    y = jax.nn.relu(y @ params["fc1_w"].T + params["fc1_b"])
    y = jax.nn.relu(y @ params["fc2_w"].T + params["fc2_b"])
    return y @ params["fc3_w"].T + params["fc3_b"]


if __name__ == "__main__":
    key = jax.random.PRNGKey(0)
    params = init_params(key)
    prep = prepare_params(params)        # one-time weight layout work

    # 50x50 spatial is required by the module (view(-1, 6*6*10)).
    x = jax.random.normal(jax.random.fold_in(key, 123), (2, 3, 50, 50),
                          dtype=jnp.float32)

    out = jax.block_until_ready(net_best_forward(x, prep))
    assert out.shape == (2, 10), out.shape

    with jax.default_matmul_precision("highest"):
        ref = jax.block_until_ready(reference_forward(x, params))

    # bf16 MXU operands with f32 accumulation vs. an f32 HIGHEST reference.
    np.testing.assert_allclose(np.asarray(out), np.asarray(ref),
                               rtol=5e-2, atol=5e-2)
    print("KERNEL_OK")
</pallas_src>

<mosaic_0001>
module attributes {stable_mosaic.version = 11 : i64} {
  func.func @_net_kernel(%arg0: i32, %arg1: memref<800x150xbf16, #tpu.memory_space<vmem>>, %arg2: memref<2x3x150x240xbf16, #tpu.memory_space<vmem>>, %arg3: memref<1x240xf32, #tpu.memory_space<vmem>>, %arg4: memref<2x3x240x120xbf16, #tpu.memory_space<vmem>>, %arg5: memref<1x120xf32, #tpu.memory_space<vmem>>, %arg6: memref<2x3x120x60xbf16, #tpu.memory_space<vmem>>, %arg7: memref<1x60xf32, #tpu.memory_space<vmem>>, %arg8: memref<6x60x100xbf16, #tpu.memory_space<vmem>>, %arg9: memref<1x100xf32, #tpu.memory_space<vmem>>, %arg10: memref<100x30xbf16, #tpu.memory_space<vmem>>, %arg11: memref<1x30xf32, #tpu.memory_space<vmem>>, %arg12: memref<30x128xbf16, #tpu.memory_space<vmem>>, %arg13: memref<1x128xf32, #tpu.memory_space<vmem>>, %arg14: memref<16x128xf32, #tpu.memory_space<vmem>>) attributes {dimension_semantics = [#tpu.dimension_semantics<parallel>], iteration_bounds = array<i64: 1>, scalar_prefetch = 0 : i64, scratch_operands = 0 : i64, tpu.core_type = #tpu.core_type<tc>, window_params = [{transform_indices = @transform_0, window_bounds = array<i64: 800, 150>}, {pipeline_mode = #tpu.pipeline_mode<synchronous>, transform_indices = @transform_1, window_bounds = array<i64: 2, 3, 150, 240>}, {pipeline_mode = #tpu.pipeline_mode<synchronous>, transform_indices = @transform_2, window_bounds = array<i64: 1, 240>}, {pipeline_mode = #tpu.pipeline_mode<synchronous>, transform_indices = @transform_3, window_bounds = array<i64: 2, 3, 240, 120>}, {pipeline_mode = #tpu.pipeline_mode<synchronous>, transform_indices = @transform_4, window_bounds = array<i64: 1, 120>}, {pipeline_mode = #tpu.pipeline_mode<synchronous>, transform_indices = @transform_5, window_bounds = array<i64: 2, 3, 120, 60>}, {pipeline_mode = #tpu.pipeline_mode<synchronous>, transform_indices = @transform_6, window_bounds = array<i64: 1, 60>}, {pipeline_mode = #tpu.pipeline_mode<synchronous>, transform_indices = @transform_7, window_bounds = array<i64: 6, 60, 100>}, {pipeline_mode = #tpu.pipeline_mode<synchronous>, transform_indices = @transform_8, window_bounds = array<i64: 1, 100>}, {pipeline_mode = #tpu.pipeline_mode<synchronous>, transform_indices = @transform_9, window_bounds = array<i64: 100, 30>}, {pipeline_mode = #tpu.pipeline_mode<synchronous>, transform_indices = @transform_10, window_bounds = array<i64: 1, 30>}, {pipeline_mode = #tpu.pipeline_mode<synchronous>, transform_indices = @transform_11, window_bounds = array<i64: 30, 128>}, {pipeline_mode = #tpu.pipeline_mode<synchronous>, transform_indices = @transform_12, window_bounds = array<i64: 1, 128>}, {transform_indices = @transform_13, window_bounds = array<i64: 16, 128>}]} {
    %c0 = arith.constant 0 : index
    %c0_0 = arith.constant 0 : index
    %0 = vector.load %arg1[%c0, %c0_0] : memref<800x150xbf16, #tpu.memory_space<vmem>>, vector<800x150xbf16>
    %1 = vector.extract_strided_slice %0 {offsets = [0, 0], sizes = [768, 150], strides = [1, 1]} : vector<800x150xbf16> to vector<768x150xbf16>
    %c0_1 = arith.constant 0 : index
    %c0_2 = arith.constant 0 : index
    %c0_3 = arith.constant 0 : index
    %c0_4 = arith.constant 0 : index
    %2 = vector.load %arg2[%c0_1, %c0_2, %c0_3, %c0_4] : memref<2x3x150x240xbf16, #tpu.memory_space<vmem>>, vector<1x1x150x240xbf16>
    %3 = vector.shape_cast %2 : vector<1x1x150x240xbf16> to vector<150x240xbf16>
    %cst = arith.constant dense<0.000000e+00> : vector<768x240xf32>
    %4 = tpu.matmul %1, %3, %cst {dimension_numbers = #tpu.dot_dimension_numbers<[1], [0], [0], [1], [0, 0, 1, 1], [], []>} : vector<768x150xbf16>, vector<150x240xbf16>, vector<768x240xf32> -> vector<768x240xf32>
    %5 = vector.extract_strided_slice %0 {offsets = [16, 0], sizes = [768, 150], strides = [1, 1]} : vector<800x150xbf16> to vector<768x150xbf16>
    %c0_5 = arith.constant 0 : index
    %c1 = arith.constant 1 : index
    %c0_6 = arith.constant 0 : index
    %c0_7 = arith.constant 0 : index
    %6 = vector.load %arg2[%c0_5, %c1, %c0_6, %c0_7] : memref<2x3x150x240xbf16, #tpu.memory_space<vmem>>, vector<1x1x150x240xbf16>
    %7 = vector.shape_cast %6 : vector<1x1x150x240xbf16> to vector<150x240xbf16>
    %cst_8 = arith.constant dense<0.000000e+00> : vector<768x240xf32>
    %8 = tpu.matmul %5, %7, %cst_8 {dimension_numbers = #tpu.dot_dimension_numbers<[1], [0], [0], [1], [0, 0, 1, 1], [], []>} : vector<768x150xbf16>, vector<150x240xbf16>, vector<768x240xf32> -> vector<768x240xf32>
    %9 = arith.addf %4, %8 : vector<768x240xf32>
    %10 = vector.extract_strided_slice %0 {offsets = [32, 0], sizes = [768, 150], strides = [1, 1]} : vector<800x150xbf16> to vector<768x150xbf16>
    %c0_9 = arith.constant 0 : index
    %c2 = arith.constant 2 : index
    %c0_10 = arith.constant 0 : index
    %c0_11 = arith.constant 0 : index
    %11 = vector.load %arg2[%c0_9, %c2, %c0_10, %c0_11] : memref<2x3x150x240xbf16, #tpu.memory_space<vmem>>, vector<1x1x150x240xbf16>
    %12 = vector.shape_cast %11 : vector<1x1x150x240xbf16> to vector<150x240xbf16>
    %cst_12 = arith.constant dense<0.000000e+00> : vector<768x240xf32>
    %13 = tpu.matmul %10, %12, %cst_12 {dimension_numbers = #tpu.dot_dimension_numbers<[1], [0], [0], [1], [0, 0, 1, 1], [], []>} : vector<768x150xbf16>, vector<150x240xbf16>, vector<768x240xf32> -> vector<768x240xf32>
    %14 = arith.addf %9, %13 : vector<768x240xf32>
    %15 = vector.extract_strided_slice %0 {offsets = [0, 0], sizes = [768, 150], strides = [1, 1]} : vector<800x150xbf16> to vector<768x150xbf16>
    %c1_13 = arith.constant 1 : index
    %c0_14 = arith.constant 0 : index
    %c0_15 = arith.constant 0 : index
    %c0_16 = arith.constant 0 : index
    %16 = vector.load %arg2[%c1_13, %c0_14, %c0_15, %c0_16] : memref<2x3x150x240xbf16, #tpu.memory_space<vmem>>, vector<1x1x150x240xbf16>
    %17 = vector.shape_cast %16 : vector<1x1x150x240xbf16> to vector<150x240xbf16>
    %cst_17 = arith.constant dense<0.000000e+00> : vector<768x240xf32>
    %18 = tpu.matmul %15, %17, %cst_17 {dimension_numbers = #tpu.dot_dimension_numbers<[1], [0], [0], [1], [0, 0, 1, 1], [], []>} : vector<768x150xbf16>, vector<150x240xbf16>, vector<768x240xf32> -> vector<768x240xf32>
    %19 = vector.extract_strided_slice %0 {offsets = [16, 0], sizes = [768, 150], strides = [1, 1]} : vector<800x150xbf16> to vector<768x150xbf16>
    %c1_18 = arith.constant 1 : index
    %c1_19 = arith.constant 1 : index
    %c0_20 = arith.constant 0 : index
    %c0_21 = arith.constant 0 : index
    %20 = vector.load %arg2[%c1_18, %c1_19, %c0_20, %c0_21] : memref<2x3x150x240xbf16, #tpu.memory_space<vmem>>, vector<1x1x150x240xbf16>
    %21 = vector.shape_cast %20 : vector<1x1x150x240xbf16> to vector<150x240xbf16>
    %cst_22 = arith.constant dense<0.000000e+00> : vector<768x240xf32>
    %22 = tpu.matmul %19, %21, %cst_22 {dimension_numbers = #tpu.dot_dimension_numbers<[1], [0], [0], [1], [0, 0, 1, 1], [], []>} : vector<768x150xbf16>, vector<150x240xbf16>, vector<768x240xf32> -> vector<768x240xf32>
    %23 = arith.addf %18, %22 : vector<768x240xf32>
    %24 = vector.extract_strided_slice %0 {offsets = [32, 0], sizes = [768, 150], strides = [1, 1]} : vector<800x150xbf16> to vector<768x150xbf16>
    %c1_23 = arith.constant 1 : index
    %c2_24 = arith.constant 2 : index
    %c0_25 = arith.constant 0 : index
    %c0_26 = arith.constant 0 : index
    %25 = vector.load %arg2[%c1_23, %c2_24, %c0_25, %c0_26] : memref<2x3x150x240xbf16, #tpu.memory_space<vmem>>, vector<1x1x150x240xbf16>
    %26 = vector.shape_cast %25 : vector<1x1x150x240xbf16> to vector<150x240xbf16>
    %cst_27 = arith.constant dense<0.000000e+00> : vector<768x240xf32>
    %27 = tpu.matmul %24, %26, %cst_27 {dimension_numbers = #tpu.dot_dimension_numbers<[1], [0], [0], [1], [0, 0, 1, 1], [], []>} : vector<768x150xbf16>, vector<150x240xbf16>, vector<768x240xf32> -> vector<768x240xf32>
    %28 = arith.addf %23, %27 : vector<768x240xf32>
    %29 = arith.maximumf %14, %28 : vector<768x240xf32>
    %c0_28 = arith.constant 0 : index
    %c0_29 = arith.constant 0 : index
    %30 = vector.load %arg3[%c0_28, %c0_29] : memref<1x240xf32, #tpu.memory_space<vmem>>, vector<1x240xf32>
    %31 = vector.broadcast %30 : vector<1x240xf32> to vector<768x240xf32>
    %32 = arith.addf %29, %31 : vector<768x240xf32>
    %cst_30 = arith.constant 0.000000e+00 : f32
    %33 = vector.broadcast %cst_30 : f32 to vector<768x240xf32>
    %34 = arith.maximumf %32, %33 : vector<768x240xf32>
    %35 = vector.shape_cast %34 : vector<768x240xf32> to vector<24x32x240xf32>
    %36 = vector.extract_strided_slice %35 {offsets = [0, 0, 0], sizes = [24, 16, 240], strides = [1, 1, 1]} : vector<24x32x240xf32> to vector<24x16x240xf32>
    %37 = vector.extract_strided_slice %35 {offsets = [0, 16, 0], sizes = [24, 16, 240], strides = [1, 1, 1]} : vector<24x32x240xf32> to vector<24x16x240xf32>
    %38 = arith.maximumf %36, %37 : vector<24x16x240xf32>
    %39 = vector.shape_cast %38 : vector<24x16x240xf32> to vector<384x240xf32>
    %40 = arith.truncf %39 : vector<384x240xf32> to vector<384x240xbf16>
    %41 = vector.extract_strided_slice %40 {offsets = [0, 0], sizes = [352, 240], strides = [1, 1]} : vector<384x240xbf16> to vector<352x240xbf16>
    %c0_31 = arith.constant 0 : index
    %c0_32 = arith.constant 0 : index
    %c0_33 = arith.constant 0 : index
    %c0_34 = arith.constant 0 : index
    %42 = vector.load %arg4[%c0_31, %c0_32, %c0_33, %c0_34] : memref<2x3x240x120xbf16, #tpu.memory_space<vmem>>, vector<1x1x240x120xbf16>
    %43 = vector.shape_cast %42 : vector<1x1x240x120xbf16> to vector<240x120xbf16>
    %cst_35 = arith.constant dense<0.000000e+00> : vector<352x120xf32>
    %44 = tpu.matmul %41, %43, %cst_35 {dimension_numbers = #tpu.dot_dimension_numbers<[1], [0], [0], [1], [0, 0, 1, 1], [], []>} : vector<352x240xbf16>, vector<240x120xbf16>, vector<352x120xf32> -> vector<352x120xf32>
    %45 = vector.extract_strided_slice %40 {offsets = [16, 0], sizes = [352, 240], strides = [1, 1]} : vector<384x240xbf16> to vector<352x240xbf16>
    %c0_36 = arith.constant 0 : index
    %c1_37 = arith.constant 1 : index
    %c0_38 = arith.constant 0 : index
    %c0_39 = arith.constant 0 : index
    %46 = vector.load %arg4[%c0_36, %c1_37, %c0_38, %c0_39] : memref<2x3x240x120xbf16, #tpu.memory_space<vmem>>, vector<1x1x240x120xbf16>
    %47 = vector.shape_cast %46 : vector<1x1x240x120xbf16> to vector<240x120xbf16>
    %cst_40 = arith.constant dense<0.000000e+00> : vector<352x120xf32>
    %48 = tpu.matmul %45, %47, %cst_40 {dimension_numbers = #tpu.dot_dimension_numbers<[1], [0], [0], [1], [0, 0, 1, 1], [], []>} : vector<352x240xbf16>, vector<240x120xbf16>, vector<352x120xf32> -> vector<352x120xf32>
    %49 = arith.addf %44, %48 : vector<352x120xf32>
    %50 = vector.extract_strided_slice %40 {offsets = [32, 0], sizes = [352, 240], strides = [1, 1]} : vector<384x240xbf16> to vector<352x240xbf16>
    %c0_41 = arith.constant 0 : index
    %c2_42 = arith.constant 2 : index
    %c0_43 = arith.constant 0 : index
    %c0_44 = arith.constant 0 : index
    %51 = vector.load %arg4[%c0_41, %c2_42, %c0_43, %c0_44] : memref<2x3x240x120xbf16, #tpu.memory_space<vmem>>, vector<1x1x240x120xbf16>
    %52 = vector.shape_cast %51 : vector<1x1x240x120xbf16> to vector<240x120xbf16>
    %cst_45 = arith.constant dense<0.000000e+00> : vector<352x120xf32>
    %53 = tpu.matmul %50, %52, %cst_45 {dimension_numbers = #tpu.dot_dimension_numbers<[1], [0], [0], [1], [0, 0, 1, 1], [], []>} : vector<352x240xbf16>, vector<240x120xbf16>, vector<352x120xf32> -> vector<352x120xf32>
    %54 = arith.addf %49, %53 : vector<352x120xf32>
    %55 = vector.extract_strided_slice %40 {offsets = [0, 0], sizes = [352, 240], strides = [1, 1]} : vector<384x240xbf16> to vector<352x240xbf16>
    %c1_46 = arith.constant 1 : index
    %c0_47 = arith.constant 0 : index
    %c0_48 = arith.constant 0 : index
    %c0_49 = arith.constant 0 : index
    %56 = vector.load %arg4[%c1_46, %c0_47, %c0_48, %c0_49] : memref<2x3x240x120xbf16, #tpu.memory_space<vmem>>, vector<1x1x240x120xbf16>
    %57 = vector.shape_cast %56 : vector<1x1x240x120xbf16> to vector<240x120xbf16>
    %cst_50 = arith.constant dense<0.000000e+00> : vector<352x120xf32>
    %58 = tpu.matmul %55, %57, %cst_50 {dimension_numbers = #tpu.dot_dimension_numbers<[1], [0], [0], [1], [0, 0, 1, 1], [], []>} : vector<352x240xbf16>, vector<240x120xbf16>, vector<352x120xf32> -> vector<352x120xf32>
    %59 = vector.extract_strided_slice %40 {offsets = [16, 0], sizes = [352, 240], strides = [1, 1]} : vector<384x240xbf16> to vector<352x240xbf16>
    %c1_51 = arith.constant 1 : index
    %c1_52 = arith.constant 1 : index
    %c0_53 = arith.constant 0 : index
    %c0_54 = arith.constant 0 : index
    %60 = vector.load %arg4[%c1_51, %c1_52, %c0_53, %c0_54] : memref<2x3x240x120xbf16, #tpu.memory_space<vmem>>, vector<1x1x240x120xbf16>
    %61 = vector.shape_cast %60 : vector<1x1x240x120xbf16> to vector<240x120xbf16>
    %cst_55 = arith.constant dense<0.000000e+00> : vector<352x120xf32>
    %62 = tpu.matmul %59, %61, %cst_55 {dimension_numbers = #tpu.dot_dimension_numbers<[1], [0], [0], [1], [0, 0, 1, 1], [], []>} : vector<352x240xbf16>, vector<240x120xbf16>, vector<352x120xf32> -> vector<352x120xf32>
    %63 = arith.addf %58, %62 : vector<352x120xf32>
    %64 = vector.extract_strided_slice %40 {offsets = [32, 0], sizes = [352, 240], strides = [1, 1]} : vector<384x240xbf16> to vector<352x240xbf16>
    %c1_56 = arith.constant 1 : index
    %c2_57 = arith.constant 2 : index
    %c0_58 = arith.constant 0 : index
    %c0_59 = arith.constant 0 : index
    %65 = vector.load %arg4[%c1_56, %c2_57, %c0_58, %c0_59] : memref<2x3x240x120xbf16, #tpu.memory_space<vmem>>, vector<1x1x240x120xbf16>
    %66 = vector.shape_cast %65 : vector<1x1x240x120xbf16> to vector<240x120xbf16>
    %cst_60 = arith.constant dense<0.000000e+00> : vector<352x120xf32>
    %67 = tpu.matmul %64, %66, %cst_60 {dimension_numbers = #tpu.dot_dimension_numbers<[1], [0], [0], [1], [0, 0, 1, 1], [], []>} : vector<352x240xbf16>, vector<240x120xbf16>, vector<352x120xf32> -> vector<352x120xf32>
    %68 = arith.addf %63, %67 : vector<352x120xf32>
    %69 = arith.maximumf %54, %68 : vector<352x120xf32>
    %c0_61 = arith.constant 0 : index
    %c0_62 = arith.constant 0 : index
    %70 = vector.load %arg5[%c0_61, %c0_62] : memref<1x120xf32, #tpu.memory_space<vmem>>, vector<1x120xf32>
    %71 = vector.broadcast %70 : vector<1x120xf32> to vector<352x120xf32>
    %72 = arith.addf %69, %71 : vector<352x120xf32>
    %cst_63 = arith.constant 0.000000e+00 : f32
    %73 = vector.broadcast %cst_63 : f32 to vector<352x120xf32>
    %74 = arith.maximumf %72, %73 : vector<352x120xf32>
    %75 = vector.extract_strided_slice %74 {offsets = [0, 0], sizes = [16, 120], strides = [1, 1]} : vector<352x120xf32> to vector<16x120xf32>
    %76 = vector.extract_strided_slice %74 {offsets = [336, 0], sizes = [16, 120], strides = [1, 1]} : vector<352x120xf32> to vector<16x120xf32>
    %77 = tpu.concatenate %75, %74, %76 in 0 : vector<16x120xf32>, vector<352x120xf32>, vector<16x120xf32> -> vector<384x120xf32>
    %78 = vector.shape_cast %77 : vector<384x120xf32> to vector<12x32x120xf32>
    %79 = vector.extract_strided_slice %78 {offsets = [0, 0, 0], sizes = [12, 16, 120], strides = [1, 1, 1]} : vector<12x32x120xf32> to vector<12x16x120xf32>
    %80 = vector.extract_strided_slice %78 {offsets = [0, 16, 0], sizes = [12, 16, 120], strides = [1, 1, 1]} : vector<12x32x120xf32> to vector<12x16x120xf32>
    %81 = arith.maximumf %79, %80 : vector<12x16x120xf32>
    %82 = vector.shape_cast %81 : vector<12x16x120xf32> to vector<192x120xf32>
    %83 = arith.truncf %82 : vector<192x120xf32> to vector<192x120xbf16>
    %84 = vector.extract_strided_slice %83 {offsets = [0, 0], sizes = [160, 120], strides = [1, 1]} : vector<192x120xbf16> to vector<160x120xbf16>
    %c0_64 = arith.constant 0 : index
    %c0_65 = arith.constant 0 : index
    %c0_66 = arith.constant 0 : index
    %c0_67 = arith.constant 0 : index
    %85 = vector.load %arg6[%c0_64, %c0_65, %c0_66, %c0_67] : memref<2x3x120x60xbf16, #tpu.memory_space<vmem>>, vector<1x1x120x60xbf16>
    %86 = vector.shape_cast %85 : vector<1x1x120x60xbf16> to vector<120x60xbf16>
    %cst_68 = arith.constant dense<0.000000e+00> : vector<160x60xf32>
    %87 = tpu.matmul %84, %86, %cst_68 {dimension_numbers = #tpu.dot_dimension_numbers<[1], [0], [0], [1], [0, 0, 1, 1], [], []>} : vector<160x120xbf16>, vector<120x60xbf16>, vector<160x60xf32> -> vector<160x60xf32>
    %88 = vector.extract_strided_slice %83 {offsets = [16, 0], sizes = [160, 120], strides = [1, 1]} : vector<192x120xbf16> to vector<160x120xbf16>
    %c0_69 = arith.constant 0 : index
    %c1_70 = arith.constant 1 : index
    %c0_71 = arith.constant 0 : index
    %c0_72 = arith.constant 0 : index
    %89 = vector.load %arg6[%c0_69, %c1_70, %c0_71, %c0_72] : memref<2x3x120x60xbf16, #tpu.memory_space<vmem>>, vector<1x1x120x60xbf16>
    %90 = vector.shape_cast %89 : vector<1x1x120x60xbf16> to vector<120x60xbf16>
    %cst_73 = arith.constant dense<0.000000e+00> : vector<160x60xf32>
    %91 = tpu.matmul %88, %90, %cst_73 {dimension_numbers = #tpu.dot_dimension_numbers<[1], [0], [0], [1], [0, 0, 1, 1], [], []>} : vector<160x120xbf16>, vector<120x60xbf16>, vector<160x60xf32> -> vector<160x60xf32>
    %92 = arith.addf %87, %91 : vector<160x60xf32>
    %93 = vector.extract_strided_slice %83 {offsets = [32, 0], sizes = [160, 120], strides = [1, 1]} : vector<192x120xbf16> to vector<160x120xbf16>
    %c0_74 = arith.constant 0 : index
    %c2_75 = arith.constant 2 : index
    %c0_76 = arith.constant 0 : index
    %c0_77 = arith.constant 0 : index
    %94 = vector.load %arg6[%c0_74, %c2_75, %c0_76, %c0_77] : memref<2x3x120x60xbf16, #tpu.memory_space<vmem>>, vector<1x1x120x60xbf16>
    %95 = vector.shape_cast %94 : vector<1x1x120x60xbf16> to vector<120x60xbf16>
    %cst_78 = arith.constant dense<0.000000e+00> : vector<160x60xf32>
    %96 = tpu.matmul %93, %95, %cst_78 {dimension_numbers = #tpu.dot_dimension_numbers<[1], [0], [0], [1], [0, 0, 1, 1], [], []>} : vector<160x120xbf16>, vector<120x60xbf16>, vector<160x60xf32> -> vector<160x60xf32>
    %97 = arith.addf %92, %96 : vector<160x60xf32>
    %98 = vector.extract_strided_slice %83 {offsets = [0, 0], sizes = [160, 120], strides = [1, 1]} : vector<192x120xbf16> to vector<160x120xbf16>
    %c1_79 = arith.constant 1 : index
    %c0_80 = arith.constant 0 : index
    %c0_81 = arith.constant 0 : index
    %c0_82 = arith.constant 0 : index
    %99 = vector.load %arg6[%c1_79, %c0_80, %c0_81, %c0_82] : memref<2x3x120x60xbf16, #tpu.memory_space<vmem>>, vector<1x1x120x60xbf16>
    %100 = vector.shape_cast %99 : vector<1x1x120x60xbf16> to vector<120x60xbf16>
    %cst_83 = arith.constant dense<0.000000e+00> : vector<160x60xf32>
    %101 = tpu.matmul %98, %100, %cst_83 {dimension_numbers = #tpu.dot_dimension_numbers<[1], [0], [0], [1], [0, 0, 1, 1], [], []>} : vector<160x120xbf16>, vector<120x60xbf16>, vector<160x60xf32> -> vector<160x60xf32>
    %102 = vector.extract_strided_slice %83 {offsets = [16, 0], sizes = [160, 120], strides = [1, 1]} : vector<192x120xbf16> to vector<160x120xbf16>
    %c1_84 = arith.constant 1 : index
    %c1_85 = arith.constant 1 : index
    %c0_86 = arith.constant 0 : index
    %c0_87 = arith.constant 0 : index
    %103 = vector.load %arg6[%c1_84, %c1_85, %c0_86, %c0_87] : memref<2x3x120x60xbf16, #tpu.memory_space<vmem>>, vector<1x1x120x60xbf16>
    %104 = vector.shape_cast %103 : vector<1x1x120x60xbf16> to vector<120x60xbf16>
    %cst_88 = arith.constant dense<0.000000e+00> : vector<160x60xf32>
    %105 = tpu.matmul %102, %104, %cst_88 {dimension_numbers = #tpu.dot_dimension_numbers<[1], [0], [0], [1], [0, 0, 1, 1], [], []>} : vector<160x120xbf16>, vector<120x60xbf16>, vector<160x60xf32> -> vector<160x60xf32>
    %106 = arith.addf %101, %105 : vector<160x60xf32>
    %107 = vector.extract_strided_slice %83 {offsets = [32, 0], sizes = [160, 120], strides = [1, 1]} : vector<192x120xbf16> to vector<160x120xbf16>
    %c1_89 = arith.constant 1 : index
    %c2_90 = arith.constant 2 : index
    %c0_91 = arith.constant 0 : index
    %c0_92 = arith.constant 0 : index
    %108 = vector.load %arg6[%c1_89, %c2_90, %c0_91, %c0_92] : memref<2x3x120x60xbf16, #tpu.memory_space<vmem>>, vector<1x1x120x60xbf16>
    %109 = vector.shape_cast %108 : vector<1x1x120x60xbf16> to vector<120x60xbf16>
    %cst_93 = arith.constant dense<0.000000e+00> : vector<160x60xf32>
    %110 = tpu.matmul %107, %109, %cst_93 {dimension_numbers = #tpu.dot_dimension_numbers<[1], [0], [0], [1], [0, 0, 1, 1], [], []>} : vector<160x120xbf16>, vector<120x60xbf16>, vector<160x60xf32> -> vector<160x60xf32>
    %111 = arith.addf %106, %110 : vector<160x60xf32>
    %112 = arith.maximumf %97, %111 : vector<160x60xf32>
    %c0_94 = arith.constant 0 : index
    %c0_95 = arith.constant 0 : index
    %113 = vector.load %arg7[%c0_94, %c0_95] : memref<1x60xf32, #tpu.memory_space<vmem>>, vector<1x60xf32>
    %114 = vector.broadcast %113 : vector<1x60xf32> to vector<160x60xf32>
    %115 = arith.addf %112, %114 : vector<160x60xf32>
    %cst_96 = arith.constant 0.000000e+00 : f32
    %116 = vector.broadcast %cst_96 : f32 to vector<160x60xf32>
    %117 = arith.maximumf %115, %116 : vector<160x60xf32>
    %118 = vector.extract_strided_slice %117 {offsets = [0, 0], sizes = [16, 60], strides = [1, 1]} : vector<160x60xf32> to vector<16x60xf32>
    %119 = vector.extract_strided_slice %117 {offsets = [144, 0], sizes = [16, 60], strides = [1, 1]} : vector<160x60xf32> to vector<16x60xf32>
    %120 = tpu.concatenate %118, %117, %119 in 0 : vector<16x60xf32>, vector<160x60xf32>, vector<16x60xf32> -> vector<192x60xf32>
    %121 = vector.shape_cast %120 : vector<192x60xf32> to vector<6x32x60xf32>
    %122 = vector.extract_strided_slice %121 {offsets = [0, 0, 0], sizes = [6, 16, 60], strides = [1, 1, 1]} : vector<6x32x60xf32> to vector<6x16x60xf32>
    %123 = vector.extract_strided_slice %121 {offsets = [0, 16, 0], sizes = [6, 16, 60], strides = [1, 1, 1]} : vector<6x32x60xf32> to vector<6x16x60xf32>
    %124 = arith.maximumf %122, %123 : vector<6x16x60xf32>
    %125 = vector.shape_cast %124 : vector<6x16x60xf32> to vector<96x60xf32>
    %126 = arith.truncf %125 : vector<96x60xf32> to vector<96x60xbf16>
    %127 = vector.extract_strided_slice %126 {offsets = [0, 0], sizes = [16, 60], strides = [1, 1]} : vector<96x60xbf16> to vector<16x60xbf16>
    %c0_97 = arith.constant 0 : index
    %c0_98 = arith.constant 0 : index
    %c0_99 = arith.constant 0 : index
    %128 = vector.load %arg8[%c0_97, %c0_98, %c0_99] : memref<6x60x100xbf16, #tpu.memory_space<vmem>>, vector<1x60x100xbf16>
    %129 = vector.shape_cast %128 : vector<1x60x100xbf16> to vector<60x100xbf16>
    %cst_100 = arith.constant dense<0.000000e+00> : vector<16x100xf32>
    %130 = tpu.matmul %127, %129, %cst_100 {dimension_numbers = #tpu.dot_dimension_numbers<[1], [0], [0], [1], [0, 0, 1, 1], [], []>} : vector<16x60xbf16>, vector<60x100xbf16>, vector<16x100xf32> -> vector<16x100xf32>
    %131 = vector.extract_strided_slice %126 {offsets = [16, 0], sizes = [16, 60], strides = [1, 1]} : vector<96x60xbf16> to vector<16x60xbf16>
    %c1_101 = arith.constant 1 : index
    %c0_102 = arith.constant 0 : index
    %c0_103 = arith.constant 0 : index
    %132 = vector.load %arg8[%c1_101, %c0_102, %c0_103] : memref<6x60x100xbf16, #tpu.memory_space<vmem>>, vector<1x60x100xbf16>
    %133 = vector.shape_cast %132 : vector<1x60x100xbf16> to vector<60x100xbf16>
    %cst_104 = arith.constant dense<0.000000e+00> : vector<16x100xf32>
    %134 = tpu.matmul %131, %133, %cst_104 {dimension_numbers = #tpu.dot_dimension_numbers<[1], [0], [0], [1], [0, 0, 1, 1], [], []>} : vector<16x60xbf16>, vector<60x100xbf16>, vector<16x100xf32> -> vector<16x100xf32>
    %135 = arith.addf %130, %134 : vector<16x100xf32>
    %136 = vector.extract_strided_slice %126 {offsets = [32, 0], sizes = [16, 60], strides = [1, 1]} : vector<96x60xbf16> to vector<16x60xbf16>
    %c2_105 = arith.constant 2 : index
    %c0_106 = arith.constant 0 : index
    %c0_107 = arith.constant 0 : index
    %137 = vector.load %arg8[%c2_105, %c0_106, %c0_107] : memref<6x60x100xbf16, #tpu.memory_space<vmem>>, vector<1x60x100xbf16>
    %138 = vector.shape_cast %137 : vector<1x60x100xbf16> to vector<60x100xbf16>
    %cst_108 = arith.constant dense<0.000000e+00> : vector<16x100xf32>
    %139 = tpu.matmul %136, %138, %cst_108 {dimension_numbers = #tpu.dot_dimension_numbers<[1], [0], [0], [1], [0, 0, 1, 1], [], []>} : vector<16x60xbf16>, vector<60x100xbf16>, vector<16x100xf32> -> vector<16x100xf32>
    %140 = arith.addf %135, %139 : vector<16x100xf32>
    %141 = vector.extract_strided_slice %126 {offsets = [48, 0], sizes = [16, 60], strides = [1, 1]} : vector<96x60xbf16> to vector<16x60xbf16>
    %c3 = arith.constant 3 : index
    %c0_109 = arith.constant 0 : index
    %c0_110 = arith.constant 0 : index
    %142 = vector.load %arg8[%c3, %c0_109, %c0_110] : memref<6x60x100xbf16, #tpu.memory_space<vmem>>, vector<1x60x100xbf16>
    %143 = vector.shape_cast %142 : vector<1x60x100xbf16> to vector<60x100xbf16>
    %cst_111 = arith.constant dense<0.000000e+00> : vector<16x100xf32>
    %144 = tpu.matmul %141, %143, %cst_111 {dimension_numbers = #tpu.dot_dimension_numbers<[1], [0], [0], [1], [0, 0, 1, 1], [], []>} : vector<16x60xbf16>, vector<60x100xbf16>, vector<16x100xf32> -> vector<16x100xf32>
    %145 = arith.addf %140, %144 : vector<16x100xf32>
    %146 = vector.extract_strided_slice %126 {offsets = [64, 0], sizes = [16, 60], strides = [1, 1]} : vector<96x60xbf16> to vector<16x60xbf16>
    %c4 = arith.constant 4 : index
    %c0_112 = arith.constant 0 : index
    %c0_113 = arith.constant 0 : index
    %147 = vector.load %arg8[%c4, %c0_112, %c0_113] : memref<6x60x100xbf16, #tpu.memory_space<vmem>>, vector<1x60x100xbf16>
    %148 = vector.shape_cast %147 : vector<1x60x100xbf16> to vector<60x100xbf16>
    %cst_114 = arith.constant dense<0.000000e+00> : vector<16x100xf32>
    %149 = tpu.matmul %146, %148, %cst_114 {dimension_numbers = #tpu.dot_dimension_numbers<[1], [0], [0], [1], [0, 0, 1, 1], [], []>} : vector<16x60xbf16>, vector<60x100xbf16>, vector<16x100xf32> -> vector<16x100xf32>
    %150 = arith.addf %145, %149 : vector<16x100xf32>
    %151 = vector.extract_strided_slice %126 {offsets = [80, 0], sizes = [16, 60], strides = [1, 1]} : vector<96x60xbf16> to vector<16x60xbf16>
    %c5 = arith.constant 5 : index
    %c0_115 = arith.constant 0 : index
    %c0_116 = arith.constant 0 : index
    %152 = vector.load %arg8[%c5, %c0_115, %c0_116] : memref<6x60x100xbf16, #tpu.memory_space<vmem>>, vector<1x60x100xbf16>
    %153 = vector.shape_cast %152 : vector<1x60x100xbf16> to vector<60x100xbf16>
    %cst_117 = arith.constant dense<0.000000e+00> : vector<16x100xf32>
    %154 = tpu.matmul %151, %153, %cst_117 {dimension_numbers = #tpu.dot_dimension_numbers<[1], [0], [0], [1], [0, 0, 1, 1], [], []>} : vector<16x60xbf16>, vector<60x100xbf16>, vector<16x100xf32> -> vector<16x100xf32>
    %155 = arith.addf %150, %154 : vector<16x100xf32>
    %c0_118 = arith.constant 0 : index
    %c0_119 = arith.constant 0 : index
    %156 = vector.load %arg9[%c0_118, %c0_119] : memref<1x100xf32, #tpu.memory_space<vmem>>, vector<1x100xf32>
    %157 = vector.broadcast %156 : vector<1x100xf32> to vector<16x100xf32>
    %158 = arith.addf %155, %157 : vector<16x100xf32>
    %cst_120 = arith.constant 0.000000e+00 : f32
    %159 = vector.broadcast %cst_120 : f32 to vector<16x100xf32>
    %160 = arith.maximumf %158, %159 : vector<16x100xf32>
    %161 = arith.truncf %160 : vector<16x100xf32> to vector<16x100xbf16>
    %c0_121 = arith.constant 0 : index
    %c0_122 = arith.constant 0 : index
    %162 = vector.load %arg10[%c0_121, %c0_122] : memref<100x30xbf16, #tpu.memory_space<vmem>>, vector<100x30xbf16>
    %cst_123 = arith.constant dense<0.000000e+00> : vector<16x30xf32>
    %163 = tpu.matmul %161, %162, %cst_123 {dimension_numbers = #tpu.dot_dimension_numbers<[1], [0], [0], [1], [0, 0, 1, 1], [], []>} : vector<16x100xbf16>, vector<100x30xbf16>, vector<16x30xf32> -> vector<16x30xf32>
    %c0_124 = arith.constant 0 : index
    %c0_125 = arith.constant 0 : index
    %164 = vector.load %arg11[%c0_124, %c0_125] : memref<1x30xf32, #tpu.memory_space<vmem>>, vector<1x30xf32>
    %165 = vector.broadcast %164 : vector<1x30xf32> to vector<16x30xf32>
    %166 = arith.addf %163, %165 : vector<16x30xf32>
    %cst_126 = arith.constant 0.000000e+00 : f32
    %167 = vector.broadcast %cst_126 : f32 to vector<16x30xf32>
    %168 = arith.maximumf %166, %167 : vector<16x30xf32>
    %169 = arith.truncf %168 : vector<16x30xf32> to vector<16x30xbf16>
    %c0_127 = arith.constant 0 : index
    %c0_128 = arith.constant 0 : index
    %170 = vector.load %arg12[%c0_127, %c0_128] : memref<30x128xbf16, #tpu.memory_space<vmem>>, vector<30x128xbf16>
    %cst_129 = arith.constant dense<0.000000e+00> : vector<16x128xf32>
    %171 = tpu.matmul %169, %170, %cst_129 {dimension_numbers = #tpu.dot_dimension_numbers<[1], [0], [0], [1], [0, 0, 1, 1], [], []>} : vector<16x30xbf16>, vector<30x128xbf16>, vector<16x128xf32> -> vector<16x128xf32>
    %c0_130 = arith.constant 0 : index
    %c0_131 = arith.constant 0 : index
    %172 = vector.load %arg13[%c0_130, %c0_131] : memref<1x128xf32, #tpu.memory_space<vmem>>, vector<1x128xf32>
    %173 = vector.broadcast %172 : vector<1x128xf32> to vector<16x128xf32>
    %174 = arith.addf %171, %173 : vector<16x128xf32>
    %c0_132 = arith.constant 0 : index
    %c0_133 = arith.constant 0 : index
    %175 = vector.load %arg14[%c0_132, %c0_133] : memref<16x128xf32, #tpu.memory_space<vmem>>, vector<16x128xf32>
    tpu.vector_store %arg14[%c0_132, %c0_133], %174 {strides = array<i32>} : memref<16x128xf32, #tpu.memory_space<vmem>>, vector<16x128xf32>,
    return
  }
  func.func @transform_0(%arg0: i32) -> (i32, i32) {
    %c0_i32 = arith.constant 0 : i32
    %c0_i32_0 = arith.constant 0 : i32
    return %arg0, %c0_i32 : i32, i32
  }
  func.func @transform_1(%arg0: i32) -> (i32, i32, i32, i32) {
    %c0_i32 = arith.constant 0 : i32
    %c0_i32_0 = arith.constant 0 : i32
    %c0_i32_1 = arith.constant 0 : i32
    %c0_i32_2 = arith.constant 0 : i32
    %c0_i32_3 = arith.constant 0 : i32
    return %c0_i32, %c0_i32_0, %c0_i32_1, %c0_i32_2 : i32, i32, i32, i32
  }
  func.func @transform_2(%arg0: i32) -> (i32, i32) {
    %c0_i32 = arith.constant 0 : i32
    %c0_i32_0 = arith.constant 0 : i32
    %c0_i32_1 = arith.constant 0 : i32
    return %c0_i32, %c0_i32_0 : i32, i32
  }
  func.func @transform_3(%arg0: i32) -> (i32, i32, i32, i32) {
    %c0_i32 = arith.constant 0 : i32
    %c0_i32_0 = arith.constant 0 : i32
    %c0_i32_1 = arith.constant 0 : i32
    %c0_i32_2 = arith.constant 0 : i32
    %c0_i32_3 = arith.constant 0 : i32
    return %c0_i32, %c0_i32_0, %c0_i32_1, %c0_i32_2 : i32, i32, i32, i32
  }
  func.func @transform_4(%arg0: i32) -> (i32, i32) {
    %c0_i32 = arith.constant 0 : i32
    %c0_i32_0 = arith.constant 0 : i32
    %c0_i32_1 = arith.constant 0 : i32
    return %c0_i32, %c0_i32_0 : i32, i32
  }
  func.func @transform_5(%arg0: i32) -> (i32, i32, i32, i32) {
    %c0_i32 = arith.constant 0 : i32
    %c0_i32_0 = arith.constant 0 : i32
    %c0_i32_1 = arith.constant 0 : i32
    %c0_i32_2 = arith.constant 0 : i32
    %c0_i32_3 = arith.constant 0 : i32
    return %c0_i32, %c0_i32_0, %c0_i32_1, %c0_i32_2 : i32, i32, i32, i32
  }
  func.func @transform_6(%arg0: i32) -> (i32, i32) {
    %c0_i32 = arith.constant 0 : i32
    %c0_i32_0 = arith.constant 0 : i32
    %c0_i32_1 = arith.constant 0 : i32
    return %c0_i32, %c0_i32_0 : i32, i32
  }
  func.func @transform_7(%arg0: i32) -> (i32, i32, i32) {
    %c0_i32 = arith.constant 0 : i32
    %c0_i32_0 = arith.constant 0 : i32
    %c0_i32_1 = arith.constant 0 : i32
    %c0_i32_2 = arith.constant 0 : i32
    return %c0_i32, %c0_i32_0, %c0_i32_1 : i32, i32, i32
  }
  func.func @transform_8(%arg0: i32) -> (i32, i32) {
    %c0_i32 = arith.constant 0 : i32
    %c0_i32_0 = arith.constant 0 : i32
    %c0_i32_1 = arith.constant 0 : i32
    return %c0_i32, %c0_i32_0 : i32, i32
  }
  func.func @transform_9(%arg0: i32) -> (i32, i32) {
    %c0_i32 = arith.constant 0 : i32
    %c0_i32_0 = arith.constant 0 : i32
    %c0_i32_1 = arith.constant 0 : i32
    return %c0_i32, %c0_i32_0 : i32, i32
  }
  func.func @transform_10(%arg0: i32) -> (i32, i32) {
    %c0_i32 = arith.constant 0 : i32
    %c0_i32_0 = arith.constant 0 : i32
    %c0_i32_1 = arith.constant 0 : i32
    return %c0_i32, %c0_i32_0 : i32, i32
  }
  func.func @transform_11(%arg0: i32) -> (i32, i32) {
    %c0_i32 = arith.constant 0 : i32
    %c0_i32_0 = arith.constant 0 : i32
    %c0_i32_1 = arith.constant 0 : i32
    return %c0_i32, %c0_i32_0 : i32, i32
  }
  func.func @transform_12(%arg0: i32) -> (i32, i32) {
    %c0_i32 = arith.constant 0 : i32
    %c0_i32_0 = arith.constant 0 : i32
    %c0_i32_1 = arith.constant 0 : i32
    return %c0_i32, %c0_i32_0 : i32, i32
  }
  func.func @transform_13(%arg0: i32) -> (i32, i32) {
    %c0_i32 = arith.constant 0 : i32
    %c0_i32_0 = arith.constant 0 : i32
    return %arg0, %c0_i32 : i32, i32
  }
}

</mosaic_0001>

<bundles_post_ra>
// kernel: tpu_custom_call.1
= control target key start
LH: loop header
LB: loop body
LE: loop exit
PB: predicated region body
PF: predicated region fallthrough
CT: control target
= control target key end

     0   :  { %vm712_vm0 = vcmask 179200   ;;  %vm857_vm1 = vcmask 1042432   ;;  %s16919_s0 = inlined_call_operand.vmem [shape: bf16[800,150], index: 0, kind: input, shape index: {}]   ;;  %s16920_s1 = inlined_call_operand.vmem [shape: bf16[2,3,150,240], index: 1, kind: input, shape index: {}]   ;;  %s16921_s2 = inlined_call_operand.vmem [shape: f32[1,240], index: 2, kind: input, shape index: {}]   ;;  %s16922_s3 = inlined_call_operand.vmem [shape: bf16[2,3,240,120], index: 3, kind: input, shape index: {}]   ;;  %s16923_s4 = inlined_call_operand.vmem [shape: f32[1,120], index: 4, kind: input, shape index: {}]   ;;  %s16924_s5 = inlined_call_operand.vmem [shape: bf16[2,3,120,60], index: 5, kind: input, shape index: {}]   ;;  %s16925_s6 = inlined_call_operand.vmem [shape: f32[1,60], index: 6, kind: input, shape index: {}]   ;;  %s16926_s7 = inlined_call_operand.vmem [shape: bf16[6,60,100], index: 7, kind: input, shape index: {}]   ;;  %s16927_s8 = inlined_call_operand.vmem [shape: f32[1,100], index: 8, kind: input, shape index: {}]   ;;  %s16928_s9 = inlined_call_operand.vmem [shape: bf16[100,30], index: 9, kind: input, shape index: {}]   ;;  %s16929_s10 = inlined_call_operand.vmem [shape: f32[1,30], index: 10, kind: input, shape index: {}]   ;;  %s16930_s11 = inlined_call_operand.vmem [shape: bf16[30,128], index: 11, kind: input, shape index: {}]   ;;  %s16931_s12 = inlined_call_operand.vmem [shape: f32[1,128], index: 12, kind: input, shape index: {}]   ;;  %s16932_s13 = inlined_call_operand.hbm [shape: f32[16,128], index: 13, kind: output, shape index: {}]  }
   0x1   :  { %v12818_v0 = vld [vmem:[%s16920_s1 + $0x9c] ss:$8 sps:$4 sm:$0xff]   ;;  %v12822_v2 = vld [vmem:[%s16920_s1 + $0x98] ss:$8 sps:$4 sm:$0xff]   ;;  %v12824_v4 = vld [vmem:[%s16920_s1 + $0xac] ss:$8 sps:$4 sm:$0xff]  }
   0x2   :  { %v12820_v1 = vld [vmem:[%s16920_s1 + $0x264] ss:$8 sps:$4 sm:$0xff]   ;;  %864 = vmatprep.subr.bf16.mxu0 %v12818_v0  ;;  %v12823_v3 = vld [vmem:[%s16920_s1 + $0x260] ss:$8 sps:$4 sm:$0xff]   ;;  %v12826_v5 = vld [vmem:[%s16920_s1 + $0x274] ss:$8 sps:$4 sm:$0xff]  }
   0x3   :  { %2982 = vmatprep.subr.bf16.mxu1 %v12820_v1  ;;  %865 = vmatpush1.bf16.msra.mxu0 %v12822_v2  ;;  %v12828_v6 = vld [vmem:[%s16920_s1 + $0xa8] ss:$8 sps:$4 sm:$0xff]   ;;  %v12830_v8 = vld [vmem:[%s16920_s1 + $0xbc] ss:$8 sps:$4 sm:$0xff]   ;;  %v12834_v10 = vld [vmem:[%s16920_s1 + $0xb8] ss:$8 sps:$4 sm:$0xff]  }
   0x4   :  { %2983 = vmatpush1.bf16.msra.mxu1 %v12823_v3  ;;  %866 = vmatprep.subr.bf16.mxu0 %v12824_v4  ;;  %v12829_v7 = vld [vmem:[%s16920_s1 + $0x270] ss:$8 sps:$4 sm:$0xff]   ;;  %v12832_v9 = vld [vmem:[%s16920_s1 + $0x284] ss:$8 sps:$4 sm:$0xff]   ;;  %v12835_v11 = vld [vmem:[%s16920_s1 + $0x280] ss:$8 sps:$4 sm:$0xff]  }
   0x5   :  { %2984 = vmatprep.subr.bf16.mxu1 %v12826_v5  ;;  %v12836_v12 = vld [vmem:[%s16920_s1 + $0xcc] ss:$8 sps:$4 sm:$0xff]   ;;  %v12840_v14 = vld [vmem:[%s16920_s1 + $0xc8] ss:$8 sps:$4 sm:$0xff]   ;;  %v12842_v16 = vld [vmem:[%s16920_s1 + $0xdc] ss:$8 sps:$4 sm:$0xff]  }
   0x6   :  { %v12838_v13 = vld [vmem:[%s16920_s1 + $0x294] ss:$8 sps:$4 sm:$0xff]   ;;  %v12841_v15 = vld [vmem:[%s16920_s1 + $0x290] ss:$8 sps:$4 sm:$0xff]   ;;  %v12844_v17 = vld [vmem:[%s16920_s1 + $0x2a4] ss:$8 sps:$4 sm:$0xff]  }
   0x7   :  { %867 = vmatpush1.bf16.msra.mxu0 %v12828_v6  ;;  %v12846_v18 = vld [vmem:[%s16920_s1 + $0xd8] ss:$8 sps:$4 sm:$0xff]   ;;  %v12848_v20 = vld [vmem:[%s16920_s1 + $0xec] ss:$8 sps:$4 sm:$0xff]   ;;  %v12852_v22 = vld [vmem:[%s16920_s1 + $0xe8] ss:$8 sps:$4 sm:$0xff]  }
   0x8   :  { %2985 = vmatpush1.bf16.msra.mxu1 %v12829_v7  ;;  %868 = vmatprep.subr.bf16.mxu0 %v12830_v8  ;;  %v12847_v19 = vld [vmem:[%s16920_s1 + $0x2a0] ss:$8 sps:$4 sm:$0xff]   ;;  %v12850_v21 = vld [vmem:[%s16920_s1 + $0x2b4] ss:$8 sps:$4 sm:$0xff]   ;;  %v12853_v23 = vld [vmem:[%s16920_s1 + $0x2b0] ss:$8 sps:$4 sm:$0xff]  }
   0x9   :  { %2986 = vmatprep.subr.bf16.mxu1 %v12832_v9  ;;  %v12854_v24 = vld [vmem:[%s16920_s1 + $0xfc] ss:$8 sps:$4 sm:$0xff]   ;;  %v12858_v26 = vld [vmem:[%s16920_s1 + $0xf8] ss:$8 sps:$4 sm:$0xff]   ;;  %v12860_v28 = vld [vmem:[%s16920_s1 + $0x10c] ss:$8 sps:$4 sm:$0xff]  }
   0xa   :  { %v12856_v25 = vld [vmem:[%s16920_s1 + $0x2c4] ss:$8 sps:$4 sm:$0xff]   ;;  %v12859_v27 = vld [vmem:[%s16920_s1 + $0x2c0] ss:$8 sps:$4 sm:$0xff]   ;;  %v12862_v29 = vld [vmem:[%s16920_s1 + $0x2d4] ss:$8 sps:$4 sm:$0xff]  }
   0xb   :  { %869 = vmatpush1.bf16.msra.mxu0 %v12834_v10  ;;  %v12876_v30 = vld [vmem:[%s16919_s0 + $0x14] ss:$8 sps:$4 sm:$0xff]   ;;  %v12864_v31 = vld [vmem:[%s16920_s1 + $0x108] ss:$8 sps:$4 sm:$0xff]   ;;  %v12868_v34 = vld [vmem:[%s16920_s1 + $0x2e4] ss:$8 sps:$4 sm:$0xff]  }
   0xc   :  { %2987 = vmatpush1.bf16.msra.mxu1 %v12835_v11  ;;  %870 = vmatprep.subr.bf16.mxu0 %v12836_v12  ;;  %v12865_v32 = vld [vmem:[%s16920_s1 + $0x2d0] ss:$8 sps:$4 sm:$0xff]   ;;  %v12866_v33 = vld [vmem:[%s16920_s1 + $0x11c] ss:$8 sps:$4 sm:$0xff]   ;;  %v9911_v35 = vld [vmem:[%s16920_s1 + $0x128] sm:$0x77] }
   0xd   :  { %2988 = vmatprep.subr.bf16.mxu1 %v12838_v13  ;;  %10029 = vmatprep.mubr.msk.bf16.mxu0 %vm712_vm0, %v12876_v30  ;;  %v10275_v36 = vld [vmem:[%s16920_s1 + $0x2f0] sm:$0x77]  ;;  %v12870_v37 = vld [vmem:[%s16920_s1 + $0x118] ss:$8 sps:$4 sm:$0xff]   ;;  %v10027_v39 = vcombine.high %v9911_v35, %v9911_v35  ;;  %v10026_v41 = vcombine.low %v9911_v35, %v9911_v35  ;;  %v12881_v45 = vld [vmem:[%s16920_s1 + $0x4] ss:$8 sps:$4 sm:$0xff]  }
   0xe   :  { %10297 = vmatprep.mubr.msk.bf16.mxu1 %vm712_vm0, %v12876_v30  ;;  %v12871_v38 = vld [vmem:[%s16920_s1 + $0x2e0] ss:$8 sps:$4 sm:$0xff]   ;;  %v10295_v40 = vcombine.high %v10275_v36, %v10275_v36  ;;  %v10294_v42 = vcombine.low %v10275_v36, %v10275_v36  ;;  %v12884_v46 = vld [vmem:[%s16920_s1 + $0x1cc] ss:$8 sps:$4 sm:$0xff]   ;;  %v12878_v47 = vld [vmem:[%s16919_s0 + $0x10] ss:$8 sps:$4 sm:$0xff]  }
   0xf   :  { %871 = vmatpush1.bf16.msra.mxu0 %v12840_v14  ;;  %v859_v43 = vsel %vm857_vm1, %v10026_v41, 0  ;;  %v12879_v48 = vld [vmem:[%s16920_s1] ss:$8 sps:$4 sm:$0xff]   ;;  %v12885_v50 = vld [vmem:[%s16919_s0 + $0x24] ss:$8 sps:$4 sm:$0xff]  }
  0x10   :  { %2989 = vmatpush1.bf16.msra.mxu1 %v12841_v15  ;;  %872 = vmatprep.subr.bf16.mxu0 %v12842_v16  ;;  %v2977_v44 = vsel %vm857_vm1, %v10294_v42, 0  ;;  %v12882_v49 = vld [vmem:[%s16920_s1 + $0x1c8] ss:$8 sps:$4 sm:$0xff]   ;;  %v12901_v51 = vld [vmem:[%s16920_s1 + $0x14] ss:$8 sps:$4 sm:$0xff]  }
  0x11   :  { %2990 = vmatprep.subr.bf16.mxu1 %v12844_v17  ;;  %v12904_v52 = vld [vmem:[%s16920_s1 + $0x1dc] ss:$8 sps:$4 sm:$0xff]   ;;  %v12899_v53 = vld [vmem:[%s16920_s1 + $0x10] ss:$8 sps:$4 sm:$0xff]   ;;  %v12923_v56 = vld [vmem:[%s16920_s1 + $0x1ec] ss:$8 sps:$4 sm:$0xff]  }
  0x12   :  { %v12902_v54 = vld [vmem:[%s16920_s1 + $0x1d8] ss:$8 sps:$4 sm:$0xff]   ;;  %v12920_v55 = vld [vmem:[%s16920_s1 + $0x24] ss:$8 sps:$4 sm:$0xff]   ;;  %v12888_v58 = vld [vmem:[%s16919_s0 + $0x34] ss:$8 sps:$4 sm:$0xff]  }
  0x13   :  { %873 = vmatpush1.bf16.msra.mxu0 %v12846_v18  ;;  %v12887_v57 = vld [vmem:[%s16919_s0 + $0x20] ss:$8 sps:$4 sm:$0xff]   ;;  %v12890_v61 = vld [vmem:[%s16919_s0 + $0x30] ss:$8 sps:$4 sm:$0xff]   ;;  %v12941_v63 = vld [vmem:[%s16920_s1 + $0x34] ss:$8 sps:$4 sm:$0xff]  }
  0x14   :  { %2991 = vmatpush1.bf16.msra.mxu1 %v12847_v19  ;;  %874 = vmatprep.subr.bf16.mxu0 %v12848_v20  ;;  %v12918_v59 = vld [vmem:[%s16920_s1 + $0x20] ss:$8 sps:$4 sm:$0xff]   ;;  %v12939_v62 = vld [vmem:[%s16920_s1 + $0x30] ss:$8 sps:$4 sm:$0xff]   ;;  %v12944_v1 = vld [vmem:[%s16920_s1 + $0x1fc] ss:$8 sps:$4 sm:$0xff]  }
  0x15   :  { %2992 = vmatprep.subr.bf16.mxu1 %v12850_v21  ;;  %v12921_v60 = vld [vmem:[%s16920_s1 + $0x1e8] ss:$8 sps:$4 sm:$0xff]   ;;  %v12942_v0 = vld [vmem:[%s16920_s1 + $0x1f8] ss:$8 sps:$4 sm:$0xff]   ;;  %v12891_v2 = vld [vmem:[%s16919_s0 + $0x44] ss:$8 sps:$4 sm:$0xff]  }
  0x16   :  { %v12893_v3 = vld [vmem:[%s16919_s0 + $0x40] ss:$8 sps:$4 sm:$0xff]   ;;  %v12894_v4 = vld [vmem:[%s16919_s0 + $0x54] ss:$8 sps:$4 sm:$0xff]   ;;  %v12962_v6 = vld [vmem:[%s16920_s1 + $0x44] ss:$8 sps:$4 sm:$0xff]  }
  0x17   :  { %875 = vmatpush1.bf16.msra.mxu0 %v12852_v22  ;;  %v12960_v5 = vld [vmem:[%s16920_s1 + $0x40] ss:$8 sps:$4 sm:$0xff]   ;;  %v12965_v8 = vld [vmem:[%s16920_s1 + $0x20c] ss:$8 sps:$4 sm:$0xff]   ;;  %v12896_v9 = vld [vmem:[%s16919_s0 + $0x50] ss:$8 sps:$4 sm:$0xff]  }
  0x18   :  { %2993 = vmatpush1.bf16.msra.mxu1 %v12853_v23  ;;  %876 = vmatprep.subr.bf16.mxu0 %v12854_v24  ;;  %v12963_v7 = vld [vmem:[%s16920_s1 + $0x208] ss:$8 sps:$4 sm:$0xff]   ;;  %v12897_v10 = vld [vmem:[%s16919_s0 + $0x64] ss:$8 sps:$4 sm:$0xff]   ;;  %v12906_v12 = vld [vmem:[%s16919_s0 + $0x74] ss:$8 sps:$4 sm:$0xff]  }
  0x19   :  { %2994 = vmatprep.subr.bf16.mxu1 %v12856_v25  ;;  %v12905_v11 = vld [vmem:[%s16919_s0 + $0x60] ss:$8 sps:$4 sm:$0xff]   ;;  %v12908_v13 = vld [vmem:[%s16919_s0 + $0x70] ss:$8 sps:$4 sm:$0xff]   ;;  %v12909_v14 = vld [vmem:[%s16919_s0 + $0x84] ss:$8 sps:$4 sm:$0xff]  }
  0x1a   :  { %v12911_v15 = vld [vmem:[%s16919_s0 + $0x80] ss:$8 sps:$4 sm:$0xff]   ;;  %v12912_v16 = vld [vmem:[%s16919_s0 + $0x94] ss:$8 sps:$4 sm:$0xff]   ;;  %v12914_v17 = vld [vmem:[%s16919_s0 + $0x90] ss:$8 sps:$4 sm:$0xff]  }
  0x1b   :  { %877 = vmatpush1.bf16.msra.mxu0 %v12858_v26  ;;  %v12915_v18 = vld [vmem:[%s16919_s0 + $0xa4] ss:$8 sps:$4 sm:$0xff]   ;;  %v12981_v19 = vld [vmem:[%s16920_s1 + $0x50] ss:$8 sps:$4 sm:$0xff]   ;;  %v12983_v20 = vld [vmem:[%s16920_s1 + $0x54] ss:$8 sps:$4 sm:$0xff]  }
  0x1c   :  { %2995 = vmatpush1.bf16.msra.mxu1 %v12859_v27  ;;  %878 = vmatprep.subr.bf16.mxu0 %v12860_v28  ;;  %v12984_v21 = vld [vmem:[%s16920_s1 + $0x218] ss:$8 sps:$4 sm:$0xff]   ;;  %v12986_v22 = vld [vmem:[%s16920_s1 + $0x21c] ss:$8 sps:$4 sm:$0xff]   ;;  %v13006_v35 = vld [vmem:[%s16920_s1 + $0x22c] ss:$8 sps:$4 sm:$0xff]  }
  0x1d   :  { %2996 = vmatprep.subr.bf16.mxu1 %v12862_v29  ;;  %v12917_v23 = vld [vmem:[%s16919_s0 + $0xa0] ss:$8 sps:$4 sm:$0xff]   ;;  %v12924_v24 = vld [vmem:[%s16919_s0 + $0xb4] ss:$8 sps:$4 sm:$0xff]   ;;  %v12926_v25 = vld [vmem:[%s16919_s0 + $0xb0] ss:$8 sps:$4 sm:$0xff]  }
  0x1e   :  { %v12927_v26 = vld [vmem:[%s16919_s0 + $0xc4] ss:$8 sps:$4 sm:$0xff]   ;;  %v12929_v27 = vld [vmem:[%s16919_s0 + $0xc0] ss:$8 sps:$4 sm:$0xff]   ;;  %v12930_v28 = vld [vmem:[%s16919_s0 + $0xd4] ss:$8 sps:$4 sm:$0xff]  }
  0x1f   :  { %879 = vmatpush1.bf16.msra.mxu0 %v12864_v31  ;;  %v12932_v29 = vld [vmem:[%s16919_s0 + $0xd0] ss:$8 sps:$4 sm:$0xff]   ;;  %v12933_v30 = vld [vmem:[%s16919_s0 + $0xe4] ss:$8 sps:$4 sm:$0xff]   ;;  %v13001_v31 = vld [vmem:[%s16920_s1 + $0x60] ss:$8 sps:$4 sm:$0xff]  }
  0x20   :  { %2997 = vmatpush1.bf16.msra.mxu1 %v12865_v32  ;;  %880 = vmatprep.subr.bf16.mxu0 %v12866_v33  ;;  %v13003_v32 = vld [vmem:[%s16920_s1 + $0x64] ss:$8 sps:$4 sm:$0xff]   ;;  %v13004_v33 = vld [vmem:[%s16920_s1 + $0x228] ss:$8 sps:$4 sm:$0xff]   ;;  %v12936_v36 = vld [vmem:[%s16919_s0 + $0xf4] ss:$8 sps:$4 sm:$0xff]  }
  0x21   :  { %2998 = vmatprep.subr.bf16.mxu1 %v12868_v34  ;;  %v12935_v34 = vld [vmem:[%s16919_s0 + $0xe0] ss:$8 sps:$4 sm:$0xff]   ;;  %v12950_v41 = vld [vmem:[%s16919_s0 + $0x110] ss:$8 sps:$4 sm:$0xff]   ;;  %v12951_v42 = vld [vmem:[%s16919_s0 + $0x124] ss:$8 sps:$4 sm:$0xff]  }
  0x23   :  { %881 = vmatpush1.bf16.msra.mxu0 %v12870_v37  ;;  %v12938_v37 = vld [vmem:[%s16919_s0 + $0xf0] ss:$8 sps:$4 sm:$0xff]  }
  0x24   :  { %2999 = vmatpush1.bf16.msra.mxu1 %v12871_v38  ;;  %10028 = vmatprep.subr.msk.bf16.mxu0 %vm857_vm1, %v10027_v39  ;;  %v12945_v38 = vld [vmem:[%s16919_s0 + $0x104] ss:$8 sps:$4 sm:$0xff]   ;;  %v12947_v39 = vld [vmem:[%s16919_s0 + $0x100] ss:$8 sps:$4 sm:$0xff]  }
  0x25   :  { %10296 = vmatprep.subr.msk.bf16.mxu1 %vm857_vm1, %v10295_v40  ;;  %v12948_v40 = vld [vmem:[%s16919_s0 + $0x114] ss:$8 sps:$4 sm:$0xff]  }
  0x27   :  { %883 = vmatpush1.bf16.msra.mxu0 %v859_v43  ;;  %v13855_v43 = vld [vmem:[%s16919_s0 + $0x120] ss:$8 sps:$4 sm:$0xff]  }
  0x28   :  { %3001 = vmatpush1.bf16.msra.mxu1 %v2977_v44  ;;  %1490 = vmatprep.subr.bf16.mxu0 %v12881_v45  ;;  %v13860_v44 = vld [vmem:[%s16919_s0 + $0x134] ss:$8 sps:$4 sm:$0xff]   ;;  %v13020_v45 = vld [vmem:[%s16920_s1 + $0x70] ss:$8 sps:$4 sm:$0xff]  }
  0x29   :  { %3596 = vmatprep.subr.bf16.mxu1 %v12884_v46  ;;  %v13022_v46 = vld [vmem:[%s16920_s1 + $0x74] ss:$8 sps:$4 sm:$0xff]  }
  0x2a   :  { %897 = vmatmul.mubr.bf16.vlgmr.msra.gmra.mrb[0].mxu0 %v12878_v47 }
  0x2b   :  { %3015 = vmatmul.mubr.bf16.vlgmr.msra.gmra.mrb[0].mxu1 %v12878_v47  ;;  %1491 = vmatpush1.bf16.msra.mxu0 %v12879_v48  ;;  %v13023_v47 = vld [vmem:[%s16920_s1 + $0x238] ss:$8 sps:$4 sm:$0xff]   ;;  %v13025_v48 = vld [vmem:[%s16920_s1 + $0x23c] ss:$8 sps:$4 sm:$0xff]  }
  0x2c   :  { %3597 = vmatpush1.bf16.msra.mxu1 %v12882_v49  ;;  %10030 = vmatprep.mubr.msk.bf16.mxu0 %vm712_vm0, %v12885_v50  ;;  %v13883_v49 = vld [vmem:[%s16919_s0 + $0x130] ss:$8 sps:$4 sm:$0xff]  }
  0x2d   :  { %10298 = vmatprep.mubr.msk.bf16.mxu1 %vm712_vm0, %v12885_v50  ;;  %1492 = vmatprep.subr.bf16.mxu0 %v12901_v51  ;;  %v13888_v50 = vld [vmem:[%s16919_s0 + $0x144] ss:$8 sps:$4 sm:$0xff]   ;;  %v13899_v51 = vld [vmem:[%s16919_s0 + $0x140] ss:$8 sps:$4 sm:$0xff]  }
  0x2e   :  { %3598 = vmatprep.subr.bf16.mxu1 %v12904_v52  ;;  %v13904_v52 = vld [vmem:[%s16919_s0 + $0x154] ss:$8 sps:$4 sm:$0xff]  }
  0x2f   :  { %1493 = vmatpush1.bf16.msra.mxu0 %v12899_v53  ;;  %v13915_v53 = vld [vmem:[%s16919_s0 + $0x150] ss:$8 sps:$4 sm:$0xff]  }
  0x30   :  { %3599 = vmatpush1.bf16.msra.mxu1 %v12902_v54  ;;  %1494 = vmatprep.subr.bf16.mxu0 %v12920_v55  ;;  %v13920_v54 = vld [vmem:[%s16919_s0 + $0x164] ss:$8 sps:$4 sm:$0xff]   ;;  %v13931_v55 = vld [vmem:[%s16919_s0 + $0x160] ss:$8 sps:$4 sm:$0xff]  }
  0x31   :  { %3600 = vmatprep.subr.bf16.mxu1 %v12923_v56  ;;  %v13936_v56 = vld [vmem:[%s16919_s0 + $0x174] ss:$8 sps:$4 sm:$0xff]  }
  0x32   :  { %907 = vmatmul.mubr.bf16.gmra.mrb[4].mxu0 %v12887_v57 }
  0x33   :  { %3025 = vmatmul.mubr.bf16.gmra.mrb[4].mxu1 %v12887_v57  ;;  %10031 = vmatprep.mubr.msk.bf16.mxu0 %vm712_vm0, %v12888_v58  ;;  %v13947_v57 = vld [vmem:[%s16919_s0 + $0x170] ss:$8 sps:$4 sm:$0xff]  }
  0x34   :  { %10299 = vmatprep.mubr.msk.bf16.mxu1 %vm712_vm0, %v12888_v58  ;;  %1495 = vmatpush1.bf16.msra.mxu0 %v12918_v59  ;;  %v13952_v58 = vld [vmem:[%s16919_s0 + $0x184] ss:$8 sps:$4 sm:$0xff]   ;;  %v13041_v59 = vld [vmem:[%s16920_s1 + $0x80] ss:$8 sps:$4 sm:$0xff]  }
  0x35   :  { %3601 = vmatpush1.bf16.msra.mxu1 %v12921_v60  ;;  %1496 = vmatprep.subr.bf16.mxu0 %v12941_v63  ;;  %v13043_v60 = vld [vmem:[%s16920_s1 + $0x84] ss:$8 sps:$4 sm:$0xff]   ;;  %v13975_v63 = vld [vmem:[%s16919_s0 + $0x180] ss:$8 sps:$4 sm:$0xff]  }
  0x36   :  { %3602 = vmatprep.subr.bf16.mxu1 %v12944_v1  ;;  %v13991_v1 = vld [vmem:[%s16919_s0 + $0x190] ss:$8 sps:$4 sm:$0xff]  }
  0x38   :  { %1497 = vmatpush1.bf16.msra.mxu0 %v12939_v62  ;;  %v13046_v62 = vld [vmem:[%s16920_s1 + $0x24c] ss:$8 sps:$4 sm:$0xff]  }
  0x39   :  { %3603 = vmatpush1.bf16.msra.mxu1 %v12942_v0  ;;  %1498 = vmatprep.subr.bf16.mxu0 %v12962_v6  ;;  %v13980_v0 = vld [vmem:[%s16919_s0 + $0x194] ss:$8 sps:$4 sm:$0xff]  }
  0x3a   :  { %917 = vmatmul.mubr.bf16.gmra.mrb[8].mxu0 %v12890_v61  ;;  %3604 = vmatprep.subr.bf16.mxu1 %v12965_v8 }
  0x3b   :  { %3035 = vmatmul.mubr.bf16.gmra.mrb[8].mxu1 %v12890_v61  ;;  %10032 = vmatprep.mubr.msk.bf16.mxu0 %vm712_vm0, %v12891_v2  ;;  %v13044_v61 = vld [vmem:[%s16920_s1 + $0x248] ss:$8 sps:$4 sm:$0xff]  }
  0x3c   :  { %10300 = vmatprep.mubr.msk.bf16.mxu1 %vm712_vm0, %v12891_v2  ;;  %1499 = vmatpush1.bf16.msra.mxu0 %v12960_v5  ;;  %v13996_v2 = vld [vmem:[%s16919_s0 + $0x1a4] ss:$8 sps:$4 sm:$0xff]  }
  0x3d   :  { %3605 = vmatpush1.bf16.msra.mxu1 %v12963_v7  ;;  %1500 = vmatprep.subr.bf16.mxu0 %v12983_v20 }
  0x3e   :  { %3606 = vmatprep.subr.bf16.mxu1 %v12986_v22 }
  0x40   :  { %1501 = vmatpush1.bf16.msra.mxu0 %v12981_v19 }
  0x41   :  { %3607 = vmatpush1.bf16.msra.mxu1 %v12984_v21  ;;  %1502 = vmatprep.subr.bf16.mxu0 %v13003_v32 }
  0x42   :  { %927 = vmatmul.mubr.bf16.gmra.mrb[12].mxu0 %v12893_v3  ;;  %3608 = vmatprep.subr.bf16.mxu1 %v13006_v35 }
  0x43   :  { %3045 = vmatmul.mubr.bf16.gmra.mrb[12].mxu1 %v12893_v3  ;;  %10033 = vmatprep.mubr.msk.bf16.mxu0 %vm712_vm0, %v12894_v4 }
  0x44   :  { %10301 = vmatprep.mubr.msk.bf16.mxu1 %vm712_vm0, %v12894_v4  ;;  %1503 = vmatpush1.bf16.msra.mxu0 %v13001_v31 }
  0x45   :  { %3609 = vmatpush1.bf16.msra.mxu1 %v13004_v33  ;;  %1504 = vmatprep.subr.bf16.mxu0 %v13022_v46 }
  0x46   :  { %3610 = vmatprep.subr.bf16.mxu1 %v13025_v48 }
  0x48   :  { %1505 = vmatpush1.bf16.msra.mxu0 %v13020_v45 }
  0x49   :  { %3611 = vmatpush1.bf16.msra.mxu1 %v13023_v47  ;;  %1506 = vmatprep.subr.bf16.mxu0 %v13043_v60 }
  0x4a   :  { %937 = vmatmul.mubr.bf16.gmra.mrb[16].mxu0 %v12896_v9  ;;  %3612 = vmatprep.subr.bf16.mxu1 %v13046_v62 }
  0x4b   :  { %3055 = vmatmul.mubr.bf16.gmra.mrb[16].mxu1 %v12896_v9  ;;  %10034 = vmatprep.mubr.msk.bf16.mxu0 %vm712_vm0, %v12897_v10 }
  0x4c   :  { %10302 = vmatprep.mubr.msk.bf16.mxu1 %vm712_vm0, %v12897_v10  ;;  %1507 = vmatpush1.bf16.msra.mxu0 %v13041_v59 }
  0x4d   :  { %3613 = vmatpush1.bf16.msra.mxu1 %v13044_v61 }
  0x52   :  { %947 = vmatmul.mubr.bf16.gmra.mrb[20].mxu0 %v12905_v11 }
  0x53   :  { %3065 = vmatmul.mubr.bf16.gmra.mrb[20].mxu1 %v12905_v11  ;;  %10035 = vmatprep.mubr.msk.bf16.mxu0 %vm712_vm0, %v12906_v12 }
  0x54   :  { %10303 = vmatprep.mubr.msk.bf16.mxu1 %vm712_vm0, %v12906_v12 }
  0x5a   :  { %957 = vmatmul.mubr.bf16.gmra.mrb[24].mxu0 %v12908_v13 }
  0x5b   :  { %3075 = vmatmul.mubr.bf16.gmra.mrb[24].mxu1 %v12908_v13  ;;  %10036 = vmatprep.mubr.msk.bf16.mxu0 %vm712_vm0, %v12909_v14 }
  0x5c   :  { %10304 = vmatprep.mubr.msk.bf16.mxu1 %vm712_vm0, %v12909_v14 }
  0x62   :  { %967 = vmatmul.mubr.bf16.gmra.mrb[28].mxu0 %v12911_v15 }
  0x63   :  { %3085 = vmatmul.mubr.bf16.gmra.mrb[28].mxu1 %v12911_v15  ;;  %10037 = vmatprep.mubr.msk.bf16.mxu0 %vm712_vm0, %v12912_v16 }
  0x64   :  { %10305 = vmatprep.mubr.msk.bf16.mxu1 %vm712_vm0, %v12912_v16 }
  0x6a   :  { %977 = vmatmul.mubr.bf16.gmra.mrb[32].mxu0 %v12914_v17 }
  0x6b   :  { %3095 = vmatmul.mubr.bf16.gmra.mrb[32].mxu1 %v12914_v17  ;;  %10038 = vmatprep.mubr.msk.bf16.mxu0 %vm712_vm0, %v12915_v18 }
  0x6c   :  { %10306 = vmatprep.mubr.msk.bf16.mxu1 %vm712_vm0, %v12915_v18 }
  0x72   :  { %987 = vmatmul.mubr.bf16.gmra.mrb[36].mxu0 %v12917_v23 }
  0x73   :  { %3105 = vmatmul.mubr.bf16.gmra.mrb[36].mxu1 %v12917_v23  ;;  %10039 = vmatprep.mubr.msk.bf16.mxu0 %vm712_vm0, %v12924_v24 }
  0x74   :  { %10307 = vmatprep.mubr.msk.bf16.mxu1 %vm712_vm0, %v12924_v24 }
  0x7a   :  { %997 = vmatmul.mubr.bf16.gmra.mrb[40].mxu0 %v12926_v25 }
  0x7b   :  { %3115 = vmatmul.mubr.bf16.gmra.mrb[40].mxu1 %v12926_v25  ;;  %10040 = vmatprep.mubr.msk.bf16.mxu0 %vm712_vm0, %v12927_v26 }
  0x7c   :  { %10308 = vmatprep.mubr.msk.bf16.mxu1 %vm712_vm0, %v12927_v26 }
  0x82   :  { %1007 = vmatmul.mubr.bf16.gmra.mrb[44].mxu0 %v12929_v27 }
  0x83   :  { %3125 = vmatmul.mubr.bf16.gmra.mrb[44].mxu1 %v12929_v27  ;;  %10041 = vmatprep.mubr.msk.bf16.mxu0 %vm712_vm0, %v12930_v28 }
  0x84   :  { %10309 = vmatprep.mubr.msk.bf16.mxu1 %vm712_vm0, %v12930_v28 }
  0x8a   :  { %1017 = vmatmul.mubr.bf16.gmra.mrb[48].mxu0 %v12932_v29 }
  0x8b   :  { %3135 = vmatmul.mubr.bf16.gmra.mrb[48].mxu1 %v12932_v29  ;;  %10042 = vmatprep.mubr.msk.bf16.mxu0 %vm712_vm0, %v12933_v30 }
  0x8c   :  { %10310 = vmatprep.mubr.msk.bf16.mxu1 %vm712_vm0, %v12933_v30 }
  0x92   :  { %1027 = vmatmul.mubr.bf16.gmra.mrb[52].mxu0 %v12935_v34 }
  0x93   :  { %3145 = vmatmul.mubr.bf16.gmra.mrb[52].mxu1 %v12935_v34  ;;  %10043 = vmatprep.mubr.msk.bf16.mxu0 %vm712_vm0, %v12936_v36 }
  0x94   :  { %10311 = vmatprep.mubr.msk.bf16.mxu1 %vm712_vm0, %v12936_v36 }
  0x9a   :  { %1037 = vmatmul.mubr.bf16.gmra.mrb[56].mxu0 %v12938_v37 }
  0x9b   :  { %3155 = vmatmul.mubr.bf16.gmra.mrb[56].mxu1 %v12938_v37  ;;  %10044 = vmatprep.mubr.msk.bf16.mxu0 %vm712_vm0, %v12945_v38 }
  0x9c   :  { %10312 = vmatprep.mubr.msk.bf16.mxu1 %vm712_vm0, %v12945_v38 }
  0xa2   :  { %1047 = vmatmul.mubr.bf16.gmra.mrb[60].mxu0 %v12947_v39 }
  0xa3   :  { %3165 = vmatmul.mubr.bf16.gmra.mrb[60].mxu1 %v12947_v39  ;;  %10045 = vmatprep.mubr.msk.bf16.mxu0 %vm712_vm0, %v12948_v40 }
  0xa4   :  { %10313 = vmatprep.mubr.msk.bf16.mxu1 %vm712_vm0, %v12948_v40 }
  0xaa   :  { %1057 = vmatmul.mubr.bf16.gmra.mrb[64].mxu0 %v12950_v41 }
  0xab   :  { %3175 = vmatmul.mubr.bf16.gmra.mrb[64].mxu1 %v12950_v41  ;;  %10046 = vmatprep.mubr.msk.bf16.mxu0 %vm712_vm0, %v12951_v42 }
  0xac   :  { %10314 = vmatprep.mubr.msk.bf16.mxu1 %vm712_vm0, %v12951_v42 }
  0xb2   :  { %1067 = vmatmul.mubr.bf16.gmra.mrb[68].mxu0 %v13855_v43 }
  0xb3   :  { %3185 = vmatmul.mubr.bf16.gmra.mrb[68].mxu1 %v13855_v43  ;;  %10047 = vmatprep.mubr.msk.bf16.mxu0 %vm712_vm0, %v13860_v44 }
  0xb4   :  { %10315 = vmatprep.mubr.msk.bf16.mxu1 %vm712_vm0, %v13860_v44 }
  0xba   :  { %1077 = vmatmul.mubr.bf16.gmra.mrb[72].mxu0 %v13883_v49 }
  0xbb   :  { %3195 = vmatmul.mubr.bf16.gmra.mrb[72].mxu1 %v13883_v49  ;;  %10048 = vmatprep.mubr.msk.bf16.mxu0 %vm712_vm0, %v13888_v50 }
  0xbc   :  { %10316 = vmatprep.mubr.msk.bf16.mxu1 %vm712_vm0, %v13888_v50 }
  0xc2   :  { %1087 = vmatmul.mubr.bf16.gmra.mrb[76].mxu0 %v13899_v51 }
  0xc3   :  { %3205 = vmatmul.mubr.bf16.gmra.mrb[76].mxu1 %v13899_v51  ;;  %10049 = vmatprep.mubr.msk.bf16.mxu0 %vm712_vm0, %v13904_v52 }
  0xc4   :  { %10317 = vmatprep.mubr.msk.bf16.mxu1 %vm712_vm0, %v13904_v52 }
  0xca   :  { %1097 = vmatmul.mubr.bf16.gmra.mrb[80].mxu0 %v13915_v53 }
  0xcb   :  { %3215 = vmatmul.mubr.bf16.gmra.mrb[80].mxu1 %v13915_v53  ;;  %10050 = vmatprep.mubr.msk.bf16.mxu0 %vm712_vm0, %v13920_v54 }
  0xcc   :  { %10318 = vmatprep.mubr.msk.bf16.mxu1 %vm712_vm0, %v13920_v54 }
  0xd2   :  { %1107 = vmatmul.mubr.bf16.gmra.mrb[84].mxu0 %v13931_v55 }
  0xd3   :  { %3225 = vmatmul.mubr.bf16.gmra.mrb[84].mxu1 %v13931_v55  ;;  %10051 = vmatprep.mubr.msk.bf16.mxu0 %vm712_vm0, %v13936_v56 }
  0xd4   :  { %10319 = vmatprep.mubr.msk.bf16.mxu1 %vm712_vm0, %v13936_v56 }
  0xda   :  { %1117 = vmatmul.mubr.bf16.gmra.mrb[88].mxu0 %v13947_v57 }
  0xdb   :  { %3235 = vmatmul.mubr.bf16.gmra.mrb[88].mxu1 %v13947_v57  ;;  %10052 = vmatprep.mubr.msk.bf16.mxu0 %vm712_vm0, %v13952_v58 }
  0xdc   :  { %10320 = vmatprep.mubr.msk.bf16.mxu1 %vm712_vm0, %v13952_v58 }
  0xe2   :  { %1127 = vmatmul.mubr.bf16.gmra.mrb[92].mxu0 %v13975_v63 }
  0xe3   :  { %3245 = vmatmul.mubr.bf16.gmra.mrb[92].mxu1 %v13975_v63  ;;  %10053 = vmatprep.mubr.msk.bf16.mxu0 %vm712_vm0, %v13980_v0 }
  0xe4   :  { %10321 = vmatprep.mubr.msk.bf16.mxu1 %vm712_vm0, %v13980_v0 }
  0xe5   :  { %18 = vsyncpa [#allocation3], 0  ;;  %v14007_v3 = vld [vmem:[%s16919_s0 + $0x1a0] ss:$8 sps:$4 sm:$0xff]   ;;  %v14012_v4 = vld [vmem:[%s16919_s0 + $0x1b4] ss:$8 sps:$4 sm:$0xff]  }
  0xe6   :  { %v14023_v5 = vld [vmem:[%s16919_s0 + $0x1b0] ss:$8 sps:$4 sm:$0xff]   ;;  %v14028_v6 = vld [vmem:[%s16919_s0 + $0x1c4] ss:$8 sps:$4 sm:$0xff]   ;;  %v14039_v7 = vld [vmem:[%s16919_s0 + $0x1c0] ss:$8 sps:$4 sm:$0xff]  }
  0xe7   :  { %v14044_v8 = vld [vmem:[%s16919_s0 + $0x1d4] ss:$8 sps:$4 sm:$0xff]   ;;  %v14064_v16 = vld [vmem:[%s16919_s0 + $0x1d0] ss:$8 sps:$4 sm:$0xff]   ;;  %v14070_v18 = vld [vmem:[%s16919_s0 + $0x1e4] ss:$8 sps:$4 sm:$0xff]  }
  0xe8   :  { %v164_v9 = vld [vmem:[%s16920_s1 + $0x90] sm:$0x77]  ;;  %v10256_v10 = vld [vmem:[%s16920_s1 + $0x258] sm:$0x77]  ;;  %v14081_v19 = vld [vmem:[%s16919_s0 + $0x1e0] ss:$8 sps:$4 sm:$0xff]  }
  0xe9   :  { %v10098_v11 = vcombine.high %v164_v9, %v164_v9  ;;  %v10364_v12 = vcombine.high %v10256_v10, %v10256_v10  ;;  %v10097_v13 = vcombine.low %v164_v9, %v164_v9  ;;  %v10363_v14 = vcombine.low %v10256_v10, %v10256_v10  ;;  %v14086_v20 = vld [vmem:[%s16919_s0 + $0x1f4] ss:$8 sps:$4 sm:$0xff]   ;;  %v14097_v21 = vld [vmem:[%s16919_s0 + $0x1f0] ss:$8 sps:$4 sm:$0xff]   ;;  %v14102_v22 = vld [vmem:[%s16919_s0 + $0x204] ss:$8 sps:$4 sm:$0xff]  }
  0xea   :  { %1137 = vmatmul.mubr.bf16.gmra.mrb[96].mxu0 %v13991_v1  ;;  %v14113_v23 = vld [vmem:[%s16919_s0 + $0x200] ss:$8 sps:$4 sm:$0xff]   ;;  %v14118_v24 = vld [vmem:[%s16919_s0 + $0x214] ss:$8 sps:$4 sm:$0xff]   ;;  %v14129_v25 = vld [vmem:[%s16919_s0 + $0x210] ss:$8 sps:$4 sm:$0xff]  }
  0xeb   :  { %3255 = vmatmul.mubr.bf16.gmra.mrb[96].mxu1 %v13991_v1  ;;  %10054 = vmatprep.mubr.msk.bf16.mxu0 %vm712_vm0, %v13996_v2  ;;  %v1485_v15 = vsel %vm857_vm1, %v10097_v13, 0  ;;  %v3591_v17 = vsel %vm857_vm1, %v10363_v14, 0  ;;  %v14134_v26 = vld [vmem:[%s16919_s0 + $0x224] ss:$8 sps:$4 sm:$0xff]   ;;  %v13083_v27 = vld [vmem:[%s16920_s1 + $0x134] ss:$8 sps:$4 sm:$0xff]  }
  0xec   :  { %10322 = vmatprep.mubr.msk.bf16.mxu1 %vm712_vm0, %v13996_v2  ;;  %10099 = vmatprep.subr.msk.bf16.mxu0 %vm857_vm1, %v10098_v11  ;;  %v13086_v28 = vld [vmem:[%s16920_s1 + $0x2fc] ss:$8 sps:$4 sm:$0xff]   ;;  %v14151_v29 = vld [vmem:[%s16919_s0 + $0x220] ss:$8 sps:$4 sm:$0xff]   ;;  %v14167_v31 = vld [vmem:[%s16919_s0 + $0x230] ss:$8 sps:$4 sm:$0xff]  }
  0xed   :  { %10365 = vmatprep.subr.msk.bf16.mxu1 %vm857_vm1, %v10364_v12  ;;  %1509 = vmatpush1.bf16.msra.mxu0 %v1485_v15  ;;  %v14156_v30 = vld [vmem:[%s16919_s0 + $0x234] ss:$8 sps:$4 sm:$0xff]   ;;  %v14172_v32 = vld [vmem:[%s16919_s0 + $0x244] ss:$8 sps:$4 sm:$0xff]   ;;  %v14183_v33 = vld [vmem:[%s16919_s0 + $0x240] ss:$8 sps:$4 sm:$0xff]  }
  0xee   :  { %3615 = vmatpush1.bf16.msra.mxu1 %v3591_v17  ;;  %2136 = vmatprep.subr.bf16.mxu0 %v13083_v27  ;;  %v14188_v34 = vld [vmem:[%s16919_s0 + $0x254] ss:$8 sps:$4 sm:$0xff]   ;;  %v14199_v35 = vld [vmem:[%s16919_s0 + $0x250] ss:$8 sps:$4 sm:$0xff]   ;;  %v14204_v36 = vld [vmem:[%s16919_s0 + $0x264] ss:$8 sps:$4 sm:$0xff]  }
  0xef   :  { %4230 = vmatprep.subr.bf16.mxu1 %v13086_v28  ;;  %v14215_v37 = vld [vmem:[%s16919_s0 + $0x260] ss:$8 sps:$4 sm:$0xff]   ;;  %v14220_v38 = vld [vmem:[%s16919_s0 + $0x274] ss:$8 sps:$4 sm:$0xff]   ;;  %v14231_v39 = vld [vmem:[%s16919_s0 + $0x270] ss:$8 sps:$4 sm:$0xff]  }
  0xf0   :  { %v14236_v40 = vld [vmem:[%s16919_s0 + $0x284] ss:$8 sps:$4 sm:$0xff]   ;;  %v14247_v41 = vld [vmem:[%s16919_s0 + $0x280] ss:$8 sps:$4 sm:$0xff]   ;;  %v14252_v42 = vld [vmem:[%s16919_s0 + $0x294] ss:$8 sps:$4 sm:$0xff]  }
  0xf1   :  { %v14263_v45 = vld [vmem:[%s16919_s0 + $0x290] ss:$8 sps:$4 sm:$0xff]   ;;  %v14268_v46 = vld [vmem:[%s16919_s0 + $0x2a4] ss:$8 sps:$4 sm:$0xff]   ;;  %v14279_v47 = vld [vmem:[%s16919_s0 + $0x2a0] ss:$8 sps:$4 sm:$0xff]  }
  0xf2   :  { %1147 = vmatmul.mubr.bf16.gmra.mrb[100].mxu0 %v14007_v3  ;;  %v14284_v48 = vld [vmem:[%s16919_s0 + $0x2b4] ss:$8 sps:$4 sm:$0xff]   ;;  %v14295_v59 = vld [vmem:[%s16919_s0 + $0x2b0] ss:$8 sps:$4 sm:$0xff]   ;;  %v14300_v60 = vld [vmem:[%s16919_s0 + $0x2c4] ss:$8 sps:$4 sm:$0xff]  }
  0xf3   :  { %3265 = vmatmul.mubr.bf16.gmra.mrb[100].mxu1 %v14007_v3  ;;  %10055 = vmatprep.mubr.msk.bf16.mxu0 %vm712_vm0, %v14012_v4  ;;  %v14311_v61 = vld [vmem:[%s16919_s0 + $0x2c0] ss:$8 sps:$4 sm:$0xff]   ;;  %v14316_v62 = vld [vmem:[%s16919_s0 + $0x2d4] ss:$8 sps:$4 sm:$0xff]   ;;  %v14327_v9 = vld [vmem:[%s16919_s0 + $0x2d0] ss:$8 sps:$4 sm:$0xff]  }
  0xf4   :  { %10323 = vmatprep.mubr.msk.bf16.mxu1 %vm712_vm0, %v14012_v4  ;;  %v14332_v10 = vld [vmem:[%s16919_s0 + $0x2e4] ss:$8 sps:$4 sm:$0xff]   ;;  %v14343_v11 = vld [vmem:[%s16919_s0 + $0x2e0] ss:$8 sps:$4 sm:$0xff]   ;;  %v14348_v12 = vld [vmem:[%s16919_s0 + $0x2f4] ss:$8 sps:$4 sm:$0xff]  }
  0xf5   :  { %17017 = vst [vmem:[#allocation5_spill] sm:$0xff] %v14332_v10  ;;  %17018 = vst [vmem:[#allocation6_spill] sm:$0xff] %v14343_v11  ;;  %v14359_v13 = vld [vmem:[%s16919_s0 + $0x2f0] ss:$8 sps:$4 sm:$0xff]   ;;  %v13075_v14 = vld [vmem:[%s16919_s0 + $0x304] ss:$8 sps:$4 sm:$0xff]  }
  0xf6   :  { %17019 = vst [vmem:[#allocation7_spill] sm:$0xff] %v14348_v12  ;;  %17020 = vst [vmem:[#allocation8_spill] sm:$0xff] %v14359_v13  ;;  %v13077_v15 = vld [vmem:[%s16919_s0 + $0x300] ss:$8 sps:$4 sm:$0xff]   ;;  %v13080_v17 = vld [vmem:[%s16919_s0 + $0x4] ss:$8 sps:$4 sm:$0xff]  }
  0xf7   :  { %v13078_v27 = vld [vmem:[%s16919_s0] ss:$8 sps:$4 sm:$0xff]   ;;  %v13081_v28 = vld [vmem:[%s16920_s1 + $0x130] ss:$8 sps:$4 sm:$0xff]   ;;  %vm5818_vm2 = vcmask 916480   ;;  %vm8085_vm3 = vcmask 1043456  }
  0xf8   :  { %vm8054_vm4 = vcmask 982016   ;;  %vm9242_vm5 = vcmask 1045504   ;;  %vm13435_vm6 = vmmov 0   ;;  %vm9238_vm7 = vcmask 490496   ;;  %s13436_s17 = smov [#allocation2]  }
  0xf9   :  { %vm9756_vm8 = vcmask 1041408   ;;  %vm9752_vm9 = vcmask 818176   ;;  %vm9830_vm10 = vcmask 1046528   ;;  %vm9826_vm11 = vcmask 244736   ;;  %s9882_s18 = sshll.u32 %s13436_s17, 4  ;;  %s9883_s18 = int_to_ptr.vmem [resolvable:$true] %s9882_s18 }
  0xfa   :  { %1157 = vmatmul.mubr.bf16.gmra.mrb[104].mxu0 %v14023_v5  ;;  %p13414_p1 = scmp.lt.s32.totalorder %s9883_s18, %s9883_s18 }
  0xfb   :  { %3275 = vmatmul.mubr.bf16.gmra.mrb[104].mxu1 %v14023_v5  ;;  %10056 = vmatprep.mubr.msk.bf16.mxu0 %vm712_vm0, %v14028_v6 }
  0xfc   :  { %10324 = vmatprep.mubr.msk.bf16.mxu1 %vm712_vm0, %v14028_v6 }
 0x102   :  { %1167 = vmatmul.mubr.bf16.gmra.mrb[108].mxu0 %v14039_v7 }
 0x103   :  { %3285 = vmatmul.mubr.bf16.gmra.mrb[108].mxu1 %v14039_v7  ;;  %10057 = vmatprep.mubr.msk.bf16.mxu0 %vm712_vm0, %v14044_v8 }
 0x104   :  { %10325 = vmatprep.mubr.msk.bf16.mxu1 %vm712_vm0, %v14044_v8 }
 0x10a   :  { %1177 = vmatmul.mubr.bf16.gmra.mrb[112].mxu0 %v14064_v16 }
 0x10b   :  { %3295 = vmatmul.mubr.bf16.gmra.mrb[112].mxu1 %v14064_v16  ;;  %10058 = vmatprep.mubr.msk.bf16.mxu0 %vm712_vm0, %v14070_v18 }
 0x10c   :  { %10326 = vmatprep.mubr.msk.bf16.mxu1 %vm712_vm0, %v14070_v18 }
 0x112   :  { %1187 = vmatmul.mubr.bf16.gmra.mrb[116].mxu0 %v14081_v19 }
 0x113   :  { %3305 = vmatmul.mubr.bf16.gmra.mrb[116].mxu1 %v14081_v19  ;;  %10059 = vmatprep.mubr.msk.bf16.mxu0 %vm712_vm0, %v14086_v20 }
 0x114   :  { %10327 = vmatprep.mubr.msk.bf16.mxu1 %vm712_vm0, %v14086_v20 }
 0x11a   :  { %1197 = vmatmul.mubr.bf16.gmra.mrb[120].mxu0 %v14097_v21 }
 0x11b   :  { %3315 = vmatmul.mubr.bf16.gmra.mrb[120].mxu1 %v14097_v21  ;;  %10060 = vmatprep.mubr.msk.bf16.mxu0 %vm712_vm0, %v14102_v22 }
 0x11c   :  { %10328 = vmatprep.mubr.msk.bf16.mxu1 %vm712_vm0, %v14102_v22 }
 0x122   :  { %1207 = vmatmul.mubr.bf16.gmra.mrb[124].mxu0 %v14113_v23 }
 0x123   :  { %3325 = vmatmul.mubr.bf16.gmra.mrb[124].mxu1 %v14113_v23  ;;  %10061 = vmatprep.mubr.msk.bf16.mxu0 %vm712_vm0, %v14118_v24 }
 0x124   :  { %10329 = vmatprep.mubr.msk.bf16.mxu1 %vm712_vm0, %v14118_v24 }
 0x12a   :  { %1217 = vmatmul.mubr.bf16.gmra.mrb[128].mxu0 %v14129_v25 }
 0x12b   :  { %3335 = vmatmul.mubr.bf16.gmra.mrb[128].mxu1 %v14129_v25  ;;  %10062 = vmatprep.mubr.msk.bf16.mxu0 %vm712_vm0, %v14134_v26 }
 0x12c   :  { %10330 = vmatprep.mubr.msk.bf16.mxu1 %vm712_vm0, %v14134_v26 }
 0x132   :  { %1227 = vmatmul.mubr.bf16.gmra.mrb[132].mxu0 %v14151_v29 }
 0x133   :  { %3345 = vmatmul.mubr.bf16.gmra.mrb[132].mxu1 %v14151_v29  ;;  %10063 = vmatprep.mubr.msk.bf16.mxu0 %vm712_vm0, %v14156_v30 }
 0x134   :  { %10331 = vmatprep.mubr.msk.bf16.mxu1 %vm712_vm0, %v14156_v30 }
 0x13a   :  { %1237 = vmatmul.mubr.bf16.gmra.mrb[136].mxu0 %v14167_v31 }
 0x13b   :  { %3355 = vmatmul.mubr.bf16.gmra.mrb[136].mxu1 %v14167_v31  ;;  %10064 = vmatprep.mubr.msk.bf16.mxu0 %vm712_vm0, %v14172_v32 }
 0x13c   :  { %10332 = vmatprep.mubr.msk.bf16.mxu1 %vm712_vm0, %v14172_v32 }
 0x142   :  { %1247 = vmatmul.mubr.bf16.gmra.mrb[140].mxu0 %v14183_v33 }
 0x143   :  { %3365 = vmatmul.mubr.bf16.gmra.mrb[140].mxu1 %v14183_v33  ;;  %10065 = vmatprep.mubr.msk.bf16.mxu0 %vm712_vm0, %v14188_v34 }
 0x144   :  { %10333 = vmatprep.mubr.msk.bf16.mxu1 %vm712_vm0, %v14188_v34 }
 0x14a   :  { %1257 = vmatmul.mubr.bf16.gmra.mrb[144].mxu0 %v14199_v35 }
 0x14b   :  { %3375 = vmatmul.mubr.bf16.gmra.mrb[144].mxu1 %v14199_v35  ;;  %10066 = vmatprep.mubr.msk.bf16.mxu0 %vm712_vm0, %v14204_v36 }
 0x14c   :  { %10334 = vmatprep.mubr.msk.bf16.mxu1 %vm712_vm0, %v14204_v36 }
 0x152   :  { %1267 = vmatmul.mubr.bf16.gmra.mrb[148].mxu0 %v14215_v37 }
 0x153   :  { %3385 = vmatmul.mubr.bf16.gmra.mrb[148].mxu1 %v14215_v37  ;;  %10067 = vmatprep.mubr.msk.bf16.mxu0 %vm712_vm0, %v14220_v38 }
 0x154   :  { %10335 = vmatprep.mubr.msk.bf16.mxu1 %vm712_vm0, %v14220_v38 }
 0x15a   :  { %1277 = vmatmul.mubr.bf16.gmra.mrb[152].mxu0 %v14231_v39 }
 0x15b   :  { %3395 = vmatmul.mubr.bf16.gmra.mrb[152].mxu1 %v14231_v39  ;;  %10068 = vmatprep.mubr.msk.bf16.mxu0 %vm712_vm0, %v14236_v40 }
 0x15c   :  { %10336 = vmatprep.mubr.msk.bf16.mxu1 %vm712_vm0, %v14236_v40 }
 0x162   :  { %1287 = vmatmul.mubr.bf16.gmra.mrb[156].mxu0 %v14247_v41 }
 0x163   :  { %3405 = vmatmul.mubr.bf16.gmra.mrb[156].mxu1 %v14247_v41  ;;  %10069 = vmatprep.mubr.msk.bf16.mxu0 %vm712_vm0, %v14252_v42 }
 0x164   :  { %10337 = vmatprep.mubr.msk.bf16.mxu1 %vm712_vm0, %v14252_v42 }
 0x16a   :  { %1297 = vmatmul.mubr.bf16.gmra.mrb[160].mxu0 %v14263_v45 }
 0x16b   :  { %3415 = vmatmul.mubr.bf16.gmra.mrb[160].mxu1 %v14263_v45  ;;  %10070 = vmatprep.mubr.msk.bf16.mxu0 %vm712_vm0, %v14268_v46 }
 0x16c   :  { %10338 = vmatprep.mubr.msk.bf16.mxu1 %vm712_vm0, %v14268_v46 }
 0x172   :  { %1307 = vmatmul.mubr.bf16.gmra.mrb[164].mxu0 %v14279_v47 }
 0x173   :  { %3425 = vmatmul.mubr.bf16.gmra.mrb[164].mxu1 %v14279_v47  ;;  %10071 = vmatprep.mubr.msk.bf16.mxu0 %vm712_vm0, %v14284_v48 }
 0x174   :  { %10339 = vmatprep.mubr.msk.bf16.mxu1 %vm712_vm0, %v14284_v48 }
 0x17a   :  { %1317 = vmatmul.mubr.bf16.gmra.mrb[168].mxu0 %v14295_v59 }
 0x17b   :  { %3435 = vmatmul.mubr.bf16.gmra.mrb[168].mxu1 %v14295_v59  ;;  %10072 = vmatprep.mubr.msk.bf16.mxu0 %vm712_vm0, %v14300_v60 }
 0x17c   :  { %10340 = vmatprep.mubr.msk.bf16.mxu1 %vm712_vm0, %v14300_v60 }
 0x182   :  { %1327 = vmatmul.mubr.bf16.gmra.mrb[172].mxu0 %v14311_v61 }
 0x183   :  { %3445 = vmatmul.mubr.bf16.gmra.mrb[172].mxu1 %v14311_v61  ;;  %10073 = vmatprep.mubr.msk.bf16.mxu0 %vm712_vm0, %v14316_v62 }
 0x184   :  { %10341 = vmatprep.mubr.msk.bf16.mxu1 %vm712_vm0, %v14316_v62 }
 0x18a   :  { %1337 = vmatmul.mubr.bf16.gmra.mrb[176].mxu0 %v14327_v9 }
 0x18b   :  { %3455 = vmatmul.mubr.bf16.gmra.mrb[176].mxu1 %v14327_v9  ;;  %10074 = vmatprep.mubr.msk.bf16.mxu0 %vm712_vm0, %v14332_v10 }
 0x18c   :  { %10342 = vmatprep.mubr.msk.bf16.mxu1 %vm712_vm0, %v14332_v10  ;;  %v13101_v10 = vld [vmem:[%s16920_s1 + $0x164] ss:$8 sps:$4 sm:$0xff]  }
 0x192   :  { %1347 = vmatmul.mubr.bf16.gmra.mrb[180].mxu0 %v14343_v11 }
 0x193   :  { %3465 = vmatmul.mubr.bf16.gmra.mrb[180].mxu1 %v14343_v11  ;;  %10075 = vmatprep.mubr.msk.bf16.mxu0 %vm712_vm0, %v14348_v12  ;;  %v13313_v11 = vld [vmem:[%s16919_s0 + $0x14] ss:$8 sps:$4 sm:$0xff]  }
 0x194   :  { %10343 = vmatprep.mubr.msk.bf16.mxu1 %vm712_vm0, %v14348_v12  ;;  %v13090_v12 = vld [vmem:[%s16920_s1 + $0x308] ss:$8 sps:$4 sm:$0xff]  }
 0x19a   :  { %1357 = vmatmul.mubr.bf16.gmra.mrb[184].mxu0 %v14359_v13 }
 0x19b   :  { %3475 = vmatmul.mubr.bf16.gmra.mrb[184].mxu1 %v14359_v13  ;;  %10076 = vmatprep.mubr.msk.bf16.mxu0 %vm712_vm0, %v13075_v14  ;;  %v13087_v13 = vld [vmem:[%s16920_s1 + $0x140] ss:$8 sps:$4 sm:$0xff]  }
 0x19c   :  { %10344 = vmatprep.mubr.msk.bf16.mxu1 %vm712_vm0, %v13075_v14  ;;  %v13084_v14 = vld [vmem:[%s16920_s1 + $0x2f8] ss:$8 sps:$4 sm:$0xff]  }
 0x1a2   :  { %1367 = vmatmul.mubr.bf16.gmra.mrb[188].mxu0 %v13077_v15 }
 0x1a3   :  { %3485 = vmatmul.mubr.bf16.gmra.mrb[188].mxu1 %v13077_v15  ;;  %10100 = vmatprep.mubr.msk.bf16.mxu0 %vm712_vm0, %v13080_v17  ;;  %v13089_v15 = vld [vmem:[%s16920_s1 + $0x144] ss:$8 sps:$4 sm:$0xff]  }
 0x1a4   :  { %10366 = vmatprep.mubr.msk.bf16.mxu1 %vm712_vm0, %v13080_v17  ;;  %v13092_v17 = vld [vmem:[%s16920_s1 + $0x30c] ss:$8 sps:$4 sm:$0xff]  }
 0x1aa   :  { %1523 = vmatmul.mubr.bf16.vlgmr.msra.gmra.mrb[0].mxu0 %v13078_v27 }
 0x1ab   :  { %3629 = vmatmul.mubr.bf16.vlgmr.msra.gmra.mrb[0].mxu1 %v13078_v27  ;;  %2137 = vmatpush1.bf16.msra.mxu0 %v13081_v28  ;;  %v13095_v27 = vld [vmem:[%s16920_s1 + $0x154] ss:$8 sps:$4 sm:$0xff]  }
 0x1ac   :  { %4231 = vmatpush1.bf16.msra.mxu1 %v13084_v14  ;;  %10101 = vmatprep.mubr.msk.bf16.mxu0 %vm712_vm0, %v13313_v11  ;;  %v13098_v28 = vld [vmem:[%s16920_s1 + $0x31c] ss:$8 sps:$4 sm:$0xff]   ;;  %v13093_v14 = vld [vmem:[%s16920_s1 + $0x150] ss:$8 sps:$4 sm:$0xff]  }
 0x1ad   :  { %10367 = vmatprep.mubr.msk.bf16.mxu1 %vm712_vm0, %v13313_v11  ;;  %2138 = vmatprep.subr.bf16.mxu0 %v13089_v15  ;;  %v13096_v11 = vld [vmem:[%s16920_s1 + $0x318] ss:$8 sps:$4 sm:$0xff]   ;;  %v13104_v15 = vld [vmem:[%s16920_s1 + $0x32c] ss:$8 sps:$4 sm:$0xff]  }
 0x1ae   :  { %4232 = vmatprep.subr.bf16.mxu1 %v13092_v17  ;;  %v13099_v17 = vld [vmem:[%s16920_s1 + $0x160] ss:$8 sps:$4 sm:$0xff]  }
 0x1af   :  { %2139 = vmatpush1.bf16.msra.mxu0 %v13087_v13  ;;  %v14426_v13 = vld [vmem:[%s16919_s0 + $0x24] ss:$8 sps:$4 sm:$0xff]  }
 0x1b0   :  { %4233 = vmatpush1.bf16.msra.mxu1 %v13090_v12  ;;  %2140 = vmatprep.subr.bf16.mxu0 %v13095_v27  ;;  %v13314_v12 = vld [vmem:[%s16919_s0 + $0x10] ss:$8 sps:$4 sm:$0xff]  }
 0x1b1   :  { %4234 = vmatprep.subr.bf16.mxu1 %v13098_v28  ;;  %v13102_v27 = vld [vmem:[%s16920_s1 + $0x328] ss:$8 sps:$4 sm:$0xff]  }
 0x1b2   :  { %1533 = vmatmul.mubr.bf16.gmra.mrb[4].mxu0 %v13314_v12  ;;  %v14441_v28 = vld [vmem:[%s16919_s0 + $0x20] ss:$8 sps:$4 sm:$0xff]  }
 0x1b3   :  { %3639 = vmatmul.mubr.bf16.gmra.mrb[4].mxu1 %v13314_v12  ;;  %10102 = vmatprep.mubr.msk.bf16.mxu0 %vm712_vm0, %v14426_v13  ;;  %v13108_v12 = vld [vmem:[%s16920_s1 + $0x338] ss:$8 sps:$4 sm:$0xff]  }
 0x1b4   :  { %10368 = vmatprep.mubr.msk.bf16.mxu1 %vm712_vm0, %v14426_v13  ;;  %2141 = vmatpush1.bf16.msra.mxu0 %v13093_v14  ;;  %v14448_v14 = vld [vmem:[%s16919_s0 + $0x34] ss:$8 sps:$4 sm:$0xff]  }
 0x1b5   :  { %4235 = vmatpush1.bf16.msra.mxu1 %v13096_v11  ;;  %2142 = vmatprep.subr.bf16.mxu0 %v13101_v10  ;;  %v14457_v10 = vld [vmem:[%s16919_s0 + $0x30] ss:$8 sps:$4 sm:$0xff]  }
 0x1b6   :  { %4236 = vmatprep.subr.bf16.mxu1 %v13104_v15  ;;  %17021 = vst [vmem:[#allocation9_spill] sm:$0xff] %v14457_v10  ;;  %v13105_v11 = vld [vmem:[%s16920_s1 + $0x170] ss:$8 sps:$4 sm:$0xff]   ;;  %v13107_v15 = vld [vmem:[%s16920_s1 + $0x174] ss:$8 sps:$4 sm:$0xff]  }
 0x1b8   :  { %2143 = vmatpush1.bf16.msra.mxu0 %v13099_v17  ;;  %v14473_v17 = vld [vmem:[%s16919_s0 + $0x44] ss:$8 sps:$4 sm:$0xff]  }
 0x1b9   :  { %4237 = vmatpush1.bf16.msra.mxu1 %v13102_v27  ;;  %17022 = vst [vmem:[#allocation10_spill] sm:$0xff] %v14473_v17  ;;  %v13110_v27 = vld [vmem:[%s16920_s1 + $0x33c] ss:$8 sps:$4 sm:$0xff]   ;;  %2144 = vmatprep.subr.bf16.mxu0 %v13107_v15 }
 0x1ba   :  { %1543 = vmatmul.mubr.bf16.gmra.mrb[8].mxu0 %v14441_v28  ;;  %4238 = vmatprep.subr.bf16.mxu1 %v13110_v27  ;;  %v14508_v15 = vld [vmem:[%s16919_s0 + $0x64] ss:$8 sps:$4 sm:$0xff]   ;;  %v14524_v27 = vld [vmem:[%s16919_s0 + $0x74] ss:$8 sps:$4 sm:$0xff]  }
 0x1bb   :  { %3649 = vmatmul.mubr.bf16.gmra.mrb[8].mxu1 %v14441_v28  ;;  %10103 = vmatprep.mubr.msk.bf16.mxu0 %vm712_vm0, %v14448_v14  ;;  %17026 = vst [vmem:[#allocation14_spill] sm:$0xff] %v14508_v15  ;;  %17028 = vst [vmem:[#allocation16_spill] sm:$0xff] %v14524_v27 }
 0x1bc   :  { %10369 = vmatprep.mubr.msk.bf16.mxu1 %vm712_vm0, %v14448_v14  ;;  %2145 = vmatpush1.bf16.msra.mxu0 %v13105_v11  ;;  %v14501_v11 = vld [vmem:[%s16919_s0 + $0x50] ss:$8 sps:$4 sm:$0xff]  }
 0x1bd   :  { %4239 = vmatpush1.bf16.msra.mxu1 %v13108_v12  ;;  %17025 = vst [vmem:[#allocation13_spill] sm:$0xff] %v14501_v11  ;;  %v14517_v12 = vld [vmem:[%s16919_s0 + $0x60] ss:$8 sps:$4 sm:$0xff]  }
 0x1be   :  { %17027 = vst [vmem:[#allocation15_spill] sm:$0xff] %v14517_v12 }
 0x1c2   :  { %1553 = vmatmul.mubr.bf16.gmra.mrb[12].mxu0 %v14457_v10 }
 0x1c3   :  { %3659 = vmatmul.mubr.bf16.gmra.mrb[12].mxu1 %v14457_v10  ;;  %10104 = vmatprep.mubr.msk.bf16.mxu0 %vm712_vm0, %v14473_v17  ;;  %v14485_v10 = vld [vmem:[%s16919_s0 + $0x40] ss:$8 sps:$4 sm:$0xff]  }
 0x1c4   :  { %10370 = vmatprep.mubr.msk.bf16.mxu1 %vm712_vm0, %v14473_v17  ;;  %17023 = vst [vmem:[#allocation11_spill] sm:$0xff] %v14485_v10  ;;  %v14492_v17 = vld [vmem:[%s16919_s0 + $0x54] ss:$8 sps:$4 sm:$0xff]  }
 0x1c5   :  { %17024 = vst [vmem:[#allocation12_spill] sm:$0xff] %v14492_v17 }
 0x1ca   :  { %1563 = vmatmul.mubr.bf16.gmra.mrb[16].mxu0 %v14485_v10 }
 0x1cb   :  { %3669 = vmatmul.mubr.bf16.gmra.mrb[16].mxu1 %v14485_v10  ;;  %10105 = vmatprep.mubr.msk.bf16.mxu0 %vm712_vm0, %v14492_v17  ;;  %v14577_v10 = vld [vmem:[%s16919_s0 + $0x90] ss:$8 sps:$4 sm:$0xff]  }
 0x1cc   :  { %10371 = vmatprep.mubr.msk.bf16.mxu1 %vm712_vm0, %v14492_v17  ;;  %v14565_v17 = vld [vmem:[%s16919_s0 + $0x94] ss:$8 sps:$4 sm:$0xff]   ;;  %17033 = vst [vmem:[#allocation21_spill] sm:$0xff] %v14577_v10 }
 0x1cd   :  { %17032 = vst [vmem:[#allocation20_spill] sm:$0xff] %v14565_v17 }
 0x1d2   :  { %1573 = vmatmul.mubr.bf16.gmra.mrb[20].mxu0 %v14501_v11 }
 0x1d3   :  { %3679 = vmatmul.mubr.bf16.gmra.mrb[20].mxu1 %v14501_v11  ;;  %10106 = vmatprep.mubr.msk.bf16.mxu0 %vm712_vm0, %v14508_v15  ;;  %v13113_v11 = vld [vmem:[%s16920_s1 + $0x184] ss:$8 sps:$4 sm:$0xff]  }
 0x1d4   :  { %10372 = vmatprep.mubr.msk.bf16.mxu1 %vm712_vm0, %v14508_v15  ;;  %v14533_v15 = vld [vmem:[%s16919_s0 + $0x70] ss:$8 sps:$4 sm:$0xff]   ;;  %2146 = vmatprep.subr.bf16.mxu0 %v13113_v11  ;;  %v14593_v11 = vld [vmem:[%s16919_s0 + $0xa0] ss:$8 sps:$4 sm:$0xff]  }
 0x1d5   :  { %17029 = vst [vmem:[#allocation17_spill] sm:$0xff] %v14533_v15  ;;  %17035 = vst [vmem:[#allocation23_spill] sm:$0xff] %v14593_v11 }
 0x1da   :  { %1583 = vmatmul.mubr.bf16.gmra.mrb[24].mxu0 %v14517_v12 }
 0x1db   :  { %3689 = vmatmul.mubr.bf16.gmra.mrb[24].mxu1 %v14517_v12  ;;  %10107 = vmatprep.mubr.msk.bf16.mxu0 %vm712_vm0, %v14524_v27  ;;  %v14540_v12 = vld [vmem:[%s16919_s0 + $0x84] ss:$8 sps:$4 sm:$0xff]  }
 0x1dc   :  { %10373 = vmatprep.mubr.msk.bf16.mxu1 %vm712_vm0, %v14524_v27  ;;  %17030 = vst [vmem:[#allocation18_spill] sm:$0xff] %v14540_v12  ;;  %v14549_v27 = vld [vmem:[%s16919_s0 + $0x80] ss:$8 sps:$4 sm:$0xff]  }
 0x1dd   :  { %17031 = vst [vmem:[#allocation19_spill] sm:$0xff] %v14549_v27 }
 0x1e2   :  { %1593 = vmatmul.mubr.bf16.gmra.mrb[28].mxu0 %v14533_v15 }
 0x1e3   :  { %3699 = vmatmul.mubr.bf16.gmra.mrb[28].mxu1 %v14533_v15  ;;  %10108 = vmatprep.mubr.msk.bf16.mxu0 %vm712_vm0, %v14540_v12  ;;  %v13111_v15 = vld [vmem:[%s16920_s1 + $0x180] ss:$8 sps:$4 sm:$0xff]  }
 0x1e4   :  { %10374 = vmatprep.mubr.msk.bf16.mxu1 %vm712_vm0, %v14540_v12  ;;  %v13114_v12 = vld [vmem:[%s16920_s1 + $0x348] ss:$8 sps:$4 sm:$0xff]   ;;  %2147 = vmatpush1.bf16.msra.mxu0 %v13111_v15  ;;  %v14600_v15 = vld [vmem:[%s16919_s0 + $0xb4] ss:$8 sps:$4 sm:$0xff]  }
 0x1e5   :  { %17036 = vst [vmem:[#allocation24_spill] sm:$0xff] %v14600_v15 }
 0x1ea   :  { %1603 = vmatmul.mubr.bf16.gmra.mrb[32].mxu0 %v14549_v27 }
 0x1eb   :  { %3709 = vmatmul.mubr.bf16.gmra.mrb[32].mxu1 %v14549_v27  ;;  %10109 = vmatprep.mubr.msk.bf16.mxu0 %vm712_vm0, %v14565_v17  ;;  %v13116_v27 = vld [vmem:[%s16920_s1 + $0x34c] ss:$8 sps:$4 sm:$0xff]  }
 0x1ec   :  { %10375 = vmatprep.mubr.msk.bf16.mxu1 %vm712_vm0, %v14565_v17  ;;  %4240 = vmatprep.subr.bf16.mxu1 %v13116_v27  ;;  %v14584_v17 = vld [vmem:[%s16919_s0 + $0xa4] ss:$8 sps:$4 sm:$0xff]  }
 0x1ed   :  { %4241 = vmatpush1.bf16.msra.mxu1 %v13114_v12  ;;  %17034 = vst [vmem:[#allocation22_spill] sm:$0xff] %v14584_v17  ;;  %v14609_v12 = vld [vmem:[%s16919_s0 + $0xb0] ss:$8 sps:$4 sm:$0xff]   ;;  %v14616_v27 = vld [vmem:[%s16919_s0 + $0xc4] ss:$8 sps:$4 sm:$0xff]  }
 0x1ee   :  { %17037 = vst [vmem:[#allocation25_spill] sm:$0xff] %v14609_v12  ;;  %17038 = vst [vmem:[#allocation26_spill] sm:$0xff] %v14616_v27 }
 0x1f2   :  { %1613 = vmatmul.mubr.bf16.gmra.mrb[36].mxu0 %v14577_v10 }
 0x1f3   :  { %3719 = vmatmul.mubr.bf16.gmra.mrb[36].mxu1 %v14577_v10  ;;  %10110 = vmatprep.mubr.msk.bf16.mxu0 %vm712_vm0, %v14584_v17  ;;  %v14660_v10 = vld [vmem:[%s16919_s0 + $0xe4] ss:$8 sps:$4 sm:$0xff]  }
 0x1f4   :  { %10376 = vmatprep.mubr.msk.bf16.mxu1 %vm712_vm0, %v14584_v17  ;;  %v13122_v17 = vld [vmem:[%s16920_s1 + $0x35c] ss:$8 sps:$4 sm:$0xff]   ;;  %17041 = vst [vmem:[#allocation29_spill] sm:$0xff] %v14660_v10 }
 0x1f5   :  { %4242 = vmatprep.subr.bf16.mxu1 %v13122_v17  ;;  %v14669_v17 = vld [vmem:[%s16919_s0 + $0xe0] ss:$8 sps:$4 sm:$0xff]  }
 0x1f6   :  { %17042 = vst [vmem:[#allocation30_spill] sm:$0xff] %v14669_v17 }
 0x1fa   :  { %1623 = vmatmul.mubr.bf16.gmra.mrb[40].mxu0 %v14593_v11 }
 0x1fb   :  { %3729 = vmatmul.mubr.bf16.gmra.mrb[40].mxu1 %v14593_v11  ;;  %10111 = vmatprep.mubr.msk.bf16.mxu0 %vm712_vm0, %v14600_v15  ;;  %v13119_v11 = vld [vmem:[%s16920_s1 + $0x194] ss:$8 sps:$4 sm:$0xff]  }
 0x1fc   :  { %10377 = vmatprep.mubr.msk.bf16.mxu1 %vm712_vm0, %v14600_v15  ;;  %v14625_v15 = vld [vmem:[%s16919_s0 + $0xc0] ss:$8 sps:$4 sm:$0xff]   ;;  %2148 = vmatprep.subr.bf16.mxu0 %v13119_v11  ;;  %v14676_v11 = vld [vmem:[%s16919_s0 + $0xf4] ss:$8 sps:$4 sm:$0xff]  }
 0x1fd   :  { %17039 = vst [vmem:[#allocation27_spill] sm:$0xff] %v14625_v15  ;;  %17043 = vst [vmem:[#allocation31_spill] sm:$0xff] %v14676_v11 }
 0x202   :  { %1633 = vmatmul.mubr.bf16.gmra.mrb[44].mxu0 %v14609_v12 }
 0x203   :  { %3739 = vmatmul.mubr.bf16.gmra.mrb[44].mxu1 %v14609_v12  ;;  %10112 = vmatprep.mubr.msk.bf16.mxu0 %vm712_vm0, %v14616_v27  ;;  %v14632_v12 = vld [vmem:[%s16919_s0 + $0xd4] ss:$8 sps:$4 sm:$0xff]  }
 0x204   :  { %10378 = vmatprep.mubr.msk.bf16.mxu1 %vm712_vm0, %v14616_v27  ;;  %17040 = vst [vmem:[#allocation28_spill] sm:$0xff] %v14632_v12  ;;  %v13117_v27 = vld [vmem:[%s16920_s1 + $0x190] ss:$8 sps:$4 sm:$0xff]  }
 0x205   :  { %2149 = vmatpush1.bf16.msra.mxu0 %v13117_v27  ;;  %v14692_v27 = vld [vmem:[%s16919_s0 + $0x104] ss:$8 sps:$4 sm:$0xff]  }
 0x206   :  { %17045 = vst [vmem:[#allocation33_spill] sm:$0xff] %v14692_v27 }
 0x20a   :  { %1643 = vmatmul.mubr.bf16.gmra.mrb[48].mxu0 %v14625_v15 }
 0x20b   :  { %3749 = vmatmul.mubr.bf16.gmra.mrb[48].mxu1 %v14625_v15  ;;  %10113 = vmatprep.mubr.msk.bf16.mxu0 %vm712_vm0, %v14632_v12  ;;  %v13120_v15 = vld [vmem:[%s16920_s1 + $0x358] ss:$8 sps:$4 sm:$0xff]  }
 0x20c   :  { %10379 = vmatprep.mubr.msk.bf16.mxu1 %vm712_vm0, %v14632_v12  ;;  %4243 = vmatpush1.bf16.msra.mxu1 %v13120_v15  ;;  %v14653_v12 = vld [vmem:[%s16919_s0 + $0xd0] ss:$8 sps:$4 sm:$0xff]  }
 0x20d   :  { %v14685_v15 = vld [vmem:[%s16919_s0 + $0xf0] ss:$8 sps:$4 sm:$0xff]  }
 0x20e   :  { %17044 = vst [vmem:[#allocation32_spill] sm:$0xff] %v14685_v15 }
 0x212   :  { %1653 = vmatmul.mubr.bf16.gmra.mrb[52].mxu0 %v14653_v12 }
 0x213   :  { %3759 = vmatmul.mubr.bf16.gmra.mrb[52].mxu1 %v14653_v12  ;;  %10114 = vmatprep.mubr.msk.bf16.mxu0 %vm712_vm0, %v14660_v10 }
 0x214   :  { %10380 = vmatprep.mubr.msk.bf16.mxu1 %vm712_vm0, %v14660_v10  ;;  %v14733_v10 = vld [vmem:[%s16919_s0 + $0x124] ss:$8 sps:$4 sm:$0xff]  }
 0x21a   :  { %1663 = vmatmul.mubr.bf16.gmra.mrb[56].mxu0 %v14669_v17 }
 0x21b   :  { %3769 = vmatmul.mubr.bf16.gmra.mrb[56].mxu1 %v14669_v17  ;;  %10115 = vmatprep.mubr.msk.bf16.mxu0 %vm712_vm0, %v14676_v11  ;;  %v13125_v17 = vld [vmem:[%s16920_s1 + $0x1a4] ss:$8 sps:$4 sm:$0xff]  }
 0x21c   :  { %10381 = vmatprep.mubr.msk.bf16.mxu1 %vm712_vm0, %v14676_v11  ;;  %v14701_v11 = vld [vmem:[%s16919_s0 + $0x100] ss:$8 sps:$4 sm:$0xff]   ;;  %2150 = vmatprep.subr.bf16.mxu0 %v13125_v17 }
 0x21d   :  { %17046 = vst [vmem:[#allocation34_spill] sm:$0xff] %v14701_v11 }
 0x222   :  { %1673 = vmatmul.mubr.bf16.gmra.mrb[60].mxu0 %v14685_v15 }
 0x223   :  { %3779 = vmatmul.mubr.bf16.gmra.mrb[60].mxu1 %v14685_v15  ;;  %10116 = vmatprep.mubr.msk.bf16.mxu0 %vm712_vm0, %v14692_v27  ;;  %v14708_v15 = vld [vmem:[%s16919_s0 + $0x114] ss:$8 sps:$4 sm:$0xff]  }
 0x224   :  { %10382 = vmatprep.mubr.msk.bf16.mxu1 %vm712_vm0, %v14692_v27  ;;  %17047 = vst [vmem:[#allocation35_spill] sm:$0xff] %v14708_v15  ;;  %v14717_v27 = vld [vmem:[%s16919_s0 + $0x110] ss:$8 sps:$4 sm:$0xff]  }
 0x225   :  { %17048 = vst [vmem:[#allocation36_spill] sm:$0xff] %v14717_v27 }
 0x22a   :  { %1683 = vmatmul.mubr.bf16.gmra.mrb[64].mxu0 %v14701_v11 }
 0x22b   :  { %3789 = vmatmul.mubr.bf16.gmra.mrb[64].mxu1 %v14701_v11  ;;  %10117 = vmatprep.mubr.msk.bf16.mxu0 %vm712_vm0, %v14708_v15  ;;  %v13123_v11 = vld [vmem:[%s16920_s1 + $0x1a0] ss:$8 sps:$4 sm:$0xff]  }
 0x22c   :  { %10383 = vmatprep.mubr.msk.bf16.mxu1 %vm712_vm0, %v14708_v15  ;;  %v13126_v15 = vld [vmem:[%s16920_s1 + $0x368] ss:$8 sps:$4 sm:$0xff]   ;;  %2151 = vmatpush1.bf16.msra.mxu0 %v13123_v11  ;;  %v17079_v17 = vld [vmem:[#allocation35_spill] sm:$0xff]  ;;  %v13155_v11 = vld [vmem:[%s16922_s3 + $0xb8] sm:$0xff]  }
 0x232   :  { %1693 = vmatmul.mubr.bf16.gmra.mrb[68].mxu0 %v14717_v27 }
 0x233   :  { %3799 = vmatmul.mubr.bf16.gmra.mrb[68].mxu1 %v14717_v27  ;;  %10118 = vmatprep.mubr.msk.bf16.mxu0 %vm712_vm0, %v14733_v10  ;;  %v13128_v27 = vld [vmem:[%s16920_s1 + $0x36c] ss:$8 sps:$4 sm:$0xff]  }
 0x234   :  { %10384 = vmatprep.mubr.msk.bf16.mxu1 %vm712_vm0, %v14733_v10  ;;  %4244 = vmatprep.subr.bf16.mxu1 %v13128_v27  ;;  %v17080_v27 = vld [vmem:[#allocation36_spill] sm:$0xff] }
 0x235   :  { %4245 = vmatpush1.bf16.msra.mxu1 %v13126_v15  ;;  %v13156_v15 = vld [vmem:[%s16922_s3 + $0x220] sm:$0xff]  }
 0x23a   :  { %1703 = vmatmul.mubr.bf16.gmra.mrb[72].mxu0 %v13855_v43 }
 0x23b   :  { %3809 = vmatmul.mubr.bf16.gmra.mrb[72].mxu1 %v13855_v43  ;;  %10119 = vmatprep.mubr.msk.bf16.mxu0 %vm712_vm0, %v13860_v44  ;;  %v13129_v43 = vld [vmem:[%s16920_s1 + $0x1b0] ss:$8 sps:$4 sm:$0xff]  }
 0x23c   :  { %10385 = vmatprep.mubr.msk.bf16.mxu1 %vm712_vm0, %v13860_v44  ;;  %v13131_v44 = vld [vmem:[%s16920_s1 + $0x1b4] ss:$8 sps:$4 sm:$0xff]  }
 0x23d   :  { %2152 = vmatprep.subr.bf16.mxu0 %v13131_v44  ;;  %v13349_v44 = vld [vmem:[%s16919_s0 + $0x134] ss:$8 sps:$4 sm:$0xff]  }
 0x23e   :  { %2153 = vmatpush1.bf16.msra.mxu0 %v13129_v43  ;;  %v13348_v43 = vld [vmem:[%s16919_s0 + $0x120] ss:$8 sps:$4 sm:$0xff]  }
 0x242   :  { %1713 = vmatmul.mubr.bf16.gmra.mrb[76].mxu0 %v13883_v49 }
 0x243   :  { %3819 = vmatmul.mubr.bf16.gmra.mrb[76].mxu1 %v13883_v49  ;;  %10120 = vmatprep.mubr.msk.bf16.mxu0 %vm712_vm0, %v13888_v50  ;;  %v13132_v49 = vld [vmem:[%s16920_s1 + $0x378] ss:$8 sps:$4 sm:$0xff]  }
 0x244   :  { %10386 = vmatprep.mubr.msk.bf16.mxu1 %vm712_vm0, %v13888_v50  ;;  %v13134_v50 = vld [vmem:[%s16920_s1 + $0x37c] ss:$8 sps:$4 sm:$0xff]  }
 0x245   :  { %4246 = vmatprep.subr.bf16.mxu1 %v13134_v50  ;;  %v13157_v50 = vld [vmem:[%s16922_s3 + $0xc0] sm:$0xff]  }
 0x246   :  { %4247 = vmatpush1.bf16.msra.mxu1 %v13132_v49  ;;  %v13350_v49 = vld [vmem:[%s16919_s0 + $0x130] ss:$8 sps:$4 sm:$0xff]  }
 0x24a   :  { %1723 = vmatmul.mubr.bf16.gmra.mrb[80].mxu0 %v13899_v51 }
 0x24b   :  { %3829 = vmatmul.mubr.bf16.gmra.mrb[80].mxu1 %v13899_v51  ;;  %10121 = vmatprep.mubr.msk.bf16.mxu0 %vm712_vm0, %v13904_v52  ;;  %v10166_v51 = vld [vmem:[%s16920_s1 + $0x1c0] sm:$0x77] }
 0x24c   :  { %10387 = vmatprep.mubr.msk.bf16.mxu1 %vm712_vm0, %v13904_v52  ;;  %v10432_v52 = vld [vmem:[%s16920_s1 + $0x388] sm:$0x77] }
 0x252   :  { %1733 = vmatmul.mubr.bf16.gmra.mrb[84].mxu0 %v13915_v53 }
 0x253   :  { %3839 = vmatmul.mubr.bf16.gmra.mrb[84].mxu1 %v13915_v53  ;;  %10122 = vmatprep.mubr.msk.bf16.mxu0 %vm712_vm0, %v13920_v54  ;;  %v10188_v53 = vcombine.high %v10166_v51, %v10166_v51 }
 0x254   :  { %10388 = vmatprep.mubr.msk.bf16.mxu1 %vm712_vm0, %v13920_v54  ;;  %v10452_v54 = vcombine.high %v10432_v52, %v10432_v52 }
 0x255   :  { %10189 = vmatprep.subr.msk.bf16.mxu0 %vm857_vm1, %v10188_v53  ;;  %v13353_v53 = vld [vmem:[%s16919_s0 + $0x154] ss:$8 sps:$4 sm:$0xff]  }
 0x256   :  { %10453 = vmatprep.subr.msk.bf16.mxu1 %vm857_vm1, %v10452_v54  ;;  %v13354_v54 = vld [vmem:[%s16919_s0 + $0x150] ss:$8 sps:$4 sm:$0xff]  }
 0x25a   :  { %1743 = vmatmul.mubr.bf16.gmra.mrb[88].mxu0 %v13931_v55 }
 0x25b   :  { %3849 = vmatmul.mubr.bf16.gmra.mrb[88].mxu1 %v13931_v55  ;;  %10123 = vmatprep.mubr.msk.bf16.mxu0 %vm712_vm0, %v13936_v56  ;;  %v10187_v55 = vcombine.low %v10166_v51, %v10166_v51  ;;  %v13158_v51 = vld [vmem:[%s16922_s3 + $0x228] sm:$0xff]  }
 0x25c   :  { %10389 = vmatprep.mubr.msk.bf16.mxu1 %vm712_vm0, %v13936_v56  ;;  %v10451_v56 = vcombine.low %v10432_v52, %v10432_v52  ;;  %v13352_v52 = vld [vmem:[%s16919_s0 + $0x140] ss:$8 sps:$4 sm:$0xff]  }
 0x262   :  { %1753 = vmatmul.mubr.bf16.gmra.mrb[92].mxu0 %v13947_v57 }
 0x263   :  { %3859 = vmatmul.mubr.bf16.gmra.mrb[92].mxu1 %v13947_v57  ;;  %10124 = vmatprep.mubr.msk.bf16.mxu0 %vm712_vm0, %v13952_v58  ;;  %v2131_v57 = vsel %vm857_vm1, %v10187_v55, 0  ;;  %v13355_v55 = vld [vmem:[%s16919_s0 + $0x164] ss:$8 sps:$4 sm:$0xff]  }
 0x264   :  { %10390 = vmatprep.mubr.msk.bf16.mxu1 %vm712_vm0, %v13952_v58  ;;  %2155 = vmatpush1.bf16.msra.mxu0 %v2131_v57  ;;  %v4225_v58 = vsel %vm857_vm1, %v10451_v56, 0  ;;  %v13356_v56 = vld [vmem:[%s16919_s0 + $0x160] ss:$8 sps:$4 sm:$0xff]   ;;  %v13357_v57 = vld [vmem:[%s16919_s0 + $0x174] ss:$8 sps:$4 sm:$0xff]  }
 0x265   :  { %4249 = vmatpush1.bf16.msra.mxu1 %v4225_v58  ;;  %v13159_v58 = vld [vmem:[%s16922_s3 + $0xc8] sm:$0xff]  }
 0x26a   :  { %1763 = vmatmul.mubr.bf16.gmra.mrb[96].mxu0 %v13975_v63 }
 0x26b   :  { %3869 = vmatmul.mubr.bf16.gmra.mrb[96].mxu1 %v13975_v63  ;;  %10125 = vmatprep.mubr.msk.bf16.mxu0 %vm712_vm0, %v13980_v0  ;;  %v16997_v63 = vmov 0  }
 0x26c   :  { %10391 = vmatprep.mubr.msk.bf16.mxu1 %vm712_vm0, %v13980_v0  ;;  %5885 = vmatprep.subr.bf16.mxu0 %v16997_v63  ;;  %v17049_v0 = vld [vmem:[#allocation5_spill] sm:$0xff] }
 0x26d   :  { %6925 = vmatprep.subr.bf16.mxu1 %v16997_v63 }
 0x272   :  { %1773 = vmatmul.mubr.bf16.gmra.mrb[100].mxu0 %v13991_v1 }
 0x273   :  { %3879 = vmatmul.mubr.bf16.gmra.mrb[100].mxu1 %v13991_v1  ;;  %10126 = vmatprep.mubr.msk.bf16.mxu0 %vm712_vm0, %v13996_v2  ;;  %v17050_v1 = vld [vmem:[#allocation6_spill] sm:$0xff] }
 0x274   :  { %10392 = vmatprep.mubr.msk.bf16.mxu1 %vm712_vm0, %v13996_v2  ;;  %v17051_v2 = vld [vmem:[#allocation7_spill] sm:$0xff] }
 0x27a   :  { %1783 = vmatmul.mubr.bf16.gmra.mrb[104].mxu0 %v14007_v3 }
 0x27b   :  { %3889 = vmatmul.mubr.bf16.gmra.mrb[104].mxu1 %v14007_v3  ;;  %10127 = vmatprep.mubr.msk.bf16.mxu0 %vm712_vm0, %v14012_v4  ;;  %v17052_v3 = vld [vmem:[#allocation8_spill] sm:$0xff] }
 0x27c   :  { %10393 = vmatprep.mubr.msk.bf16.mxu1 %vm712_vm0, %v14012_v4  ;;  %v13139_v4 = vld [vmem:[%s16922_s3 + $0x78] sm:$0xff]  }
 0x282   :  { %1793 = vmatmul.mubr.bf16.gmra.mrb[108].mxu0 %v14023_v5 }
 0x283   :  { %3899 = vmatmul.mubr.bf16.gmra.mrb[108].mxu1 %v14023_v5  ;;  %10128 = vmatprep.mubr.msk.bf16.mxu0 %vm712_vm0, %v14028_v6  ;;  %v13140_v5 = vld [vmem:[%s16922_s3 + $0x1e0] sm:$0xff]  }
 0x284   :  { %10394 = vmatprep.mubr.msk.bf16.mxu1 %vm712_vm0, %v14028_v6  ;;  %v13141_v6 = vld [vmem:[%s16922_s3 + $0x80] sm:$0xff]  }
 0x28a   :  { %1803 = vmatmul.mubr.bf16.gmra.mrb[112].mxu0 %v14039_v7 }
 0x28b   :  { %3909 = vmatmul.mubr.bf16.gmra.mrb[112].mxu1 %v14039_v7  ;;  %10129 = vmatprep.mubr.msk.bf16.mxu0 %vm712_vm0, %v14044_v8  ;;  %v13142_v7 = vld [vmem:[%s16922_s3 + $0x1e8] sm:$0xff]  }
 0x28c   :  { %10395 = vmatprep.mubr.msk.bf16.mxu1 %vm712_vm0, %v14044_v8  ;;  %v13143_v8 = vld [vmem:[%s16922_s3 + $0x88] sm:$0xff]  }
 0x292   :  { %1813 = vmatmul.mubr.bf16.gmra.mrb[116].mxu0 %v14064_v16 }
 0x293   :  { %3919 = vmatmul.mubr.bf16.gmra.mrb[116].mxu1 %v14064_v16  ;;  %10130 = vmatprep.mubr.msk.bf16.mxu0 %vm712_vm0, %v14070_v18  ;;  %v13144_v16 = vld [vmem:[%s16922_s3 + $0x1f0] sm:$0xff]  }
 0x294   :  { %10396 = vmatprep.mubr.msk.bf16.mxu1 %vm712_vm0, %v14070_v18  ;;  %v17053_v18 = vld [vmem:[#allocation9_spill] sm:$0xff] }
 0x29a   :  { %1823 = vmatmul.mubr.bf16.gmra.mrb[120].mxu0 %v14081_v19 }
 0x29b   :  { %3929 = vmatmul.mubr.bf16.gmra.mrb[120].mxu1 %v14081_v19  ;;  %10131 = vmatprep.mubr.msk.bf16.mxu0 %vm712_vm0, %v14086_v20  ;;  %v17054_v19 = vld [vmem:[#allocation10_spill] sm:$0xff] }
 0x29c   :  { %10397 = vmatprep.mubr.msk.bf16.mxu1 %vm712_vm0, %v14086_v20  ;;  %v13145_v20 = vld [vmem:[%s16922_s3 + $0x90] sm:$0xff]  }
 0x2a2   :  { %1833 = vmatmul.mubr.bf16.gmra.mrb[124].mxu0 %v14097_v21 }
 0x2a3   :  { %3939 = vmatmul.mubr.bf16.gmra.mrb[124].mxu1 %v14097_v21  ;;  %10132 = vmatprep.mubr.msk.bf16.mxu0 %vm712_vm0, %v14102_v22  ;;  %v13146_v21 = vld [vmem:[%s16922_s3 + $0x1f8] sm:$0xff]  }
 0x2a4   :  { %10398 = vmatprep.mubr.msk.bf16.mxu1 %vm712_vm0, %v14102_v22  ;;  %v13147_v22 = vld [vmem:[%s16922_s3 + $0x98] sm:$0xff]  }
 0x2aa   :  { %1843 = vmatmul.mubr.bf16.gmra.mrb[128].mxu0 %v14113_v23 }
 0x2ab   :  { %3949 = vmatmul.mubr.bf16.gmra.mrb[128].mxu1 %v14113_v23  ;;  %10133 = vmatprep.mubr.msk.bf16.mxu0 %vm712_vm0, %v14118_v24  ;;  %v13148_v23 = vld [vmem:[%s16922_s3 + $0x200] sm:$0xff]  }
 0x2ac   :  { %10399 = vmatprep.mubr.msk.bf16.mxu1 %vm712_vm0, %v14118_v24  ;;  %v17055_v24 = vld [vmem:[#allocation11_spill] sm:$0xff] }
 0x2b2   :  { %1853 = vmatmul.mubr.bf16.gmra.mrb[132].mxu0 %v14129_v25 }
 0x2b3   :  { %3959 = vmatmul.mubr.bf16.gmra.mrb[132].mxu1 %v14129_v25  ;;  %10134 = vmatprep.mubr.msk.bf16.mxu0 %vm712_vm0, %v14134_v26  ;;  %v17056_v25 = vld [vmem:[#allocation12_spill] sm:$0xff] }
 0x2b4   :  { %10400 = vmatprep.mubr.msk.bf16.mxu1 %vm712_vm0, %v14134_v26  ;;  %v17057_v26 = vld [vmem:[#allocation13_spill] sm:$0xff] }
 0x2ba   :  { %1863 = vmatmul.mubr.bf16.gmra.mrb[136].mxu0 %v14151_v29 }
 0x2bb   :  { %3969 = vmatmul.mubr.bf16.gmra.mrb[136].mxu1 %v14151_v29  ;;  %10135 = vmatprep.mubr.msk.bf16.mxu0 %vm712_vm0, %v14156_v30  ;;  %v17058_v29 = vld [vmem:[#allocation14_spill] sm:$0xff] }
 0x2bc   :  { %10401 = vmatprep.mubr.msk.bf16.mxu1 %vm712_vm0, %v14156_v30  ;;  %v17059_v30 = vld [vmem:[#allocation15_spill] sm:$0xff] }
 0x2c2   :  { %1873 = vmatmul.mubr.bf16.gmra.mrb[140].mxu0 %v14167_v31 }
 0x2c3   :  { %3979 = vmatmul.mubr.bf16.gmra.mrb[140].mxu1 %v14167_v31  ;;  %10136 = vmatprep.mubr.msk.bf16.mxu0 %vm712_vm0, %v14172_v32  ;;  %v13149_v31 = vld [vmem:[%s16922_s3 + $0xa0] sm:$0xff]  }
 0x2c4   :  { %10402 = vmatprep.mubr.msk.bf16.mxu1 %vm712_vm0, %v14172_v32  ;;  %v13150_v32 = vld [vmem:[%s16922_s3 + $0x208] sm:$0xff]  }
 0x2ca   :  { %1883 = vmatmul.mubr.bf16.gmra.mrb[144].mxu0 %v14183_v33 }
 0x2cb   :  { %3989 = vmatmul.mubr.bf16.gmra.mrb[144].mxu1 %v14183_v33  ;;  %10137 = vmatprep.mubr.msk.bf16.mxu0 %vm712_vm0, %v14188_v34  ;;  %v17060_v33 = vld [vmem:[#allocation16_spill] sm:$0xff] }
 0x2cc   :  { %10403 = vmatprep.mubr.msk.bf16.mxu1 %vm712_vm0, %v14188_v34  ;;  %v17061_v34 = vld [vmem:[#allocation17_spill] sm:$0xff] }
 0x2d2   :  { %1893 = vmatmul.mubr.bf16.gmra.mrb[148].mxu0 %v14199_v35 }
 0x2d3   :  { %3999 = vmatmul.mubr.bf16.gmra.mrb[148].mxu1 %v14199_v35  ;;  %10138 = vmatprep.mubr.msk.bf16.mxu0 %vm712_vm0, %v14204_v36  ;;  %v17062_v35 = vld [vmem:[#allocation18_spill] sm:$0xff] }
 0x2d4   :  { %10404 = vmatprep.mubr.msk.bf16.mxu1 %vm712_vm0, %v14204_v36  ;;  %v17063_v36 = vld [vmem:[#allocation19_spill] sm:$0xff] }
 0x2da   :  { %1903 = vmatmul.mubr.bf16.gmra.mrb[152].mxu0 %v14215_v37 }
 0x2db   :  { %4009 = vmatmul.mubr.bf16.gmra.mrb[152].mxu1 %v14215_v37  ;;  %10139 = vmatprep.mubr.msk.bf16.mxu0 %vm712_vm0, %v14220_v38  ;;  %v17064_v37 = vld [vmem:[#allocation20_spill] sm:$0xff] }
 0x2dc   :  { %10405 = vmatprep.mubr.msk.bf16.mxu1 %vm712_vm0, %v14220_v38  ;;  %v17065_v38 = vld [vmem:[#allocation21_spill] sm:$0xff] }
 0x2e2   :  { %1913 = vmatmul.mubr.bf16.gmra.mrb[156].mxu0 %v14231_v39 }
 0x2e3   :  { %4019 = vmatmul.mubr.bf16.gmra.mrb[156].mxu1 %v14231_v39  ;;  %10140 = vmatprep.mubr.msk.bf16.mxu0 %vm712_vm0, %v14236_v40  ;;  %v13151_v39 = vld [vmem:[%s16922_s3 + $0xa8] sm:$0xff]  }
 0x2e4   :  { %10406 = vmatprep.mubr.msk.bf16.mxu1 %vm712_vm0, %v14236_v40  ;;  %v13152_v40 = vld [vmem:[%s16922_s3 + $0x210] sm:$0xff]  }
 0x2ea   :  { %1923 = vmatmul.mubr.bf16.gmra.mrb[160].mxu0 %v14247_v41 }
 0x2eb   :  { %4029 = vmatmul.mubr.bf16.gmra.mrb[160].mxu1 %v14247_v41  ;;  %10141 = vmatprep.mubr.msk.bf16.mxu0 %vm712_vm0, %v14252_v42  ;;  %v17066_v41 = vld [vmem:[#allocation22_spill] sm:$0xff] }
 0x2ec   :  { %10407 = vmatprep.mubr.msk.bf16.mxu1 %vm712_vm0, %v14252_v42  ;;  %v17067_v42 = vld [vmem:[#allocation23_spill] sm:$0xff] }
 0x2f2   :  { %1933 = vmatmul.mubr.bf16.gmra.mrb[164].mxu0 %v14263_v45 }
 0x2f3   :  { %4039 = vmatmul.mubr.bf16.gmra.mrb[164].mxu1 %v14263_v45  ;;  %10142 = vmatprep.mubr.msk.bf16.mxu0 %vm712_vm0, %v14268_v46  ;;  %v17068_v45 = vld [vmem:[#allocation24_spill] sm:$0xff] }
 0x2f4   :  { %10408 = vmatprep.mubr.msk.bf16.mxu1 %vm712_vm0, %v14268_v46  ;;  %v17069_v46 = vld [vmem:[#allocation25_spill] sm:$0xff] }
 0x2fa   :  { %1943 = vmatmul.mubr.bf16.gmra.mrb[168].mxu0 %v14279_v47 }
 0x2fb   :  { %4049 = vmatmul.mubr.bf16.gmra.mrb[168].mxu1 %v14279_v47  ;;  %10143 = vmatprep.mubr.msk.bf16.mxu0 %vm712_vm0, %v14284_v48  ;;  %v17070_v47 = vld [vmem:[#allocation26_spill] sm:$0xff] }
 0x2fc   :  { %10409 = vmatprep.mubr.msk.bf16.mxu1 %vm712_vm0, %v14284_v48  ;;  %v17071_v48 = vld [vmem:[#allocation27_spill] sm:$0xff] }
 0x302   :  { %1953 = vmatmul.mubr.bf16.gmra.mrb[172].mxu0 %v14295_v59 }
 0x303   :  { %4059 = vmatmul.mubr.bf16.gmra.mrb[172].mxu1 %v14295_v59  ;;  %10144 = vmatprep.mubr.msk.bf16.mxu0 %vm712_vm0, %v14300_v60  ;;  %v17072_v59 = vld [vmem:[#allocation28_spill] sm:$0xff] }
 0x304   :  { %10410 = vmatprep.mubr.msk.bf16.mxu1 %vm712_vm0, %v14300_v60  ;;  %v17073_v60 = vld [vmem:[#allocation29_spill] sm:$0xff] }
 0x30a   :  { %1963 = vmatmul.mubr.bf16.gmra.mrb[176].mxu0 %v14311_v61 }
 0x30b   :  { %4069 = vmatmul.mubr.bf16.gmra.mrb[176].mxu1 %v14311_v61  ;;  %10145 = vmatprep.mubr.msk.bf16.mxu0 %vm712_vm0, %v14316_v62  ;;  %v13153_v61 = vld [vmem:[%s16922_s3 + $0xb0] sm:$0xff]  }
 0x30c   :  { %10411 = vmatprep.mubr.msk.bf16.mxu1 %vm712_vm0, %v14316_v62  ;;  %v13154_v62 = vld [vmem:[%s16922_s3 + $0x218] sm:$0xff]  }
 0x312   :  { %1973 = vmatmul.mubr.bf16.gmra.mrb[180].mxu0 %v14327_v9 }
 0x313   :  { %4079 = vmatmul.mubr.bf16.gmra.mrb[180].mxu1 %v14327_v9  ;;  %10146 = vmatprep.mubr.msk.bf16.mxu0 %vm712_vm0, %v17049_v0  ;;  %v17074_v9 = vld [vmem:[#allocation30_spill] sm:$0xff] }
 0x314   :  { %10412 = vmatprep.mubr.msk.bf16.mxu1 %vm712_vm0, %v17049_v0  ;;  %v13160_v0 = vld [vmem:[%s16922_s3 + $0x230] sm:$0xff]  }
 0x31a   :  { %1983 = vmatmul.mubr.bf16.gmra.mrb[184].mxu0 %v17050_v1 }
 0x31b   :  { %4089 = vmatmul.mubr.bf16.gmra.mrb[184].mxu1 %v17050_v1  ;;  %10147 = vmatprep.mubr.msk.bf16.mxu0 %vm712_vm0, %v17051_v2  ;;  %v13358_v1 = vld [vmem:[%s16919_s0 + $0x170] ss:$8 sps:$4 sm:$0xff]  }
 0x31c   :  { %10413 = vmatprep.mubr.msk.bf16.mxu1 %vm712_vm0, %v17051_v2  ;;  %v13359_v2 = vld [vmem:[%s16919_s0 + $0x184] ss:$8 sps:$4 sm:$0xff]  }
 0x322   :  { %1993 = vmatmul.mubr.bf16.gmra.mrb[188].mxu0 %v17052_v3 }
 0x323   :  { %4099 = vmatmul.mubr.bf16.gmra.mrb[188].mxu1 %v17052_v3  ;;  %10190 = vmatprep.mubr.msk.bf16.mxu0 %vm712_vm0, %v14426_v13  ;;  %v13360_v3 = vld [vmem:[%s16919_s0 + $0x180] ss:$8 sps:$4 sm:$0xff]  }
 0x324   :  { %10454 = vmatprep.mubr.msk.bf16.mxu1 %vm712_vm0, %v14426_v13  ;;  %v17075_v13 = vld [vmem:[#allocation31_spill] sm:$0xff] }
 0x32a   :  { %2169 = vmatmul.mubr.bf16.vlgmr.msra.gmra.mrb[0].mxu0 %v14441_v28 }
 0x32b   :  { %4263 = vmatmul.mubr.bf16.vlgmr.msra.gmra.mrb[0].mxu1 %v14441_v28  ;;  %10191 = vmatprep.mubr.msk.bf16.mxu0 %vm712_vm0, %v14448_v14  ;;  %v17076_v28 = vld [vmem:[#allocation32_spill] sm:$0xff] }
 0x32c   :  { %10455 = vmatprep.mubr.msk.bf16.mxu1 %vm712_vm0, %v14448_v14  ;;  %5886 = vmatpush1.bf16.msra.mxu0 %v13139_v4  ;;  %v17077_v14 = vld [vmem:[#allocation33_spill] sm:$0xff] }
 0x32d   :  { %6926 = vmatpush1.bf16.msra.mxu1 %v13140_v5  ;;  %5887 = vmatprep.subr.bf16.mxu0 %v16997_v63  ;;  %v13361_v4 = vld [vmem:[%s16919_s0 + $0x194] ss:$8 sps:$4 sm:$0xff]   ;;  %v13362_v5 = vld [vmem:[%s16919_s0 + $0x190] ss:$8 sps:$4 sm:$0xff]  }
 0x32e   :  { %6927 = vmatprep.subr.bf16.mxu1 %v16997_v63 }
 0x330   :  { %5888 = vmatpush1.bf16.msra.mxu0 %v13141_v6  ;;  %v13363_v6 = vld [vmem:[%s16919_s0 + $0x1a4] ss:$8 sps:$4 sm:$0xff]  }
 0x331   :  { %6928 = vmatpush1.bf16.msra.mxu1 %v13142_v7  ;;  %5889 = vmatprep.subr.bf16.mxu0 %v16997_v63  ;;  %v13364_v7 = vld [vmem:[%s16919_s0 + $0x1a0] ss:$8 sps:$4 sm:$0xff]  }
 0x332   :  { %6929 = vmatprep.subr.bf16.mxu1 %v16997_v63  ;;  %2179 = vmatmul.mubr.bf16.gmra.mrb[4].mxu0 %v17053_v18 }
 0x333   :  { %4273 = vmatmul.mubr.bf16.gmra.mrb[4].mxu1 %v17053_v18  ;;  %10192 = vmatprep.mubr.msk.bf16.mxu0 %vm712_vm0, %v17054_v19  ;;  %v13162_v18 = vld [vmem:[%s16922_s3 + $0x238] sm:$0xff]  }
 0x334   :  { %10456 = vmatprep.mubr.msk.bf16.mxu1 %vm712_vm0, %v17054_v19  ;;  %5890 = vmatpush1.bf16.msra.mxu0 %v13143_v8  ;;  %v13365_v8 = vld [vmem:[%s16919_s0 + $0x1b4] ss:$8 sps:$4 sm:$0xff]   ;;  %v13366_v19 = vld [vmem:[%s16919_s0 + $0x1b0] ss:$8 sps:$4 sm:$0xff]  }
 0x335   :  { %6930 = vmatpush1.bf16.msra.mxu1 %v13144_v16  ;;  %5891 = vmatprep.subr.bf16.mxu0 %v16997_v63  ;;  %v13161_v16 = vld [vmem:[%s16922_s3 + $0xd0] sm:$0xff]  }
 0x336   :  { %6931 = vmatprep.subr.bf16.mxu1 %v16997_v63 }
 0x338   :  { %5892 = vmatpush1.bf16.msra.mxu0 %v13145_v20  ;;  %v13367_v20 = vld [vmem:[%s16919_s0 + $0x1c4] ss:$8 sps:$4 sm:$0xff]  }
 0x339   :  { %6932 = vmatpush1.bf16.msra.mxu1 %v13146_v21  ;;  %5893 = vmatprep.subr.bf16.mxu0 %v16997_v63  ;;  %v5129_v21 = vlaneseq }
 0x33a   :  { %6933 = vmatprep.subr.bf16.mxu1 %v16997_v63  ;;  %2189 = vmatmul.mubr.bf16.gmra.mrb[8].mxu0 %v17055_v24 }
 0x33b   :  { %4283 = vmatmul.mubr.bf16.gmra.mrb[8].mxu1 %v17055_v24  ;;  %10193 = vmatprep.mubr.msk.bf16.mxu0 %vm712_vm0, %v17056_v25  ;;  %v13369_v24 = vld [vmem:[%s16919_s0 + $0x1d4] ss:$8 sps:$4 sm:$0xff]  }
 0x33c   :  { %10457 = vmatprep.mubr.msk.bf16.mxu1 %vm712_vm0, %v17056_v25  ;;  %5894 = vmatpush1.bf16.msra.mxu0 %v13147_v22  ;;  %v13368_v22 = vld [vmem:[%s16919_s0 + $0x1c0] ss:$8 sps:$4 sm:$0xff]  }
 0x33d   :  { %6934 = vmatpush1.bf16.msra.mxu1 %v13148_v23  ;;  %5895 = vmatprep.subr.bf16.mxu0 %v16997_v63  ;;  %v5130_v23 = vshrl.u32 %v5129_v21, 7 }
 0x33e   :  { %6935 = vmatprep.subr.bf16.mxu1 %v16997_v63 }
 0x340   :  { %5896 = vmatpush1.bf16.msra.mxu0 %v13149_v31 }
 0x341   :  { %6936 = vmatpush1.bf16.msra.mxu1 %v13150_v32  ;;  %5897 = vmatprep.subr.bf16.mxu0 %v16997_v63 }
 0x342   :  { %2199 = vmatmul.mubr.bf16.gmra.mrb[12].mxu0 %v17057_v26  ;;  %6937 = vmatprep.subr.bf16.mxu1 %v16997_v63 }
 0x343   :  { %4293 = vmatmul.mubr.bf16.gmra.mrb[12].mxu1 %v17057_v26  ;;  %10194 = vmatprep.mubr.msk.bf16.mxu0 %vm712_vm0, %v17058_v29 }
 0x344   :  { %10458 = vmatprep.mubr.msk.bf16.mxu1 %vm712_vm0, %v17058_v29  ;;  %5898 = vmatpush1.bf16.msra.mxu0 %v13151_v39 }
 0x345   :  { %6938 = vmatpush1.bf16.msra.mxu1 %v13152_v40  ;;  %5899 = vmatprep.subr.bf16.mxu0 %v16997_v63 }
 0x346   :  { %6939 = vmatprep.subr.bf16.mxu1 %v16997_v63 }
 0x348   :  { %5900 = vmatpush1.bf16.msra.mxu0 %v13153_v61  ;;  %v13164_v61 = vld [vmem:[%s16922_s3 + $0x240] sm:$0xff]  }
 0x349   :  { %6940 = vmatpush1.bf16.msra.mxu1 %v13154_v62  ;;  %5901 = vmatprep.subr.bf16.mxu0 %v16997_v63 }
 0x34a   :  { %2209 = vmatmul.mubr.bf16.gmra.mrb[16].mxu0 %v17059_v30  ;;  %6941 = vmatprep.subr.bf16.mxu1 %v16997_v63 }
 0x34b   :  { %4303 = vmatmul.mubr.bf16.gmra.mrb[16].mxu1 %v17059_v30  ;;  %10195 = vmatprep.mubr.msk.bf16.mxu0 %vm712_vm0, %v17060_v33  ;;  %v5131_v30 = vsub.s32 0, %v5130_v23 }
 0x34c   :  { %10459 = vmatprep.mubr.msk.bf16.mxu1 %vm712_vm0, %v17060_v33  ;;  %5902 = vmatpush1.bf16.msra.mxu0 %v13155_v11  ;;  %v5127_v33 = vld [vmem:[%s16921_s2] sm:$0x3] }
 0x34d   :  { %6942 = vmatpush1.bf16.msra.mxu1 %v13156_v15  ;;  %5903 = vmatprep.subr.bf16.mxu0 %v16997_v63 }
 0x34e   :  { %6943 = vmatprep.subr.bf16.mxu1 %v16997_v63 }
 0x350   :  { %5904 = vmatpush1.bf16.msra.mxu0 %v13157_v50 }
 0x351   :  { %6944 = vmatpush1.bf16.msra.mxu1 %v13158_v51  ;;  %5905 = vmatprep.subr.bf16.mxu0 %v16997_v63 }
 0x352   :  { %2219 = vmatmul.mubr.bf16.gmra.mrb[20].mxu0 %v17061_v34  ;;  %6945 = vmatprep.subr.bf16.mxu1 %v16997_v63 }
 0x353   :  { %4313 = vmatmul.mubr.bf16.gmra.mrb[20].mxu1 %v17061_v34  ;;  %10196 = vmatprep.mubr.msk.bf16.mxu0 %vm712_vm0, %v17062_v35 }
 0x354   :  { %10460 = vmatprep.mubr.msk.bf16.mxu1 %vm712_vm0, %v17062_v35  ;;  %5906 = vmatpush1.bf16.msra.mxu0 %v13159_v58  ;;  %v5135_v35 = vsub.s32 1, %v5130_v23 }
 0x355   :  { %6946 = vmatpush1.bf16.msra.mxu1 %v13160_v0  ;;  %5907 = vmatprep.subr.bf16.mxu0 %v16997_v63  ;;  %v13373_v0 = vld [vmem:[%s16919_s0 + $0x1f4] ss:$8 sps:$4 sm:$0xff]  }
 0x356   :  { %6947 = vmatprep.subr.bf16.mxu1 %v16997_v63 }
 0x358   :  { %5908 = vmatpush1.bf16.msra.mxu0 %v13161_v16 }
 0x359   :  { %6948 = vmatpush1.bf16.msra.mxu1 %v13162_v18  ;;  %5909 = vmatprep.subr.bf16.mxu0 %v16997_v63 }
 0x35a   :  { %2229 = vmatmul.mubr.bf16.gmra.mrb[24].mxu0 %v17063_v36  ;;  %6949 = vmatprep.subr.bf16.mxu1 %v16997_v63 }
 0x35b   :  { %4323 = vmatmul.mubr.bf16.gmra.mrb[24].mxu1 %v17063_v36  ;;  %10197 = vmatprep.mubr.msk.bf16.mxu0 %vm712_vm0, %v17064_v37 }
 0x35c   :  { %10461 = vmatprep.mubr.msk.bf16.mxu1 %vm712_vm0, %v17064_v37 }
 0x35d   :  { %6950 = vmatpush1.bf16.msra.mxu1 %v13164_v61 }
 0x35e   :  { %6951 = vmatprep.subr.bf16.mxu1 %v16997_v63 }
 0x362   :  { %2239 = vmatmul.mubr.bf16.gmra.mrb[28].mxu0 %v17065_v38 }
 0x363   :  { %4333 = vmatmul.mubr.bf16.gmra.mrb[28].mxu1 %v17065_v38  ;;  %10198 = vmatprep.mubr.msk.bf16.mxu0 %vm712_vm0, %v17066_v41 }
 0x364   :  { %10462 = vmatprep.mubr.msk.bf16.mxu1 %vm712_vm0, %v17066_v41 }
 0x36a   :  { %2249 = vmatmul.mubr.bf16.gmra.mrb[32].mxu0 %v17067_v42 }
 0x36b   :  { %4343 = vmatmul.mubr.bf16.gmra.mrb[32].mxu1 %v17067_v42  ;;  %10199 = vmatprep.mubr.msk.bf16.mxu0 %vm712_vm0, %v17068_v45  ;;  %v15229_v42 = vrot.slane %v5127_v33, %v5131_v30 }
 0x36c   :  { %10463 = vmatprep.mubr.msk.bf16.mxu1 %vm712_vm0, %v17068_v45  ;;  %v13370_v45 = vld [vmem:[%s16919_s0 + $0x1d0] ss:$8 sps:$4 sm:$0xff]  }
 0x372   :  { %2259 = vmatmul.mubr.bf16.gmra.mrb[36].mxu0 %v17069_v46 }
 0x373   :  { %4353 = vmatmul.mubr.bf16.gmra.mrb[36].mxu1 %v17069_v46  ;;  %10200 = vmatprep.mubr.msk.bf16.mxu0 %vm712_vm0, %v17070_v47  ;;  %v15234_v46 = vrot.slane %v5127_v33, %v5135_v35  ;;  %v13374_v33 = vld [vmem:[%s16919_s0 + $0x1f0] ss:$8 sps:$4 sm:$0xff]  }
 0x374   :  { %10464 = vmatprep.mubr.msk.bf16.mxu1 %vm712_vm0, %v17070_v47  ;;  %v13371_v47 = vld [vmem:[%s16919_s0 + $0x1e4] ss:$8 sps:$4 sm:$0xff]  }
 0x37a   :  { %2269 = vmatmul.mubr.bf16.gmra.mrb[40].mxu0 %v17071_v48 }
 0x37b   :  { %4363 = vmatmul.mubr.bf16.gmra.mrb[40].mxu1 %v17071_v48  ;;  %10201 = vmatprep.mubr.msk.bf16.mxu0 %vm712_vm0, %v17072_v59 }
 0x37c   :  { %10465 = vmatprep.mubr.msk.bf16.mxu1 %vm712_vm0, %v17072_v59 }
 0x382   :  { %2279 = vmatmul.mubr.bf16.gmra.mrb[44].mxu0 %v14653_v12 }
 0x383   :  { %4373 = vmatmul.mubr.bf16.gmra.mrb[44].mxu1 %v14653_v12  ;;  %10202 = vmatprep.mubr.msk.bf16.mxu0 %vm712_vm0, %v17073_v60  ;;  %v17078_v12 = vld [vmem:[#allocation34_spill] sm:$0xff] }
 0x384   :  { %10466 = vmatprep.mubr.msk.bf16.mxu1 %vm712_vm0, %v17073_v60  ;;  %v13163_v60 = vld [vmem:[%s16922_s3 + $0xd8] sm:$0xff]  }
 0x385   :  { %5910 = vmatpush1.bf16.msra.mxu0 %v13163_v60 }
 0x386   :  { %5911 = vmatprep.subr.bf16.mxu0 %v16997_v63 }
 0x38a   :  { %2289 = vmatmul.mubr.bf16.gmra.mrb[48].mxu0 %v17074_v9 }
 0x38b   :  { %4383 = vmatmul.mubr.bf16.gmra.mrb[48].mxu1 %v17074_v9  ;;  %10203 = vmatprep.mubr.msk.bf16.mxu0 %vm712_vm0, %v17075_v13 }
 0x38c   :  { %10467 = vmatprep.mubr.msk.bf16.mxu1 %vm712_vm0, %v17075_v13 }
 0x392   :  { %2299 = vmatmul.mubr.bf16.gmra.mrb[52].mxu0 %v17076_v28 }
 0x393   :  { %4393 = vmatmul.mubr.bf16.gmra.mrb[52].mxu1 %v17076_v28  ;;  %10204 = vmatprep.mubr.msk.bf16.mxu0 %vm712_vm0, %v17077_v14 }
 0x394   :  { %10468 = vmatprep.mubr.msk.bf16.mxu1 %vm712_vm0, %v17077_v14 }
 0x39a   :  { %2309 = vmatmul.mubr.bf16.gmra.mrb[56].mxu0 %v17078_v12 }
 0x39b   :  { %4403 = vmatmul.mubr.bf16.gmra.mrb[56].mxu1 %v17078_v12  ;;  %10205 = vmatprep.mubr.msk.bf16.mxu0 %vm712_vm0, %v17079_v17 }
 0x39c   :  { %10469 = vmatprep.mubr.msk.bf16.mxu1 %vm712_vm0, %v17079_v17 }
 0x3a2   :  { %2319 = vmatmul.mubr.bf16.gmra.mrb[60].mxu0 %v17080_v27 }
 0x3a3   :  { %4413 = vmatmul.mubr.bf16.gmra.mrb[60].mxu1 %v17080_v27  ;;  %10206 = vmatprep.mubr.msk.bf16.mxu0 %vm712_vm0, %v14733_v10 }
 0x3a4   :  { %10470 = vmatprep.mubr.msk.bf16.mxu1 %vm712_vm0, %v14733_v10  ;;  %v13351_v10 = vld [vmem:[%s16919_s0 + $0x144] ss:$8 sps:$4 sm:$0xff]  }
 0x3aa   :  { %2329 = vmatmul.mubr.bf16.gmra.mrb[64].mxu0 %v13348_v43 }
 0x3ab   :  { %4423 = vmatmul.mubr.bf16.gmra.mrb[64].mxu1 %v13348_v43  ;;  %10207 = vmatprep.mubr.msk.bf16.mxu0 %vm712_vm0, %v13349_v44 }
 0x3ac   :  { %10471 = vmatprep.mubr.msk.bf16.mxu1 %vm712_vm0, %v13349_v44 }
 0x3b2   :  { %2339 = vmatmul.mubr.bf16.gmra.mrb[68].mxu0 %v13350_v49 }
 0x3b3   :  { %4433 = vmatmul.mubr.bf16.gmra.mrb[68].mxu1 %v13350_v49  ;;  %10208 = vmatprep.mubr.msk.bf16.mxu0 %vm712_vm0, %v13351_v10 }
 0x3b4   :  { %10472 = vmatprep.mubr.msk.bf16.mxu1 %vm712_vm0, %v13351_v10 }
 0x3ba   :  { %2349 = vmatmul.mubr.bf16.gmra.mrb[72].mxu0 %v13352_v52 }
 0x3bb   :  { %4443 = vmatmul.mubr.bf16.gmra.mrb[72].mxu1 %v13352_v52  ;;  %10209 = vmatprep.mubr.msk.bf16.mxu0 %vm712_vm0, %v13353_v53 }
 0x3bc   :  { %10473 = vmatprep.mubr.msk.bf16.mxu1 %vm712_vm0, %v13353_v53 }
 0x3c2   :  { %2359 = vmatmul.mubr.bf16.gmra.mrb[76].mxu0 %v13354_v54 }
 0x3c3   :  { %4453 = vmatmul.mubr.bf16.gmra.mrb[76].mxu1 %v13354_v54  ;;  %10210 = vmatprep.mubr.msk.bf16.mxu0 %vm712_vm0, %v13355_v55 }
 0x3c4   :  { %10474 = vmatprep.mubr.msk.bf16.mxu1 %vm712_vm0, %v13355_v55  ;;  %v13372_v55 = vld [vmem:[%s16919_s0 + $0x1e0] ss:$8 sps:$4 sm:$0xff]  }
 0x3ca   :  { %2369 = vmatmul.mubr.bf16.gmra.mrb[80].mxu0 %v13356_v56 }
 0x3cb   :  { %4463 = vmatmul.mubr.bf16.gmra.mrb[80].mxu1 %v13356_v56  ;;  %10211 = vmatprep.mubr.msk.bf16.mxu0 %vm712_vm0, %v13357_v57 }
 0x3cc   :  { %10475 = vmatprep.mubr.msk.bf16.mxu1 %vm712_vm0, %v13357_v57 }
 0x3d2   :  { %2379 = vmatmul.mubr.bf16.gmra.mrb[84].mxu0 %v13358_v1 }
 0x3d3   :  { %4473 = vmatmul.mubr.bf16.gmra.mrb[84].mxu1 %v13358_v1  ;;  %10212 = vmatprep.mubr.msk.bf16.mxu0 %vm712_vm0, %v13359_v2 }
 0x3d4   :  { %10476 = vmatprep.mubr.msk.bf16.mxu1 %vm712_vm0, %v13359_v2 }
 0x3da   :  { %2389 = vmatmul.mubr.bf16.gmra.mrb[88].mxu0 %v13360_v3 }
 0x3db   :  { %4483 = vmatmul.mubr.bf16.gmra.mrb[88].mxu1 %v13360_v3  ;;  %10213 = vmatprep.mubr.msk.bf16.mxu0 %vm712_vm0, %v13361_v4 }
 0x3dc   :  { %10477 = vmatprep.mubr.msk.bf16.mxu1 %vm712_vm0, %v13361_v4 }
 0x3e2   :  { %2399 = vmatmul.mubr.bf16.gmra.mrb[92].mxu0 %v13362_v5 }
 0x3e3   :  { %4493 = vmatmul.mubr.bf16.gmra.mrb[92].mxu1 %v13362_v5  ;;  %10214 = vmatprep.mubr.msk.bf16.mxu0 %vm712_vm0, %v13363_v6 }
 0x3e4   :  { %10478 = vmatprep.mubr.msk.bf16.mxu1 %vm712_vm0, %v13363_v6 }
 0x3ea   :  { %2409 = vmatmul.mubr.bf16.gmra.mrb[96].mxu0 %v13364_v7 }
 0x3eb   :  { %4503 = vmatmul.mubr.bf16.gmra.mrb[96].mxu1 %v13364_v7  ;;  %10215 = vmatprep.mubr.msk.bf16.mxu0 %vm712_vm0, %v13365_v8 }
 0x3ec   :  { %10479 = vmatprep.mubr.msk.bf16.mxu1 %vm712_vm0, %v13365_v8 }
 0x3f2   :  { %2419 = vmatmul.mubr.bf16.gmra.mrb[100].mxu0 %v13366_v19 }
 0x3f3   :  { %4513 = vmatmul.mubr.bf16.gmra.mrb[100].mxu1 %v13366_v19  ;;  %10216 = vmatprep.mubr.msk.bf16.mxu0 %vm712_vm0, %v13367_v20 }
 0x3f4   :  { %10480 = vmatprep.mubr.msk.bf16.mxu1 %vm712_vm0, %v13367_v20 }
 0x3fa   :  { %2429 = vmatmul.mubr.bf16.gmra.mrb[104].mxu0 %v13368_v22 }
 0x3fb   :  { %4523 = vmatmul.mubr.bf16.gmra.mrb[104].mxu1 %v13368_v22  ;;  %10217 = vmatprep.mubr.msk.bf16.mxu0 %vm712_vm0, %v13369_v24 }
 0x3fc   :  { %10481 = vmatprep.mubr.msk.bf16.mxu1 %vm712_vm0, %v13369_v24 }
 0x3fd   :  { %v2170_v25 = vpop.f32.mrb[0].mxu0 }
 0x3fe   :  { %v4264_v26 = vpop.f32.mrb[0].mxu1  ;;  %v2172_v31 = vpop.f32.mrb[1].mxu0 }
 0x3ff   :  { %v4935_v29 = vmax.f32 %v2170_v25, %v4264_v26  ;;  %v4266_v32 = vpop.f32.mrb[1].mxu1  ;;  %v2174_v36 = vpop.f32.mrb[2].mxu0 }
 0x400   :  { %v4936_v34 = vmax.f32 %v2172_v31, %v4266_v32  ;;  %v4268_v37 = vpop.f32.mrb[2].mxu1  ;;  %v2176_v39 = vpop.f32.mrb[3].mxu0 }
 0x401   :  { %v4937_v38 = vmax.f32 %v2174_v36, %v4268_v37  ;;  %v4270_v40 = vpop.f32.mrb[3].mxu1  ;;  %v5139_v62 = vadd.f32 %v15229_v42, %v4935_v29 }
 0x402   :  { %v4938_v41 = vmax.f32 %v2176_v39, %v4270_v40  ;;  %2439 = vmatmul.mubr.bf16.gmra.mrb[108].mxu0 %v13370_v45  ;;  %v5140_v14 = vadd.f32 %v15234_v46, %v4936_v34  ;;  %v13375_v34 = vld [vmem:[%s16919_s0 + $0x204] ss:$8 sps:$4 sm:$0xff]  }
 0x403   :  { %4533 = vmatmul.mubr.bf16.gmra.mrb[108].mxu1 %v13370_v45  ;;  %10218 = vmatprep.mubr.msk.bf16.mxu0 %vm712_vm0, %v13371_v47  ;;  %v5141_v15 = vadd.f32 %v15229_v42, %v4937_v38  ;;  %v5331_v52 = vmax.f32 %v5139_v62, 0.0 }
 0x404   :  { %10482 = vmatprep.mubr.msk.bf16.mxu1 %vm712_vm0, %v13371_v47  ;;  %v5142_v10 = vadd.f32 %v15234_v46, %v4938_v41  ;;  %v5332_v56 = vmax.f32 %v5140_v14, 0.0 }
 0x405   :  { %v2180_v48 = vpop.f32.mrb[4].mxu0  ;;  %v5333_v1 = vmax.f32 %v5141_v15, 0.0  ;;  %v13376_v15 = vld [vmem:[%s16919_s0 + $0x200] ss:$8 sps:$4 sm:$0xff]  }
 0x406   :  { %v4274_v59 = vpop.f32.mrb[4].mxu1  ;;  %v2182_v13 = vpop.f32.mrb[5].mxu0  ;;  %v5334_v4 = vmax.f32 %v5142_v10, 0.0 }
 0x407   :  { %v4939_v9 = vmax.f32 %v2180_v48, %v4274_v59  ;;  %v4276_v28 = vpop.f32.mrb[5].mxu1  ;;  %v2184_v17 = vpop.f32.mrb[6].mxu0 }
 0x408   :  { %v4940_v12 = vmax.f32 %v2182_v13, %v4276_v28  ;;  %v4278_v11 = vpop.f32.mrb[6].mxu1  ;;  %v2186_v44 = vpop.f32.mrb[7].mxu0 }
 0x409   :  { %v5143_v27 = vadd.f32 %v15229_v42, %v4939_v9  ;;  %v4941_v43 = vmax.f32 %v2184_v17, %v4278_v11  ;;  %v4280_v49 = vpop.f32.mrb[7].mxu1 }
 0x40a   :  { %v5144_v50 = vadd.f32 %v15234_v46, %v4940_v12  ;;  %v4942_v51 = vmax.f32 %v2186_v44, %v4280_v49  ;;  %2449 = vmatmul.mubr.bf16.gmra.mrb[112].mxu0 %v13372_v55  ;;  %v13377_v49 = vld [vmem:[%s16919_s0 + $0x214] ss:$8 sps:$4 sm:$0xff]  }
 0x40b   :  { %v5335_v53 = vmax.f32 %v5143_v27, 0.0  ;;  %v5145_v54 = vadd.f32 %v15229_v42, %v4941_v43  ;;  %4543 = vmatmul.mubr.bf16.gmra.mrb[112].mxu1 %v13372_v55  ;;  %10219 = vmatprep.mubr.msk.bf16.mxu0 %vm712_vm0, %v13373_v0 }
 0x40c   :  { %v5336_v57 = vmax.f32 %v5144_v50, 0.0  ;;  %v5146_v58 = vadd.f32 %v15234_v46, %v4942_v51  ;;  %10483 = vmatprep.mubr.msk.bf16.mxu1 %vm712_vm0, %v13373_v0 }
 0x40d   :  { %v5523_v2 = vmax.f32 %v5331_v52, %v5335_v53  ;;  %v5337_v3 = vmax.f32 %v5145_v54, 0.0  ;;  %v2190_v6 = vpop.f32.mrb[8].mxu0 }
 0x40e   :  { %v5338_v5 = vmax.f32 %v5146_v58, 0.0  ;;  %v4284_v7 = vpop.f32.mrb[8].mxu1  ;;  %v5524_v8 = vmax.f32 %v5332_v56, %v5336_v57  ;;  %v2192_v19 = vpop.f32.mrb[9].mxu0 }
 0x40f   :  { %v5525_v16 = vmax.f32 %v5333_v1, %v5337_v3  ;;  %v4943_v18 = vmax.f32 %v2190_v6, %v4284_v7  ;;  %v4286_v20 = vpop.f32.mrb[9].mxu1  ;;  %v2194_v22 = vpop.f32.mrb[10].mxu0 }
 0x410   :  { %v4944_v21 = vmax.f32 %v2192_v19, %v4286_v20  ;;  %v4288_v23 = vpop.f32.mrb[10].mxu1  ;;  %v5526_v24 = vmax.f32 %v5334_v4, %v5338_v5  ;;  %v2196_v26 = vpop.f32.mrb[11].mxu0  ;;  %v13165_v19 = vld [vmem:[%s16922_s3 + $0xe0] sm:$0xff]   ;;  %v13166_v20 = vld [vmem:[%s16922_s3 + $0x248] sm:$0xff]  }
 0x411   :  { %v4945_v25 = vmax.f32 %v2194_v22, %v4288_v23  ;;  %v4290_v29 = vpop.f32.mrb[11].mxu1  ;;  %v15265_v30 = vpack.c.bf16 %v5525_v16, %v5523_v2  ;;  %v5147_v37 = vadd.f32 %v15229_v42, %v4943_v18  ;;  %v13378_v22 = vld [vmem:[%s16919_s0 + $0x210] ss:$8 sps:$4 sm:$0xff]   ;;  %v13379_v23 = vld [vmem:[%s16919_s0 + $0x224] ss:$8 sps:$4 sm:$0xff]   ;;  %5912 = vmatpush1.bf16.msra.mxu0 %v13165_v19  ;;  %6952 = vmatpush1.bf16.msra.mxu1 %v13166_v20 }
 0x412   :  { %v4946_v31 = vmax.f32 %v2196_v26, %v4290_v29  ;;  %v15267_v32 = vpack.c.bf16 %v5526_v24, %v5524_v8  ;;  %2459 = vmatmul.mubr.bf16.gmra.mrb[116].mxu0 %v13374_v33  ;;  %v5148_v41 = vadd.f32 %v15234_v46, %v4944_v21  ;;  %5913 = vmatprep.subr.bf16.mxu0 %v16997_v63  ;;  %v13170_v26 = vld [vmem:[%s16922_s3 + $0xe8] sm:$0xff]   ;;  %v13171_v29 = vld [vmem:[%s16922_s3 + $0x250] sm:$0xff]  }
 0x413   :  { %4553 = vmatmul.mubr.bf16.gmra.mrb[116].mxu1 %v13374_v33  ;;  %10220 = vmatprep.mubr.msk.bf16.mxu0 %vm712_vm0, %v13375_v34  ;;  %v5149_v59 = vadd.f32 %v15229_v42, %v4945_v25  ;;  %v5339_v12 = vmax.f32 %v5147_v37, 0.0 }
 0x414   :  { %10484 = vmatprep.mubr.msk.bf16.mxu1 %vm712_vm0, %v13375_v34  ;;  %v5150_v13 = vadd.f32 %v15234_v46, %v4946_v31  ;;  %v5340_v27 = vmax.f32 %v5148_v41, 0.0  ;;  %6953 = vmatprep.subr.bf16.mxu1 %v16997_v63 }
 0x415   :  { %v2200_v35 = vpop.f32.mrb[12].mxu0  ;;  %v5341_v10 = vmax.f32 %v5149_v59, 0.0  ;;  %5914 = vmatpush1.bf16.msra.mxu0 %v13170_v26  ;;  %6954 = vmatpush1.bf16.msra.mxu1 %v13171_v29 }
 0x416   :  { %v4294_v36 = vpop.f32.mrb[12].mxu1  ;;  %v2202_v39 = vpop.f32.mrb[13].mxu0  ;;  %v5342_v52 = vmax.f32 %v5150_v13, 0.0  ;;  %6187 = vmatprep.subr.bf16.mxu0 %v16997_v63  ;;  %7224 = vmatprep.subr.bf16.mxu1 %v16997_v63 }
 0x417   :  { %v4947_v38 = vmax.f32 %v2200_v35, %v4294_v36  ;;  %v4296_v40 = vpop.f32.mrb[13].mxu1  ;;  %v2204_v47 = vpop.f32.mrb[14].mxu0 }
 0x418   :  { %v4948_v45 = vmax.f32 %v2202_v39, %v4296_v40  ;;  %v4298_v48 = vpop.f32.mrb[14].mxu1  ;;  %v2206_v62 = vpop.f32.mrb[15].mxu0 }
 0x419   :  { %v5151_v60 = vadd.f32 %v15229_v42, %v4947_v38  ;;  %v4949_v61 = vmax.f32 %v2204_v47, %v4298_v48  ;;  %v4300_v9 = vpop.f32.mrb[15].mxu1 }
 0x41a   :  { %v5152_v28 = vadd.f32 %v15234_v46, %v4948_v45  ;;  %v4950_v14 = vmax.f32 %v2206_v62, %v4300_v9  ;;  %2469 = vmatmul.mubr.bf16.gmra.mrb[120].mxu0 %v13376_v15 }
 0x41b   :  { %v5343_v17 = vmax.f32 %v5151_v60, 0.0  ;;  %v5153_v11 = vadd.f32 %v15229_v42, %v4949_v61  ;;  %4563 = vmatmul.mubr.bf16.gmra.mrb[120].mxu1 %v13376_v15  ;;  %10221 = vmatprep.mubr.msk.bf16.mxu0 %vm712_vm0, %v13377_v49 }
 0x41c   :  { %v5344_v43 = vmax.f32 %v5152_v28, 0.0  ;;  %v5154_v44 = vadd.f32 %v15234_v46, %v4950_v14  ;;  %10485 = vmatprep.mubr.msk.bf16.mxu1 %vm712_vm0, %v13377_v49  ;;  %v13380_v28 = vld [vmem:[%s16919_s0 + $0x220] ss:$8 sps:$4 sm:$0xff]  }
 0x41d   :  { %v5527_v50 = vmax.f32 %v5339_v12, %v5343_v17  ;;  %v5345_v51 = vmax.f32 %v5153_v11, 0.0  ;;  %v2210_v54 = vpop.f32.mrb[16].mxu0  ;;  %v13381_v11 = vld [vmem:[%s16919_s0 + $0x234] ss:$8 sps:$4 sm:$0xff]  }
 0x41e   :  { %v5346_v53 = vmax.f32 %v5154_v44, 0.0  ;;  %v4304_v55 = vpop.f32.mrb[16].mxu1  ;;  %v5528_v56 = vmax.f32 %v5340_v27, %v5344_v43  ;;  %v2212_v0 = vpop.f32.mrb[17].mxu0 }
 0x41f   :  { %v5529_v57 = vmax.f32 %v5341_v10, %v5345_v51  ;;  %v4951_v58 = vmax.f32 %v2210_v54, %v4304_v55  ;;  %v4306_v1 = vpop.f32.mrb[17].mxu1  ;;  %v2214_v3 = vpop.f32.mrb[18].mxu0 }
 0x420   :  { %v4952_v2 = vmax.f32 %v2212_v0, %v4306_v1  ;;  %v4308_v4 = vpop.f32.mrb[18].mxu1  ;;  %v5530_v5 = vmax.f32 %v5342_v52, %v5346_v53  ;;  %v2216_v7 = vpop.f32.mrb[19].mxu0 }
 0x421   :  { %v4953_v6 = vmax.f32 %v2214_v3, %v4308_v4  ;;  %v4310_v8 = vpop.f32.mrb[19].mxu1  ;;  %v15293_v16 = vpack.c.bf16 %v5529_v57, %v5527_v50  ;;  %v5155_v31 = vadd.f32 %v15229_v42, %v4951_v58 }
 0x422   :  { %v4954_v18 = vmax.f32 %v2216_v7, %v4310_v8  ;;  %v15301_v21 = vpack.c.bf16 %v5530_v5, %v5528_v56  ;;  %2479 = vmatmul.mubr.bf16.gmra.mrb[124].mxu0 %v13378_v22  ;;  %v5156_v36 = vadd.f32 %v15234_v46, %v4952_v2  ;;  %v13382_v7 = vld [vmem:[%s16919_s0 + $0x230] ss:$8 sps:$4 sm:$0xff]   ;;  %v13383_v8 = vld [vmem:[%s16919_s0 + $0x244] ss:$8 sps:$4 sm:$0xff]  }
 0x423   :  { %4573 = vmatmul.mubr.bf16.gmra.mrb[124].mxu1 %v13378_v22  ;;  %10222 = vmatprep.mubr.msk.bf16.mxu0 %vm712_vm0, %v13379_v23  ;;  %v5157_v40 = vadd.f32 %v15229_v42, %v4953_v6  ;;  %v5347_v62 = vmax.f32 %v5155_v31, 0.0 }
 0x424   :  { %10486 = vmatprep.mubr.msk.bf16.mxu1 %vm712_vm0, %v13379_v23  ;;  %v5158_v59 = vadd.f32 %v15234_v46, %v4954_v18  ;;  %v5348_v14 = vmax.f32 %v5156_v36, 0.0 }
 0x425   :  { %v2220_v24 = vpop.f32.mrb[20].mxu0  ;;  %v5349_v15 = vmax.f32 %v5157_v40, 0.0 }
 0x426   :  { %v4314_v25 = vpop.f32.mrb[20].mxu1  ;;  %v2222_v34 = vpop.f32.mrb[21].mxu0  ;;  %v5350_v44 = vmax.f32 %v5158_v59, 0.0 }
 0x427   :  { %v4955_v33 = vmax.f32 %v2220_v24, %v4314_v25  ;;  %v4316_v35 = vpop.f32.mrb[21].mxu1  ;;  %v2224_v38 = vpop.f32.mrb[22].mxu0 }
 0x428   :  { %v4956_v37 = vmax.f32 %v2222_v34, %v4316_v35  ;;  %v4318_v39 = vpop.f32.mrb[22].mxu1  ;;  %v2226_v47 = vpop.f32.mrb[23].mxu0 }
 0x429   :  { %v5159_v41 = vadd.f32 %v15229_v42, %v4955_v33  ;;  %v4957_v45 = vmax.f32 %v2224_v38, %v4318_v39  ;;  %v4320_v48 = vpop.f32.mrb[23].mxu1 }
 0x42a   :  { %v5160_v60 = vadd.f32 %v15234_v46, %v4956_v37  ;;  %v4958_v61 = vmax.f32 %v2226_v47, %v4320_v48  ;;  %2489 = vmatmul.mubr.bf16.gmra.mrb[128].mxu0 %v13380_v28  ;;  %v13384_v48 = vld [vmem:[%s16919_s0 + $0x240] ss:$8 sps:$4 sm:$0xff]  }
 0x42b   :  { %v5351_v9 = vmax.f32 %v5159_v41, 0.0  ;;  %v5161_v13 = vadd.f32 %v15229_v42, %v4957_v45  ;;  %4583 = vmatmul.mubr.bf16.gmra.mrb[128].mxu1 %v13380_v28  ;;  %10223 = vmatprep.mubr.msk.bf16.mxu0 %vm712_vm0, %v13381_v11 }
 0x42c   :  { %v5352_v12 = vmax.f32 %v5160_v60, 0.0  ;;  %v5162_v17 = vadd.f32 %v15234_v46, %v4958_v61  ;;  %10487 = vmatprep.mubr.msk.bf16.mxu1 %vm712_vm0, %v13381_v11 }
 0x42d   :  { %v5531_v27 = vmax.f32 %v5347_v62, %v5351_v9  ;;  %v5353_v43 = vmax.f32 %v5161_v13, 0.0  ;;  %v2230_v50 = vpop.f32.mrb[24].mxu0  ;;  %v13385_v62 = vld [vmem:[%s16919_s0 + $0x254] ss:$8 sps:$4 sm:$0xff]  }
 0x42e   :  { %v5532_v49 = vmax.f32 %v5348_v14, %v5352_v12  ;;  %v5354_v10 = vmax.f32 %v5162_v17, 0.0  ;;  %v4324_v51 = vpop.f32.mrb[24].mxu1  ;;  %v2232_v54 = vpop.f32.mrb[25].mxu0 }
 0x42f   :  { %v5533_v52 = vmax.f32 %v5349_v15, %v5353_v43  ;;  %v4959_v53 = vmax.f32 %v2230_v50, %v4324_v51  ;;  %v4326_v55 = vpop.f32.mrb[25].mxu1  ;;  %v2234_v58 = vpop.f32.mrb[26].mxu0 }
 0x430   :  { %v5534_v56 = vmax.f32 %v5350_v44, %v5354_v10  ;;  %v4960_v57 = vmax.f32 %v2232_v54, %v4326_v55  ;;  %v4328_v0 = vpop.f32.mrb[26].mxu1  ;;  %v2236_v3 = vpop.f32.mrb[27].mxu0 }
 0x431   :  { %v15337_v1 = vpack.c.bf16 %v5533_v52, %v5531_v27  ;;  %v4961_v2 = vmax.f32 %v2234_v58, %v4328_v0  ;;  %v4330_v4 = vpop.f32.mrb[27].mxu1  ;;  %v5163_v20 = vadd.f32 %v15229_v42, %v4959_v53  ;;  %v13386_v0 = vld [vmem:[%s16919_s0 + $0x250] ss:$8 sps:$4 sm:$0xff]  }
 0x432   :  { %v15339_v5 = vpack.c.bf16 %v5534_v56, %v5532_v49  ;;  %v4962_v6 = vmax.f32 %v2236_v3, %v4330_v4  ;;  %2499 = vmatmul.mubr.bf16.gmra.mrb[132].mxu0 %v13382_v7  ;;  %v5164_v25 = vadd.f32 %v15234_v46, %v4960_v57 }
 0x433   :  { %4593 = vmatmul.mubr.bf16.gmra.mrb[132].mxu1 %v13382_v7  ;;  %10224 = vmatprep.mubr.msk.bf16.mxu0 %vm712_vm0, %v13383_v8  ;;  %v5165_v33 = vadd.f32 %v15229_v42, %v4961_v2  ;;  %v5355_v41 = vmax.f32 %v5163_v20, 0.0  ;;  %v13387_v2 = vld [vmem:[%s16919_s0 + $0x264] ss:$8 sps:$4 sm:$0xff]  }
 0x434   :  { %10488 = vmatprep.mubr.msk.bf16.mxu1 %vm712_vm0, %v13383_v8  ;;  %v5166_v38 = vadd.f32 %v15234_v46, %v4962_v6  ;;  %v5356_v59 = vmax.f32 %v5164_v25, 0.0 }
 0x435   :  { %v2240_v18 = vpop.f32.mrb[28].mxu0  ;;  %v5357_v9 = vmax.f32 %v5165_v33, 0.0 }
 0x436   :  { %v4334_v19 = vpop.f32.mrb[28].mxu1  ;;  %v2242_v23 = vpop.f32.mrb[29].mxu0  ;;  %v5358_v14 = vmax.f32 %v5166_v38, 0.0 }
 0x437   :  { %v4963_v22 = vmax.f32 %v2240_v18, %v4334_v19  ;;  %v4336_v24 = vpop.f32.mrb[29].mxu1  ;;  %v2244_v29 = vpop.f32.mrb[30].mxu0 }
 0x438   :  { %v4964_v26 = vmax.f32 %v2242_v23, %v4336_v24  ;;  %v4338_v31 = vpop.f32.mrb[30].mxu1  ;;  %v2246_v36 = vpop.f32.mrb[31].mxu0 }
 0x439   :  { %v5167_v34 = vadd.f32 %v15229_v42, %v4963_v22  ;;  %v4965_v35 = vmax.f32 %v2244_v29, %v4338_v31  ;;  %v4340_v37 = vpop.f32.mrb[31].mxu1 }
 0x43a   :  { %v5168_v39 = vadd.f32 %v15234_v46, %v4964_v26  ;;  %v4966_v40 = vmax.f32 %v2246_v36, %v4340_v37  ;;  %2509 = vmatmul.mubr.bf16.gmra.mrb[136].mxu0 %v13384_v48 }
 0x43b   :  { %v5359_v45 = vmax.f32 %v5167_v34, 0.0  ;;  %v5169_v47 = vadd.f32 %v15229_v42, %v4965_v35  ;;  %4603 = vmatmul.mubr.bf16.gmra.mrb[136].mxu1 %v13384_v48  ;;  %10225 = vmatprep.mubr.msk.bf16.mxu0 %vm712_vm0, %v13385_v62 }
 0x43c   :  { %v5360_v60 = vmax.f32 %v5168_v39, 0.0  ;;  %v5170_v61 = vadd.f32 %v15234_v46, %v4966_v40  ;;  %10489 = vmatprep.mubr.msk.bf16.mxu1 %vm712_vm0, %v13385_v62  ;;  %v13388_v39 = vld [vmem:[%s16919_s0 + $0x260] ss:$8 sps:$4 sm:$0xff]  }
 0x43d   :  { %v5535_v13 = vmax.f32 %v5355_v41, %v5359_v45  ;;  %v5361_v28 = vmax.f32 %v5169_v47, 0.0  ;;  %v2250_v11 = vpop.f32.mrb[32].mxu0  ;;  %v13389_v47 = vld [vmem:[%s16919_s0 + $0x274] ss:$8 sps:$4 sm:$0xff]  }
 0x43e   :  { %v5536_v12 = vmax.f32 %v5356_v59, %v5360_v60  ;;  %v5362_v17 = vmax.f32 %v5170_v61, 0.0  ;;  %v4344_v15 = vpop.f32.mrb[32].mxu1  ;;  %v2252_v44 = vpop.f32.mrb[33].mxu0 }
 0x43f   :  { %v5537_v27 = vmax.f32 %v5357_v9, %v5361_v28  ;;  %v4967_v43 = vmax.f32 %v2250_v11, %v4344_v15  ;;  %v4346_v49 = vpop.f32.mrb[33].mxu1  ;;  %v2254_v51 = vpop.f32.mrb[34].mxu0 }
 0x440   :  { %v5538_v10 = vmax.f32 %v5358_v14, %v5362_v17  ;;  %v4968_v50 = vmax.f32 %v2252_v44, %v4346_v49  ;;  %v4348_v52 = vpop.f32.mrb[34].mxu1  ;;  %v2256_v55 = vpop.f32.mrb[35].mxu0 }
 0x441   :  { %v15365_v53 = vpack.c.bf16 %v5537_v27, %v5535_v13  ;;  %v4969_v54 = vmax.f32 %v2254_v51, %v4348_v52  ;;  %v4350_v56 = vpop.f32.mrb[35].mxu1  ;;  %v5171_v6 = vadd.f32 %v15229_v42, %v4967_v43 }
 0x442   :  { %v15367_v57 = vpack.c.bf16 %v5538_v10, %v5536_v12  ;;  %v4970_v58 = vmax.f32 %v2256_v55, %v4350_v56  ;;  %2519 = vmatmul.mubr.bf16.gmra.mrb[140].mxu0 %v13386_v0  ;;  %v5172_v19 = vadd.f32 %v15234_v46, %v4968_v50  ;;  %v13390_v55 = vld [vmem:[%s16919_s0 + $0x270] ss:$8 sps:$4 sm:$0xff]   ;;  %v13391_v56 = vld [vmem:[%s16919_s0 + $0x284] ss:$8 sps:$4 sm:$0xff]  }
 0x443   :  { %4613 = vmatmul.mubr.bf16.gmra.mrb[140].mxu1 %v13386_v0  ;;  %10226 = vmatprep.mubr.msk.bf16.mxu0 %vm712_vm0, %v13387_v2  ;;  %v5173_v24 = vadd.f32 %v15229_v42, %v4969_v54  ;;  %v5363_v36 = vmax.f32 %v5171_v6, 0.0 }
 0x444   :  { %10490 = vmatprep.mubr.msk.bf16.mxu1 %vm712_vm0, %v13387_v2  ;;  %v5174_v33 = vadd.f32 %v15234_v46, %v4970_v58  ;;  %v5364_v40 = vmax.f32 %v5172_v19, 0.0 }
 0x445   :  { %v2260_v3 = vpop.f32.mrb[36].mxu0  ;;  %v5365_v48 = vmax.f32 %v5173_v24, 0.0 }
 0x446   :  { %v4354_v4 = vpop.f32.mrb[36].mxu1  ;;  %v2262_v8 = vpop.f32.mrb[37].mxu0  ;;  %v5366_v61 = vmax.f32 %v5174_v33, 0.0 }
 0x447   :  { %v4971_v7 = vmax.f32 %v2260_v3, %v4354_v4  ;;  %v4356_v18 = vpop.f32.mrb[37].mxu1  ;;  %v2264_v22 = vpop.f32.mrb[38].mxu0 }
 0x448   :  { %v4972_v20 = vmax.f32 %v2262_v8, %v4356_v18  ;;  %v4358_v23 = vpop.f32.mrb[38].mxu1  ;;  %v2266_v29 = vpop.f32.mrb[39].mxu0 }
 0x449   :  { %v5175_v25 = vadd.f32 %v15229_v42, %v4971_v7  ;;  %v4973_v26 = vmax.f32 %v2264_v22, %v4358_v23  ;;  %v4360_v31 = vpop.f32.mrb[39].mxu1 }
 0x44a   :  { %v5176_v34 = vadd.f32 %v15234_v46, %v4972_v20  ;;  %v4974_v35 = vmax.f32 %v2266_v29, %v4360_v31  ;;  %2529 = vmatmul.mubr.bf16.gmra.mrb[144].mxu0 %v13388_v39 }
 0x44b   :  { %v5367_v37 = vmax.f32 %v5175_v25, 0.0  ;;  %v5177_v38 = vadd.f32 %v15229_v42, %v4973_v26  ;;  %4623 = vmatmul.mubr.bf16.gmra.mrb[144].mxu1 %v13388_v39  ;;  %10227 = vmatprep.mubr.msk.bf16.mxu0 %vm712_vm0, %v13389_v47 }
 0x44c   :  { %v5368_v41 = vmax.f32 %v5176_v34, 0.0  ;;  %v5178_v45 = vadd.f32 %v15234_v46, %v4974_v35  ;;  %10491 = vmatprep.mubr.msk.bf16.mxu1 %vm712_vm0, %v13389_v47 }
 0x44d   :  { %v5539_v59 = vmax.f32 %v5363_v36, %v5367_v37  ;;  %v5369_v60 = vmax.f32 %v5177_v38, 0.0  ;;  %v2270_v13 = vpop.f32.mrb[40].mxu0  ;;  %v13392_v36 = vld [vmem:[%s16919_s0 + $0x280] ss:$8 sps:$4 sm:$0xff]  }
 0x44e   :  { %v5540_v62 = vmax.f32 %v5364_v40, %v5368_v41  ;;  %v5370_v9 = vmax.f32 %v5178_v45, 0.0  ;;  %v4364_v28 = vpop.f32.mrb[40].mxu1  ;;  %v2272_v17 = vpop.f32.mrb[41].mxu0  ;;  %v13393_v40 = vld [vmem:[%s16919_s0 + $0x294] ss:$8 sps:$4 sm:$0xff]  }
 0x44f   :  { %v5541_v14 = vmax.f32 %v5365_v48, %v5369_v60  ;;  %v4975_v12 = vmax.f32 %v2270_v13, %v4364_v28  ;;  %v4366_v11 = vpop.f32.mrb[41].mxu1  ;;  %v2274_v43 = vpop.f32.mrb[42].mxu0 }
 0x450   :  { %v5542_v15 = vmax.f32 %v5366_v61, %v5370_v9  ;;  %v4976_v27 = vmax.f32 %v2272_v17, %v4366_v11  ;;  %v4368_v44 = vpop.f32.mrb[42].mxu1  ;;  %v2276_v50 = vpop.f32.mrb[43].mxu0 }
 0x451   :  { %v15393_v49 = vpack.c.bf16 %v5541_v14, %v5539_v59  ;;  %v4977_v10 = vmax.f32 %v2274_v43, %v4368_v44  ;;  %v4370_v51 = vpop.f32.mrb[43].mxu1  ;;  %v5179_v3 = vadd.f32 %v15229_v42, %v4975_v12 }
 0x452   :  { %v15395_v52 = vpack.c.bf16 %v5542_v15, %v5540_v62  ;;  %v4978_v54 = vmax.f32 %v2276_v50, %v4370_v51  ;;  %2539 = vmatmul.mubr.bf16.gmra.mrb[148].mxu0 %v13390_v55  ;;  %v5180_v8 = vadd.f32 %v15234_v46, %v4976_v27 }
 0x453   :  { %4633 = vmatmul.mubr.bf16.gmra.mrb[148].mxu1 %v13390_v55  ;;  %10228 = vmatprep.mubr.msk.bf16.mxu0 %vm712_vm0, %v13391_v56  ;;  %v5181_v23 = vadd.f32 %v15229_v42, %v4977_v10  ;;  %v5371_v33 = vmax.f32 %v5179_v3, 0.0  ;;  %v13395_v55 = vld [vmem:[%s16919_s0 + $0x2a4] ss:$8 sps:$4 sm:$0xff]  }
 0x454   :  { %10492 = vmatprep.mubr.msk.bf16.mxu1 %vm712_vm0, %v13391_v56  ;;  %v5182_v31 = vadd.f32 %v15234_v46, %v4978_v54  ;;  %v5372_v37 = vmax.f32 %v5180_v8, 0.0  ;;  %v13394_v54 = vld [vmem:[%s16919_s0 + $0x290] ss:$8 sps:$4 sm:$0xff]  }
 0x455   :  { %v2280_v58 = vpop.f32.mrb[44].mxu0  ;;  %v5373_v45 = vmax.f32 %v5181_v23, 0.0 }
 0x456   :  { %v4374_v0 = vpop.f32.mrb[44].mxu1  ;;  %v2282_v4 = vpop.f32.mrb[45].mxu0  ;;  %v5374_v59 = vmax.f32 %v5182_v31, 0.0 }
 0x457   :  { %v4979_v2 = vmax.f32 %v2280_v58, %v4374_v0  ;;  %v4376_v6 = vpop.f32.mrb[45].mxu1  ;;  %v2284_v18 = vpop.f32.mrb[46].mxu0 }
 0x458   :  { %v4980_v7 = vmax.f32 %v2282_v4, %v4376_v6  ;;  %v4378_v19 = vpop.f32.mrb[46].mxu1  ;;  %v2286_v24 = vpop.f32.mrb[47].mxu0 }
 0x459   :  { %v5183_v20 = vadd.f32 %v15229_v42, %v4979_v2  ;;  %v4981_v22 = vmax.f32 %v2284_v18, %v4378_v19  ;;  %v4380_v25 = vpop.f32.mrb[47].mxu1 }
 0x45a   :  { %v5184_v26 = vadd.f32 %v15234_v46, %v4980_v7  ;;  %v4982_v29 = vmax.f32 %v2286_v24, %v4380_v25  ;;  %2549 = vmatmul.mubr.bf16.gmra.mrb[152].mxu0 %v13392_v36 }
 0x45b   :  { %v5375_v34 = vmax.f32 %v5183_v20, 0.0  ;;  %v5185_v35 = vadd.f32 %v15229_v42, %v4981_v22  ;;  %4643 = vmatmul.mubr.bf16.gmra.mrb[152].mxu1 %v13392_v36  ;;  %10229 = vmatprep.mubr.msk.bf16.mxu0 %vm712_vm0, %v13393_v40 }
 0x45c   :  { %v5376_v38 = vmax.f32 %v5184_v26, 0.0  ;;  %v5186_v39 = vadd.f32 %v15234_v46, %v4982_v29  ;;  %10493 = vmatprep.mubr.msk.bf16.mxu1 %vm712_vm0, %v13393_v40 }
 0x45d   :  { %v5543_v41 = vmax.f32 %v5371_v33, %v5375_v34  ;;  %v5377_v47 = vmax.f32 %v5185_v35, 0.0  ;;  %v2290_v61 = vpop.f32.mrb[48].mxu0  ;;  %v13396_v35 = vld [vmem:[%s16919_s0 + $0x2a0] ss:$8 sps:$4 sm:$0xff]  }
 0x45e   :  { %v5544_v48 = vmax.f32 %v5372_v37, %v5376_v38  ;;  %v5378_v60 = vmax.f32 %v5186_v39, 0.0  ;;  %v4384_v62 = vpop.f32.mrb[48].mxu1  ;;  %v2292_v28 = vpop.f32.mrb[49].mxu0  ;;  %v13397_v39 = vld [vmem:[%s16919_s0 + $0x2b4] ss:$8 sps:$4 sm:$0xff]  }
 0x45f   :  { %v5545_v9 = vmax.f32 %v5373_v45, %v5377_v47  ;;  %v4983_v13 = vmax.f32 %v2290_v61, %v4384_v62  ;;  %v4386_v14 = vpop.f32.mrb[49].mxu1  ;;  %v2294_v11 = vpop.f32.mrb[50].mxu0 }
 0x460   :  { %v5546_v12 = vmax.f32 %v5374_v59, %v5378_v60  ;;  %v4984_v17 = vmax.f32 %v2292_v28, %v4386_v14  ;;  %v4388_v15 = vpop.f32.mrb[50].mxu1  ;;  %v2296_v44 = vpop.f32.mrb[51].mxu0 }
 0x461   :  { %v15421_v27 = vpack.c.bf16 %v5545_v9, %v5543_v41  ;;  %v4985_v43 = vmax.f32 %v2294_v11, %v4388_v15  ;;  %v4390_v10 = vpop.f32.mrb[51].mxu1  ;;  %v5187_v0 = vadd.f32 %v15229_v42, %v4983_v13 }
 0x462   :  { %v15423_v50 = vpack.c.bf16 %v5546_v12, %v5544_v48  ;;  %v4986_v51 = vmax.f32 %v2296_v44, %v4390_v10  ;;  %2559 = vmatmul.mubr.bf16.gmra.mrb[156].mxu0 %v13394_v54  ;;  %v5188_v6 = vadd.f32 %v15234_v46, %v4984_v17 }
 0x463   :  { %4653 = vmatmul.mubr.bf16.gmra.mrb[156].mxu1 %v13394_v54  ;;  %10230 = vmatprep.mubr.msk.bf16.mxu0 %vm712_vm0, %v13395_v55  ;;  %v5189_v19 = vadd.f32 %v15229_v42, %v4985_v43  ;;  %v5379_v31 = vmax.f32 %v5187_v0, 0.0 }
 0x464   :  { %10494 = vmatprep.mubr.msk.bf16.mxu1 %vm712_vm0, %v13395_v55  ;;  %v5190_v25 = vadd.f32 %v15234_v46, %v4986_v51  ;;  %v5380_v36 = vmax.f32 %v5188_v6, 0.0  ;;  %v13398_v55 = vld [vmem:[%s16919_s0 + $0x2b0] ss:$8 sps:$4 sm:$0xff]  }
 0x465   :  { %v2300_v56 = vpop.f32.mrb[52].mxu0  ;;  %v5381_v40 = vmax.f32 %v5189_v19, 0.0 }
 0x466   :  { %v4394_v58 = vpop.f32.mrb[52].mxu1  ;;  %v2302_v3 = vpop.f32.mrb[53].mxu0  ;;  %v5382_v47 = vmax.f32 %v5190_v25, 0.0 }
 0x467   :  { %v4987_v2 = vmax.f32 %v2300_v56, %v4394_v58  ;;  %v4396_v4 = vpop.f32.mrb[53].mxu1  ;;  %v2304_v8 = vpop.f32.mrb[54].mxu0  ;;  %v13399_v56 = vld [vmem:[%s16919_s0 + $0x2c4] ss:$8 sps:$4 sm:$0xff]  }
 0x468   :  { %v4988_v7 = vmax.f32 %v2302_v3, %v4396_v4  ;;  %v4398_v18 = vpop.f32.mrb[54].mxu1  ;;  %v2306_v23 = vpop.f32.mrb[55].mxu0 }
 0x469   :  { %v5191_v20 = vadd.f32 %v15229_v42, %v4987_v2  ;;  %v4989_v22 = vmax.f32 %v2304_v8, %v4398_v18  ;;  %v4400_v24 = vpop.f32.mrb[55].mxu1 }
 0x46a   :  { %v5192_v26 = vadd.f32 %v15234_v46, %v4988_v7  ;;  %v4990_v29 = vmax.f32 %v2306_v23, %v4400_v24  ;;  %2569 = vmatmul.mubr.bf16.gmra.mrb[160].mxu0 %v13396_v35 }
 0x46b   :  { %v5383_v33 = vmax.f32 %v5191_v20, 0.0  ;;  %v5193_v34 = vadd.f32 %v15229_v42, %v4989_v22  ;;  %4663 = vmatmul.mubr.bf16.gmra.mrb[160].mxu1 %v13396_v35  ;;  %10231 = vmatprep.mubr.msk.bf16.mxu0 %vm712_vm0, %v13397_v39 }
 0x46c   :  { %v5384_v37 = vmax.f32 %v5192_v26, 0.0  ;;  %v5194_v38 = vadd.f32 %v15234_v46, %v4990_v29  ;;  %10495 = vmatprep.mubr.msk.bf16.mxu1 %vm712_vm0, %v13397_v39 }
 0x46d   :  { %v5547_v41 = vmax.f32 %v5379_v31, %v5383_v33  ;;  %v5385_v45 = vmax.f32 %v5193_v34, 0.0  ;;  %v2310_v60 = vpop.f32.mrb[56].mxu0 }
 0x46e   :  { %v5548_v48 = vmax.f32 %v5380_v36, %v5384_v37  ;;  %v5386_v59 = vmax.f32 %v5194_v38, 0.0  ;;  %v4404_v61 = vpop.f32.mrb[56].mxu1  ;;  %v2312_v13 = vpop.f32.mrb[57].mxu0  ;;  %v13400_v36 = vld [vmem:[%s16919_s0 + $0x2c0] ss:$8 sps:$4 sm:$0xff]  }
 0x46f   :  { %v5549_v62 = vmax.f32 %v5381_v40, %v5385_v45  ;;  %v4991_v9 = vmax.f32 %v2310_v60, %v4404_v61  ;;  %v4406_v28 = vpop.f32.mrb[57].mxu1  ;;  %v2314_v17 = vpop.f32.mrb[58].mxu0  ;;  %v13401_v40 = vld [vmem:[%s16919_s0 + $0x2d4] ss:$8 sps:$4 sm:$0xff]  }
 0x470   :  { %v5550_v14 = vmax.f32 %v5382_v47, %v5386_v59  ;;  %v4992_v12 = vmax.f32 %v2312_v13, %v4406_v28  ;;  %v4408_v11 = vpop.f32.mrb[58].mxu1  ;;  %v2316_v44 = vpop.f32.mrb[59].mxu0 }
 0x471   :  { %v15449_v15 = vpack.c.bf16 %v5549_v62, %v5547_v41  ;;  %v4993_v43 = vmax.f32 %v2314_v17, %v4408_v11  ;;  %v4410_v10 = vpop.f32.mrb[59].mxu1  ;;  %v5195_v2 = vadd.f32 %v15229_v42, %v4991_v9 }
 0x472   :  { %v15451_v51 = vpack.c.bf16 %v5550_v14, %v5548_v48  ;;  %v4994_v54 = vmax.f32 %v2316_v44, %v4410_v10  ;;  %2579 = vmatmul.mubr.bf16.gmra.mrb[164].mxu0 %v13398_v55  ;;  %v5196_v7 = vadd.f32 %v15234_v46, %v4992_v12 }
 0x473   :  { %4673 = vmatmul.mubr.bf16.gmra.mrb[164].mxu1 %v13398_v55  ;;  %10232 = vmatprep.mubr.msk.bf16.mxu0 %vm712_vm0, %v13399_v56  ;;  %v5197_v20 = vadd.f32 %v15229_v42, %v4993_v43  ;;  %v5387_v33 = vmax.f32 %v5195_v2, 0.0  ;;  %v13403_v2 = vld [vmem:[%s16919_s0 + $0x2e4] ss:$8 sps:$4 sm:$0xff]  }
 0x474   :  { %10496 = vmatprep.mubr.msk.bf16.mxu1 %vm712_vm0, %v13399_v56  ;;  %v5198_v26 = vadd.f32 %v15234_v46, %v4994_v54  ;;  %v5388_v37 = vmax.f32 %v5196_v7, 0.0 }
 0x475   :  { %v2320_v58 = vpop.f32.mrb[60].mxu0  ;;  %v5389_v41 = vmax.f32 %v5197_v20, 0.0 }
 0x476   :  { %v4414_v0 = vpop.f32.mrb[60].mxu1  ;;  %v2322_v4 = vpop.f32.mrb[61].mxu0  ;;  %v5390_v48 = vmax.f32 %v5198_v26, 0.0 }
 0x477   :  { %v4995_v3 = vmax.f32 %v2320_v58, %v4414_v0  ;;  %v4416_v6 = vpop.f32.mrb[61].mxu1  ;;  %v2324_v18 = vpop.f32.mrb[62].mxu0  ;;  %v13402_v0 = vld [vmem:[%s16919_s0 + $0x2d0] ss:$8 sps:$4 sm:$0xff]  }
 0x478   :  { %v4996_v8 = vmax.f32 %v2322_v4, %v4416_v6  ;;  %v4418_v19 = vpop.f32.mrb[62].mxu1  ;;  %v2326_v24 = vpop.f32.mrb[63].mxu0 }
 0x479   :  { %v5199_v22 = vadd.f32 %v15229_v42, %v4995_v3  ;;  %v4997_v23 = vmax.f32 %v2324_v18, %v4418_v19  ;;  %v4420_v25 = vpop.f32.mrb[63].mxu1 }
 0x47a   :  { %v5200_v29 = vadd.f32 %v15234_v46, %v4996_v8  ;;  %v4998_v31 = vmax.f32 %v2326_v24, %v4420_v25  ;;  %2589 = vmatmul.mubr.bf16.gmra.mrb[168].mxu0 %v13400_v36 }
 0x47b   :  { %v5391_v34 = vmax.f32 %v5199_v22, 0.0  ;;  %v5201_v35 = vadd.f32 %v15229_v42, %v4997_v23  ;;  %4683 = vmatmul.mubr.bf16.gmra.mrb[168].mxu1 %v13400_v36  ;;  %10233 = vmatprep.mubr.msk.bf16.mxu0 %vm712_vm0, %v13401_v40 }
 0x47c   :  { %v5392_v38 = vmax.f32 %v5200_v29, 0.0  ;;  %v5202_v39 = vadd.f32 %v15234_v46, %v4998_v31  ;;  %10497 = vmatprep.mubr.msk.bf16.mxu1 %vm712_vm0, %v13401_v40 }
 0x47d   :  { %v5551_v45 = vmax.f32 %v5387_v33, %v5391_v34  ;;  %v5393_v47 = vmax.f32 %v5201_v35, 0.0  ;;  %v2330_v61 = vpop.f32.mrb[64].mxu0 }
 0x47e   :  { %v5552_v59 = vmax.f32 %v5388_v37, %v5392_v38  ;;  %v5394_v60 = vmax.f32 %v5202_v39, 0.0  ;;  %v4424_v62 = vpop.f32.mrb[64].mxu1  ;;  %v2332_v28 = vpop.f32.mrb[65].mxu0  ;;  %v13404_v39 = vld [vmem:[%s16919_s0 + $0x2e0] ss:$8 sps:$4 sm:$0xff]  }
 0x47f   :  { %v5553_v9 = vmax.f32 %v5389_v41, %v5393_v47  ;;  %v4999_v13 = vmax.f32 %v2330_v61, %v4424_v62  ;;  %v4426_v14 = vpop.f32.mrb[65].mxu1  ;;  %v2334_v11 = vpop.f32.mrb[66].mxu0  ;;  %v13405_v47 = vld [vmem:[%s16919_s0 + $0x2f4] ss:$8 sps:$4 sm:$0xff]  }
 0x480   :  { %v5554_v12 = vmax.f32 %v5390_v48, %v5394_v60  ;;  %v5000_v17 = vmax.f32 %v2332_v28, %v4426_v14  ;;  %v4428_v43 = vpop.f32.mrb[66].mxu1  ;;  %v2336_v54 = vpop.f32.mrb[67].mxu0 }
 0x481   :  { %v15477_v44 = vpack.c.bf16 %v5553_v9, %v5551_v45  ;;  %v5001_v10 = vmax.f32 %v2334_v11, %v4428_v43  ;;  %v4430_v55 = vpop.f32.mrb[67].mxu1  ;;  %v5203_v6 = vadd.f32 %v15229_v42, %v4999_v13 }
 0x482   :  { %v15479_v56 = vpack.c.bf16 %v5554_v12, %v5552_v59  ;;  %v5002_v58 = vmax.f32 %v2336_v54, %v4430_v55  ;;  %2599 = vmatmul.mubr.bf16.gmra.mrb[172].mxu0 %v13402_v0  ;;  %v5204_v19 = vadd.f32 %v15234_v46, %v5000_v17 }
 0x483   :  { %4693 = vmatmul.mubr.bf16.gmra.mrb[172].mxu1 %v13402_v0  ;;  %10234 = vmatprep.mubr.msk.bf16.mxu0 %vm712_vm0, %v13403_v2  ;;  %v5205_v24 = vadd.f32 %v15229_v42, %v5001_v10  ;;  %v5395_v36 = vmax.f32 %v5203_v6, 0.0 }
 0x484   :  { %10498 = vmatprep.mubr.msk.bf16.mxu1 %vm712_vm0, %v13403_v2  ;;  %v5206_v33 = vadd.f32 %v15234_v46, %v5002_v58  ;;  %v5396_v40 = vmax.f32 %v5204_v19, 0.0 }
 0x485   :  { %v2340_v3 = vpop.f32.mrb[68].mxu0  ;;  %v5397_v48 = vmax.f32 %v5205_v24, 0.0 }
 0x486   :  { %v4434_v4 = vpop.f32.mrb[68].mxu1  ;;  %v2342_v8 = vpop.f32.mrb[69].mxu0  ;;  %v5398_v61 = vmax.f32 %v5206_v33, 0.0  ;;  %v13167_v33 = vld [vmem:[%s16919_s0 + $0x314] ss:$8 sps:$4 sm:$0xff]  }
 0x487   :  { %v5003_v7 = vmax.f32 %v2340_v3, %v4434_v4  ;;  %v4436_v18 = vpop.f32.mrb[69].mxu1  ;;  %v2344_v22 = vpop.f32.mrb[70].mxu0 }
 0x488   :  { %v5004_v20 = vmax.f32 %v2342_v8, %v4436_v18  ;;  %v4438_v23 = vpop.f32.mrb[70].mxu1  ;;  %v2346_v29 = vpop.f32.mrb[71].mxu0  ;;  %v13407_v8 = vld [vmem:[%s16919_s0 + $0x304] ss:$8 sps:$4 sm:$0xff]  }
 0x489   :  { %v5207_v25 = vadd.f32 %v15229_v42, %v5003_v7  ;;  %v5005_v26 = vmax.f32 %v2344_v22, %v4438_v23  ;;  %v4440_v31 = vpop.f32.mrb[71].mxu1  ;;  %v13406_v7 = vld [vmem:[%s16919_s0 + $0x2f0] ss:$8 sps:$4 sm:$0xff]  }
 0x48a   :  { %v5208_v34 = vadd.f32 %v15234_v46, %v5004_v20  ;;  %v5006_v35 = vmax.f32 %v2346_v29, %v4440_v31  ;;  %2609 = vmatmul.mubr.bf16.gmra.mrb[176].mxu0 %v13404_v39 }
 0x48b   :  { %v5399_v37 = vmax.f32 %v5207_v25, 0.0  ;;  %v5209_v38 = vadd.f32 %v15229_v42, %v5005_v26  ;;  %4703 = vmatmul.mubr.bf16.gmra.mrb[176].mxu1 %v13404_v39  ;;  %10235 = vmatprep.mubr.msk.bf16.mxu0 %vm712_vm0, %v13405_v47 }
 0x48c   :  { %v5400_v41 = vmax.f32 %v5208_v34, 0.0  ;;  %v5210_v45 = vadd.f32 %v15234_v46, %v5006_v35  ;;  %10499 = vmatprep.mubr.msk.bf16.mxu1 %vm712_vm0, %v13405_v47 }
 0x48d   :  { %v5555_v59 = vmax.f32 %v5395_v36, %v5399_v37  ;;  %v5401_v60 = vmax.f32 %v5209_v38, 0.0  ;;  %v2350_v13 = vpop.f32.mrb[72].mxu0 }
 0x48e   :  { %v5556_v62 = vmax.f32 %v5396_v40, %v5400_v41  ;;  %v5402_v9 = vmax.f32 %v5210_v45, 0.0  ;;  %v4444_v28 = vpop.f32.mrb[72].mxu1  ;;  %v2352_v17 = vpop.f32.mrb[73].mxu0 }
 0x48f   :  { %v5557_v14 = vmax.f32 %v5397_v48, %v5401_v60  ;;  %v5007_v12 = vmax.f32 %v2350_v13, %v4444_v28  ;;  %v4446_v11 = vpop.f32.mrb[73].mxu1  ;;  %v2354_v54 = vpop.f32.mrb[74].mxu0 }
 0x490   :  { %v5558_v43 = vmax.f32 %v5398_v61, %v5402_v9  ;;  %v5008_v10 = vmax.f32 %v2352_v17, %v4446_v11  ;;  %v4448_v55 = vpop.f32.mrb[74].mxu1  ;;  %v2356_v2 = vpop.f32.mrb[75].mxu0 }
 0x491   :  { %v15505_v58 = vpack.c.bf16 %v5557_v14, %v5555_v59  ;;  %v5009_v0 = vmax.f32 %v2354_v54, %v4448_v55  ;;  %v4450_v3 = vpop.f32.mrb[75].mxu1  ;;  %v5211_v20 = vadd.f32 %v15229_v42, %v5007_v12  ;;  %v13408_v59 = vld [vmem:[%s16919_s0 + $0x300] ss:$8 sps:$4 sm:$0xff]  }
 0x492   :  { %v15507_v4 = vpack.c.bf16 %v5558_v43, %v5556_v62  ;;  %v5010_v6 = vmax.f32 %v2356_v2, %v4450_v3  ;;  %2619 = vmatmul.mubr.bf16.gmra.mrb[180].mxu0 %v13406_v7  ;;  %v5212_v25 = vadd.f32 %v15234_v46, %v5008_v10  ;;  %v13169_v2 = vld [vmem:[%s16919_s0 + $0x310] ss:$8 sps:$4 sm:$0xff]  }
 0x493   :  { %4713 = vmatmul.mubr.bf16.gmra.mrb[180].mxu1 %v13406_v7  ;;  %10236 = vmatprep.mubr.msk.bf16.mxu0 %vm712_vm0, %v13407_v8  ;;  %v5213_v34 = vadd.f32 %v15229_v42, %v5009_v0  ;;  %v5403_v45 = vmax.f32 %v5211_v20, 0.0 }
 0x494   :  { %10500 = vmatprep.mubr.msk.bf16.mxu1 %vm712_vm0, %v13407_v8  ;;  %v5214_v39 = vadd.f32 %v15234_v46, %v5010_v6  ;;  %v5404_v60 = vmax.f32 %v5212_v25, 0.0 }
 0x495   :  { %v2360_v18 = vpop.f32.mrb[76].mxu0  ;;  %v5405_v9 = vmax.f32 %v5213_v34, 0.0 }
 0x496   :  { %v4454_v19 = vpop.f32.mrb[76].mxu1  ;;  %v2362_v23 = vpop.f32.mrb[77].mxu0  ;;  %v5406_v14 = vmax.f32 %v5214_v39, 0.0 }
 0x497   :  { %v5011_v22 = vmax.f32 %v2360_v18, %v4454_v19  ;;  %v4456_v24 = vpop.f32.mrb[77].mxu1  ;;  %v2364_v29 = vpop.f32.mrb[78].mxu0 }
 0x498   :  { %v5012_v26 = vmax.f32 %v2362_v23, %v4456_v24  ;;  %v4458_v31 = vpop.f32.mrb[78].mxu1  ;;  %v2366_v37 = vpop.f32.mrb[79].mxu0 }
 0x499   :  { %v5215_v35 = vadd.f32 %v15229_v42, %v5011_v22  ;;  %v5013_v36 = vmax.f32 %v2364_v29, %v4458_v31  ;;  %v4460_v38 = vpop.f32.mrb[79].mxu1 }
 0x49a   :  { %v5216_v40 = vadd.f32 %v15234_v46, %v5012_v26  ;;  %v5014_v41 = vmax.f32 %v2366_v37, %v4460_v38  ;;  %2629 = vmatmul.mubr.bf16.gmra.mrb[184].mxu0 %v13408_v59 }
 0x49b   :  { %v5407_v47 = vmax.f32 %v5215_v35, 0.0  ;;  %v5217_v48 = vadd.f32 %v15229_v42, %v5013_v36  ;;  %4723 = vmatmul.mubr.bf16.gmra.mrb[184].mxu1 %v13408_v59  ;;  %10237 = vmatprep.mubr.msk.bf16.mxu0 %vm712_vm0, %v13167_v33  ;;  %v13173_v59 = vld [vmem:[%s16922_s3 + $0x168] sm:$0xff]  }
 0x49c   :  { %v5408_v61 = vmax.f32 %v5216_v40, 0.0  ;;  %v5218_v62 = vadd.f32 %v15234_v46, %v5014_v41  ;;  %10501 = vmatprep.mubr.msk.bf16.mxu1 %vm712_vm0, %v13167_v33 }
 0x49d   :  { %v5559_v13 = vmax.f32 %v5403_v45, %v5407_v47  ;;  %v5409_v28 = vmax.f32 %v5217_v48, 0.0  ;;  %v2370_v11 = vpop.f32.mrb[80].mxu0  ;;  %v13172_v48 = vld [vmem:[%s16922_s3] sm:$0xff]  }
 0x49e   :  { %v5560_v12 = vmax.f32 %v5404_v60, %v5408_v61  ;;  %v5410_v17 = vmax.f32 %v5218_v62, 0.0  ;;  %v4464_v43 = vpop.f32.mrb[80].mxu1  ;;  %v2372_v55 = vpop.f32.mrb[81].mxu0 }
 0x49f   :  { %v5561_v10 = vmax.f32 %v5405_v9, %v5409_v28  ;;  %v5015_v54 = vmax.f32 %v2370_v11, %v4464_v43  ;;  %v4466_v0 = vpop.f32.mrb[81].mxu1  ;;  %v2374_v7 = vpop.f32.mrb[82].mxu0 }
 0x4a0   :  { %v5562_v3 = vmax.f32 %v5406_v14, %v5410_v17  ;;  %v5016_v6 = vmax.f32 %v2372_v55, %v4466_v0  ;;  %v4468_v8 = vpop.f32.mrb[82].mxu1  ;;  %v2376_v20 = vpop.f32.mrb[83].mxu0  ;;  %v13175_v55 = vld [vmem:[%s16922_s3 + $0x170] sm:$0xff]  }
 0x4a1   :  { %v15536_v18 = vpack.c.bf16 %v5561_v10, %v5559_v13  ;;  %v5017_v19 = vmax.f32 %v2374_v7, %v4468_v8  ;;  %v4470_v22 = vpop.f32.mrb[83].mxu1  ;;  %v5219_v29 = vadd.f32 %v15229_v42, %v5015_v54  ;;  %v13174_v54 = vld [vmem:[%s16922_s3 + $0x8] sm:$0xff]  }
 0x4a2   :  { %v15538_v23 = vpack.c.bf16 %v5562_v3, %v5560_v12  ;;  %v5018_v24 = vmax.f32 %v2376_v20, %v4470_v22  ;;  %2639 = vmatmul.mubr.bf16.gmra.mrb[188].mxu0 %v13169_v2  ;;  %v5220_v35 = vadd.f32 %v15234_v46, %v5016_v6 }
 0x4a3   :  { %4733 = vmatmul.mubr.bf16.gmra.mrb[188].mxu1 %v13169_v2  ;;  %10547 = vmatprep.mubr.msk.bf16.mxu0 %vm5818_vm2, %v15301_v21  ;;  %v5221_v39 = vadd.f32 %v15229_v42, %v5017_v19  ;;  %v5411_v9 = vmax.f32 %v5219_v29, 0.0 }
 0x4a4   :  { %10748 = vmatprep.mubr.msk.bf16.mxu1 %vm5818_vm2, %v15301_v21  ;;  %v5222_v60 = vadd.f32 %v15234_v46, %v5018_v24  ;;  %v5412_v14 = vmax.f32 %v5220_v35, 0.0 }
 0x4a5   :  { %v2380_v25 = vpop.f32.mrb[84].mxu0  ;;  %v5413_v11 = vmax.f32 %v5221_v39, 0.0 }
 0x4a6   :  { %v4474_v26 = vpop.f32.mrb[84].mxu1  ;;  %v2382_v33 = vpop.f32.mrb[85].mxu0  ;;  %v5414_v0 = vmax.f32 %v5222_v60, 0.0 }
 0x4a7   :  { %v5019_v31 = vmax.f32 %v2380_v25, %v4474_v26  ;;  %v4476_v34 = vpop.f32.mrb[85].mxu1  ;;  %v2384_v37 = vpop.f32.mrb[86].mxu0 }
 0x4a8   :  { %v5020_v36 = vmax.f32 %v2382_v33, %v4476_v34  ;;  %v4478_v38 = vpop.f32.mrb[86].mxu1  ;;  %v2386_v45 = vpop.f32.mrb[87].mxu0 }
 0x4a9   :  { %v5223_v40 = vadd.f32 %v15229_v42, %v5019_v31  ;;  %v5021_v41 = vmax.f32 %v2384_v37, %v4478_v38  ;;  %v4480_v47 = vpop.f32.mrb[87].mxu1  ;;  %v13177_v37 = vld [vmem:[%s16922_s3 + $0x178] sm:$0xff]  }
 0x4aa   :  { %v5224_v61 = vadd.f32 %v15234_v46, %v5020_v36  ;;  %v5022_v62 = vmax.f32 %v2386_v45, %v4480_v47  ;;  %5918 = vmatmul.mubr.bf16.vlgmr.msra.gmra.mrb[192].mxu0 %v15293_v16  ;;  %v13176_v36 = vld [vmem:[%s16922_s3 + $0x10] sm:$0xff]  }
 0x4ab   :  { %v5415_v13 = vmax.f32 %v5223_v40, 0.0  ;;  %v5225_v28 = vadd.f32 %v15229_v42, %v5021_v41  ;;  %6958 = vmatmul.mubr.bf16.vlgmr.msra.gmra.mrb[192].mxu1 %v15293_v16  ;;  %10548 = vmatprep.mubr.msk.bf16.mxu0 %vm5818_vm2, %v15339_v5  ;;  %v13178_v40 = vld [vmem:[%s16922_s3 + $0x18] sm:$0xff]   ;;  %v13179_v41 = vld [vmem:[%s16922_s3 + $0x180] sm:$0xff]  }
 0x4ac   :  { %v5416_v12 = vmax.f32 %v5224_v61, 0.0  ;;  %v5226_v17 = vadd.f32 %v15234_v46, %v5022_v62  ;;  %10749 = vmatprep.mubr.msk.bf16.mxu1 %vm5818_vm2, %v15339_v5  ;;  %6188 = vmatpush1.bf16.msra.mxu0 %v13172_v48 }
 0x4ad   :  { %v5563_v43 = vmax.f32 %v5411_v9, %v5415_v13  ;;  %v5417_v10 = vmax.f32 %v5225_v28, 0.0  ;;  %7225 = vmatpush1.bf16.msra.mxu1 %v13173_v59  ;;  %v2390_v6 = vpop.f32.mrb[88].mxu0  ;;  %6189 = vmatprep.subr.bf16.mxu0 %v16997_v63 }
 0x4ae   :  { %v5564_v2 = vmax.f32 %v5412_v14, %v5416_v12  ;;  %v5418_v3 = vmax.f32 %v5226_v17, 0.0  ;;  %v4484_v7 = vpop.f32.mrb[88].mxu1  ;;  %7226 = vmatprep.subr.bf16.mxu1 %v16997_v63  ;;  %v2392_v20 = vpop.f32.mrb[89].mxu0 }
 0x4af   :  { %v5565_v8 = vmax.f32 %v5413_v11, %v5417_v10  ;;  %v5023_v19 = vmax.f32 %v2390_v6, %v4484_v7  ;;  %v4486_v22 = vpop.f32.mrb[89].mxu1  ;;  %v2394_v26 = vpop.f32.mrb[90].mxu0  ;;  %v13180_v10 = vld [vmem:[%s16922_s3 + $0x20] sm:$0xff]  }
 0x4b0   :  { %v5566_v24 = vmax.f32 %v5414_v0, %v5418_v3  ;;  %v5024_v25 = vmax.f32 %v2392_v20, %v4486_v22  ;;  %v4488_v29 = vpop.f32.mrb[90].mxu1  ;;  %v2396_v34 = vpop.f32.mrb[91].mxu0  ;;  %6190 = vmatpush1.bf16.msra.mxu0 %v13174_v54  ;;  %v13181_v54 = vld [vmem:[%s16922_s3 + $0x188] sm:$0xff]  }
 0x4b1   :  { %v15572_v31 = vpack.c.bf16 %v5565_v8, %v5563_v43  ;;  %v5025_v33 = vmax.f32 %v2394_v26, %v4488_v29  ;;  %v4490_v35 = vpop.f32.mrb[91].mxu1  ;;  %7227 = vmatpush1.bf16.msra.mxu1 %v13175_v55  ;;  %6191 = vmatprep.subr.bf16.mxu0 %v16997_v63  ;;  %v5227_v48 = vadd.f32 %v15229_v42, %v5023_v19  ;;  %v13182_v26 = vld [vmem:[%s16922_s3 + $0x28] sm:$0xff]   ;;  %v13183_v29 = vld [vmem:[%s16922_s3 + $0x190] sm:$0xff]  }
 0x4b2   :  { %v15580_v38 = vpack.c.bf16 %v5566_v24, %v5564_v2  ;;  %v5026_v39 = vmax.f32 %v2396_v34, %v4490_v35  ;;  %7228 = vmatprep.subr.bf16.mxu1 %v16997_v63  ;;  %5926 = vmatmul.mubr.bf16.gmra.mrb[196].mxu0 %v15337_v1  ;;  %v5228_v62 = vadd.f32 %v15234_v46, %v5024_v25 }
 0x4b3   :  { %6966 = vmatmul.mubr.bf16.gmra.mrb[196].mxu1 %v15337_v1  ;;  %10549 = vmatprep.mubr.msk.bf16.mxu0 %vm5818_vm2, %v15367_v57  ;;  %v5229_v14 = vadd.f32 %v15229_v42, %v5025_v33  ;;  %v5419_v3 = vmax.f32 %v5227_v48, 0.0 }
 0x4b4   :  { %10750 = vmatprep.mubr.msk.bf16.mxu1 %vm5818_vm2, %v15367_v57  ;;  %6192 = vmatpush1.bf16.msra.mxu0 %v13176_v36  ;;  %v5230_v55 = vadd.f32 %v15234_v46, %v5026_v39  ;;  %v5420_v8 = vmax.f32 %v5228_v62, 0.0 }
 0x4b5   :  { %7229 = vmatpush1.bf16.msra.mxu1 %v13177_v37  ;;  %v2400_v45 = vpop.f32.mrb[92].mxu0  ;;  %6193 = vmatprep.subr.bf16.mxu0 %v16997_v63  ;;  %v5421_v22 = vmax.f32 %v5229_v14, 0.0  ;;  %v13185_v14 = vld [vmem:[%s16922_s3 + $0x198] sm:$0xff]  }
 0x4b6   :  { %v4494_v47 = vpop.f32.mrb[92].mxu1  ;;  %7230 = vmatprep.subr.bf16.mxu1 %v16997_v63  ;;  %v2402_v60 = vpop.f32.mrb[93].mxu0  ;;  %v5422_v33 = vmax.f32 %v5230_v55, 0.0 }
 0x4b7   :  { %v5027_v59 = vmax.f32 %v2400_v45, %v4494_v47  ;;  %v4496_v61 = vpop.f32.mrb[93].mxu1  ;;  %v2404_v13 = vpop.f32.mrb[94].mxu0 }
 0x4b8   :  { %v5028_v9 = vmax.f32 %v2402_v60, %v4496_v61  ;;  %v4498_v28 = vpop.f32.mrb[94].mxu1  ;;  %v2406_v11 = vpop.f32.mrb[95].mxu0  ;;  %6194 = vmatpush1.bf16.msra.mxu0 %v13178_v40 }
 0x4b9   :  { %v5231_v12 = vadd.f32 %v15229_v42, %v5027_v59  ;;  %v5029_v17 = vmax.f32 %v2404_v13, %v4498_v28  ;;  %v4500_v43 = vpop.f32.mrb[95].mxu1  ;;  %7231 = vmatpush1.bf16.msra.mxu1 %v13179_v41  ;;  %6195 = vmatprep.subr.bf16.mxu0 %v16997_v63  ;;  %v13184_v28 = vld [vmem:[%s16922_s3 + $0x30] sm:$0xff]  }
 0x4ba   :  { %v5232_v0 = vadd.f32 %v15234_v46, %v5028_v9  ;;  %v5030_v2 = vmax.f32 %v2406_v11, %v4500_v43  ;;  %7232 = vmatprep.subr.bf16.mxu1 %v16997_v63  ;;  %5934 = vmatmul.mubr.bf16.gmra.mrb[200].mxu0 %v15365_v53  ;;  %v13186_v11 = vld [vmem:[%s16922_s3 + $0x38] sm:$0xff]   ;;  %v13187_v43 = vld [vmem:[%s16922_s3 + $0x1a0] sm:$0xff]  }
 0x4bb   :  { %v5423_v6 = vmax.f32 %v5231_v12, 0.0  ;;  %v5233_v7 = vadd.f32 %v15229_v42, %v5029_v17  ;;  %6974 = vmatmul.mubr.bf16.gmra.mrb[200].mxu1 %v15365_v53  ;;  %10550 = vmatprep.mubr.msk.bf16.mxu0 %vm5818_vm2, %v15395_v52 }
 0x4bc   :  { %v5424_v19 = vmax.f32 %v5232_v0, 0.0  ;;  %v5234_v20 = vadd.f32 %v15234_v46, %v5030_v2  ;;  %10751 = vmatprep.mubr.msk.bf16.mxu1 %vm5818_vm2, %v15395_v52  ;;  %6196 = vmatpush1.bf16.msra.mxu0 %v13180_v10 }
 0x4bd   :  { %v5567_v24 = vmax.f32 %v5419_v3, %v5423_v6  ;;  %v5425_v25 = vmax.f32 %v5233_v7, 0.0  ;;  %7233 = vmatpush1.bf16.msra.mxu1 %v13181_v54  ;;  %v2410_v36 = vpop.f32.mrb[96].mxu0  ;;  %6197 = vmatprep.subr.bf16.mxu0 %v16997_v63 }
 0x4be   :  { %v5568_v34 = vmax.f32 %v5420_v8, %v5424_v19  ;;  %v5426_v35 = vmax.f32 %v5234_v20, 0.0  ;;  %v4504_v37 = vpop.f32.mrb[96].mxu1  ;;  %7234 = vmatprep.subr.bf16.mxu1 %v16997_v63  ;;  %v2412_v41 = vpop.f32.mrb[97].mxu0 }
 0x4bf   :  { %v5569_v39 = vmax.f32 %v5421_v22, %v5425_v25  ;;  %v5031_v40 = vmax.f32 %v2410_v36, %v4504_v37  ;;  %v4506_v45 = vpop.f32.mrb[97].mxu1  ;;  %v2414_v59 = vpop.f32.mrb[98].mxu0 }
 0x4c0   :  { %v5570_v47 = vmax.f32 %v5422_v33, %v5426_v35  ;;  %v5032_v48 = vmax.f32 %v2412_v41, %v4506_v45  ;;  %v4508_v60 = vpop.f32.mrb[98].mxu1  ;;  %v2416_v9 = vpop.f32.mrb[99].mxu0  ;;  %6198 = vmatpush1.bf16.msra.mxu0 %v13182_v26  ;;  %v13189_v33 = vld [vmem:[%s16922_s3 + $0x1a8] sm:$0xff]  }
 0x4c1   :  { %v15628_v61 = vpack.c.bf16 %v5569_v39, %v5567_v24  ;;  %v5033_v62 = vmax.f32 %v2414_v59, %v4508_v60  ;;  %v4510_v13 = vpop.f32.mrb[99].mxu1  ;;  %7235 = vmatpush1.bf16.msra.mxu1 %v13183_v29  ;;  %6199 = vmatprep.subr.bf16.mxu0 %v16997_v63  ;;  %v5235_v55 = vadd.f32 %v15229_v42, %v5031_v40  ;;  %v13188_v29 = vld [vmem:[%s16922_s3 + $0x40] sm:$0xff]  }
 0x4c2   :  { %v15636_v12 = vpack.c.bf16 %v5570_v47, %v5568_v34  ;;  %v5034_v17 = vmax.f32 %v2416_v9, %v4510_v13  ;;  %7236 = vmatprep.subr.bf16.mxu1 %v16997_v63  ;;  %5942 = vmatmul.mubr.bf16.gmra.mrb[204].mxu0 %v15393_v49  ;;  %v5236_v6 = vadd.f32 %v15234_v46, %v5032_v48  ;;  %v13191_v9 = vld [vmem:[%s16922_s3 + $0x1b0] sm:$0xff]  }
 0x4c3   :  { %6982 = vmatmul.mubr.bf16.gmra.mrb[204].mxu1 %v15393_v49  ;;  %10551 = vmatprep.mubr.msk.bf16.mxu0 %vm5818_vm2, %v15423_v50  ;;  %v5237_v20 = vadd.f32 %v15229_v42, %v5033_v62  ;;  %v5427_v37 = vmax.f32 %v5235_v55, 0.0  ;;  %v13190_v62 = vld [vmem:[%s16922_s3 + $0x48] sm:$0xff]  }
 0x4c4   :  { %10752 = vmatprep.mubr.msk.bf16.mxu1 %vm5818_vm2, %v15423_v50  ;;  %6200 = vmatpush1.bf16.msra.mxu0 %v13184_v28  ;;  %v5238_v34 = vadd.f32 %v15234_v46, %v5034_v17  ;;  %v5428_v41 = vmax.f32 %v5236_v6, 0.0 }
 0x4c5   :  { %7237 = vmatpush1.bf16.msra.mxu1 %v13185_v14  ;;  %v2420_v10 = vpop.f32.mrb[100].mxu0  ;;  %6201 = vmatprep.subr.bf16.mxu0 %v16997_v63  ;;  %v5429_v48 = vmax.f32 %v5237_v20, 0.0 }
 0x4c6   :  { %v4514_v54 = vpop.f32.mrb[100].mxu1  ;;  %7238 = vmatprep.subr.bf16.mxu1 %v16997_v63  ;;  %v2422_v2 = vpop.f32.mrb[101].mxu0  ;;  %v5430_v13 = vmax.f32 %v5238_v34, 0.0 }
 0x4c7   :  { %v5035_v0 = vmax.f32 %v2420_v10, %v4514_v54  ;;  %v4516_v3 = vpop.f32.mrb[101].mxu1  ;;  %v2424_v8 = vpop.f32.mrb[102].mxu0 }
 0x4c8   :  { %v5036_v7 = vmax.f32 %v2422_v2, %v4516_v3  ;;  %v4518_v19 = vpop.f32.mrb[102].mxu1  ;;  %v2426_v25 = vpop.f32.mrb[103].mxu0  ;;  %6202 = vmatpush1.bf16.msra.mxu0 %v13186_v11 }
 0x4c9   :  { %v5239_v22 = vadd.f32 %v15229_v42, %v5035_v0  ;;  %v5037_v24 = vmax.f32 %v2424_v8, %v4518_v19  ;;  %v4520_v26 = vpop.f32.mrb[103].mxu1  ;;  %7239 = vmatpush1.bf16.msra.mxu1 %v13187_v43  ;;  %6203 = vmatprep.subr.bf16.mxu0 %v16997_v63 }
 0x4ca   :  { %v5240_v35 = vadd.f32 %v15234_v46, %v5036_v7  ;;  %v5038_v36 = vmax.f32 %v2426_v25, %v4520_v26  ;;  %7240 = vmatprep.subr.bf16.mxu1 %v16997_v63  ;;  %5950 = vmatmul.mubr.bf16.gmra.mrb[208].mxu0 %v15421_v27 }
 0x4cb   :  { %v5431_v39 = vmax.f32 %v5239_v22, 0.0  ;;  %v5241_v40 = vadd.f32 %v15229_v42, %v5037_v24  ;;  %6990 = vmatmul.mubr.bf16.gmra.mrb[208].mxu1 %v15421_v27  ;;  %10552 = vmatprep.mubr.msk.bf16.mxu0 %vm5818_vm2, %v15451_v51  ;;  %v13192_v22 = vld [vmem:[%s16922_s3 + $0x50] sm:$0xff]   ;;  %v13193_v24 = vld [vmem:[%s16922_s3 + $0x1b8] sm:$0xff]  }
 0x4cc   :  { %v5432_v45 = vmax.f32 %v5240_v35, 0.0  ;;  %v5242_v47 = vadd.f32 %v15234_v46, %v5038_v36  ;;  %10753 = vmatprep.mubr.msk.bf16.mxu1 %vm5818_vm2, %v15451_v51  ;;  %6204 = vmatpush1.bf16.msra.mxu0 %v13188_v29  ;;  %v13194_v29 = vld [vmem:[%s16922_s3 + $0x58] sm:$0xff]  }
 0x4cd   :  { %v5571_v59 = vmax.f32 %v5427_v37, %v5431_v39  ;;  %v5433_v60 = vmax.f32 %v5241_v40, 0.0  ;;  %7241 = vmatpush1.bf16.msra.mxu1 %v13189_v33  ;;  %v2430_v17 = vpop.f32.mrb[104].mxu0  ;;  %6205 = vmatprep.subr.bf16.mxu0 %v16997_v63  ;;  %v13195_v33 = vld [vmem:[%s16922_s3 + $0x1c0] sm:$0xff]  }
 0x4ce   :  { %v5572_v28 = vmax.f32 %v5428_v41, %v5432_v45  ;;  %v5434_v14 = vmax.f32 %v5242_v47, 0.0  ;;  %v4524_v11 = vpop.f32.mrb[104].mxu1  ;;  %7242 = vmatprep.subr.bf16.mxu1 %v16997_v63  ;;  %v2432_v54 = vpop.f32.mrb[105].mxu0 }
 0x4cf   :  { %v5573_v43 = vmax.f32 %v5429_v48, %v5433_v60  ;;  %v5039_v10 = vmax.f32 %v2430_v17, %v4524_v11  ;;  %v4526_v55 = vpop.f32.mrb[105].mxu1  ;;  %v2434_v3 = vpop.f32.mrb[106].mxu0 }
 0x4d0   :  { %v5574_v0 = vmax.f32 %v5430_v13, %v5434_v14  ;;  %v5040_v2 = vmax.f32 %v2432_v54, %v4526_v55  ;;  %v4528_v6 = vpop.f32.mrb[106].mxu1  ;;  %v2436_v19 = vpop.f32.mrb[107].mxu0  ;;  %6206 = vmatpush1.bf16.msra.mxu0 %v13190_v62 }
 0x4d1   :  { %v15684_v7 = vpack.c.bf16 %v5573_v43, %v5571_v59  ;;  %v5041_v8 = vmax.f32 %v2434_v3, %v4528_v6  ;;  %v4530_v20 = vpop.f32.mrb[107].mxu1  ;;  %7243 = vmatpush1.bf16.msra.mxu1 %v13191_v9  ;;  %6207 = vmatprep.subr.bf16.mxu0 %v16997_v63  ;;  %v5243_v36 = vadd.f32 %v15229_v42, %v5039_v10 }
 0x4d2   :  { %v15692_v25 = vpack.c.bf16 %v5574_v0, %v5572_v28  ;;  %v5042_v26 = vmax.f32 %v2436_v19, %v4530_v20  ;;  %7244 = vmatprep.subr.bf16.mxu1 %v16997_v63  ;;  %5958 = vmatmul.mubr.bf16.gmra.mrb[212].mxu0 %v15449_v15  ;;  %v5244_v41 = vadd.f32 %v15234_v46, %v5040_v2 }
 0x4d3   :  { %6998 = vmatmul.mubr.bf16.gmra.mrb[212].mxu1 %v15449_v15  ;;  %10553 = vmatprep.mubr.msk.bf16.mxu0 %vm5818_vm2, %v15479_v56  ;;  %v5245_v59 = vadd.f32 %v15229_v42, %v5041_v8  ;;  %v5435_v11 = vmax.f32 %v5243_v36, 0.0 }
 0x4d4   :  { %10754 = vmatprep.mubr.msk.bf16.mxu1 %vm5818_vm2, %v15479_v56  ;;  %6208 = vmatpush1.bf16.msra.mxu0 %v13192_v22  ;;  %v5246_v28 = vadd.f32 %v15234_v46, %v5042_v26  ;;  %v5436_v54 = vmax.f32 %v5244_v41, 0.0 }
 0x4d5   :  { %7245 = vmatpush1.bf16.msra.mxu1 %v13193_v24  ;;  %v2440_v34 = vpop.f32.mrb[108].mxu0  ;;  %6209 = vmatprep.subr.bf16.mxu0 %v16997_v63  ;;  %v5437_v2 = vmax.f32 %v5245_v59, 0.0 }
 0x4d6   :  { %v4534_v35 = vpop.f32.mrb[108].mxu1  ;;  %7246 = vmatprep.subr.bf16.mxu1 %v16997_v63  ;;  %v2442_v39 = vpop.f32.mrb[109].mxu0  ;;  %v5438_v8 = vmax.f32 %v5246_v28, 0.0 }
 0x4d7   :  { %v5043_v37 = vmax.f32 %v2440_v34, %v4534_v35  ;;  %v4536_v40 = vpop.f32.mrb[109].mxu1  ;;  %v2444_v47 = vpop.f32.mrb[110].mxu0 }
 0x4d8   :  { %v5044_v45 = vmax.f32 %v2442_v39, %v4536_v40  ;;  %v4538_v48 = vpop.f32.mrb[110].mxu1  ;;  %v2446_v9 = vpop.f32.mrb[111].mxu0  ;;  %6210 = vmatpush1.bf16.msra.mxu0 %v13194_v29 }
 0x4d9   :  { %v5247_v60 = vadd.f32 %v15229_v42, %v5043_v37  ;;  %v5045_v62 = vmax.f32 %v2444_v47, %v4538_v48  ;;  %v4540_v13 = vpop.f32.mrb[111].mxu1  ;;  %7247 = vmatpush1.bf16.msra.mxu1 %v13195_v33  ;;  %6211 = vmatprep.subr.bf16.mxu0 %v16997_v63 }
 0x4da   :  { %v5248_v14 = vadd.f32 %v15234_v46, %v5044_v45  ;;  %v5046_v17 = vmax.f32 %v2446_v9, %v4540_v13  ;;  %7248 = vmatprep.subr.bf16.mxu1 %v16997_v63  ;;  %5966 = vmatmul.mubr.bf16.gmra.mrb[216].mxu0 %v15477_v44 }
 0x4db   :  { %v5439_v43 = vmax.f32 %v5247_v60, 0.0  ;;  %v5249_v10 = vadd.f32 %v15229_v42, %v5045_v62  ;;  %7006 = vmatmul.mubr.bf16.gmra.mrb[216].mxu1 %v15477_v44  ;;  %10554 = vmatprep.mubr.msk.bf16.mxu0 %vm5818_vm2, %v15507_v4  ;;  %v13196_v60 = vld [vmem:[%s16922_s3 + $0x60] sm:$0xff]   ;;  %v13197_v62 = vld [vmem:[%s16922_s3 + $0x1c8] sm:$0xff]  }
 0x4dc   :  { %v5440_v55 = vmax.f32 %v5248_v14, 0.0  ;;  %v5250_v0 = vadd.f32 %v15234_v46, %v5046_v17  ;;  %10755 = vmatprep.mubr.msk.bf16.mxu1 %vm5818_vm2, %v15507_v4  ;;  %6212 = vmatpush1.bf16.msra.mxu0 %v13196_v60 }
 0x4dd   :  { %v5575_v3 = vmax.f32 %v5435_v11, %v5439_v43  ;;  %v5441_v6 = vmax.f32 %v5249_v10, 0.0  ;;  %v2450_v22 = vpop.f32.mrb[112].mxu0  ;;  %7249 = vmatpush1.bf16.msra.mxu1 %v13197_v62  ;;  %6213 = vmatprep.subr.bf16.mxu0 %v16997_v63  ;;  %v13198_v62 = vld [vmem:[%s16922_s3 + $0x68] sm:$0xff]  }
 0x4de   :  { %v5576_v19 = vmax.f32 %v5436_v54, %v5440_v55  ;;  %v5442_v20 = vmax.f32 %v5250_v0, 0.0  ;;  %v4544_v24 = vpop.f32.mrb[112].mxu1  ;;  %v2452_v33 = vpop.f32.mrb[113].mxu0  ;;  %7250 = vmatprep.subr.bf16.mxu1 %v16997_v63 }
 0x4df   :  { %v5577_v26 = vmax.f32 %v5437_v2, %v5441_v6  ;;  %v5047_v29 = vmax.f32 %v2450_v22, %v4544_v24  ;;  %v4546_v34 = vpop.f32.mrb[113].mxu1  ;;  %v2454_v37 = vpop.f32.mrb[114].mxu0 }
 0x4e0   :  { %v5578_v35 = vmax.f32 %v5438_v8, %v5442_v20  ;;  %v5048_v36 = vmax.f32 %v2452_v33, %v4546_v34  ;;  %v4548_v39 = vpop.f32.mrb[114].mxu1  ;;  %v2456_v45 = vpop.f32.mrb[115].mxu0  ;;  %6214 = vmatpush1.bf16.msra.mxu0 %v13198_v62 }
 0x4e1   :  { %v15726_v40 = vpack.c.bf16 %v5577_v26, %v5575_v3  ;;  %v5049_v41 = vmax.f32 %v2454_v37, %v4548_v39  ;;  %v4550_v47 = vpop.f32.mrb[115].mxu1  ;;  %v5251_v28 = vadd.f32 %v15229_v42, %v5047_v29  ;;  %6215 = vmatprep.subr.bf16.mxu0 %v16997_v63 }
 0x4e2   :  { %v15728_v48 = vpack.c.bf16 %v5578_v35, %v5576_v19  ;;  %v5050_v59 = vmax.f32 %v2456_v45, %v4550_v47  ;;  %5974 = vmatmul.mubr.bf16.gmra.mrb[220].mxu0 %v15505_v58  ;;  %v5252_v43 = vadd.f32 %v15234_v46, %v5048_v36 }
 0x4e3   :  { %7014 = vmatmul.mubr.bf16.gmra.mrb[220].mxu1 %v15505_v58  ;;  %10555 = vmatprep.mubr.msk.bf16.mxu0 %vm5818_vm2, %v15538_v23  ;;  %v5253_v0 = vadd.f32 %v15229_v42, %v5049_v41  ;;  %v5443_v24 = vmax.f32 %v5251_v28, 0.0 }
 0x4e4   :  { %10756 = vmatprep.mubr.msk.bf16.mxu1 %vm5818_vm2, %v15538_v23  ;;  %v5254_v19 = vadd.f32 %v15234_v46, %v5050_v59  ;;  %v5444_v33 = vmax.f32 %v5252_v43, 0.0 }
 0x4e5   :  { %v2460_v9 = vpop.f32.mrb[116].mxu0  ;;  %v5445_v36 = vmax.f32 %v5253_v0, 0.0 }
 0x4e6   :  { %v4554_v13 = vpop.f32.mrb[116].mxu1  ;;  %v2462_v17 = vpop.f32.mrb[117].mxu0  ;;  %v5446_v41 = vmax.f32 %v5254_v19, 0.0 }
 0x4e7   :  { %v5051_v14 = vmax.f32 %v2460_v9, %v4554_v13  ;;  %v4556_v11 = vpop.f32.mrb[117].mxu1  ;;  %v2464_v54 = vpop.f32.mrb[118].mxu0  ;;  %v13199_v9 = vld [vmem:[%s16922_s3 + $0x1d0] sm:$0xff]  }
 0x4e8   :  { %v5052_v10 = vmax.f32 %v2462_v17, %v4556_v11  ;;  %v4558_v55 = vpop.f32.mrb[118].mxu1  ;;  %v2466_v6 = vpop.f32.mrb[119].mxu0  ;;  %7251 = vmatpush1.bf16.msra.mxu1 %v13199_v9 }
 0x4e9   :  { %v5255_v2 = vadd.f32 %v15229_v42, %v5051_v14  ;;  %v5053_v3 = vmax.f32 %v2464_v54, %v4558_v55  ;;  %v4560_v8 = vpop.f32.mrb[119].mxu1  ;;  %7252 = vmatprep.subr.bf16.mxu1 %v16997_v63 }
 0x4ea   :  { %v5256_v20 = vadd.f32 %v15234_v46, %v5052_v10  ;;  %v5054_v22 = vmax.f32 %v2466_v6, %v4560_v8  ;;  %5982 = vmatmul.mubr.bf16.gmra.mrb[224].mxu0 %v15536_v18 }
 0x4eb   :  { %v5447_v26 = vmax.f32 %v5255_v2, 0.0  ;;  %v5257_v29 = vadd.f32 %v15229_v42, %v5053_v3  ;;  %7022 = vmatmul.mubr.bf16.gmra.mrb[224].mxu1 %v15536_v18  ;;  %10556 = vmatprep.mubr.msk.bf16.mxu0 %vm5818_vm2, %v15580_v38 }
 0x4ec   :  { %v5448_v34 = vmax.f32 %v5256_v20, 0.0  ;;  %v5258_v35 = vadd.f32 %v15234_v46, %v5054_v22  ;;  %10757 = vmatprep.mubr.msk.bf16.mxu1 %vm5818_vm2, %v15580_v38  ;;  %v13200_v22 = vld [vmem:[%s16922_s3 + $0x70] sm:$0xff]  }
 0x4ed   :  { %v5579_v37 = vmax.f32 %v5443_v24, %v5447_v26  ;;  %v5449_v39 = vmax.f32 %v5257_v29, 0.0  ;;  %v2470_v59 = vpop.f32.mrb[120].mxu0  ;;  %v13201_v24 = vld [vmem:[%s16922_s3 + $0x1d8] sm:$0xff]   ;;  %6216 = vmatpush1.bf16.msra.mxu0 %v13200_v22 }
 0x4ee   :  { %v5580_v45 = vmax.f32 %v5444_v33, %v5448_v34  ;;  %v5450_v47 = vmax.f32 %v5258_v35, 0.0  ;;  %v4564_v60 = vpop.f32.mrb[120].mxu1  ;;  %v2472_v14 = vpop.f32.mrb[121].mxu0  ;;  %7253 = vmatpush1.bf16.msra.mxu1 %v13201_v24  ;;  %6520 = vmatprep.subr.bf16.mxu0 %v16997_v63 }
 0x4ef   :  { %v5581_v13 = vmax.f32 %v5445_v36, %v5449_v39  ;;  %v5055_v28 = vmax.f32 %v2470_v59, %v4564_v60  ;;  %v4566_v17 = vpop.f32.mrb[121].mxu1  ;;  %v2474_v10 = vpop.f32.mrb[122].mxu0  ;;  %7554 = vmatprep.subr.bf16.mxu1 %v16997_v63 }
 0x4f0   :  { %v5582_v11 = vmax.f32 %v5446_v41, %v5450_v47  ;;  %v5056_v43 = vmax.f32 %v2472_v14, %v4566_v17  ;;  %v4568_v54 = vpop.f32.mrb[122].mxu1  ;;  %v2476_v2 = vpop.f32.mrb[123].mxu0 }
 0x4f1   :  { %v15764_v55 = vpack.c.bf16 %v5581_v13, %v5579_v37  ;;  %v5057_v0 = vmax.f32 %v2474_v10, %v4568_v54  ;;  %v4570_v3 = vpop.f32.mrb[123].mxu1  ;;  %v5259_v26 = vadd.f32 %v15229_v42, %v5055_v28 }
 0x4f2   :  { %v15768_v6 = vpack.c.bf16 %v5582_v11, %v5580_v45  ;;  %v5058_v8 = vmax.f32 %v2476_v2, %v4570_v3  ;;  %5990 = vmatmul.mubr.bf16.gmra.mrb[228].mxu0 %v15572_v31  ;;  %v5260_v35 = vadd.f32 %v15234_v46, %v5056_v43 }
 0x4f3   :  { %7030 = vmatmul.mubr.bf16.gmra.mrb[228].mxu1 %v15572_v31  ;;  %10557 = vmatprep.mubr.msk.bf16.mxu0 %vm5818_vm2, %v15636_v12  ;;  %v5261_v41 = vadd.f32 %v15229_v42, %v5057_v0  ;;  %v5451_v28 = vmax.f32 %v5259_v26, 0.0 }
 0x4f4   :  { %10758 = vmatprep.mubr.msk.bf16.mxu1 %vm5818_vm2, %v15636_v12  ;;  %v5262_v62 = vadd.f32 %v15234_v46, %v5058_v8  ;;  %v5452_v11 = vmax.f32 %v5260_v35, 0.0 }
 0x4f5   :  { %v2480_v19 = vpop.f32.mrb[124].mxu0  ;;  %v5453_v54 = vmax.f32 %v5261_v41, 0.0 }
 0x4f6   :  { %v4574_v20 = vpop.f32.mrb[124].mxu1  ;;  %v2482_v33 = vpop.f32.mrb[125].mxu0  ;;  %v5454_v3 = vmax.f32 %v5262_v62, 0.0 }
 0x4f7   :  { %v5059_v29 = vmax.f32 %v2480_v19, %v4574_v20  ;;  %v4576_v34 = vpop.f32.mrb[125].mxu1  ;;  %v2484_v37 = vpop.f32.mrb[126].mxu0 }
 0x4f8   :  { %v5060_v36 = vmax.f32 %v2482_v33, %v4576_v34  ;;  %v4578_v39 = vpop.f32.mrb[126].mxu1  ;;  %v2486_v59 = vpop.f32.mrb[127].mxu0 }
 0x4f9   :  { %v5263_v45 = vadd.f32 %v15229_v42, %v5059_v29  ;;  %v5061_v47 = vmax.f32 %v2484_v37, %v4578_v39  ;;  %v4580_v60 = vpop.f32.mrb[127].mxu1 }
 0x4fa   :  { %v5264_v9 = vadd.f32 %v15234_v46, %v5060_v36  ;;  %v5062_v13 = vmax.f32 %v2486_v59, %v4580_v60  ;;  %5998 = vmatmul.mubr.bf16.gmra.mrb[232].mxu0 %v15628_v61 }
 0x4fb   :  { %v5455_v14 = vmax.f32 %v5263_v45, 0.0  ;;  %v5265_v17 = vadd.f32 %v15229_v42, %v5061_v47  ;;  %7038 = vmatmul.mubr.bf16.gmra.mrb[232].mxu1 %v15628_v61  ;;  %10558 = vmatprep.mubr.msk.bf16.mxu0 %vm5818_vm2, %v15692_v25 }
 0x4fc   :  { %v5456_v43 = vmax.f32 %v5264_v9, 0.0  ;;  %v5266_v10 = vadd.f32 %v15234_v46, %v5062_v13  ;;  %10759 = vmatprep.mubr.msk.bf16.mxu1 %vm5818_vm2, %v15692_v25 }
 0x4fd   :  { %v5583_v0 = vmax.f32 %v5451_v28, %v5455_v14  ;;  %v5457_v2 = vmax.f32 %v5265_v17, 0.0  ;;  %v2490_v20 = vpop.f32.mrb[128].mxu0 }
 0x4fe   :  { %v5584_v8 = vmax.f32 %v5452_v11, %v5456_v43  ;;  %v5458_v19 = vmax.f32 %v5266_v10, 0.0  ;;  %v4584_v22 = vpop.f32.mrb[128].mxu1  ;;  %v2492_v29 = vpop.f32.mrb[129].mxu0 }
 0x4ff   :  { %v5585_v24 = vmax.f32 %v5453_v54, %v5457_v2  ;;  %v5063_v26 = vmax.f32 %v2490_v20, %v4584_v22  ;;  %v4586_v33 = vpop.f32.mrb[129].mxu1  ;;  %v2494_v36 = vpop.f32.mrb[130].mxu0 }
 0x500   :  { %v5586_v34 = vmax.f32 %v5454_v3, %v5458_v19  ;;  %v5064_v35 = vmax.f32 %v2492_v29, %v4586_v33  ;;  %v4588_v37 = vpop.f32.mrb[130].mxu1  ;;  %v2496_v47 = vpop.f32.mrb[131].mxu0 }
 0x501   :  { %v15798_v39 = vpack.c.bf16 %v5585_v24, %v5583_v0  ;;  %v5065_v45 = vmax.f32 %v2494_v36, %v4588_v37  ;;  %v4590_v41 = vpop.f32.mrb[131].mxu1  ;;  %v5267_v13 = vadd.f32 %v15229_v42, %v5063_v26 }
 0x502   :  { %v15800_v59 = vpack.c.bf16 %v5586_v34, %v5584_v8  ;;  %v5066_v60 = vmax.f32 %v2496_v47, %v4590_v41  ;;  %6006 = vmatmul.mubr.bf16.gmra.mrb[236].mxu0 %v15684_v7  ;;  %v5268_v11 = vadd.f32 %v15234_v46, %v5064_v35 }
 0x503   :  { %7046 = vmatmul.mubr.bf16.gmra.mrb[236].mxu1 %v15684_v7  ;;  %10559 = vmatprep.mubr.msk.bf16.mxu0 %vm5818_vm2, %v15728_v48  ;;  %v5269_v0 = vadd.f32 %v15229_v42, %v5065_v45  ;;  %v5459_v26 = vmax.f32 %v5267_v13, 0.0 }
 0x504   :  { %10760 = vmatprep.mubr.msk.bf16.mxu1 %vm5818_vm2, %v15728_v48  ;;  %v5270_v20 = vadd.f32 %v15234_v46, %v5066_v60  ;;  %v5460_v34 = vmax.f32 %v5268_v11, 0.0 }
 0x505   :  { %v2500_v62 = vpop.f32.mrb[132].mxu0  ;;  %v5461_v37 = vmax.f32 %v5269_v0, 0.0 }
 0x506   :  { %v4594_v9 = vpop.f32.mrb[132].mxu1  ;;  %v2502_v14 = vpop.f32.mrb[133].mxu0  ;;  %v5462_v41 = vmax.f32 %v5270_v20, 0.0 }
 0x507   :  { %v5067_v28 = vmax.f32 %v2500_v62, %v4594_v9  ;;  %v4596_v17 = vpop.f32.mrb[133].mxu1  ;;  %v2504_v10 = vpop.f32.mrb[134].mxu0 }
 0x508   :  { %v5068_v43 = vmax.f32 %v2502_v14, %v4596_v17  ;;  %v4598_v54 = vpop.f32.mrb[134].mxu1  ;;  %v2506_v8 = vpop.f32.mrb[135].mxu0 }
 0x509   :  { %v5271_v2 = vadd.f32 %v15229_v42, %v5067_v28  ;;  %v5069_v3 = vmax.f32 %v2504_v10, %v4598_v54  ;;  %v4600_v19 = vpop.f32.mrb[135].mxu1 }
 0x50a   :  { %v5272_v22 = vadd.f32 %v15234_v46, %v5068_v43  ;;  %v5070_v24 = vmax.f32 %v2506_v8, %v4600_v19  ;;  %6014 = vmatmul.mubr.bf16.gmra.mrb[240].mxu0 %v15726_v40 }
 0x50b   :  { %v5463_v29 = vmax.f32 %v5271_v2, 0.0  ;;  %v5273_v33 = vadd.f32 %v15229_v42, %v5069_v3  ;;  %7054 = vmatmul.mubr.bf16.gmra.mrb[240].mxu1 %v15726_v40  ;;  %10560 = vmatprep.mubr.msk.bf16.mxu0 %vm5818_vm2, %v15768_v6 }
 0x50c   :  { %v5464_v35 = vmax.f32 %v5272_v22, 0.0  ;;  %v5274_v36 = vadd.f32 %v15234_v46, %v5070_v24  ;;  %10761 = vmatprep.mubr.msk.bf16.mxu1 %vm5818_vm2, %v15768_v6 }
 0x50d   :  { %v5587_v45 = vmax.f32 %v5459_v26, %v5463_v29  ;;  %v5465_v47 = vmax.f32 %v5273_v33, 0.0  ;;  %v2510_v9 = vpop.f32.mrb[136].mxu0 }
 0x50e   :  { %v5588_v60 = vmax.f32 %v5460_v34, %v5464_v35  ;;  %v5466_v62 = vmax.f32 %v5274_v36, 0.0  ;;  %v4604_v13 = vpop.f32.mrb[136].mxu1  ;;  %v2512_v17 = vpop.f32.mrb[137].mxu0 }
 0x50f   :  { %v5589_v28 = vmax.f32 %v5461_v37, %v5465_v47  ;;  %v5071_v14 = vmax.f32 %v2510_v9, %v4604_v13  ;;  %v4606_v11 = vpop.f32.mrb[137].mxu1  ;;  %v2514_v54 = vpop.f32.mrb[138].mxu0 }
 0x510   :  { %v5590_v43 = vmax.f32 %v5462_v41, %v5466_v62  ;;  %v5072_v10 = vmax.f32 %v2512_v17, %v4606_v11  ;;  %v4608_v2 = vpop.f32.mrb[138].mxu1  ;;  %v2516_v19 = vpop.f32.mrb[139].mxu0 }
 0x511   :  { %v15822_v3 = vpack.c.bf16 %v5589_v28, %v5587_v45  ;;  %v5073_v8 = vmax.f32 %v2514_v54, %v4608_v2  ;;  %v4610_v0 = vpop.f32.mrb[139].mxu1  ;;  %v5275_v29 = vadd.f32 %v15229_v42, %v5071_v14 }
 0x512   :  { %v15824_v22 = vpack.c.bf16 %v5590_v43, %v5588_v60  ;;  %v5074_v20 = vmax.f32 %v2516_v19, %v4610_v0  ;;  %6022 = vmatmul.mubr.bf16.gmra.mrb[244].mxu0 %v15764_v55  ;;  %v5276_v36 = vadd.f32 %v15234_v46, %v5072_v10 }
 0x513   :  { %7062 = vmatmul.mubr.bf16.gmra.mrb[244].mxu1 %v15764_v55  ;;  %10561 = vmatprep.mubr.msk.bf16.mxu0 %vm5818_vm2, %v15800_v59  ;;  %v5277_v41 = vadd.f32 %v15229_v42, %v5073_v8  ;;  %v5467_v11 = vmax.f32 %v5275_v29, 0.0 }
 0x514   :  { %10762 = vmatprep.mubr.msk.bf16.mxu1 %vm5818_vm2, %v15800_v59  ;;  %v5278_v28 = vadd.f32 %v15234_v46, %v5074_v20  ;;  %v5468_v10 = vmax.f32 %v5276_v36, 0.0 }
 0x515   :  { %v2520_v24 = vpop.f32.mrb[140].mxu0  ;;  %v5469_v19 = vmax.f32 %v5277_v41, 0.0 }
 0x516   :  { %v4614_v26 = vpop.f32.mrb[140].mxu1  ;;  %v2522_v34 = vpop.f32.mrb[141].mxu0 }
 0x517   :  { %v5075_v33 = vmax.f32 %v2520_v24, %v4614_v26  ;;  %v4616_v35 = vpop.f32.mrb[141].mxu1  ;;  %v2524_v45 = vpop.f32.mrb[142].mxu0  ;;  %v5470_v24 = vmax.f32 %v5278_v28, 0.0 }
 0x518   :  { %v5076_v37 = vmax.f32 %v2522_v34, %v4616_v35  ;;  %v4618_v47 = vpop.f32.mrb[142].mxu1  ;;  %v2526_v9 = vpop.f32.mrb[143].mxu0 }
 0x519   :  { %v5279_v60 = vadd.f32 %v15229_v42, %v5075_v33  ;;  %v5077_v62 = vmax.f32 %v2524_v45, %v4618_v47  ;;  %v4620_v13 = vpop.f32.mrb[143].mxu1 }
 0x51a   :  { %v5280_v17 = vadd.f32 %v15234_v46, %v5076_v37  ;;  %v5078_v14 = vmax.f32 %v2526_v9, %v4620_v13  ;;  %6030 = vmatmul.mubr.bf16.gmra.mrb[248].mxu0 %v15798_v39 }
 0x51b   :  { %v5471_v43 = vmax.f32 %v5279_v60, 0.0  ;;  %v5281_v54 = vadd.f32 %v15229_v42, %v5077_v62  ;;  %7070 = vmatmul.mubr.bf16.gmra.mrb[248].mxu1 %v15798_v39  ;;  %10562 = vmatprep.mubr.msk.bf16.mxu0 %vm5818_vm2, %v15824_v22 }
 0x51c   :  { %v5472_v2 = vmax.f32 %v5280_v17, 0.0  ;;  %v5282_v8 = vadd.f32 %v15234_v46, %v5078_v14  ;;  %10763 = vmatprep.mubr.msk.bf16.mxu1 %vm5818_vm2, %v15824_v22 }
 0x51d   :  { %v5591_v0 = vmax.f32 %v5467_v11, %v5471_v43  ;;  %v5473_v20 = vmax.f32 %v5281_v54, 0.0  ;;  %v2530_v33 = vpop.f32.mrb[144].mxu0 }
 0x51e   :  { %v5592_v26 = vmax.f32 %v5468_v10, %v5472_v2  ;;  %v5474_v29 = vmax.f32 %v5282_v8, 0.0  ;;  %v4624_v34 = vpop.f32.mrb[144].mxu1  ;;  %v2532_v36 = vpop.f32.mrb[145].mxu0 }
 0x51f   :  { %v5593_v35 = vmax.f32 %v5469_v19, %v5473_v20  ;;  %v5079_v37 = vmax.f32 %v2530_v33, %v4624_v34  ;;  %v4626_v45 = vpop.f32.mrb[145].mxu1  ;;  %v2534_v62 = vpop.f32.mrb[146].mxu0 }
 0x520   :  { %v5594_v47 = vmax.f32 %v5470_v24, %v5474_v29  ;;  %v5080_v60 = vmax.f32 %v2532_v36, %v4626_v45  ;;  %v4628_v9 = vpop.f32.mrb[146].mxu1  ;;  %v2536_v14 = vpop.f32.mrb[147].mxu0 }
 0x521   :  { %v15846_v13 = vpack.c.bf16 %v5593_v35, %v5591_v0  ;;  %v5081_v17 = vmax.f32 %v2534_v62, %v4628_v9  ;;  %v4630_v41 = vpop.f32.mrb[147].mxu1  ;;  %v5283_v10 = vadd.f32 %v15229_v42, %v5079_v37 }
 0x522   :  { %v15848_v11 = vpack.c.bf16 %v5594_v47, %v5592_v26  ;;  %v5082_v28 = vmax.f32 %v2536_v14, %v4630_v41  ;;  %6038 = vmatmul.mubr.bf16.gmra.mrb[252].mxu0 %v15822_v3  ;;  %v5284_v0 = vadd.f32 %v15234_v46, %v5080_v60 }
 0x523   :  { %17081 = vst [vmem:[#allocation5_spill] sm:$0xff] %v15846_v13  ;;  %7078 = vmatmul.mubr.bf16.gmra.mrb[252].mxu1 %v15822_v3  ;;  %v5285_v29 = vadd.f32 %v15229_v42, %v5081_v17  ;;  %v5475_v62 = vmax.f32 %v5283_v10, 0.0 }
 0x524   :  { %10563 = vmatprep.mubr.msk.bf16.mxu0 %vm5818_vm2, %v15848_v11  ;;  %10764 = vmatprep.mubr.msk.bf16.mxu1 %vm5818_vm2, %v15848_v11  ;;  %v5286_v45 = vadd.f32 %v15234_v46, %v5082_v28  ;;  %v5476_v60 = vmax.f32 %v5284_v0, 0.0 }
 0x525   :  { %v2540_v43 = vpop.f32.mrb[148].mxu0 }
 0x526   :  { %v4634_v54 = vpop.f32.mrb[148].mxu1  ;;  %v2542_v8 = vpop.f32.mrb[149].mxu0 }
 0x527   :  { %v5083_v2 = vmax.f32 %v2540_v43, %v4634_v54  ;;  %v4636_v19 = vpop.f32.mrb[149].mxu1  ;;  %v2544_v24 = vpop.f32.mrb[150].mxu0  ;;  %v5477_v43 = vmax.f32 %v5285_v29, 0.0 }
 0x528   :  { %v5084_v20 = vmax.f32 %v2542_v8, %v4636_v19  ;;  %v4638_v26 = vpop.f32.mrb[150].mxu1  ;;  %v2546_v35 = vpop.f32.mrb[151].mxu0  ;;  %v5478_v8 = vmax.f32 %v5286_v45, 0.0 }
 0x529   :  { %v5287_v33 = vadd.f32 %v15229_v42, %v5083_v2  ;;  %v5085_v34 = vmax.f32 %v2544_v24, %v4638_v26  ;;  %v4640_v36 = vpop.f32.mrb[151].mxu1 }
 0x52a   :  { %v5288_v47 = vadd.f32 %v15234_v46, %v5084_v20  ;;  %v5086_v37 = vmax.f32 %v2546_v35, %v4640_v36  ;;  %6046 = vmatmul.mubr.bf16.gmra.mrb[0].mxu0 %v15846_v13 }
 0x52b   :  { %v5479_v9 = vmax.f32 %v5287_v33, 0.0  ;;  %v5289_v14 = vadd.f32 %v15229_v42, %v5085_v34  ;;  %7086 = vmatmul.mubr.bf16.gmra.mrb[0].mxu1 %v15846_v13 }
 0x52c   :  { %v5480_v17 = vmax.f32 %v5288_v47, 0.0  ;;  %v5290_v41 = vadd.f32 %v15234_v46, %v5086_v37 }
 0x52d   :  { %v5595_v54 = vmax.f32 %v5475_v62, %v5479_v9  ;;  %v5481_v2 = vmax.f32 %v5289_v14, 0.0  ;;  %v2550_v20 = vpop.f32.mrb[152].mxu0 }
 0x52e   :  { %v5596_v28 = vmax.f32 %v5476_v60, %v5480_v17  ;;  %v5482_v19 = vmax.f32 %v5290_v41, 0.0  ;;  %v4644_v24 = vpop.f32.mrb[152].mxu1  ;;  %v2552_v33 = vpop.f32.mrb[153].mxu0 }
 0x52f   :  { %v5597_v10 = vmax.f32 %v5477_v43, %v5481_v2  ;;  %v5087_v26 = vmax.f32 %v2550_v20, %v4644_v24  ;;  %v4646_v34 = vpop.f32.mrb[153].mxu1  ;;  %v2554_v63 = vpop.f32.mrb[154].mxu0 }
 0x530   :  { %v5598_v35 = vmax.f32 %v5478_v8, %v5482_v19  ;;  %v5088_v36 = vmax.f32 %v2552_v33, %v4646_v34  ;;  %v4648_v13 = vpop.f32.mrb[154].mxu1  ;;  %v2556_v37 = vpop.f32.mrb[155].mxu0 }
 0x531   :  { %v15866_v0 = vpack.c.bf16 %v5597_v10, %v5595_v54  ;;  %v5089_v47 = vmax.f32 %v2554_v63, %v4648_v13  ;;  %v4650_v29 = vpop.f32.mrb[155].mxu1  ;;  %v5291_v60 = vadd.f32 %v15229_v42, %v5087_v26 }
 0x532   :  { %v15868_v62 = vpack.c.bf16 %v5598_v35, %v5596_v28  ;;  %v5090_v45 = vmax.f32 %v2556_v37, %v4650_v29  ;;  %v5292_v41 = vadd.f32 %v15234_v46, %v5088_v36 }
 0x533   :  { %17082 = vst [vmem:[#allocation6_spill] sm:$0xff] %v15866_v0  ;;  %v5293_v8 = vadd.f32 %v15229_v42, %v5089_v47  ;;  %v5483_v34 = vmax.f32 %v5291_v60, 0.0 }
 0x534   :  { %17083 = vst [vmem:[#allocation7_spill] sm:$0xff] %v15868_v62  ;;  %10564 = vmatprep.mubr.msk.bf16.mxu0 %vm5818_vm2, %v15868_v62  ;;  %10765 = vmatprep.mubr.msk.bf16.mxu1 %vm5818_vm2, %v15868_v62  ;;  %v5294_v10 = vadd.f32 %v15234_v46, %v5090_v45  ;;  %v5484_v36 = vmax.f32 %v5292_v41, 0.0 }
 0x535   :  { %6054 = vmatmul.mubr.bf16.gmra.mrb[4].mxu0 %v15866_v0  ;;  %7094 = vmatmul.mubr.bf16.gmra.mrb[4].mxu1 %v15866_v0  ;;  %v2560_v9 = vpop.f32.mrb[156].mxu0 }
 0x536   :  { %v4654_v14 = vpop.f32.mrb[156].mxu1  ;;  %v2562_v13 = vpop.f32.mrb[157].mxu0 }
 0x537   :  { %v5091_v63 = vmax.f32 %v2560_v9, %v4654_v14  ;;  %v4656_v17 = vpop.f32.mrb[157].mxu1  ;;  %v2564_v54 = vpop.f32.mrb[158].mxu0  ;;  %v5485_v14 = vmax.f32 %v5293_v8, 0.0 }
 0x538   :  { %v5092_v43 = vmax.f32 %v2562_v13, %v4656_v17  ;;  %v4658_v2 = vpop.f32.mrb[158].mxu1  ;;  %v2566_v20 = vpop.f32.mrb[159].mxu0 }
 0x539   :  { %v5295_v28 = vadd.f32 %v15229_v42, %v5091_v63  ;;  %v5093_v19 = vmax.f32 %v2564_v54, %v4658_v2  ;;  %v4660_v24 = vpop.f32.mrb[159].mxu1  ;;  %v5486_v63 = vmax.f32 %v5294_v10, 0.0 }
 0x53a   :  { %v5296_v33 = vadd.f32 %v15234_v46, %v5092_v43  ;;  %v5094_v26 = vmax.f32 %v2566_v20, %v4660_v24 }
 0x53b   :  { %v5487_v35 = vmax.f32 %v5295_v28, 0.0  ;;  %v5297_v37 = vadd.f32 %v15229_v42, %v5093_v19 }
 0x53c   :  { %v5488_v29 = vmax.f32 %v5296_v33, 0.0  ;;  %v5298_v9 = vadd.f32 %v15234_v46, %v5094_v26 }
 0x53d   :  { %v5599_v47 = vmax.f32 %v5483_v34, %v5487_v35  ;;  %v5489_v13 = vmax.f32 %v5297_v37, 0.0  ;;  %v2570_v2 = vpop.f32.mrb[160].mxu0 }
 0x53e   :  { %v5600_v17 = vmax.f32 %v5484_v36, %v5488_v29  ;;  %v5490_v54 = vmax.f32 %v5298_v9, 0.0  ;;  %v4664_v0 = vpop.f32.mrb[160].mxu1  ;;  %v2572_v43 = vpop.f32.mrb[161].mxu0 }
 0x53f   :  { %v5601_v45 = vmax.f32 %v5485_v14, %v5489_v13  ;;  %v5095_v62 = vmax.f32 %v2570_v2, %v4664_v0  ;;  %v4666_v20 = vpop.f32.mrb[161].mxu1  ;;  %v2574_v24 = vpop.f32.mrb[162].mxu0 }
 0x540   :  { %v5602_v60 = vmax.f32 %v5486_v63, %v5490_v54  ;;  %v5096_v28 = vmax.f32 %v2572_v43, %v4666_v20  ;;  %v4668_v19 = vpop.f32.mrb[162].mxu1  ;;  %v2576_v26 = vpop.f32.mrb[163].mxu0 }
 0x541   :  { %v15884_v41 = vpack.c.bf16 %v5601_v45, %v5599_v47  ;;  %v5097_v33 = vmax.f32 %v2574_v24, %v4668_v19  ;;  %v4670_v8 = vpop.f32.mrb[163].mxu1  ;;  %v5299_v37 = vadd.f32 %v15229_v42, %v5095_v62 }
 0x542   :  { %v15886_v34 = vpack.c.bf16 %v5602_v60, %v5600_v17  ;;  %v5098_v10 = vmax.f32 %v2576_v26, %v4670_v8  ;;  %v5300_v14 = vadd.f32 %v15234_v46, %v5096_v28 }
 0x543   :  { %17084 = vst [vmem:[#allocation8_spill] sm:$0xff] %v15884_v41  ;;  %v5301_v17 = vadd.f32 %v15229_v42, %v5097_v33  ;;  %v5491_v24 = vmax.f32 %v5299_v37, 0.0 }
 0x544   :  { %17085 = vst [vmem:[#allocation9_spill] sm:$0xff] %v15886_v34  ;;  %10565 = vmatprep.mubr.msk.bf16.mxu0 %vm5818_vm2, %v15886_v34  ;;  %10766 = vmatprep.mubr.msk.bf16.mxu1 %vm5818_vm2, %v15886_v34  ;;  %v5302_v20 = vadd.f32 %v15234_v46, %v5098_v10  ;;  %v5492_v28 = vmax.f32 %v5300_v14, 0.0 }
 0x545   :  { %6062 = vmatmul.mubr.bf16.gmra.mrb[8].mxu0 %v15884_v41  ;;  %7102 = vmatmul.mubr.bf16.gmra.mrb[8].mxu1 %v15884_v41  ;;  %v2580_v0 = vpop.f32.mrb[164].mxu0 }
 0x546   :  { %v4674_v35 = vpop.f32.mrb[164].mxu1  ;;  %v2582_v29 = vpop.f32.mrb[165].mxu0 }
 0x547   :  { %v5099_v36 = vmax.f32 %v2580_v0, %v4674_v35  ;;  %v4676_v9 = vpop.f32.mrb[165].mxu1  ;;  %v2584_v13 = vpop.f32.mrb[166].mxu0  ;;  %v5493_v35 = vmax.f32 %v5301_v17, 0.0 }
 0x548   :  { %v5100_v47 = vmax.f32 %v2582_v29, %v4676_v9  ;;  %v4678_v63 = vpop.f32.mrb[166].mxu1  ;;  %v2586_v45 = vpop.f32.mrb[167].mxu0 }
 0x549   :  { %v5303_v54 = vadd.f32 %v15229_v42, %v5099_v36  ;;  %v5101_v2 = vmax.f32 %v2584_v13, %v4678_v63  ;;  %v4680_v43 = vpop.f32.mrb[167].mxu1  ;;  %v5494_v36 = vmax.f32 %v5302_v20, 0.0 }
 0x54a   :  { %v5304_v60 = vadd.f32 %v15234_v46, %v5100_v47  ;;  %v5102_v62 = vmax.f32 %v2586_v45, %v4680_v43 }
 0x54b   :  { %v5495_v19 = vmax.f32 %v5303_v54, 0.0  ;;  %v5305_v26 = vadd.f32 %v15229_v42, %v5101_v2 }
 0x54c   :  { %v5496_v8 = vmax.f32 %v5304_v60, 0.0  ;;  %v5306_v0 = vadd.f32 %v15234_v46, %v5102_v62 }
 0x54d   :  { %v5603_v33 = vmax.f32 %v5491_v24, %v5495_v19  ;;  %v5497_v29 = vmax.f32 %v5305_v26, 0.0  ;;  %v2590_v63 = vpop.f32.mrb[168].mxu0 }
 0x54e   :  { %v5604_v9 = vmax.f32 %v5492_v28, %v5496_v8  ;;  %v5498_v13 = vmax.f32 %v5306_v0, 0.0  ;;  %v4684_v41 = vpop.f32.mrb[168].mxu1  ;;  %v2592_v47 = vpop.f32.mrb[169].mxu0 }
 0x54f   :  { %v5605_v10 = vmax.f32 %v5493_v35, %v5497_v29  ;;  %v5103_v34 = vmax.f32 %v2590_v63, %v4684_v41  ;;  %v4686_v45 = vpop.f32.mrb[169].mxu1  ;;  %v2594_v43 = vpop.f32.mrb[170].mxu0 }
 0x550   :  { %v5606_v37 = vmax.f32 %v5494_v36, %v5498_v13  ;;  %v5104_v54 = vmax.f32 %v2592_v47, %v4686_v45  ;;  %v4688_v2 = vpop.f32.mrb[170].mxu1  ;;  %v2596_v62 = vpop.f32.mrb[171].mxu0 }
 0x551   :  { %v15902_v14 = vpack.c.bf16 %v5605_v10, %v5603_v33  ;;  %v5105_v60 = vmax.f32 %v2594_v43, %v4688_v2  ;;  %v4690_v17 = vpop.f32.mrb[171].mxu1  ;;  %v5307_v26 = vadd.f32 %v15229_v42, %v5103_v34 }
 0x552   :  { %v15904_v24 = vpack.c.bf16 %v5606_v37, %v5604_v9  ;;  %v5106_v20 = vmax.f32 %v2596_v62, %v4690_v17  ;;  %v5308_v35 = vadd.f32 %v15234_v46, %v5104_v54 }
 0x553   :  { %17086 = vst [vmem:[#allocation10_spill] sm:$0xff] %v15902_v14  ;;  %v5309_v9 = vadd.f32 %v15229_v42, %v5105_v60  ;;  %v5499_v43 = vmax.f32 %v5307_v26, 0.0 }
 0x554   :  { %17087 = vst [vmem:[#allocation11_spill] sm:$0xff] %v15904_v24  ;;  %10566 = vmatprep.mubr.msk.bf16.mxu0 %vm5818_vm2, %v15904_v24  ;;  %10767 = vmatprep.mubr.msk.bf16.mxu1 %vm5818_vm2, %v15904_v24  ;;  %v5310_v45 = vadd.f32 %v15234_v46, %v5106_v20  ;;  %v5500_v54 = vmax.f32 %v5308_v35, 0.0 }
 0x555   :  { %6070 = vmatmul.mubr.bf16.gmra.mrb[12].mxu0 %v15902_v14  ;;  %7110 = vmatmul.mubr.bf16.gmra.mrb[12].mxu1 %v15902_v14  ;;  %v2600_v41 = vpop.f32.mrb[172].mxu0 }
 0x556   :  { %v4694_v19 = vpop.f32.mrb[172].mxu1  ;;  %v2602_v8 = vpop.f32.mrb[173].mxu0 }
 0x557   :  { %v5107_v28 = vmax.f32 %v2600_v41, %v4694_v19  ;;  %v4696_v0 = vpop.f32.mrb[173].mxu1  ;;  %v2604_v29 = vpop.f32.mrb[174].mxu0  ;;  %v5501_v19 = vmax.f32 %v5309_v9, 0.0 }
 0x558   :  { %v5108_v33 = vmax.f32 %v2602_v8, %v4696_v0  ;;  %v4698_v36 = vpop.f32.mrb[174].mxu1  ;;  %v2606_v10 = vpop.f32.mrb[175].mxu0 }
 0x559   :  { %v5311_v13 = vadd.f32 %v15229_v42, %v5107_v28  ;;  %v5109_v63 = vmax.f32 %v2604_v29, %v4698_v36  ;;  %v4700_v47 = vpop.f32.mrb[175].mxu1  ;;  %v5502_v28 = vmax.f32 %v5310_v45, 0.0 }
 0x55a   :  { %v5312_v37 = vadd.f32 %v15234_v46, %v5108_v33  ;;  %v5110_v34 = vmax.f32 %v2606_v10, %v4700_v47 }
 0x55b   :  { %v5503_v2 = vmax.f32 %v5311_v13, 0.0  ;;  %v5313_v62 = vadd.f32 %v15229_v42, %v5109_v63 }
 0x55c   :  { %v5504_v17 = vmax.f32 %v5312_v37, 0.0  ;;  %v5314_v41 = vadd.f32 %v15234_v46, %v5110_v34 }
 0x55d   :  { %v5607_v60 = vmax.f32 %v5499_v43, %v5503_v2  ;;  %v5505_v8 = vmax.f32 %v5313_v62, 0.0  ;;  %v2610_v36 = vpop.f32.mrb[176].mxu0 }
 0x55e   :  { %v5608_v0 = vmax.f32 %v5500_v54, %v5504_v17  ;;  %v5506_v29 = vmax.f32 %v5314_v41, 0.0  ;;  %v4704_v14 = vpop.f32.mrb[176].mxu1  ;;  %v2612_v33 = vpop.f32.mrb[177].mxu0 }
 0x55f   :  { %v5609_v20 = vmax.f32 %v5501_v19, %v5505_v8  ;;  %v5111_v24 = vmax.f32 %v2610_v36, %v4704_v14  ;;  %v4706_v10 = vpop.f32.mrb[177].mxu1  ;;  %v2614_v47 = vpop.f32.mrb[178].mxu0 }
 0x560   :  { %v5610_v26 = vmax.f32 %v5502_v28, %v5506_v29  ;;  %v5112_v13 = vmax.f32 %v2612_v33, %v4706_v10  ;;  %v4708_v63 = vpop.f32.mrb[178].mxu1  ;;  %v2616_v34 = vpop.f32.mrb[179].mxu0 }
 0x561   :  { %v15920_v35 = vpack.c.bf16 %v5609_v20, %v5607_v60  ;;  %v5113_v37 = vmax.f32 %v2614_v47, %v4708_v63  ;;  %v4710_v9 = vpop.f32.mrb[179].mxu1  ;;  %v5315_v62 = vadd.f32 %v15229_v42, %v5111_v24 }
 0x562   :  { %v15922_v43 = vpack.c.bf16 %v5610_v26, %v5608_v0  ;;  %v5114_v45 = vmax.f32 %v2616_v34, %v4710_v9  ;;  %v5316_v19 = vadd.f32 %v15234_v46, %v5112_v13 }
 0x563   :  { %17088 = vst [vmem:[#allocation12_spill] sm:$0xff] %v15920_v35  ;;  %v5317_v0 = vadd.f32 %v15229_v42, %v5113_v37  ;;  %v5507_v47 = vmax.f32 %v5315_v62, 0.0 }
 0x564   :  { %17089 = vst [vmem:[#allocation13_spill] sm:$0xff] %v15922_v43  ;;  %10567 = vmatprep.mubr.msk.bf16.mxu0 %vm5818_vm2, %v15922_v43  ;;  %10768 = vmatprep.mubr.msk.bf16.mxu1 %vm5818_vm2, %v15922_v43  ;;  %v5318_v10 = vadd.f32 %v15234_v46, %v5114_v45  ;;  %v5508_v13 = vmax.f32 %v5316_v19, 0.0 }
 0x565   :  { %6078 = vmatmul.mubr.bf16.gmra.mrb[16].mxu0 %v15920_v35  ;;  %7118 = vmatmul.mubr.bf16.gmra.mrb[16].mxu1 %v15920_v35  ;;  %v2620_v14 = vpop.f32.mrb[180].mxu0 }
 0x566   :  { %v4714_v2 = vpop.f32.mrb[180].mxu1  ;;  %v2622_v17 = vpop.f32.mrb[181].mxu0 }
 0x567   :  { %v5115_v54 = vmax.f32 %v2620_v14, %v4714_v2  ;;  %v4716_v41 = vpop.f32.mrb[181].mxu1  ;;  %v2624_v8 = vpop.f32.mrb[182].mxu0  ;;  %v5509_v2 = vmax.f32 %v5317_v0, 0.0 }
 0x568   :  { %v5116_v60 = vmax.f32 %v2622_v17, %v4716_v41  ;;  %v4718_v28 = vpop.f32.mrb[182].mxu1  ;;  %v2626_v20 = vpop.f32.mrb[183].mxu0 }
 0x569   :  { %v5319_v29 = vadd.f32 %v15229_v42, %v5115_v54  ;;  %v5117_v36 = vmax.f32 %v2624_v8, %v4718_v28  ;;  %v4720_v33 = vpop.f32.mrb[183].mxu1  ;;  %v5510_v54 = vmax.f32 %v5318_v10, 0.0 }
 0x56a   :  { %v5320_v26 = vadd.f32 %v15234_v46, %v5116_v60  ;;  %v5118_v24 = vmax.f32 %v2626_v20, %v4720_v33 }
 0x56b   :  { %v5511_v63 = vmax.f32 %v5319_v29, 0.0  ;;  %v5321_v34 = vadd.f32 %v15229_v42, %v5117_v36 }
 0x56c   :  { %v5512_v9 = vmax.f32 %v5320_v26, 0.0  ;;  %v5322_v14 = vadd.f32 %v15234_v46, %v5118_v24 }
 0x56d   :  { %v5611_v37 = vmax.f32 %v5507_v47, %v5511_v63  ;;  %v5513_v17 = vmax.f32 %v5321_v34, 0.0  ;;  %v2630_v28 = vpop.f32.mrb[184].mxu0 }
 0x56e   :  { %v5612_v41 = vmax.f32 %v5508_v13, %v5512_v9  ;;  %v5514_v8 = vmax.f32 %v5322_v14, 0.0  ;;  %v4724_v35 = vpop.f32.mrb[184].mxu1  ;;  %v2632_v60 = vpop.f32.mrb[185].mxu0 }
 0x56f   :  { %v5613_v45 = vmax.f32 %v5509_v2, %v5513_v17  ;;  %v5119_v43 = vmax.f32 %v2630_v28, %v4724_v35  ;;  %v4726_v20 = vpop.f32.mrb[185].mxu1  ;;  %v2634_v33 = vpop.f32.mrb[186].mxu0 }
 0x570   :  { %v5614_v62 = vmax.f32 %v5510_v54, %v5514_v8  ;;  %v5120_v29 = vmax.f32 %v2632_v60, %v4726_v20  ;;  %v4728_v36 = vpop.f32.mrb[186].mxu1  ;;  %v2636_v24 = vpop.f32.mrb[187].mxu0 }
 0x571   :  { %v15938_v19 = vpack.c.bf16 %v5613_v45, %v5611_v37  ;;  %v5121_v26 = vmax.f32 %v2634_v33, %v4728_v36  ;;  %v4730_v0 = vpop.f32.mrb[187].mxu1  ;;  %v5323_v34 = vadd.f32 %v15229_v42, %v5119_v43 }
 0x572   :  { %v15940_v47 = vpack.c.bf16 %v5614_v62, %v5612_v41  ;;  %v5122_v10 = vmax.f32 %v2636_v24, %v4730_v0  ;;  %v5324_v2 = vadd.f32 %v15234_v46, %v5120_v29  ;;  %v13202_v62 = vld [vmem:[%s16922_s3 + $0xf0] sm:$0xff]  }
 0x573   :  { %v5325_v41 = vadd.f32 %v15229_v42, %v5121_v26  ;;  %v5515_v29 = vmax.f32 %v5323_v34, 0.0  ;;  %v13203_v26 = vld [vmem:[%s16922_s3 + $0x258] sm:$0xff]  }
 0x574   :  { %10568 = vmatprep.mubr.msk.bf16.mxu0 %vm5818_vm2, %v15940_v47  ;;  %10769 = vmatprep.mubr.msk.bf16.mxu1 %vm5818_vm2, %v15940_v47  ;;  %v5326_v20 = vadd.f32 %v15234_v46, %v5122_v10  ;;  %v5516_v24 = vmax.f32 %v5324_v2, 0.0 }
 0x575   :  { %6086 = vmatmul.mubr.bf16.gmra.mrb[20].mxu0 %v15938_v19  ;;  %7126 = vmatmul.mubr.bf16.gmra.mrb[20].mxu1 %v15938_v19  ;;  %v2640_v35 = vpop.f32.mrb[188].mxu0  ;;  %v5517_v10 = vmax.f32 %v5325_v41, 0.0  ;;  %v13207_v41 = vld [vmem:[%s16922_s3 + $0x268] sm:$0xff]  }
 0x576   :  { %v4734_v63 = vpop.f32.mrb[188].mxu1  ;;  %10584 = vmatprep.mubr.msk.bf16.mxu0 %vm5818_vm2, %v15267_v32  ;;  %10785 = vmatprep.mubr.msk.bf16.mxu1 %vm5818_vm2, %v15267_v32  ;;  %v2642_v9 = vpop.f32.mrb[189].mxu0 }
 0x577   :  { %v5123_v13 = vmax.f32 %v2640_v35, %v4734_v63  ;;  %v4736_v14 = vpop.f32.mrb[189].mxu1  ;;  %v2644_v17 = vpop.f32.mrb[190].mxu0 }
 0x578   :  { %v5124_v37 = vmax.f32 %v2642_v9, %v4736_v14  ;;  %v4738_v54 = vpop.f32.mrb[190].mxu1  ;;  %v2646_v45 = vpop.f32.mrb[191].mxu0  ;;  %v5518_v9 = vmax.f32 %v5326_v20, 0.0  ;;  %v13213_v20 = vld [vmem:[%s16922_s3 + $0x280] sm:$0xff]  }
 0x579   :  { %v5327_v8 = vadd.f32 %v15229_v42, %v5123_v13  ;;  %v5125_v28 = vmax.f32 %v2644_v17, %v4738_v54  ;;  %v4740_v60 = vpop.f32.mrb[191].mxu1 }
 0x57a   :  { %v5328_v32 = vadd.f32 %v15234_v46, %v5124_v37  ;;  %v5126_v43 = vmax.f32 %v2646_v45, %v4740_v60  ;;  %v17090_v37 = vmov 0   ;;  %v13211_v45 = vld [vmem:[%s16922_s3 + $0x278] sm:$0xff]  }
 0x57b   :  { %v5519_v33 = vmax.f32 %v5327_v8, 0.0  ;;  %v5329_v36 = vadd.f32 %v15229_v42, %v5125_v28  ;;  %v13204_v42 = vld [vmem:[%s16922_s3 + $0xf8] sm:$0xff]   ;;  %v13208_v8 = vld [vmem:[%s16922_s3 + $0x108] sm:$0xff]   ;;  %v13209_v28 = vld [vmem:[%s16922_s3 + $0x270] sm:$0xff]  }
 0x57c   :  { %v5520_v0 = vmax.f32 %v5328_v32, 0.0  ;;  %v5330_v35 = vadd.f32 %v15234_v46, %v5126_v43  ;;  %v13205_v46 = vld [vmem:[%s16922_s3 + $0x260] sm:$0xff]   ;;  %v13212_v60 = vld [vmem:[%s16922_s3 + $0x118] sm:$0xff]   ;;  %v13215_v43 = vld [vmem:[%s16922_s3 + $0x288] sm:$0xff]  }
 0x57d   :  { %v5615_v63 = vmax.f32 %v5515_v29, %v5519_v33  ;;  %v5521_v13 = vmax.f32 %v5329_v36, 0.0  ;;  %6220 = vmatmul.mubr.bf16.vlgmr.msra.gmra.mrb[192].mxu0 %v15265_v30  ;;  %7257 = vmatmul.mubr.bf16.vlgmr.msra.gmra.mrb[192].mxu1 %v15265_v30  ;;  %v13214_v32 = vld [vmem:[%s16922_s3 + $0x120] sm:$0xff]   ;;  %v13217_v29 = vld [vmem:[%s16922_s3 + $0x290] sm:$0xff]   ;;  %v13219_v36 = vld [vmem:[%s16922_s3 + $0x298] sm:$0xff]  }
 0x57e   :  { %v5616_v34 = vmax.f32 %v5516_v24, %v5520_v0  ;;  %v5522_v14 = vmax.f32 %v5330_v35, 0.0  ;;  %10585 = vmatprep.mubr.msk.bf16.mxu0 %vm5818_vm2, %v15301_v21  ;;  %6521 = vmatpush1.bf16.msra.mxu0 %v13202_v62  ;;  %v13216_v62 = vld [vmem:[%s16922_s3 + $0x128] sm:$0xff]   ;;  %v13218_v33 = vld [vmem:[%s16922_s3 + $0x130] sm:$0xff]   ;;  %v13221_v24 = vld [vmem:[%s16922_s3 + $0x2a0] sm:$0xff]  }
 0x57f   :  { %v5617_v2 = vmax.f32 %v5517_v10, %v5521_v13  ;;  %10786 = vmatprep.mubr.msk.bf16.mxu1 %vm5818_vm2, %v15301_v21  ;;  %7555 = vmatpush1.bf16.msra.mxu1 %v13203_v26  ;;  %v13206_v21 = vld [vmem:[%s16922_s3 + $0x100] sm:$0xff]   ;;  %v13220_v26 = vld [vmem:[%s16922_s3 + $0x138] sm:$0xff]   ;;  %v13223_v35 = vld [vmem:[%s16922_s3 + $0x2a8] sm:$0xff]  }
 0x580   :  { %v5618_v30 = vmax.f32 %v5518_v9, %v5522_v14  ;;  %6522 = vmatprep.subr.bf16.mxu0 %v17090_v37  ;;  %7556 = vmatprep.subr.bf16.mxu1 %v17090_v37  ;;  %v13222_v0 = vld [vmem:[%s16922_s3 + $0x140] sm:$0xff]   ;;  %v13224_v10 = vld [vmem:[%s16922_s3 + $0x148] sm:$0xff]   ;;  %v13226_v13 = vld [vmem:[%s16922_s3 + $0x150] sm:$0xff]  }
 0x581   :  { %v15980_v17 = vpack.c.bf16 %v5617_v2, %v5615_v63  ;;  %v13225_v63 = vld [vmem:[%s16922_s3 + $0x2b0] sm:$0xff]   ;;  %v13227_v9 = vld [vmem:[%s16922_s3 + $0x2b8] sm:$0xff]   ;;  %v13229_v14 = vld [vmem:[%s16922_s3 + $0x2c0] sm:$0xff]  }
 0x582   :  { %v15982_v54 = vpack.c.bf16 %v5618_v30, %v5616_v34  ;;  %6523 = vmatpush1.bf16.msra.mxu0 %v13204_v42  ;;  %v13228_v34 = vld [vmem:[%s16922_s3 + $0x158] sm:$0xff]   ;;  %v13230_v42 = vld [vmem:[%s16922_s3 + $0x160] sm:$0xff]   ;;  %v13231_v2 = vld [vmem:[%s16922_s3 + $0x2c8] sm:$0xff]  }
 0x583   :  { %7557 = vmatpush1.bf16.msra.mxu1 %v13205_v46  ;;  %6524 = vmatprep.subr.bf16.mxu0 %v17090_v37  ;;  %v17091_v46 = vld [vmem:[#allocation5_spill] sm:$0xff]  ;;  %v17092_v30 = vld [vmem:[#allocation7_spill] sm:$0xff] }
 0x584   :  { %7558 = vmatprep.subr.bf16.mxu1 %v17090_v37 }
 0x585   :  { %6228 = vmatmul.mubr.bf16.gmra.mrb[196].mxu0 %v15293_v16  ;;  %7265 = vmatmul.mubr.bf16.gmra.mrb[196].mxu1 %v15293_v16  ;;  %v13210_v16 = vld [vmem:[%s16922_s3 + $0x110] sm:$0xff]  }
 0x586   :  { %10586 = vmatprep.mubr.msk.bf16.mxu0 %vm5818_vm2, %v15339_v5  ;;  %10787 = vmatprep.mubr.msk.bf16.mxu1 %vm5818_vm2, %v15339_v5 }
 0x587   :  { %6525 = vmatpush1.bf16.msra.mxu0 %v13206_v21  ;;  %7559 = vmatpush1.bf16.msra.mxu1 %v13207_v41  ;;  %v17094_v21 = vld [vmem:[#allocation9_spill] sm:$0xff]  ;;  %v17095_v41 = vld [vmem:[#allocation8_spill] sm:$0xff] }
 0x588   :  { %6526 = vmatprep.subr.bf16.mxu0 %v17090_v37  ;;  %7560 = vmatprep.subr.bf16.mxu1 %v17090_v37 }
 0x58b   :  { %6527 = vmatpush1.bf16.msra.mxu0 %v13208_v8  ;;  %7561 = vmatpush1.bf16.msra.mxu1 %v13209_v28  ;;  %v17096_v8 = vld [vmem:[#allocation11_spill] sm:$0xff]  ;;  %v17097_v28 = vld [vmem:[#allocation10_spill] sm:$0xff] }
 0x58c   :  { %6528 = vmatprep.subr.bf16.mxu0 %v17090_v37  ;;  %7562 = vmatprep.subr.bf16.mxu1 %v17090_v37 }
 0x58d   :  { %6236 = vmatmul.mubr.bf16.gmra.mrb[200].mxu0 %v15337_v1  ;;  %7273 = vmatmul.mubr.bf16.gmra.mrb[200].mxu1 %v15337_v1 }
 0x58e   :  { %10587 = vmatprep.mubr.msk.bf16.mxu0 %vm5818_vm2, %v15367_v57  ;;  %10788 = vmatprep.mubr.msk.bf16.mxu1 %vm5818_vm2, %v15367_v57 }
 0x58f   :  { %6529 = vmatpush1.bf16.msra.mxu0 %v13210_v16  ;;  %7563 = vmatpush1.bf16.msra.mxu1 %v13211_v45  ;;  %v17098_v16 = vld [vmem:[#allocation13_spill] sm:$0xff]  ;;  %v17099_v45 = vld [vmem:[#allocation12_spill] sm:$0xff] }
 0x590   :  { %6530 = vmatprep.subr.bf16.mxu0 %v17090_v37  ;;  %7564 = vmatprep.subr.bf16.mxu1 %v17090_v37 }
 0x593   :  { %6531 = vmatpush1.bf16.msra.mxu0 %v13212_v60  ;;  %7565 = vmatpush1.bf16.msra.mxu1 %v13213_v20 }
 0x594   :  { %6532 = vmatprep.subr.bf16.mxu0 %v17090_v37  ;;  %7566 = vmatprep.subr.bf16.mxu1 %v17090_v37 }
 0x595   :  { %6244 = vmatmul.mubr.bf16.gmra.mrb[204].mxu0 %v15365_v53  ;;  %7281 = vmatmul.mubr.bf16.gmra.mrb[204].mxu1 %v15365_v53 }
 0x596   :  { %10588 = vmatprep.mubr.msk.bf16.mxu0 %vm5818_vm2, %v15395_v52  ;;  %10789 = vmatprep.mubr.msk.bf16.mxu1 %vm5818_vm2, %v15395_v52 }
 0x597   :  { %6533 = vmatpush1.bf16.msra.mxu0 %v13214_v32  ;;  %7567 = vmatpush1.bf16.msra.mxu1 %v13215_v43 }
 0x598   :  { %6534 = vmatprep.subr.bf16.mxu0 %v17090_v37  ;;  %7568 = vmatprep.subr.bf16.mxu1 %v17090_v37 }
 0x59b   :  { %6535 = vmatpush1.bf16.msra.mxu0 %v13216_v62  ;;  %7569 = vmatpush1.bf16.msra.mxu1 %v13217_v29 }
 0x59c   :  { %6536 = vmatprep.subr.bf16.mxu0 %v17090_v37  ;;  %7570 = vmatprep.subr.bf16.mxu1 %v17090_v37 }
 0x59d   :  { %6252 = vmatmul.mubr.bf16.gmra.mrb[208].mxu0 %v15393_v49  ;;  %7289 = vmatmul.mubr.bf16.gmra.mrb[208].mxu1 %v15393_v49 }
 0x59e   :  { %10589 = vmatprep.mubr.msk.bf16.mxu0 %vm5818_vm2, %v15423_v50  ;;  %10790 = vmatprep.mubr.msk.bf16.mxu1 %vm5818_vm2, %v15423_v50 }
 0x59f   :  { %6537 = vmatpush1.bf16.msra.mxu0 %v13218_v33  ;;  %7571 = vmatpush1.bf16.msra.mxu1 %v13219_v36 }
 0x5a0   :  { %6538 = vmatprep.subr.bf16.mxu0 %v17090_v37  ;;  %7572 = vmatprep.subr.bf16.mxu1 %v17090_v37 }
 0x5a3   :  { %6539 = vmatpush1.bf16.msra.mxu0 %v13220_v26  ;;  %7573 = vmatpush1.bf16.msra.mxu1 %v13221_v24  ;;  %v16406_v24 = vld [vmem:[%s16924_s5] sm:$0xff]  }
 0x5a4   :  { %6540 = vmatprep.subr.bf16.mxu0 %v17090_v37  ;;  %7574 = vmatprep.subr.bf16.mxu1 %v17090_v37 }
 0x5a5   :  { %6260 = vmatmul.mubr.bf16.gmra.mrb[212].mxu0 %v15421_v27  ;;  %7297 = vmatmul.mubr.bf16.gmra.mrb[212].mxu1 %v15421_v27 }
 0x5a6   :  { %10590 = vmatprep.mubr.msk.bf16.mxu0 %vm5818_vm2, %v15451_v51  ;;  %10791 = vmatprep.mubr.msk.bf16.mxu1 %vm5818_vm2, %v15451_v51 }
 0x5a7   :  { %6541 = vmatpush1.bf16.msra.mxu0 %v13222_v0  ;;  %7575 = vmatpush1.bf16.msra.mxu1 %v13223_v35  ;;  %v16411_v0 = vld [vmem:[%s16924_s5 + $0xb4] sm:$0xff]  }
 0x5a8   :  { %6542 = vmatprep.subr.bf16.mxu0 %v17090_v37  ;;  %7576 = vmatprep.subr.bf16.mxu1 %v17090_v37 }
 0x5ab   :  { %6543 = vmatpush1.bf16.msra.mxu0 %v13224_v10  ;;  %7577 = vmatpush1.bf16.msra.mxu1 %v13225_v63 }
 0x5ac   :  { %6544 = vmatprep.subr.bf16.mxu0 %v17090_v37  ;;  %7578 = vmatprep.subr.bf16.mxu1 %v17090_v37 }
 0x5ad   :  { %6268 = vmatmul.mubr.bf16.gmra.mrb[216].mxu0 %v15449_v15  ;;  %7305 = vmatmul.mubr.bf16.gmra.mrb[216].mxu1 %v15449_v15 }
 0x5ae   :  { %10591 = vmatprep.mubr.msk.bf16.mxu0 %vm5818_vm2, %v15479_v56  ;;  %10792 = vmatprep.mubr.msk.bf16.mxu1 %vm5818_vm2, %v15479_v56 }
 0x5af   :  { %6545 = vmatpush1.bf16.msra.mxu0 %v13226_v13  ;;  %7579 = vmatpush1.bf16.msra.mxu1 %v13227_v9 }
 0x5b0   :  { %6546 = vmatprep.subr.bf16.mxu0 %v17090_v37  ;;  %7580 = vmatprep.subr.bf16.mxu1 %v17090_v37 }
 0x5b3   :  { %6547 = vmatpush1.bf16.msra.mxu0 %v13228_v34  ;;  %7581 = vmatpush1.bf16.msra.mxu1 %v13229_v14 }
 0x5b4   :  { %6548 = vmatprep.subr.bf16.mxu0 %v17090_v37  ;;  %7582 = vmatprep.subr.bf16.mxu1 %v17090_v37  ;;  %v17093_v37 = vld [vmem:[#allocation6_spill] sm:$0xff] }
 0x5b5   :  { %6276 = vmatmul.mubr.bf16.gmra.mrb[220].mxu0 %v15477_v44  ;;  %7313 = vmatmul.mubr.bf16.gmra.mrb[220].mxu1 %v15477_v44 }
 0x5b6   :  { %10592 = vmatprep.mubr.msk.bf16.mxu0 %vm5818_vm2, %v15507_v4  ;;  %10793 = vmatprep.mubr.msk.bf16.mxu1 %vm5818_vm2, %v15507_v4 }
 0x5b7   :  { %6549 = vmatpush1.bf16.msra.mxu0 %v13230_v42  ;;  %7583 = vmatpush1.bf16.msra.mxu1 %v13231_v2 }
 0x5bd   :  { %6284 = vmatmul.mubr.bf16.gmra.mrb[224].mxu0 %v15505_v58  ;;  %7321 = vmatmul.mubr.bf16.gmra.mrb[224].mxu1 %v15505_v58 }
 0x5be   :  { %10593 = vmatprep.mubr.msk.bf16.mxu0 %vm5818_vm2, %v15538_v23  ;;  %10794 = vmatprep.mubr.msk.bf16.mxu1 %vm5818_vm2, %v15538_v23 }
 0x5c5   :  { %6292 = vmatmul.mubr.bf16.gmra.mrb[228].mxu0 %v15536_v18  ;;  %7329 = vmatmul.mubr.bf16.gmra.mrb[228].mxu1 %v15536_v18 }
 0x5c6   :  { %10594 = vmatprep.mubr.msk.bf16.mxu0 %vm5818_vm2, %v15580_v38  ;;  %10795 = vmatprep.mubr.msk.bf16.mxu1 %vm5818_vm2, %v15580_v38 }
 0x5cd   :  { %6300 = vmatmul.mubr.bf16.gmra.mrb[232].mxu0 %v15572_v31  ;;  %7337 = vmatmul.mubr.bf16.gmra.mrb[232].mxu1 %v15572_v31 }
 0x5ce   :  { %10595 = vmatprep.mubr.msk.bf16.mxu0 %vm5818_vm2, %v15636_v12  ;;  %10796 = vmatprep.mubr.msk.bf16.mxu1 %vm5818_vm2, %v15636_v12 }
 0x5d5   :  { %6308 = vmatmul.mubr.bf16.gmra.mrb[236].mxu0 %v15628_v61  ;;  %7345 = vmatmul.mubr.bf16.gmra.mrb[236].mxu1 %v15628_v61 }
 0x5d6   :  { %10596 = vmatprep.mubr.msk.bf16.mxu0 %vm5818_vm2, %v15692_v25  ;;  %10797 = vmatprep.mubr.msk.bf16.mxu1 %vm5818_vm2, %v15692_v25 }
 0x5dd   :  { %6316 = vmatmul.mubr.bf16.gmra.mrb[240].mxu0 %v15684_v7  ;;  %7353 = vmatmul.mubr.bf16.gmra.mrb[240].mxu1 %v15684_v7 }
 0x5de   :  { %10597 = vmatprep.mubr.msk.bf16.mxu0 %vm5818_vm2, %v15728_v48  ;;  %10798 = vmatprep.mubr.msk.bf16.mxu1 %vm5818_vm2, %v15728_v48 }
 0x5e5   :  { %6324 = vmatmul.mubr.bf16.gmra.mrb[244].mxu0 %v15726_v40  ;;  %7361 = vmatmul.mubr.bf16.gmra.mrb[244].mxu1 %v15726_v40 }
 0x5e6   :  { %10598 = vmatprep.mubr.msk.bf16.mxu0 %vm5818_vm2, %v15768_v6  ;;  %10799 = vmatprep.mubr.msk.bf16.mxu1 %vm5818_vm2, %v15768_v6 }
 0x5ed   :  { %6332 = vmatmul.mubr.bf16.gmra.mrb[248].mxu0 %v15764_v55  ;;  %7369 = vmatmul.mubr.bf16.gmra.mrb[248].mxu1 %v15764_v55 }
 0x5ee   :  { %10599 = vmatprep.mubr.msk.bf16.mxu0 %vm5818_vm2, %v15800_v59  ;;  %10800 = vmatprep.mubr.msk.bf16.mxu1 %vm5818_vm2, %v15800_v59 }
 0x5f5   :  { %6340 = vmatmul.mubr.bf16.gmra.mrb[252].mxu0 %v15798_v39  ;;  %7377 = vmatmul.mubr.bf16.gmra.mrb[252].mxu1 %v15798_v39 }
 0x5f6   :  { %10600 = vmatprep.mubr.msk.bf16.mxu0 %vm5818_vm2, %v15824_v22  ;;  %10801 = vmatprep.mubr.msk.bf16.mxu1 %vm5818_vm2, %v15824_v22 }
 0x5fd   :  { %6348 = vmatmul.mubr.bf16.gmra.mrb[0].mxu0 %v15822_v3  ;;  %7385 = vmatmul.mubr.bf16.gmra.mrb[0].mxu1 %v15822_v3 }
 0x5fe   :  { %10601 = vmatprep.mubr.msk.bf16.mxu0 %vm5818_vm2, %v15848_v11  ;;  %10802 = vmatprep.mubr.msk.bf16.mxu1 %vm5818_vm2, %v15848_v11 }
 0x605   :  { %6356 = vmatmul.mubr.bf16.gmra.mrb[4].mxu0 %v17091_v46  ;;  %7393 = vmatmul.mubr.bf16.gmra.mrb[4].mxu1 %v17091_v46 }
 0x606   :  { %10602 = vmatprep.mubr.msk.bf16.mxu0 %vm5818_vm2, %v17092_v30  ;;  %10803 = vmatprep.mubr.msk.bf16.mxu1 %vm5818_vm2, %v17092_v30 }
 0x60d   :  { %6364 = vmatmul.mubr.bf16.gmra.mrb[8].mxu0 %v17093_v37  ;;  %7401 = vmatmul.mubr.bf16.gmra.mrb[8].mxu1 %v17093_v37 }
 0x60e   :  { %10603 = vmatprep.mubr.msk.bf16.mxu0 %vm5818_vm2, %v17094_v21  ;;  %10804 = vmatprep.mubr.msk.bf16.mxu1 %vm5818_vm2, %v17094_v21 }
 0x615   :  { %6372 = vmatmul.mubr.bf16.gmra.mrb[12].mxu0 %v17095_v41  ;;  %7409 = vmatmul.mubr.bf16.gmra.mrb[12].mxu1 %v17095_v41 }
 0x616   :  { %10604 = vmatprep.mubr.msk.bf16.mxu0 %vm5818_vm2, %v17096_v8  ;;  %10805 = vmatprep.mubr.msk.bf16.mxu1 %vm5818_vm2, %v17096_v8 }
 0x61d   :  { %6380 = vmatmul.mubr.bf16.gmra.mrb[16].mxu0 %v17097_v28  ;;  %7417 = vmatmul.mubr.bf16.gmra.mrb[16].mxu1 %v17097_v28 }
 0x61e   :  { %10605 = vmatprep.mubr.msk.bf16.mxu0 %vm5818_vm2, %v17098_v16  ;;  %10806 = vmatprep.mubr.msk.bf16.mxu1 %vm5818_vm2, %v17098_v16 }
 0x625   :  { %6388 = vmatmul.mubr.bf16.gmra.mrb[20].mxu0 %v17099_v45  ;;  %7425 = vmatmul.mubr.bf16.gmra.mrb[20].mxu1 %v17099_v45 }
 0x626   :  { %10651 = vmatprep.mubr.msk.bf16.mxu0 %vm5818_vm2, %v15339_v5  ;;  %10852 = vmatprep.mubr.msk.bf16.mxu1 %vm5818_vm2, %v15339_v5  ;;  %v13233_v5 = vld [vmem:[%s16924_s5 + $0xf0] sm:$0xff]  }
 0x627   :  { %11400 = vmatprep.subr.bf16.mxu1 %v13233_v5 }
 0x62d   :  { %6553 = vmatmul.mubr.bf16.vlgmr.msra.gmra.mrb[192].mxu0 %v15337_v1  ;;  %7587 = vmatmul.mubr.bf16.vlgmr.msra.gmra.mrb[192].mxu1 %v15337_v1  ;;  %v13232_v1 = vld [vmem:[%s16924_s5 + $0x3c] sm:$0xff]  }
 0x62e   :  { %10652 = vmatprep.mubr.msk.bf16.mxu0 %vm5818_vm2, %v15367_v57  ;;  %10853 = vmatprep.mubr.msk.bf16.mxu1 %vm5818_vm2, %v15367_v57  ;;  %v13235_v57 = vld [vmem:[%s16924_s5 + $0xf8] sm:$0xff]  }
 0x62f   :  { %11292 = vmatprep.subr.bf16.mxu0 %v13232_v1  ;;  %11401 = vmatpush3.bf16.msra.mxu1 %v13233_v5 }
 0x630   :  { %11293 = vmatpush3.bf16.msra.mxu0 %v13232_v1  ;;  %11402 = vmatprep.subr.bf16.mxu1 %v13235_v57 }
 0x633   :  { %11403 = vmatpush3.bf16.msra.mxu1 %v13235_v57 }
 0x635   :  { %6561 = vmatmul.mubr.bf16.gmra.mrb[196].mxu0 %v15365_v53  ;;  %7595 = vmatmul.mubr.bf16.gmra.mrb[196].mxu1 %v15365_v53  ;;  %v13234_v53 = vld [vmem:[%s16924_s5 + $0x44] sm:$0xff]  }
 0x636   :  { %10653 = vmatprep.mubr.msk.bf16.mxu0 %vm5818_vm2, %v15395_v52  ;;  %10854 = vmatprep.mubr.msk.bf16.mxu1 %vm5818_vm2, %v15395_v52  ;;  %v13237_v52 = vld [vmem:[%s16924_s5 + $0x100] sm:$0xff]  }
 0x637   :  { %11294 = vmatprep.subr.bf16.mxu0 %v13234_v53  ;;  %11404 = vmatprep.subr.bf16.mxu1 %v13237_v52 }
 0x638   :  { %11295 = vmatpush3.bf16.msra.mxu0 %v13234_v53  ;;  %11405 = vmatpush3.bf16.msra.mxu1 %v13237_v52 }
 0x63d   :  { %6569 = vmatmul.mubr.bf16.gmra.mrb[200].mxu0 %v15393_v49  ;;  %7603 = vmatmul.mubr.bf16.gmra.mrb[200].mxu1 %v15393_v49  ;;  %v13236_v49 = vld [vmem:[%s16924_s5 + $0x4c] sm:$0xff]  }
 0x63e   :  { %10654 = vmatprep.mubr.msk.bf16.mxu0 %vm5818_vm2, %v15423_v50  ;;  %10855 = vmatprep.mubr.msk.bf16.mxu1 %vm5818_vm2, %v15423_v50  ;;  %v13239_v50 = vld [vmem:[%s16924_s5 + $0x108] sm:$0xff]  }
 0x63f   :  { %11296 = vmatprep.subr.bf16.mxu0 %v13236_v49  ;;  %11406 = vmatprep.subr.bf16.mxu1 %v13239_v50 }
 0x640   :  { %11297 = vmatpush3.bf16.msra.mxu0 %v13236_v49  ;;  %11407 = vmatpush3.bf16.msra.mxu1 %v13239_v50 }
 0x645   :  { %6577 = vmatmul.mubr.bf16.gmra.mrb[204].mxu0 %v15421_v27  ;;  %7611 = vmatmul.mubr.bf16.gmra.mrb[204].mxu1 %v15421_v27  ;;  %v13238_v27 = vld [vmem:[%s16924_s5 + $0x54] sm:$0xff]  }
 0x646   :  { %10655 = vmatprep.mubr.msk.bf16.mxu0 %vm5818_vm2, %v15451_v51  ;;  %10856 = vmatprep.mubr.msk.bf16.mxu1 %vm5818_vm2, %v15451_v51  ;;  %v13241_v51 = vld [vmem:[%s16924_s5 + $0x110] sm:$0xff]  }
 0x647   :  { %11298 = vmatprep.subr.bf16.mxu0 %v13238_v27  ;;  %11408 = vmatprep.subr.bf16.mxu1 %v13241_v51 }
 0x648   :  { %11299 = vmatpush3.bf16.msra.mxu0 %v13238_v27  ;;  %11409 = vmatpush3.bf16.msra.mxu1 %v13241_v51 }
 0x64d   :  { %6585 = vmatmul.mubr.bf16.gmra.mrb[208].mxu0 %v15449_v15  ;;  %7619 = vmatmul.mubr.bf16.gmra.mrb[208].mxu1 %v15449_v15  ;;  %v13240_v15 = vld [vmem:[%s16924_s5 + $0x5c] sm:$0xff]  }
 0x64e   :  { %10656 = vmatprep.mubr.msk.bf16.mxu0 %vm5818_vm2, %v15479_v56  ;;  %10857 = vmatprep.mubr.msk.bf16.mxu1 %vm5818_vm2, %v15479_v56  ;;  %v13243_v56 = vld [vmem:[%s16924_s5 + $0x118] sm:$0xff]  }
 0x64f   :  { %11300 = vmatprep.subr.bf16.mxu0 %v13240_v15  ;;  %11410 = vmatprep.subr.bf16.mxu1 %v13243_v56 }
 0x650   :  { %11301 = vmatpush3.bf16.msra.mxu0 %v13240_v15  ;;  %11411 = vmatpush3.bf16.msra.mxu1 %v13243_v56 }
 0x655   :  { %6593 = vmatmul.mubr.bf16.gmra.mrb[212].mxu0 %v15477_v44  ;;  %7627 = vmatmul.mubr.bf16.gmra.mrb[212].mxu1 %v15477_v44  ;;  %v13242_v44 = vld [vmem:[%s16924_s5 + $0x64] sm:$0xff]  }
 0x656   :  { %10657 = vmatprep.mubr.msk.bf16.mxu0 %vm5818_vm2, %v15507_v4  ;;  %10858 = vmatprep.mubr.msk.bf16.mxu1 %vm5818_vm2, %v15507_v4  ;;  %v13245_v4 = vld [vmem:[%s16924_s5 + $0x120] sm:$0xff]  }
 0x657   :  { %11302 = vmatprep.subr.bf16.mxu0 %v13242_v44  ;;  %11412 = vmatprep.subr.bf16.mxu1 %v13245_v4 }
 0x658   :  { %11303 = vmatpush3.bf16.msra.mxu0 %v13242_v44  ;;  %11413 = vmatpush3.bf16.msra.mxu1 %v13245_v4 }
 0x65d   :  { %6601 = vmatmul.mubr.bf16.gmra.mrb[216].mxu0 %v15505_v58  ;;  %7635 = vmatmul.mubr.bf16.gmra.mrb[216].mxu1 %v15505_v58  ;;  %v13244_v58 = vld [vmem:[%s16924_s5 + $0x6c] sm:$0xff]  }
 0x65e   :  { %10658 = vmatprep.mubr.msk.bf16.mxu0 %vm5818_vm2, %v15538_v23  ;;  %10859 = vmatprep.mubr.msk.bf16.mxu1 %vm5818_vm2, %v15538_v23  ;;  %v13247_v23 = vld [vmem:[%s16924_s5 + $0x128] ss:$0 sps:$4 sm:$0xff]  }
 0x65f   :  { %11304 = vmatprep.subr.bf16.mxu0 %v13244_v58  ;;  %12809 = vmatprep.subr.msk.bf16.mxu1 %vm8085_vm3, %v13247_v23 }
 0x660   :  { %11305 = vmatpush3.bf16.msra.mxu0 %v13244_v58 }
 0x665   :  { %6609 = vmatmul.mubr.bf16.gmra.mrb[220].mxu0 %v15536_v18  ;;  %7643 = vmatmul.mubr.bf16.gmra.mrb[220].mxu1 %v15536_v18  ;;  %v13246_v18 = vld [vmem:[%s16924_s5 + $0x74] ss:$0 sps:$4 sm:$0xff]  }
 0x666   :  { %10659 = vmatprep.mubr.msk.bf16.mxu0 %vm5818_vm2, %v15580_v38  ;;  %10860 = vmatprep.mubr.msk.bf16.mxu1 %vm5818_vm2, %v15580_v38  ;;  %v8644_v38 = vsel %vm8085_vm3, %v13247_v23, 0 }
 0x667   :  { %12806 = vmatprep.subr.msk.bf16.mxu0 %vm8085_vm3, %v13246_v18  ;;  %11415 = vmatpush3.bf16.msra.mxu1 %v8644_v38 }
 0x668   :  { %11436 = vmatprep.subr.bf16.mxu1 %v16411_v0 }
 0x66d   :  { %6617 = vmatmul.mubr.bf16.gmra.mrb[224].mxu0 %v15572_v31  ;;  %7651 = vmatmul.mubr.bf16.gmra.mrb[224].mxu1 %v15572_v31  ;;  %v8087_v31 = vsel %vm8085_vm3, %v13246_v18, 0 }
 0x66e   :  { %10660 = vmatprep.mubr.msk.bf16.mxu0 %vm5818_vm2, %v15636_v12  ;;  %10861 = vmatprep.mubr.msk.bf16.mxu1 %vm5818_vm2, %v15636_v12 }
 0x66f   :  { %11307 = vmatpush3.bf16.msra.mxu0 %v8087_v31 }
 0x670   :  { %11328 = vmatprep.subr.bf16.mxu0 %v16406_v24 }
 0x675   :  { %6625 = vmatmul.mubr.bf16.gmra.mrb[228].mxu0 %v15628_v61  ;;  %7659 = vmatmul.mubr.bf16.gmra.mrb[228].mxu1 %v15628_v61 }
 0x676   :  { %10661 = vmatprep.mubr.msk.bf16.mxu0 %vm5818_vm2, %v15692_v25  ;;  %10862 = vmatprep.mubr.msk.bf16.mxu1 %vm5818_vm2, %v15692_v25 }
 0x67d   :  { %6633 = vmatmul.mubr.bf16.gmra.mrb[232].mxu0 %v15684_v7  ;;  %7667 = vmatmul.mubr.bf16.gmra.mrb[232].mxu1 %v15684_v7  ;;  %v16397_v7 = vld [vmem:[%s16923_s4] ss:$0 sm:$0xff] }
 0x67e   :  { %10662 = vmatprep.mubr.msk.bf16.mxu0 %vm5818_vm2, %v15728_v48  ;;  %10863 = vmatprep.mubr.msk.bf16.mxu1 %vm5818_vm2, %v15728_v48 }
 0x685   :  { %6641 = vmatmul.mubr.bf16.gmra.mrb[236].mxu0 %v15726_v40  ;;  %7675 = vmatmul.mubr.bf16.gmra.mrb[236].mxu1 %v15726_v40 }
 0x686   :  { %10663 = vmatprep.mubr.msk.bf16.mxu0 %vm5818_vm2, %v15768_v6  ;;  %10864 = vmatprep.mubr.msk.bf16.mxu1 %vm5818_vm2, %v15768_v6 }
 0x68d   :  { %6649 = vmatmul.mubr.bf16.gmra.mrb[240].mxu0 %v15764_v55  ;;  %7683 = vmatmul.mubr.bf16.gmra.mrb[240].mxu1 %v15764_v55 }
 0x68e   :  { %10664 = vmatprep.mubr.msk.bf16.mxu0 %vm5818_vm2, %v15800_v59  ;;  %10865 = vmatprep.mubr.msk.bf16.mxu1 %vm5818_vm2, %v15800_v59 }
 0x695   :  { %6657 = vmatmul.mubr.bf16.gmra.mrb[244].mxu0 %v15798_v39  ;;  %7691 = vmatmul.mubr.bf16.gmra.mrb[244].mxu1 %v15798_v39 }
 0x696   :  { %10665 = vmatprep.mubr.msk.bf16.mxu0 %vm5818_vm2, %v15824_v22  ;;  %10866 = vmatprep.mubr.msk.bf16.mxu1 %vm5818_vm2, %v15824_v22 }
 0x69d   :  { %6665 = vmatmul.mubr.bf16.gmra.mrb[248].mxu0 %v15822_v3  ;;  %7699 = vmatmul.mubr.bf16.gmra.mrb[248].mxu1 %v15822_v3 }
 0x69e   :  { %10666 = vmatprep.mubr.msk.bf16.mxu0 %vm5818_vm2, %v15848_v11  ;;  %10867 = vmatprep.mubr.msk.bf16.mxu1 %vm5818_vm2, %v15848_v11 }
 0x6a5   :  { %6673 = vmatmul.mubr.bf16.gmra.mrb[252].mxu0 %v17091_v46  ;;  %7707 = vmatmul.mubr.bf16.gmra.mrb[252].mxu1 %v17091_v46 }
 0x6a6   :  { %10667 = vmatprep.mubr.msk.bf16.mxu0 %vm5818_vm2, %v17092_v30  ;;  %10868 = vmatprep.mubr.msk.bf16.mxu1 %vm5818_vm2, %v17092_v30 }
 0x6ad   :  { %6681 = vmatmul.mubr.bf16.gmra.mrb[0].mxu0 %v17093_v37  ;;  %7715 = vmatmul.mubr.bf16.gmra.mrb[0].mxu1 %v17093_v37 }
 0x6ae   :  { %10668 = vmatprep.mubr.msk.bf16.mxu0 %vm5818_vm2, %v17094_v21  ;;  %10869 = vmatprep.mubr.msk.bf16.mxu1 %vm5818_vm2, %v17094_v21 }
 0x6b5   :  { %6689 = vmatmul.mubr.bf16.gmra.mrb[4].mxu0 %v17095_v41  ;;  %7723 = vmatmul.mubr.bf16.gmra.mrb[4].mxu1 %v17095_v41 }
 0x6b6   :  { %10669 = vmatprep.mubr.msk.bf16.mxu0 %vm5818_vm2, %v17096_v8  ;;  %10870 = vmatprep.mubr.msk.bf16.mxu1 %vm5818_vm2, %v17096_v8 }
 0x6bd   :  { %6697 = vmatmul.mubr.bf16.gmra.mrb[8].mxu0 %v17097_v28  ;;  %7731 = vmatmul.mubr.bf16.gmra.mrb[8].mxu1 %v17097_v28 }
 0x6be   :  { %10670 = vmatprep.mubr.msk.bf16.mxu0 %vm5818_vm2, %v17098_v16  ;;  %10871 = vmatprep.mubr.msk.bf16.mxu1 %vm5818_vm2, %v17098_v16 }
 0x6c5   :  { %6705 = vmatmul.mubr.bf16.gmra.mrb[12].mxu0 %v17099_v45  ;;  %7739 = vmatmul.mubr.bf16.gmra.mrb[12].mxu1 %v17099_v45 }
 0x6c6   :  { %10671 = vmatprep.mubr.msk.bf16.mxu0 %vm5818_vm2, %v15940_v47  ;;  %10872 = vmatprep.mubr.msk.bf16.mxu1 %vm5818_vm2, %v15940_v47 }
 0x6cd   :  { %6713 = vmatmul.mubr.bf16.gmra.mrb[16].mxu0 %v15938_v19  ;;  %7747 = vmatmul.mubr.bf16.gmra.mrb[16].mxu1 %v15938_v19 }
 0x6ce   :  { %10672 = vmatprep.mubr.msk.bf16.mxu0 %vm5818_vm2, %v15982_v54  ;;  %10873 = vmatprep.mubr.msk.bf16.mxu1 %vm5818_vm2, %v15982_v54 }
 0x6d5   :  { %6721 = vmatmul.mubr.bf16.gmra.mrb[20].mxu0 %v15980_v17  ;;  %7755 = vmatmul.mubr.bf16.gmra.mrb[20].mxu1 %v15980_v17 }
 0x700   :  { %v6554_v61 = vpop.f32.mrb[192].mxu0  ;;  %v7588_v12 = vpop.f32.mrb[192].mxu1 }
 0x701   :  { %v7807_v25 = vmax.f32 %v6554_v61, %v7588_v12  ;;  %v6556_v40 = vpop.f32.mrb[193].mxu0  ;;  %v7590_v48 = vpop.f32.mrb[193].mxu1 }
 0x702   :  { %v6557_v55 = vpop.f32.mrb[194].mxu0  ;;  %v7591_v6 = vpop.f32.mrb[194].mxu1 }
 0x703   :  { %v7858_v39 = vadd.f32 %v16397_v7, %v7807_v25  ;;  %v7808_v59 = vmax.f32 %v6557_v55, %v7591_v6  ;;  %v6559_v3 = vpop.f32.mrb[195].mxu0  ;;  %v7593_v22 = vpop.f32.mrb[195].mxu1 }
 0x705   :  { %v7859_v11 = vadd.f32 %v16397_v7, %v7808_v59  ;;  %v7902_v19 = vmax.f32 %v7858_v39, 0.0 }
 0x707   :  { %v7903_v47 = vmax.f32 %v7859_v11, 0.0 }
 0x708   :  { %v6562_v17 = vpop.f32.mrb[196].mxu0  ;;  %v7596_v54 = vpop.f32.mrb[196].mxu1 }
 0x709   :  { %v16401_v60 = vpack.c.bf16 %v7903_v47, %v7902_v19  ;;  %v7809_v20 = vmax.f32 %v6562_v17, %v7596_v54  ;;  %v6564_v32 = vpop.f32.mrb[197].mxu0  ;;  %v7598_v43 = vpop.f32.mrb[197].mxu1 }
 0x70a   :  { %v6565_v62 = vpop.f32.mrb[198].mxu0  ;;  %v7599_v29 = vpop.f32.mrb[198].mxu1 }
 0x70b   :  { %v7810_v33 = vmax.f32 %v6565_v62, %v7599_v29  ;;  %v6567_v36 = vpop.f32.mrb[199].mxu0  ;;  %v7601_v26 = vpop.f32.mrb[199].mxu1  ;;  %v7860_v63 = vadd.f32 %v16397_v7, %v7809_v20 }
 0x70d   :  { %v7861_v2 = vadd.f32 %v16397_v7, %v7810_v33  ;;  %v7904_v41 = vmax.f32 %v7860_v63, 0.0  ;;  %v13250_v63 = vld [vmem:[%s16924_s5 + $0x8] sm:$0xff]  }
 0x70f   :  { %v7905_v16 = vmax.f32 %v7861_v2, 0.0 }
 0x710   :  { %v6570_v35 = vpop.f32.mrb[200].mxu0  ;;  %v7604_v10 = vpop.f32.mrb[200].mxu1 }
 0x711   :  { %v7811_v13 = vmax.f32 %v6570_v35, %v7604_v10  ;;  %v6572_v9 = vpop.f32.mrb[201].mxu0  ;;  %v7606_v34 = vpop.f32.mrb[201].mxu1 }
 0x712   :  { %v6573_v14 = vpop.f32.mrb[202].mxu0  ;;  %v7607_v42 = vpop.f32.mrb[202].mxu1  ;;  %v13252_v9 = vld [vmem:[%s16924_s5 + $0x10] sm:$0xff]   ;;  %v13253_v34 = vld [vmem:[%s16924_s5 + $0xc4] sm:$0xff]  }
 0x713   :  { %v7862_v46 = vadd.f32 %v16397_v7, %v7811_v13  ;;  %v7812_v30 = vmax.f32 %v6573_v14, %v7607_v42  ;;  %v6575_v37 = vpop.f32.mrb[203].mxu0  ;;  %v7609_v21 = vpop.f32.mrb[203].mxu1  ;;  %v13251_v13 = vld [vmem:[%s16924_s5 + $0xbc] sm:$0xff]  }
 0x715   :  { %v7906_v8 = vmax.f32 %v7862_v46, 0.0  ;;  %v7863_v28 = vadd.f32 %v16397_v7, %v7812_v30 }
 0x717   :  { %v7946_v45 = vmax.f32 %v7904_v41, %v7906_v8  ;;  %v7907_v1 = vmax.f32 %v7863_v28, 0.0 }
 0x718   :  { %v6578_v5 = vpop.f32.mrb[204].mxu0  ;;  %v7612_v53 = vpop.f32.mrb[204].mxu1 }
 0x719   :  { %v7947_v57 = vmax.f32 %v7905_v16, %v7907_v1  ;;  %v7813_v49 = vmax.f32 %v6578_v5, %v7612_v53  ;;  %v6580_v52 = vpop.f32.mrb[205].mxu0  ;;  %v7614_v27 = vpop.f32.mrb[205].mxu1  ;;  %v13255_v1 = vld [vmem:[%s16924_s5 + $0xcc] sm:$0xff]  }
 0x71a   :  { %v6581_v50 = vpop.f32.mrb[206].mxu0  ;;  %v7615_v15 = vpop.f32.mrb[206].mxu1 }
 0x71b   :  { %v16419_v51 = vpack.c.bf16 %v7947_v57, %v7946_v45  ;;  %v7814_v44 = vmax.f32 %v6581_v50, %v7615_v15  ;;  %v6583_v56 = vpop.f32.mrb[207].mxu0  ;;  %v7617_v58 = vpop.f32.mrb[207].mxu1  ;;  %v7864_v23 = vadd.f32 %v16397_v7, %v7813_v49  ;;  %v13254_v45 = vld [vmem:[%s16924_s5 + $0x18] sm:$0xff]   ;;  %v13256_v50 = vld [vmem:[%s16924_s5 + $0x20] sm:$0xff]  }
 0x71c   :  { %v13257_v15 = vld [vmem:[%s16924_s5 + $0xd4] sm:$0xff]  }
 0x71d   :  { %11308 = vmatprep.mubr.msk.bf16.mxu0 %vm8054_vm4, %v16419_v51  ;;  %11416 = vmatprep.mubr.msk.bf16.mxu1 %vm8054_vm4, %v16419_v51  ;;  %v7865_v40 = vadd.f32 %v16397_v7, %v7814_v44  ;;  %v7908_v59 = vmax.f32 %v7864_v23, 0.0 }
 0x71f   :  { %v7909_v11 = vmax.f32 %v7865_v40, 0.0 }
 0x720   :  { %v6586_v4 = vpop.f32.mrb[208].mxu0  ;;  %v7620_v18 = vpop.f32.mrb[208].mxu1 }
 0x721   :  { %v7815_v31 = vmax.f32 %v6586_v4, %v7620_v18  ;;  %v6588_v38 = vpop.f32.mrb[209].mxu0  ;;  %v7622_v61 = vpop.f32.mrb[209].mxu1 }
 0x722   :  { %v6589_v12 = vpop.f32.mrb[210].mxu0  ;;  %v7623_v25 = vpop.f32.mrb[210].mxu1 }
 0x723   :  { %v7866_v48 = vadd.f32 %v16397_v7, %v7815_v31  ;;  %v7816_v55 = vmax.f32 %v6589_v12, %v7623_v25  ;;  %v6591_v6 = vpop.f32.mrb[211].mxu0  ;;  %v7625_v39 = vpop.f32.mrb[211].mxu1 }
 0x724   :  { %v13260_v6 = vld [vmem:[%s16924_s5 + $0x30] sm:$0xff]   ;;  %v13261_v39 = vld [vmem:[%s16924_s5 + $0xe4] sm:$0xff]  }
 0x725   :  { %v7910_v3 = vmax.f32 %v7866_v48, 0.0  ;;  %v7867_v22 = vadd.f32 %v16397_v7, %v7816_v55  ;;  %v13258_v48 = vld [vmem:[%s16924_s5 + $0x28] sm:$0xff]   ;;  %v13259_v55 = vld [vmem:[%s16924_s5 + $0xdc] sm:$0xff]  }
 0x727   :  { %v7948_v19 = vmax.f32 %v7908_v59, %v7910_v3  ;;  %v7911_v47 = vmax.f32 %v7867_v22, 0.0 }
 0x728   :  { %v6594_v17 = vpop.f32.mrb[212].mxu0  ;;  %v7628_v54 = vpop.f32.mrb[212].mxu1 }
 0x729   :  { %v7949_v20 = vmax.f32 %v7909_v11, %v7911_v47  ;;  %v7817_v32 = vmax.f32 %v6594_v17, %v7628_v54  ;;  %v6596_v43 = vpop.f32.mrb[213].mxu0  ;;  %v7630_v62 = vpop.f32.mrb[213].mxu1 }
 0x72a   :  { %v6597_v29 = vpop.f32.mrb[214].mxu0  ;;  %v7631_v33 = vpop.f32.mrb[214].mxu1 }
 0x72b   :  { %v16429_v36 = vpack.c.bf16 %v7949_v20, %v7948_v19  ;;  %v7818_v26 = vmax.f32 %v6597_v29, %v7631_v33  ;;  %v6599_v35 = vpop.f32.mrb[215].mxu0  ;;  %v7633_v10 = vpop.f32.mrb[215].mxu1  ;;  %v7868_v2 = vadd.f32 %v16397_v7, %v7817_v32  ;;  %v13262_v20 = vld [vmem:[%s16924_s5 + $0x38] ss:$0 sps:$4 sm:$0xff]  }
 0x72d   :  { %11309 = vmatmul.mubr.msk.bf16.vlgmr.msra.gmra.mrb[24].mxu0 %vm8054_vm4, %v16429_v36  ;;  %11417 = vmatmul.mubr.msk.bf16.vlgmr.msra.gmra.mrb[24].mxu1 %vm8054_vm4, %v16429_v36  ;;  %v7912_v5 = vmax.f32 %v7868_v2, 0.0  ;;  %v16500_v2 = vld [vmem:[%s16924_s5 + $0x78] sm:$0xff]  }
 0x72e   :  { %11329 = vmatpush3.bf16.msra.mxu0 %v16406_v24  ;;  %11437 = vmatpush3.bf16.msra.mxu1 %v16411_v0  ;;  %v7869_v0 = vadd.f32 %v16397_v7, %v7818_v26  ;;  %v13263_v26 = vld [vmem:[%s16924_s5 + $0xec] ss:$0 sps:$4 sm:$0xff]  }
 0x72f   :  { %11330 = vmatprep.subr.bf16.mxu0 %v13250_v63  ;;  %11438 = vmatprep.subr.bf16.mxu1 %v13251_v13 }
 0x730   :  { %v6602_v14 = vpop.f32.mrb[216].mxu0  ;;  %v7636_v42 = vpop.f32.mrb[216].mxu1  ;;  %v7913_v49 = vmax.f32 %v7869_v0, 0.0 }
 0x731   :  { %v7819_v46 = vmax.f32 %v6602_v14, %v7636_v42  ;;  %v6604_v30 = vpop.f32.mrb[217].mxu0  ;;  %v7638_v37 = vpop.f32.mrb[217].mxu1  ;;  %v8805_v42 = vsel %vm8085_vm3, %v13263_v26, 0 }
 0x732   :  { %v6605_v24 = vpop.f32.mrb[218].mxu0  ;;  %v7639_v21 = vpop.f32.mrb[218].mxu1  ;;  %11331 = vmatpush3.bf16.msra.mxu0 %v13250_v63  ;;  %11439 = vmatpush3.bf16.msra.mxu1 %v13251_v13  ;;  %v8251_v13 = vsel %vm8085_vm3, %v13262_v20, 0 }
 0x733   :  { %v7870_v41 = vadd.f32 %v16397_v7, %v7819_v46  ;;  %v7820_v8 = vmax.f32 %v6605_v24, %v7639_v21  ;;  %v6607_v28 = vpop.f32.mrb[219].mxu0  ;;  %v7641_v16 = vpop.f32.mrb[219].mxu1  ;;  %11332 = vmatprep.subr.bf16.mxu0 %v13252_v9  ;;  %11440 = vmatprep.subr.bf16.mxu1 %v13253_v34  ;;  %v16505_v46 = vld [vmem:[%s16924_s5 + $0x12c] sm:$0xff]  }
 0x735   :  { %v7914_v53 = vmax.f32 %v7870_v41, 0.0  ;;  %v7871_v57 = vadd.f32 %v16397_v7, %v7820_v8 }
 0x736   :  { %11333 = vmatpush3.bf16.msra.mxu0 %v13252_v9  ;;  %11441 = vmatpush3.bf16.msra.mxu1 %v13253_v34 }
 0x737   :  { %v7950_v52 = vmax.f32 %v7912_v5, %v7914_v53  ;;  %v7915_v27 = vmax.f32 %v7871_v57, 0.0  ;;  %11334 = vmatprep.subr.bf16.mxu0 %v13254_v45  ;;  %11442 = vmatprep.subr.bf16.mxu1 %v13255_v1 }
 0x738   :  { %v6610_v44 = vpop.f32.mrb[220].mxu0  ;;  %v7644_v56 = vpop.f32.mrb[220].mxu1 }
 0x739   :  { %v7951_v58 = vmax.f32 %v7913_v49, %v7915_v27  ;;  %v7821_v4 = vmax.f32 %v6610_v44, %v7644_v56  ;;  %v6612_v18 = vpop.f32.mrb[221].mxu0  ;;  %v7646_v23 = vpop.f32.mrb[221].mxu1 }
 0x73a   :  { %v6613_v31 = vpop.f32.mrb[222].mxu0  ;;  %v7647_v38 = vpop.f32.mrb[222].mxu1  ;;  %11335 = vmatpush3.bf16.msra.mxu0 %v13254_v45  ;;  %11443 = vmatpush3.bf16.msra.mxu1 %v13255_v1 }
 0x73b   :  { %v16465_v61 = vpack.c.bf16 %v7951_v58, %v7950_v52  ;;  %v7822_v12 = vmax.f32 %v6613_v31, %v7647_v38  ;;  %v6615_v25 = vpop.f32.mrb[223].mxu0  ;;  %v7649_v40 = vpop.f32.mrb[223].mxu1  ;;  %11336 = vmatprep.subr.bf16.mxu0 %v13256_v50  ;;  %11444 = vmatprep.subr.bf16.mxu1 %v13257_v15  ;;  %v7872_v22 = vadd.f32 %v16397_v7, %v7821_v4 }
 0x73d   :  { %11312 = vmatprep.mubr.msk.bf16.mxu0 %vm8054_vm4, %v16465_v61  ;;  %11420 = vmatprep.mubr.msk.bf16.mxu1 %vm8054_vm4, %v16465_v61  ;;  %v7873_v32 = vadd.f32 %v16397_v7, %v7822_v12  ;;  %v7916_v35 = vmax.f32 %v7872_v22, 0.0 }
 0x73e   :  { %11337 = vmatpush3.bf16.msra.mxu0 %v13256_v50  ;;  %11445 = vmatpush3.bf16.msra.mxu1 %v13257_v15 }
 0x73f   :  { %11338 = vmatprep.subr.bf16.mxu0 %v13258_v48  ;;  %11446 = vmatprep.subr.bf16.mxu1 %v13259_v55  ;;  %v7917_v9 = vmax.f32 %v7873_v32, 0.0 }
 0x740   :  { %v6618_v59 = vpop.f32.mrb[224].mxu0  ;;  %v7652_v3 = vpop.f32.mrb[224].mxu1 }
 0x741   :  { %v7823_v11 = vmax.f32 %v6618_v59, %v7652_v3  ;;  %v6620_v19 = vpop.f32.mrb[225].mxu0  ;;  %v7654_v47 = vpop.f32.mrb[225].mxu1 }
 0x742   :  { %v6621_v17 = vpop.f32.mrb[226].mxu0  ;;  %v7655_v54 = vpop.f32.mrb[226].mxu1  ;;  %11339 = vmatpush3.bf16.msra.mxu0 %v13258_v48  ;;  %11447 = vmatpush3.bf16.msra.mxu1 %v13259_v55 }
 0x743   :  { %v7874_v43 = vadd.f32 %v16397_v7, %v7823_v11  ;;  %v7824_v62 = vmax.f32 %v6621_v17, %v7655_v54  ;;  %v6623_v29 = vpop.f32.mrb[227].mxu0  ;;  %v7657_v33 = vpop.f32.mrb[227].mxu1  ;;  %11340 = vmatprep.subr.bf16.mxu0 %v13260_v6  ;;  %11448 = vmatprep.subr.bf16.mxu1 %v13261_v39 }
 0x745   :  { %v7918_v10 = vmax.f32 %v7874_v43, 0.0  ;;  %v7875_v63 = vadd.f32 %v16397_v7, %v7824_v62 }
 0x746   :  { %11341 = vmatpush3.bf16.msra.mxu0 %v13260_v6  ;;  %11449 = vmatpush3.bf16.msra.mxu1 %v13261_v39 }
 0x747   :  { %v7952_v34 = vmax.f32 %v7916_v35, %v7918_v10  ;;  %v7919_v14 = vmax.f32 %v7875_v63, 0.0  ;;  %12807 = vmatprep.subr.msk.bf16.mxu0 %vm8085_vm3, %v13262_v20  ;;  %12810 = vmatprep.subr.msk.bf16.mxu1 %vm8085_vm3, %v13263_v26 }
 0x748   :  { %v6626_v30 = vpop.f32.mrb[228].mxu0  ;;  %v7660_v37 = vpop.f32.mrb[228].mxu1 }
 0x749   :  { %v7953_v24 = vmax.f32 %v7917_v9, %v7919_v14  ;;  %v7825_v21 = vmax.f32 %v6626_v30, %v7660_v37  ;;  %v6628_v0 = vpop.f32.mrb[229].mxu0  ;;  %v7662_v41 = vpop.f32.mrb[229].mxu1 }
 0x74a   :  { %v6629_v8 = vpop.f32.mrb[230].mxu0  ;;  %v7663_v28 = vpop.f32.mrb[230].mxu1  ;;  %11343 = vmatpush3.bf16.msra.mxu0 %v8251_v13  ;;  %11451 = vmatpush3.bf16.msra.mxu1 %v8805_v42 }
 0x74b   :  { %v16507_v16 = vpack.c.bf16 %v7953_v24, %v7952_v34  ;;  %v7826_v45 = vmax.f32 %v6629_v8, %v7663_v28  ;;  %v6631_v1 = vpop.f32.mrb[231].mxu0  ;;  %v7665_v5 = vpop.f32.mrb[231].mxu1  ;;  %11364 = vmatprep.subr.bf16.mxu0 %v16500_v2  ;;  %11472 = vmatprep.subr.bf16.mxu1 %v16505_v46  ;;  %v7876_v49 = vadd.f32 %v16397_v7, %v7825_v21 }
 0x74d   :  { %11313 = vmatmul.mubr.msk.bf16.gmra.mrb[28].mxu0 %vm8054_vm4, %v16507_v16  ;;  %11421 = vmatmul.mubr.msk.bf16.gmra.mrb[28].mxu1 %vm8054_vm4, %v16507_v16  ;;  %v7877_v56 = vadd.f32 %v16397_v7, %v7826_v45  ;;  %v7920_v31 = vmax.f32 %v7876_v49, 0.0 }
 0x74f   :  { %v7921_v25 = vmax.f32 %v7877_v56, 0.0 }
 0x750   :  { %v6634_v53 = vpop.f32.mrb[232].mxu0  ;;  %v7668_v57 = vpop.f32.mrb[232].mxu1 }
 0x751   :  { %v7827_v52 = vmax.f32 %v6634_v53, %v7668_v57  ;;  %v6636_v27 = vpop.f32.mrb[233].mxu0  ;;  %v7670_v50 = vpop.f32.mrb[233].mxu1 }
 0x752   :  { %v6637_v15 = vpop.f32.mrb[234].mxu0  ;;  %v7671_v44 = vpop.f32.mrb[234].mxu1 }
 0x753   :  { %v7878_v58 = vadd.f32 %v16397_v7, %v7827_v52  ;;  %v7828_v4 = vmax.f32 %v6637_v15, %v7671_v44  ;;  %v6639_v18 = vpop.f32.mrb[235].mxu0  ;;  %v7673_v23 = vpop.f32.mrb[235].mxu1 }
 0x755   :  { %v7922_v38 = vmax.f32 %v7878_v58, 0.0  ;;  %v7879_v12 = vadd.f32 %v16397_v7, %v7828_v4 }
 0x757   :  { %v7954_v40 = vmax.f32 %v7920_v31, %v7922_v38  ;;  %v7923_v48 = vmax.f32 %v7879_v12, 0.0 }
 0x758   :  { %v6642_v55 = vpop.f32.mrb[236].mxu0  ;;  %v7676_v6 = vpop.f32.mrb[236].mxu1 }
 0x759   :  { %v7955_v39 = vmax.f32 %v7921_v25, %v7923_v48  ;;  %v7829_v59 = vmax.f32 %v6642_v55, %v7676_v6  ;;  %v6644_v3 = vpop.f32.mrb[237].mxu0  ;;  %v7678_v22 = vpop.f32.mrb[237].mxu1 }
 0x75a   :  { %v6645_v11 = vpop.f32.mrb[238].mxu0  ;;  %v7679_v19 = vpop.f32.mrb[238].mxu1 }
 0x75b   :  { %v16519_v47 = vpack.c.bf16 %v7955_v39, %v7954_v40  ;;  %v7830_v17 = vmax.f32 %v6645_v11, %v7679_v19  ;;  %v6647_v54 = vpop.f32.mrb[239].mxu0  ;;  %v7681_v20 = vpop.f32.mrb[239].mxu1  ;;  %v7880_v62 = vadd.f32 %v16397_v7, %v7829_v59 }
 0x75d   :  { %11316 = vmatprep.mubr.msk.bf16.mxu0 %vm8054_vm4, %v16519_v47  ;;  %11424 = vmatprep.mubr.msk.bf16.mxu1 %vm8054_vm4, %v16519_v47  ;;  %v7881_v63 = vadd.f32 %v16397_v7, %v7830_v17  ;;  %v7924_v42 = vmax.f32 %v7880_v62, 0.0 }
 0x75f   :  { %v7925_v24 = vmax.f32 %v7881_v63, 0.0 }
 0x760   :  { %v6650_v32 = vpop.f32.mrb[240].mxu0  ;;  %v7684_v43 = vpop.f32.mrb[240].mxu1 }
 0x761   :  { %v7831_v29 = vmax.f32 %v6650_v32, %v7684_v43  ;;  %v6652_v33 = vpop.f32.mrb[241].mxu0  ;;  %v7686_v26 = vpop.f32.mrb[241].mxu1 }
 0x762   :  { %v6653_v35 = vpop.f32.mrb[242].mxu0  ;;  %v7687_v10 = vpop.f32.mrb[242].mxu1 }
 0x763   :  { %v7882_v13 = vadd.f32 %v16397_v7, %v7831_v29  ;;  %v7832_v9 = vmax.f32 %v6653_v35, %v7687_v10  ;;  %v6655_v34 = vpop.f32.mrb[243].mxu0  ;;  %v7689_v14 = vpop.f32.mrb[243].mxu1 }
 0x765   :  { %v7926_v30 = vmax.f32 %v7882_v13, 0.0  ;;  %v7883_v37 = vadd.f32 %v16397_v7, %v7832_v9 }
 0x767   :  { %v7956_v21 = vmax.f32 %v7924_v42, %v7926_v30  ;;  %v7927_v0 = vmax.f32 %v7883_v37, 0.0 }
 0x768   :  { %v6658_v41 = vpop.f32.mrb[244].mxu0  ;;  %v7692_v8 = vpop.f32.mrb[244].mxu1 }
 0x769   :  { %v7957_v28 = vmax.f32 %v7925_v24, %v7927_v0  ;;  %v7833_v45 = vmax.f32 %v6658_v41, %v7692_v8  ;;  %v6660_v1 = vpop.f32.mrb[245].mxu0  ;;  %v7694_v5 = vpop.f32.mrb[245].mxu1 }
 0x76a   :  { %v6661_v53 = vpop.f32.mrb[246].mxu0  ;;  %v7695_v57 = vpop.f32.mrb[246].mxu1 }
 0x76b   :  { %v16529_v49 = vpack.c.bf16 %v7957_v28, %v7956_v21  ;;  %v7834_v52 = vmax.f32 %v6661_v53, %v7695_v57  ;;  %v6663_v27 = vpop.f32.mrb[247].mxu0  ;;  %v7697_v50 = vpop.f32.mrb[247].mxu1  ;;  %v7884_v56 = vadd.f32 %v16397_v7, %v7833_v45 }
 0x76d   :  { %11317 = vmatmul.mubr.msk.bf16.gmra.mrb[32].mxu0 %vm8054_vm4, %v16529_v49  ;;  %11425 = vmatmul.mubr.msk.bf16.gmra.mrb[32].mxu1 %vm8054_vm4, %v16529_v49  ;;  %v7885_v38 = vadd.f32 %v16397_v7, %v7834_v52  ;;  %v7928_v55 = vmax.f32 %v7884_v56, 0.0 }
 0x76f   :  { %v7929_v59 = vmax.f32 %v7885_v38, 0.0 }
 0x770   :  { %v6666_v15 = vpop.f32.mrb[248].mxu0  ;;  %v7700_v44 = vpop.f32.mrb[248].mxu1 }
 0x771   :  { %v7835_v58 = vmax.f32 %v6666_v15, %v7700_v44  ;;  %v6668_v4 = vpop.f32.mrb[249].mxu0  ;;  %v7702_v18 = vpop.f32.mrb[249].mxu1 }
 0x772   :  { %v6669_v23 = vpop.f32.mrb[250].mxu0  ;;  %v7703_v31 = vpop.f32.mrb[250].mxu1 }
 0x773   :  { %v7886_v12 = vadd.f32 %v16397_v7, %v7835_v58  ;;  %v7836_v25 = vmax.f32 %v6669_v23, %v7703_v31  ;;  %v6671_v40 = vpop.f32.mrb[251].mxu0  ;;  %v7705_v48 = vpop.f32.mrb[251].mxu1 }
 0x775   :  { %v7930_v6 = vmax.f32 %v7886_v12, 0.0  ;;  %v7887_v39 = vadd.f32 %v16397_v7, %v7836_v25 }
 0x777   :  { %v7958_v3 = vmax.f32 %v7928_v55, %v7930_v6  ;;  %v7931_v22 = vmax.f32 %v7887_v39, 0.0 }
 0x778   :  { %v6674_v11 = vpop.f32.mrb[252].mxu0  ;;  %v7708_v19 = vpop.f32.mrb[252].mxu1 }
 0x779   :  { %v7959_v17 = vmax.f32 %v7929_v59, %v7931_v22  ;;  %v7837_v54 = vmax.f32 %v6674_v11, %v7708_v19  ;;  %v6676_v20 = vpop.f32.mrb[253].mxu0  ;;  %v7710_v32 = vpop.f32.mrb[253].mxu1 }
 0x77a   :  { %v6677_v43 = vpop.f32.mrb[254].mxu0  ;;  %v7711_v62 = vpop.f32.mrb[254].mxu1 }
 0x77b   :  { %v16539_v29 = vpack.c.bf16 %v7959_v17, %v7958_v3  ;;  %v7838_v33 = vmax.f32 %v6677_v43, %v7711_v62  ;;  %v6679_v26 = vpop.f32.mrb[255].mxu0  ;;  %v7713_v35 = vpop.f32.mrb[255].mxu1  ;;  %v7888_v13 = vadd.f32 %v16397_v7, %v7837_v54 }
 0x77d   :  { %11320 = vmatprep.mubr.msk.bf16.mxu0 %vm8054_vm4, %v16539_v29  ;;  %11428 = vmatprep.mubr.msk.bf16.mxu1 %vm8054_vm4, %v16539_v29  ;;  %v7889_v37 = vadd.f32 %v16397_v7, %v7838_v33  ;;  %v7932_v8 = vmax.f32 %v7888_v13, 0.0 }
 0x77f   :  { %v7933_v1 = vmax.f32 %v7889_v37, 0.0 }
 0x780   :  { %v6682_v10 = vpop.f32.mrb[0].mxu0  ;;  %v7716_v63 = vpop.f32.mrb[0].mxu1 }
 0x781   :  { %v7839_v9 = vmax.f32 %v6682_v10, %v7716_v63  ;;  %v6684_v34 = vpop.f32.mrb[1].mxu0  ;;  %v7718_v14 = vpop.f32.mrb[1].mxu1 }
 0x782   :  { %v6685_v42 = vpop.f32.mrb[2].mxu0  ;;  %v7719_v30 = vpop.f32.mrb[2].mxu1 }
 0x783   :  { %v7890_v24 = vadd.f32 %v16397_v7, %v7839_v9  ;;  %v7840_v21 = vmax.f32 %v6685_v42, %v7719_v30  ;;  %v6687_v0 = vpop.f32.mrb[3].mxu0  ;;  %v7721_v41 = vpop.f32.mrb[3].mxu1 }
 0x785   :  { %v7934_v28 = vmax.f32 %v7890_v24, 0.0  ;;  %v7891_v45 = vadd.f32 %v16397_v7, %v7840_v21 }
 0x787   :  { %v7960_v5 = vmax.f32 %v7932_v8, %v7934_v28  ;;  %v7935_v53 = vmax.f32 %v7891_v45, 0.0 }
 0x788   :  { %v6690_v57 = vpop.f32.mrb[4].mxu0  ;;  %v7724_v52 = vpop.f32.mrb[4].mxu1 }
 0x789   :  { %v7961_v27 = vmax.f32 %v7933_v1, %v7935_v53  ;;  %v7841_v50 = vmax.f32 %v6690_v57, %v7724_v52  ;;  %v6692_v15 = vpop.f32.mrb[5].mxu0  ;;  %v7726_v44 = vpop.f32.mrb[5].mxu1 }
 0x78a   :  { %v6693_v56 = vpop.f32.mrb[6].mxu0  ;;  %v7727_v58 = vpop.f32.mrb[6].mxu1 }
 0x78b   :  { %v16549_v4 = vpack.c.bf16 %v7961_v27, %v7960_v5  ;;  %v7842_v18 = vmax.f32 %v6693_v56, %v7727_v58  ;;  %v6695_v23 = vpop.f32.mrb[7].mxu0  ;;  %v7729_v31 = vpop.f32.mrb[7].mxu1  ;;  %v7892_v25 = vadd.f32 %v16397_v7, %v7841_v50 }
 0x78d   :  { %11321 = vmatmul.mubr.msk.bf16.gmra.mrb[36].mxu0 %vm8054_vm4, %v16549_v4  ;;  %11429 = vmatmul.mubr.msk.bf16.gmra.mrb[36].mxu1 %vm8054_vm4, %v16549_v4  ;;  %v7893_v59 = vadd.f32 %v16397_v7, %v7842_v18  ;;  %v7936_v17 = vmax.f32 %v7892_v25, 0.0 }
 0x78f   :  { %v7937_v32 = vmax.f32 %v7893_v59, 0.0 }
 0x790   :  { %v6698_v38 = vpop.f32.mrb[8].mxu0  ;;  %v7732_v12 = vpop.f32.mrb[8].mxu1 }
 0x791   :  { %v7843_v40 = vmax.f32 %v6698_v38, %v7732_v12  ;;  %v6700_v48 = vpop.f32.mrb[9].mxu0  ;;  %v7734_v55 = vpop.f32.mrb[9].mxu1 }
 0x792   :  { %v6701_v6 = vpop.f32.mrb[10].mxu0  ;;  %v7735_v39 = vpop.f32.mrb[10].mxu1 }
 0x793   :  { %v7894_v3 = vadd.f32 %v16397_v7, %v7843_v40  ;;  %v7844_v22 = vmax.f32 %v6701_v6, %v7735_v39  ;;  %v6703_v11 = vpop.f32.mrb[11].mxu0  ;;  %v7737_v19 = vpop.f32.mrb[11].mxu1 }
 0x795   :  { %v7938_v54 = vmax.f32 %v7894_v3, 0.0  ;;  %v7895_v20 = vadd.f32 %v16397_v7, %v7844_v22 }
 0x797   :  { %v7962_v43 = vmax.f32 %v7936_v17, %v7938_v54  ;;  %v7939_v62 = vmax.f32 %v7895_v20, 0.0  ;;  %v13267_v20 = vld [vmem:[%s16924_s5 + $0x134] sm:$0xff]  }
 0x798   :  { %v6706_v33 = vpop.f32.mrb[12].mxu0  ;;  %v7740_v26 = vpop.f32.mrb[12].mxu1 }
 0x799   :  { %v7963_v35 = vmax.f32 %v7937_v32, %v7939_v62  ;;  %v7845_v10 = vmax.f32 %v6706_v33, %v7740_v26  ;;  %v6708_v63 = vpop.f32.mrb[13].mxu0  ;;  %v7742_v13 = vpop.f32.mrb[13].mxu1  ;;  %v13272_v32 = vld [vmem:[%s16924_s5 + $0x98] sm:$0xff]   ;;  %v13274_v62 = vld [vmem:[%s16924_s5 + $0xa0] sm:$0xff]   ;;  %v13276_v26 = vld [vmem:[%s16924_s5 + $0xa8] sm:$0xff]  }
 0x79a   :  { %v6709_v9 = vpop.f32.mrb[14].mxu0  ;;  %v7743_v34 = vpop.f32.mrb[14].mxu1  ;;  %v13275_v33 = vld [vmem:[%s16924_s5 + $0x154] sm:$0xff]   ;;  %v13279_v63 = vld [vmem:[%s16924_s5 + $0x164] ss:$0 sps:$4 sm:$0xff]  }
 0x79b   :  { %v16559_v14 = vpack.c.bf16 %v7963_v35, %v7962_v43  ;;  %v7846_v42 = vmax.f32 %v6709_v9, %v7743_v34  ;;  %v6711_v30 = vpop.f32.mrb[15].mxu0  ;;  %v7745_v37 = vpop.f32.mrb[15].mxu1  ;;  %v7896_v0 = vadd.f32 %v16397_v7, %v7845_v10  ;;  %v13273_v43 = vld [vmem:[%s16924_s5 + $0x14c] sm:$0xff]   ;;  %v13277_v35 = vld [vmem:[%s16924_s5 + $0x15c] sm:$0xff]   ;;  %v8982_v9 = vsel %vm8085_vm3, %v13279_v63, 0 }
 0x79c   :  { %v13278_v10 = vld [vmem:[%s16924_s5 + $0xb0] ss:$0 sps:$4 sm:$0xff]   ;;  %v13434_v34 = vmov 0.0  }
 0x79d   :  { %11324 = vmatprep.mubr.msk.bf16.mxu0 %vm8054_vm4, %v16559_v14  ;;  %11432 = vmatprep.mubr.msk.bf16.mxu1 %vm8054_vm4, %v16559_v14  ;;  %v7897_v5 = vadd.f32 %v16397_v7, %v7846_v42  ;;  %v7940_v50 = vmax.f32 %v7896_v0, 0.0  ;;  %v8431_v13 = vsel %vm8085_vm3, %v13278_v10, 0  ;;  %v13280_v42 = vld [vmem:[%s16926_s7 + $0x20] sm:$0xff]  }
 0x79e   :  { %v16750_v0 = vld [vmem:[%s16925_s6] ss:$0 sm:$0xff] }
 0x79f   :  { %v7941_v56 = vmax.f32 %v7897_v5, 0.0 }
 0x7a0   :  { %v6714_v24 = vpop.f32.mrb[16].mxu0  ;;  %v7748_v21 = vpop.f32.mrb[16].mxu1 }
 0x7a1   :  { %v7847_v41 = vmax.f32 %v6714_v24, %v7748_v21  ;;  %v6716_v8 = vpop.f32.mrb[17].mxu0  ;;  %v7750_v28 = vpop.f32.mrb[17].mxu1 }
 0x7a2   :  { %v6717_v45 = vpop.f32.mrb[18].mxu0  ;;  %v7751_v1 = vpop.f32.mrb[18].mxu1 }
 0x7a3   :  { %v7898_v53 = vadd.f32 %v16397_v7, %v7847_v41  ;;  %v7848_v57 = vmax.f32 %v6717_v45, %v7751_v1  ;;  %v6719_v52 = vpop.f32.mrb[19].mxu0  ;;  %v7753_v27 = vpop.f32.mrb[19].mxu1 }
 0x7a5   :  { %v7942_v15 = vmax.f32 %v7898_v53, 0.0  ;;  %v7899_v44 = vadd.f32 %v16397_v7, %v7848_v57 }
 0x7a7   :  { %v7964_v58 = vmax.f32 %v7940_v50, %v7942_v15  ;;  %v7943_v18 = vmax.f32 %v7899_v44, 0.0 }
 0x7a8   :  { %v6722_v23 = vpop.f32.mrb[20].mxu0  ;;  %v7756_v31 = vpop.f32.mrb[20].mxu1 }
 0x7a9   :  { %v7965_v38 = vmax.f32 %v7941_v56, %v7943_v18  ;;  %v7849_v12 = vmax.f32 %v6722_v23, %v7756_v31  ;;  %v6724_v25 = vpop.f32.mrb[21].mxu0  ;;  %v7758_v40 = vpop.f32.mrb[21].mxu1 }
 0x7aa   :  { %v6725_v48 = vpop.f32.mrb[22].mxu0  ;;  %v7759_v55 = vpop.f32.mrb[22].mxu1 }
 0x7ab   :  { %v16569_v6 = vpack.c.bf16 %v7965_v38, %v7964_v58  ;;  %v7900_v39 = vadd.f32 %v16397_v7, %v7849_v12  ;;  %v7850_v59 = vmax.f32 %v6725_v48, %v7759_v55  ;;  %v6727_v3 = vpop.f32.mrb[23].mxu0  ;;  %v7761_v22 = vpop.f32.mrb[23].mxu1 }
 0x7ad   :  { %v7901_v11 = vadd.f32 %v16397_v7, %v7850_v59  ;;  %11325 = vmatmul.mubr.msk.bf16.gmra.mrb[40].mxu0 %vm8054_vm4, %v16569_v6  ;;  %11433 = vmatmul.mubr.msk.bf16.gmra.mrb[40].mxu1 %vm8054_vm4, %v16569_v6  ;;  %v7944_v19 = vmax.f32 %v7900_v39, 0.0  ;;  %v13266_v7 = vld [vmem:[%s16924_s5 + $0x80] sm:$0xff]  }
 0x7ae   :  { %11344 = vmatprep.mubr.msk.bf16.mxu0 %vm8054_vm4, %v16401_v60  ;;  %11452 = vmatprep.mubr.msk.bf16.mxu1 %vm8054_vm4, %v16401_v60  ;;  %v13268_v60 = vld [vmem:[%s16924_s5 + $0x88] sm:$0xff]  }
 0x7af   :  { %v7945_v17 = vmax.f32 %v7901_v11, 0.0 }
 0x7b1   :  { %v16581_v54 = vpack.c.bf16 %v7945_v17, %v7944_v19 }
 0x7b5   :  { %11345 = vmatmul.mubr.msk.bf16.vlgmr.msra.gmra.mrb[24].mxu0 %vm8054_vm4, %v16419_v51  ;;  %11453 = vmatmul.mubr.msk.bf16.vlgmr.msra.gmra.mrb[24].mxu1 %vm8054_vm4, %v16419_v51  ;;  %v13269_v51 = vld [vmem:[%s16924_s5 + $0x13c] sm:$0xff]  }
 0x7b6   :  { %11348 = vmatprep.mubr.msk.bf16.mxu0 %vm8054_vm4, %v16429_v36  ;;  %11365 = vmatpush3.bf16.msra.mxu0 %v16500_v2  ;;  %v13270_v2 = vld [vmem:[%s16924_s5 + $0x90] sm:$0xff]  }
 0x7b7   :  { %11456 = vmatprep.mubr.msk.bf16.mxu1 %vm8054_vm4, %v16429_v36  ;;  %11473 = vmatpush3.bf16.msra.mxu1 %v16505_v46  ;;  %v13271_v46 = vld [vmem:[%s16924_s5 + $0x144] sm:$0xff]  }
 0x7b8   :  { %11366 = vmatprep.subr.bf16.mxu0 %v13266_v7  ;;  %11474 = vmatprep.subr.bf16.mxu1 %v13267_v20 }
 0x7ba   :  { %11367 = vmatpush3.bf16.msra.mxu0 %v13266_v7 }
 0x7bb   :  { %11475 = vmatpush3.bf16.msra.mxu1 %v13267_v20  ;;  %11368 = vmatprep.subr.bf16.mxu0 %v13268_v60 }
 0x7bc   :  { %11476 = vmatprep.subr.bf16.mxu1 %v13269_v51 }
 0x7bd   :  { %11349 = vmatmul.mubr.msk.bf16.gmra.mrb[28].mxu0 %vm8054_vm4, %v16465_v61  ;;  %11457 = vmatmul.mubr.msk.bf16.gmra.mrb[28].mxu1 %vm8054_vm4, %v16465_v61 }
 0x7be   :  { %11352 = vmatprep.mubr.msk.bf16.mxu0 %vm8054_vm4, %v16507_v16  ;;  %11460 = vmatprep.mubr.msk.bf16.mxu1 %vm8054_vm4, %v16507_v16 }
 0x7bf   :  { %11369 = vmatpush3.bf16.msra.mxu0 %v13268_v60  ;;  %11477 = vmatpush3.bf16.msra.mxu1 %v13269_v51 }
 0x7c0   :  { %11370 = vmatprep.subr.bf16.mxu0 %v13270_v2  ;;  %11478 = vmatprep.subr.bf16.mxu1 %v13271_v46 }
 0x7c3   :  { %11371 = vmatpush3.bf16.msra.mxu0 %v13270_v2  ;;  %11479 = vmatpush3.bf16.msra.mxu1 %v13271_v46 }
 0x7c4   :  { %11372 = vmatprep.subr.bf16.mxu0 %v13272_v32  ;;  %11480 = vmatprep.subr.bf16.mxu1 %v13273_v43 }
 0x7c5   :  { %11353 = vmatmul.mubr.msk.bf16.gmra.mrb[32].mxu0 %vm8054_vm4, %v16519_v47  ;;  %11461 = vmatmul.mubr.msk.bf16.gmra.mrb[32].mxu1 %vm8054_vm4, %v16519_v47 }
 0x7c6   :  { %11356 = vmatprep.mubr.msk.bf16.mxu0 %vm8054_vm4, %v16529_v49  ;;  %11464 = vmatprep.mubr.msk.bf16.mxu1 %vm8054_vm4, %v16529_v49 }
 0x7c7   :  { %11373 = vmatpush3.bf16.msra.mxu0 %v13272_v32  ;;  %11481 = vmatpush3.bf16.msra.mxu1 %v13273_v43 }
 0x7c8   :  { %11374 = vmatprep.subr.bf16.mxu0 %v13274_v62  ;;  %11482 = vmatprep.subr.bf16.mxu1 %v13275_v33 }
 0x7cb   :  { %11375 = vmatpush3.bf16.msra.mxu0 %v13274_v62  ;;  %11483 = vmatpush3.bf16.msra.mxu1 %v13275_v33 }
 0x7cc   :  { %11376 = vmatprep.subr.bf16.mxu0 %v13276_v26  ;;  %11484 = vmatprep.subr.bf16.mxu1 %v13277_v35 }
 0x7cd   :  { %11357 = vmatmul.mubr.msk.bf16.gmra.mrb[36].mxu0 %vm8054_vm4, %v16539_v29  ;;  %11465 = vmatmul.mubr.msk.bf16.gmra.mrb[36].mxu1 %vm8054_vm4, %v16539_v29 }
 0x7ce   :  { %11360 = vmatprep.mubr.msk.bf16.mxu0 %vm8054_vm4, %v16549_v4  ;;  %11468 = vmatprep.mubr.msk.bf16.mxu1 %vm8054_vm4, %v16549_v4 }
 0x7cf   :  { %11377 = vmatpush3.bf16.msra.mxu0 %v13276_v26  ;;  %11485 = vmatpush3.bf16.msra.mxu1 %v13277_v35 }
 0x7d0   :  { %12808 = vmatprep.subr.msk.bf16.mxu0 %vm8085_vm3, %v13278_v10  ;;  %12811 = vmatprep.subr.msk.bf16.mxu1 %vm8085_vm3, %v13279_v63 }
 0x7d3   :  { %11379 = vmatpush3.bf16.msra.mxu0 %v8431_v13  ;;  %11487 = vmatpush3.bf16.msra.mxu1 %v8982_v9  ;;  %v13286_v9 = vld [vmem:[%s16926_s7] sm:$0xff]  }
 0x7d4   :  { %11508 = vmatprep.subr.bf16.mxu1 %v13434_v34  ;;  %11532 = vmatprep.subr.bf16.mxu0 %v13434_v34 }
 0x7d5   :  { %11361 = vmatmul.mubr.msk.bf16.gmra.mrb[40].mxu0 %vm8054_vm4, %v16559_v14  ;;  %11469 = vmatmul.mubr.msk.bf16.gmra.mrb[40].mxu1 %vm8054_vm4, %v16559_v14 }
 0x7d6   :  { %11380 = vmatprep.mubr.msk.bf16.mxu0 %vm8054_vm4, %v16429_v36  ;;  %11488 = vmatprep.mubr.msk.bf16.mxu1 %vm8054_vm4, %v16429_v36  ;;  %v13281_v36 = vld [vmem:[%s16926_s7 + $0x28] sm:$0xff]  }
 0x7dd   :  { %11381 = vmatmul.mubr.msk.bf16.vlgmr.msra.gmra.mrb[24].mxu0 %vm8054_vm4, %v16465_v61  ;;  %11489 = vmatmul.mubr.msk.bf16.vlgmr.msra.gmra.mrb[24].mxu1 %vm8054_vm4, %v16465_v61  ;;  %v13282_v61 = vld [vmem:[%s16926_s7 + $0x30] sm:$0xff]  }
 0x7de   :  { %11384 = vmatprep.mubr.msk.bf16.mxu0 %vm8054_vm4, %v16507_v16  ;;  %11492 = vmatprep.mubr.msk.bf16.mxu1 %vm8054_vm4, %v16507_v16  ;;  %v13284_v16 = vld [vmem:[%s16926_s7 + $0x40] sm:$0xff]  }
 0x7df   :  { %11509 = vmatpush3.bf16.msra.mxu1 %v13280_v42  ;;  %11533 = vmatpush3.bf16.msra.mxu0 %v13284_v16 }
 0x7e0   :  { %11510 = vmatprep.subr.bf16.mxu1 %v13434_v34  ;;  %11534 = vmatprep.subr.bf16.mxu0 %v13434_v34 }
 0x7e3   :  { %11511 = vmatpush3.bf16.msra.mxu1 %v13281_v36 }
 0x7e4   :  { %11512 = vmatprep.subr.bf16.mxu1 %v13434_v34 }
 0x7e5   :  { %11385 = vmatmul.mubr.msk.bf16.gmra.mrb[28].mxu0 %vm8054_vm4, %v16519_v47  ;;  %11493 = vmatmul.mubr.msk.bf16.gmra.mrb[28].mxu1 %vm8054_vm4, %v16519_v47  ;;  %v13283_v47 = vld [vmem:[%s16926_s7 + $0x38] sm:$0x3f]  }
 0x7e6   :  { %11388 = vmatprep.mubr.msk.bf16.mxu0 %vm8054_vm4, %v16529_v49  ;;  %11496 = vmatprep.mubr.msk.bf16.mxu1 %vm8054_vm4, %v16529_v49  ;;  %v9244_v49 = vsel %vm9242_vm5, %v13283_v47, 0 }
 0x7e7   :  { %11513 = vmatpush3.bf16.msra.mxu1 %v13282_v61 }
 0x7e8   :  { %11514 = vmatprep.subr.bf16.mxu1 %v13434_v34 }
 0x7eb   :  { %11515 = vmatpush3.bf16.msra.mxu1 %v9244_v49 }
 0x7ec   :  { %11520 = vmatprep.subr.bf16.mxu1 %v13434_v34 }
 0x7ed   :  { %11389 = vmatmul.mubr.msk.bf16.gmra.mrb[32].mxu0 %vm8054_vm4, %v16539_v29  ;;  %11497 = vmatmul.mubr.msk.bf16.gmra.mrb[32].mxu1 %vm8054_vm4, %v16539_v29  ;;  %v13285_v29 = vld [vmem:[%s16926_s7 + $0x48] sm:$0xff]  }
 0x7ee   :  { %11392 = vmatprep.mubr.msk.bf16.mxu0 %vm8054_vm4, %v16549_v4  ;;  %11500 = vmatprep.mubr.msk.bf16.mxu1 %vm8054_vm4, %v16549_v4  ;;  %v13287_v4 = vld [vmem:[%s16926_s7 + $0x50] sm:$0xff]  }
 0x7ef   :  { %11535 = vmatpush3.bf16.msra.mxu0 %v13285_v29 }
 0x7f0   :  { %11536 = vmatprep.subr.bf16.mxu0 %v13434_v34 }
 0x7f3   :  { %11537 = vmatpush3.bf16.msra.mxu0 %v13287_v4  ;;  %v13288_v4 = vld [vmem:[%s16926_s7 + $0x8] sm:$0xff]  }
 0x7f4   :  { %11538 = vmatprep.subr.bf16.mxu0 %v13434_v34 }
 0x7f5   :  { %11393 = vmatmul.mubr.msk.bf16.gmra.mrb[36].mxu0 %vm8054_vm4, %v16559_v14  ;;  %11501 = vmatmul.mubr.msk.bf16.gmra.mrb[36].mxu1 %vm8054_vm4, %v16559_v14  ;;  %v13289_v14 = vld [vmem:[%s16926_s7 + $0x58] sm:$0x3f]  }
 0x7f6   :  { %11396 = vmatprep.mubr.msk.bf16.mxu0 %vm8054_vm4, %v16569_v6  ;;  %11504 = vmatprep.mubr.msk.bf16.mxu1 %vm8054_vm4, %v16569_v6  ;;  %v9393_v30 = vsel %vm9242_vm5, %v13289_v14, 0 }
 0x7f7   :  { %11539 = vmatpush3.bf16.msra.mxu0 %v9393_v30 }
 0x7f8   :  { %11556 = vmatprep.subr.bf16.mxu0 %v13434_v34 }
 0x7fd   :  { %11397 = vmatmul.mubr.msk.bf16.gmra.mrb[40].mxu0 %vm8054_vm4, %v16581_v54  ;;  %11505 = vmatmul.mubr.msk.bf16.gmra.mrb[40].mxu1 %vm8054_vm4, %v16581_v54 }
 0x7fe   :  { %11516 = vmatprep.mubr.msk.bf16.mxu1 %vm13435_vm6, %v13434_v34  ;;  %11540 = vmatprep.mubr.msk.bf16.mxu0 %vm13435_vm6, %v13434_v34 }
 0x8b0   :  { %v11382_v37 = vpop.f32.mrb[24].mxu0  ;;  %v11490_v24 = vpop.f32.mrb[24].mxu1 }
 0x8b1   :  { %v9119_v21 = vmax.f32 %v11382_v37, %v11490_v24  ;;  %v8467_v41 = vpop.f32.mrb[25].mxu0  ;;  %v9018_v8 = vpop.f32.mrb[25].mxu1 }
 0x8b2   :  { %v9117_v28 = vmax.f32 %v8467_v41, %v9018_v8  ;;  %v11383_v45 = vpop.f32.mrb[26].mxu0  ;;  %v11491_v1 = vpop.f32.mrb[26].mxu1 }
 0x8b3   :  { %v9120_v5 = vmax.f32 %v11383_v45, %v11491_v1  ;;  %v8470_v53 = vpop.f32.mrb[27].mxu0  ;;  %v9021_v57 = vpop.f32.mrb[27].mxu1  ;;  %v9146_v38 = vadd.f32 %v16750_v0, %v9119_v21 }
 0x8b4   :  { %v9144_v52 = vadd.f32 %v16750_v0, %v9117_v28  ;;  %v9118_v27 = vmax.f32 %v8470_v53, %v9021_v57 }
 0x8b5   :  { %v9147_v59 = vadd.f32 %v16750_v0, %v9120_v5  ;;  %v9166_v11 = vmax.f32 %v9146_v38, 0.0 }
 0x8b6   :  { %v9145_v50 = vadd.f32 %v16750_v0, %v9118_v27  ;;  %v9164_v15 = vmax.f32 %v9144_v52, 0.0 }
 0x8b7   :  { %v9167_v54 = vmax.f32 %v9147_v59, 0.0 }
 0x8b8   :  { %v9165_v44 = vmax.f32 %v9145_v50, 0.0  ;;  %v11386_v56 = vpop.f32.mrb[28].mxu0  ;;  %v11494_v58 = vpop.f32.mrb[28].mxu1 }
 0x8b9   :  { %v9123_v18 = vmax.f32 %v11386_v56, %v11494_v58  ;;  %v8483_v23 = vpop.f32.mrb[29].mxu0  ;;  %v9034_v31 = vpop.f32.mrb[29].mxu1 }
 0x8ba   :  { %v16755_v12 = vpack.c.bf16 %v9165_v44, %v9164_v15  ;;  %v9121_v25 = vmax.f32 %v8483_v23, %v9034_v31  ;;  %v11387_v40 = vpop.f32.mrb[30].mxu0  ;;  %v11495_v48 = vpop.f32.mrb[30].mxu1  ;;  %v13290_v15 = vld [vmem:[%s16926_s7 + $0x10] sm:$0xff]   ;;  %v13291_v44 = vld [vmem:[%s16926_s7 + $0x80] sm:$0xff]   ;;  %v13292_v31 = vld [vmem:[%s16926_s7 + $0x18] sm:$0x3f]  }
 0x8bb   :  { %v9124_v55 = vmax.f32 %v11387_v40, %v11495_v48  ;;  %v8486_v6 = vpop.f32.mrb[31].mxu0  ;;  %v9037_v39 = vpop.f32.mrb[31].mxu1  ;;  %v9150_v43 = vadd.f32 %v16750_v0, %v9123_v18  ;;  %v13293_v48 = vld [vmem:[%s16926_s7 + $0x88] sm:$0xff]  }
 0x8bc   :  { %v9148_v3 = vadd.f32 %v16750_v0, %v9121_v25  ;;  %v9122_v22 = vmax.f32 %v8486_v6, %v9037_v39 }
 0x8bd   :  { %v9151_v42 = vadd.f32 %v16750_v0, %v9124_v55  ;;  %v9170_v47 = vmax.f32 %v9150_v43, 0.0 }
 0x8be   :  { %v9168_v19 = vmax.f32 %v9148_v3, 0.0  ;;  %v9149_v17 = vadd.f32 %v16750_v0, %v9122_v22  ;;  %v9314_v22 = vsel %vm9242_vm5, %v13292_v31, 0 }
 0x8bf   :  { %v9171_v14 = vmax.f32 %v9151_v42, 0.0 }
 0x8c0   :  { %v9184_v7 = vmax.f32 %v9166_v11, %v9168_v19  ;;  %v9169_v20 = vmax.f32 %v9149_v17, 0.0  ;;  %v11390_v60 = vpop.f32.mrb[32].mxu0  ;;  %v11498_v51 = vpop.f32.mrb[32].mxu1 }
 0x8c1   :  { %v9127_v2 = vmax.f32 %v11390_v60, %v11498_v51  ;;  %v8499_v46 = vpop.f32.mrb[33].mxu0  ;;  %v9050_v32 = vpop.f32.mrb[33].mxu1 }
 0x8c2   :  { %v9185_v62 = vmax.f32 %v9167_v54, %v9169_v20  ;;  %v9125_v33 = vmax.f32 %v8499_v46, %v9050_v32  ;;  %v11391_v26 = vpop.f32.mrb[34].mxu0  ;;  %v11499_v35 = vpop.f32.mrb[34].mxu1 }
 0x8c3   :  { %v9128_v10 = vmax.f32 %v11391_v26, %v11499_v35  ;;  %v8502_v63 = vpop.f32.mrb[35].mxu0  ;;  %v9053_v13 = vpop.f32.mrb[35].mxu1  ;;  %v9154_v45 = vadd.f32 %v16750_v0, %v9127_v2  ;;  %v13295_v26 = vld [vmem:[%s16926_s7 + $0x90] sm:$0xff]  }
 0x8c4   :  { %v9193_v36 = vpack.c.bf16 %v9185_v62, %v9184_v7  ;;  %v9152_v61 = vadd.f32 %v16750_v0, %v9125_v33  ;;  %v9126_v16 = vmax.f32 %v8502_v63, %v9053_v13  ;;  %v13294_v33 = vld [vmem:[%s16926_s7 + $0x60] sm:$0xff]   ;;  %v13297_v13 = vld [vmem:[%s16926_s7 + $0x98] sm:$0x3f]  }
 0x8c5   :  { %v9155_v56 = vadd.f32 %v16750_v0, %v9128_v10  ;;  %v9174_v38 = vmax.f32 %v9154_v45, 0.0  ;;  %v13302_v45 = vld [vmem:[%s16926_s7 + $0xb0] sm:$0xff]  }
 0x8c6   :  { %v9172_v49 = vmax.f32 %v9152_v61, 0.0  ;;  %v9153_v29 = vadd.f32 %v16750_v0, %v9126_v16  ;;  %11517 = vmatmul.mubr.msk.bf16.vlgmr.msra.gmra.mrb[44].mxu1 %vm9238_vm7, %v9193_v36 }
 0x8c7   :  { %11521 = vmatpush3.bf16.msra.mxu1 %v13286_v9  ;;  %11528 = vmatprep.mubr.msk.bf16.mxu1 %vm13435_vm6, %v13434_v34  ;;  %v9175_v55 = vmax.f32 %v9155_v56, 0.0 }
 0x8c8   :  { %v9186_v30 = vmax.f32 %v9170_v47, %v9172_v49  ;;  %v9173_v37 = vmax.f32 %v9153_v29, 0.0  ;;  %v11394_v24 = vpop.f32.mrb[36].mxu0  ;;  %v11502_v21 = vpop.f32.mrb[36].mxu1  ;;  %11522 = vmatprep.subr.bf16.mxu1 %v13434_v34  ;;  %v13296_v49 = vld [vmem:[%s16926_s7 + $0x68] sm:$0xff]  }
 0x8c9   :  { %v9131_v41 = vmax.f32 %v11394_v24, %v11502_v21  ;;  %v8515_v8 = vpop.f32.mrb[37].mxu0  ;;  %v9066_v28 = vpop.f32.mrb[37].mxu1  ;;  %v13299_v21 = vld [vmem:[%s16926_s7 + $0x78] sm:$0x3f]  }
 0x8ca   :  { %v9187_v1 = vmax.f32 %v9171_v14, %v9173_v37  ;;  %v9129_v5 = vmax.f32 %v8515_v8, %v9066_v28  ;;  %v11395_v53 = vpop.f32.mrb[38].mxu0  ;;  %v11503_v57 = vpop.f32.mrb[38].mxu1  ;;  %v13298_v37 = vld [vmem:[%s16926_s7 + $0x70] sm:$0xff]   ;;  %v13300_v8 = vld [vmem:[%s16926_s7 + $0xa0] sm:$0xff]   ;;  %v13301_v28 = vld [vmem:[%s16926_s7 + $0xa8] sm:$0xff]  }
 0x8cb   :  { %v9132_v52 = vmax.f32 %v11395_v53, %v11503_v57  ;;  %11523 = vmatpush3.bf16.msra.mxu1 %v13288_v4  ;;  %v8518_v27 = vpop.f32.mrb[39].mxu0  ;;  %v9069_v50 = vpop.f32.mrb[39].mxu1  ;;  %v9158_v54 = vadd.f32 %v16750_v0, %v9131_v41  ;;  %v9474_v41 = vsel %vm9242_vm5, %v13299_v21, 0  ;;  %v13304_v53 = vld [vmem:[%s16928_s9] sm:$0xff]   ;;  %v13305_v57 = vld [vmem:[%s16928_s9 + $0x8] sm:$0xff]  }
 0x8cc   :  { %v9194_v58 = vpack.c.bf16 %v9187_v1, %v9186_v30  ;;  %v9156_v18 = vadd.f32 %v16750_v0, %v9129_v5  ;;  %v9130_v23 = vmax.f32 %v8518_v27, %v9069_v50  ;;  %11524 = vmatprep.subr.bf16.mxu1 %v13434_v34  ;;  %v13303_v1 = vld [vmem:[%s16926_s7 + $0xb8] sm:$0x3f]   ;;  %v13308_v50 = vld [vmem:[%s16928_s9 + $0x20] sm:$0xff]  }
 0x8cd   :  { %v9159_v2 = vadd.f32 %v16750_v0, %v9132_v52  ;;  %v9178_v42 = vmax.f32 %v9158_v54, 0.0  ;;  %v9636_v5 = vsel %vm9242_vm5, %v13303_v1, 0  ;;  %v13306_v52 = vld [vmem:[%s16928_s9 + $0x10] sm:$0xff]   ;;  %v13307_v27 = vld [vmem:[%s16928_s9 + $0x18] sm:$0xff]  }
 0x8ce   :  { %v9176_v25 = vmax.f32 %v9156_v18, 0.0  ;;  %v9157_v40 = vadd.f32 %v16750_v0, %v9130_v23  ;;  %11541 = vmatmul.mubr.msk.bf16.vlgmr.msra.gmra.mrb[44].mxu0 %vm9238_vm7, %v9194_v58 }
 0x8cf   :  { %11525 = vmatpush3.bf16.msra.mxu1 %v13290_v15  ;;  %11557 = vmatpush3.bf16.msra.mxu0 %v13291_v44  ;;  %v9179_v29 = vmax.f32 %v9159_v2, 0.0  ;;  %v13309_v15 = vld [vmem:[%s16928_s9 + $0x28] sm:$0xff]   ;;  %v13310_v44 = vld [vmem:[%s16928_s9 + $0x30] ss:$0 sps:$4 sm:$0x33]  }
 0x8d0   :  { %v16792_v6 = vmax.f32 %v9174_v38, %v9176_v25  ;;  %v9177_v39 = vmax.f32 %v9157_v40, 0.0  ;;  %v11398_v59 = vpop.f32.mrb[40].mxu0  ;;  %v11506_v3 = vpop.f32.mrb[40].mxu1  ;;  %11526 = vmatprep.subr.bf16.mxu1 %v13434_v34  ;;  %11558 = vmatprep.subr.bf16.mxu0 %v13434_v34  ;;  %v9758_v56 = vsel %vm9756_vm8, %v13310_v44, 0 }
 0x8d1   :  { %v9135_v11 = vmax.f32 %v11398_v59, %v11506_v3  ;;  %v8531_v19 = vpop.f32.mrb[41].mxu0  ;;  %v9082_v17 = vpop.f32.mrb[41].mxu1  ;;  %11564 = vmatprep.mubr.msk.bf16.mxu0 %vm13435_vm6, %v13434_v34 }
 0x8d2   :  { %v9189_v7 = vmax.f32 %v9175_v55, %v9177_v39  ;;  %v9133_v20 = vmax.f32 %v8531_v19, %v9082_v17  ;;  %v11399_v60 = vpop.f32.mrb[42].mxu0  ;;  %v11507_v51 = vpop.f32.mrb[42].mxu1 }
 0x8d3   :  { %v9162_v46 = vadd.f32 %v16750_v0, %v9135_v11  ;;  %v9136_v32 = vmax.f32 %v11399_v60, %v11507_v51  ;;  %11527 = vmatpush3.bf16.msra.mxu1 %v9314_v22  ;;  %v8534_v43 = vpop.f32.mrb[43].mxu0  ;;  %v9085_v62 = vpop.f32.mrb[43].mxu1  ;;  %11559 = vmatpush3.bf16.msra.mxu0 %v13293_v48 }
 0x8d4   :  { %v9195_v35 = vpack.c.bf16 %v9189_v7, %v16792_v6  ;;  %v9160_v10 = vadd.f32 %v16750_v0, %v9133_v20  ;;  %v9134_v63 = vmax.f32 %v8534_v43, %v9085_v62  ;;  %11544 = vmatprep.subr.bf16.mxu1 %v13434_v34  ;;  %11560 = vmatprep.subr.bf16.mxu0 %v13434_v34 }
 0x8d5   :  { %v9163_v9 = vadd.f32 %v16750_v0, %v9136_v32  ;;  %v9182_v16 = vmax.f32 %v9162_v46, 0.0 }
 0x8d6   :  { %v9180_v36 = vmax.f32 %v9160_v10, 0.0  ;;  %v9161_v61 = vadd.f32 %v16750_v0, %v9134_v63  ;;  %11529 = vmatmul.mubr.msk.bf16.vlgmr.msra.gmra.mrb[48].mxu1 %vm9238_vm7, %v16755_v12  ;;  %v9555_v0 = vsel %vm9242_vm5, %v13297_v13, 0 }
 0x8d7   :  { %v9183_v47 = vmax.f32 %v9163_v9, 0.0  ;;  %11545 = vmatpush3.bf16.msra.mxu1 %v13294_v33  ;;  %11561 = vmatpush3.bf16.msra.mxu0 %v13295_v26 }
 0x8d8   :  { %v9190_v4 = vmax.f32 %v9178_v42, %v9180_v36  ;;  %v9181_v14 = vmax.f32 %v9161_v61, 0.0  ;;  %11546 = vmatprep.subr.bf16.mxu1 %v13434_v34  ;;  %11562 = vmatprep.subr.bf16.mxu0 %v13434_v34 }
 0x8d9   :  { %v9197_v30 = vpack.c.bf16 %v9183_v47, %v9182_v16  ;;  %11552 = vmatprep.mubr.msk.bf16.mxu1 %vm13435_vm6, %v13434_v34 }
 0x8da   :  { %v9191_v12 = vmax.f32 %v9179_v29, %v9181_v14  ;;  %v13311_v29 = vld [vmem:[%s16930_s11] sm:$0xff]  }
 0x8db   :  { %11547 = vmatpush3.bf16.msra.mxu1 %v13296_v49  ;;  %11563 = vmatpush3.bf16.msra.mxu0 %v9555_v0  ;;  %v11130_v0 = vld [vmem:[%s16929_s10] ss:$0 sm:$0xff]  ;;  %s13409_s10 = scalar_lea.vmem %s9883_s18, 256 }
 0x8dc   :  { %v9196_v24 = vpack.c.bf16 %v9191_v12, %v9190_v4  ;;  %11548 = vmatprep.subr.bf16.mxu1 %v13434_v34  ;;  %11580 = vmatprep.subr.bf16.mxu0 %v13434_v34  ;;  %v13312_v4 = vld [vmem:[%s16930_s11 + $0x8] sm:$0x7f]   ;;  %p13410_p0 = scmp.ne.s32.totalorder %s9883_s18, %s13409_s10  ;;  %p13415_p2 = scmp.lt.s32.totalorder %s13409_s10, %s13409_s10 }
 0x8dd   :  { %v9832_v14 = vsel %vm9830_vm10, %v13312_v4, 0 }
 0x8de   :  { %11565 = vmatmul.mubr.msk.bf16.vlgmr.msra.gmra.mrb[48].mxu0 %vm9238_vm7, %v9196_v24  ;;  %p13416_p3 = por %p13415_p2, %p13414_p1 }
 0x8df   :  { %11549 = vmatpush3.bf16.msra.mxu1 %v13298_v37  ;;  %11594 = vmatprep.mubr.msk.bf16.mxu0 %vm13435_vm6, %v13434_v34 }
 0x8e0   :  { %11550 = vmatprep.subr.bf16.mxu1 %v13434_v34  ;;  %11581 = vmatpush3.bf16.msra.mxu0 %v13304_v53  ;;  %p13417_p4 = pnand %p13416_p3, %p13410_p0 }
 0x8e1   :  { %11582 = vmatprep.subr.bf16.mxu0 %v13434_v34 }
 0x8e3   :  { %11551 = vmatpush3.bf16.msra.mxu1 %v9474_v41 }
 0x8e4   :  { %11568 = vmatprep.subr.bf16.mxu1 %v13434_v34  ;;  %11583 = vmatpush3.bf16.msra.mxu0 %v13305_v57 }
 0x8e5   :  { %11584 = vmatprep.subr.bf16.mxu0 %v13434_v34 }
 0x8e6   :  { %11553 = vmatmul.mubr.msk.bf16.vlgmr.msra.gmra.mrb[52].mxu1 %vm9238_vm7, %v9195_v35  ;;  %v11129_v35 = vld [vmem:[%s16927_s8] ss:$0 sm:$0xff] }
 0x8e7   :  { %11569 = vmatpush3.bf16.msra.mxu1 %v13300_v8  ;;  %11576 = vmatprep.mubr.msk.bf16.mxu1 %vm13435_vm6, %v13434_v34 }
 0x8e8   :  { %11570 = vmatprep.subr.bf16.mxu1 %v13434_v34  ;;  %11585 = vmatpush3.bf16.msra.mxu0 %v13306_v52 }
 0x8e9   :  { %11586 = vmatprep.subr.bf16.mxu0 %v13434_v34 }
 0x8eb   :  { %11571 = vmatpush3.bf16.msra.mxu1 %v13301_v28 }
 0x8ec   :  { %11572 = vmatprep.subr.bf16.mxu1 %v13434_v34  ;;  %11587 = vmatpush3.bf16.msra.mxu0 %v13307_v27 }
 0x8ed   :  { %11588 = vmatprep.subr.bf16.mxu0 %v13434_v34 }
 0x8ef   :  { %11573 = vmatpush3.bf16.msra.mxu1 %v13302_v45  ;;  %v11139_v45 = vld [vmem:[%s16931_s12] ss:$0 sm:$0xff] }
 0x8f0   :  { %11574 = vmatprep.subr.bf16.mxu1 %v13434_v34  ;;  %11589 = vmatpush3.bf16.msra.mxu0 %v13308_v50 }
 0x8f1   :  { %11590 = vmatprep.subr.bf16.mxu0 %v13434_v34 }
 0x8f3   :  { %11575 = vmatpush3.bf16.msra.mxu1 %v9636_v5 }
 0x8f4   :  { %11591 = vmatpush3.bf16.msra.mxu0 %v13309_v15 }
 0x8f5   :  { %11592 = vmatprep.subr.bf16.mxu0 %v13434_v34 }
 0x8f6   :  { %11577 = vmatmul.mubr.msk.bf16.vlgmr.msra.gmra.mrb[56].mxu1 %vm9238_vm7, %v9197_v30 }
 0x8f8   :  { %11593 = vmatpush3.bf16.msra.mxu0 %v9758_v56 }
 0x8f9   :  { %11598 = vmatprep.subr.bf16.mxu0 %v13434_v34 }
 0x999   :  { %v9280_v58 = vpop.f32.mrb[44].mxu1 }
 0x99a   :  { %v11518_v18 = vpop.f32.mrb[45].mxu1 }
 0x99b   :  { %v9283_v23 = vpop.f32.mrb[46].mxu1 }
 0x99c   :  { %v11519_v31 = vpop.f32.mrb[47].mxu1 }
 0x9a1   :  { %v9429_v38 = vpop.f32.mrb[44].mxu0 }
 0x9a2   :  { %v11542_v25 = vpop.f32.mrb[45].mxu0 }
 0x9a3   :  { %v9432_v40 = vpop.f32.mrb[46].mxu0 }
 0x9a4   :  { %v11543_v48 = vpop.f32.mrb[47].mxu0 }
 0x9a9   :  { %v9350_v55 = vpop.f32.mrb[48].mxu1 }
 0x9aa   :  { %v9351_v6 = vadd.f32 %v9350_v55, %v9280_v58  ;;  %v11530_v39 = vpop.f32.mrb[49].mxu1 }
 0x9ab   :  { %v9353_v59 = vpop.f32.mrb[50].mxu1 }
 0x9ac   :  { %v9354_v3 = vadd.f32 %v9353_v59, %v9283_v23  ;;  %v11531_v22 = vpop.f32.mrb[51].mxu1  ;;  %v9436_v11 = vadd.f32 %v9429_v38, %v9351_v6 }
 0x9ae   :  { %v9437_v19 = vadd.f32 %v9432_v40, %v9354_v3 }
 0x9b1   :  { %v9591_v17 = vpop.f32.mrb[48].mxu0 }
 0x9b2   :  { %v11566_v54 = vpop.f32.mrb[49].mxu0 }
 0x9b3   :  { %v9594_v7 = vpop.f32.mrb[50].mxu0 }
 0x9b4   :  { %v11567_v20 = vpop.f32.mrb[51].mxu0 }
 0x9b9   :  { %v9510_v60 = vpop.f32.mrb[52].mxu1 }
 0x9ba   :  { %v9517_v51 = vadd.f32 %v9510_v60, %v9436_v11  ;;  %v11554_v2 = vpop.f32.mrb[53].mxu1 }
 0x9bb   :  { %v9513_v46 = vpop.f32.mrb[54].mxu1 }
 0x9bc   :  { %v9518_v32 = vadd.f32 %v9513_v46, %v9437_v19  ;;  %v11555_v43 = vpop.f32.mrb[55].mxu1  ;;  %v9598_v62 = vadd.f32 %v9591_v17, %v9517_v51 }
 0x9be   :  { %v9599_v33 = vadd.f32 %v9594_v7, %v9518_v32 }
 0x9c9   :  { %v9672_v26 = vpop.f32.mrb[56].mxu1 }
 0x9ca   :  { %v9679_v10 = vadd.f32 %v9672_v26, %v9598_v62  ;;  %v11578_v63 = vpop.f32.mrb[57].mxu1 }
 0x9cb   :  { %v9675_v13 = vpop.f32.mrb[58].mxu1 }
 0x9cc   :  { %v9688_v9 = vadd.f32 %v11129_v35, %v9679_v10  ;;  %v9680_v42 = vadd.f32 %v9675_v13, %v9599_v33  ;;  %v11579_v36 = vpop.f32.mrb[59].mxu1 }
 0x9ce   :  { %v9689_v61 = vadd.f32 %v11129_v35, %v9680_v42  ;;  %v9690_v16 = vmax.f32 %v9688_v9, 0.0 }
 0x9d0   :  { %v9691_v47 = vmax.f32 %v9689_v61, 0.0 }
 0x9d2   :  { %v9692_v49 = vpack.c.bf16 %v9691_v47, %v9690_v16 }
 0x9d4   :  { %11595 = vmatmul.mubr.msk.bf16.vlgmr.msra.gmra.mrb[52].mxu0 %vm9752_vm9, %v9692_v49 }
 0x9d5   :  { %11602 = vmatprep.mubr.msk.bf16.mxu0 %vm13435_vm6, %v13434_v34  ;;  %11599 = vmatpush3.bf16.msra.mxu0 %v13311_v29 }
 0x9d6   :  { %11600 = vmatprep.subr.bf16.mxu0 %v13434_v34 }
 0x9d9   :  { %11601 = vmatpush3.bf16.msra.mxu0 %v9832_v14 }
 0xaa7   :  { %v9794_v30 = vpop.f32.mrb[52].mxu0 }
 0xaa8   :  { %v9795_v12 = vadd.f32 %v11130_v0, %v9794_v30  ;;  %v11596_v37 = vpop.f32.mrb[53].mxu0 }
 0xaa9   :  { %v9797_v24 = vpop.f32.mrb[54].mxu0 }
 0xaaa   :  { %v9798_v21 = vadd.f32 %v11130_v0, %v9797_v24  ;;  %v11597_v41 = vpop.f32.mrb[55].mxu0  ;;  %v9801_v8 = vmax.f32 %v9795_v12, 0.0 }
 0xaac   :  { %v9802_v28 = vmax.f32 %v9798_v21, 0.0 }
 0xaae   :  { %v9803_v34 = vpack.c.bf16 %v9802_v28, %v9801_v8 }
 0xab0   :  { %11603 = vmatmul.mubr.msk.bf16.vlgmr.msra.gmra.mrb[56].mxu0 %vm9826_vm11, %v9803_v34 }
 0xb83   :  { %v9868_v1 = vpop.f32.mrb[56].mxu0 }
 0xb84   :  { %v9869_v5 = vadd.f32 %v11139_v45, %v9868_v1  ;;  %v11604_v53 = vpop.f32.mrb[57].mxu0 }
 0xb85   :  { %v9871_v57 = vpop.f32.mrb[58].mxu0 }
 0xb86   :  { %9875 = vst [vmem:[#allocation2] sm:$0xff] %v9869_v5  ;;  %v9872_v52 = vadd.f32 %v11139_v45, %v9871_v57  ;;  %v11605_v27 = vpop.f32.mrb[59].mxu0 }
 0xb88   :  { %9876 = vst [vmem:[#allocation2 + $0x8] sm:$0xff] %v9872_v52 }
 0xb89   :  { %13420 = shalt.err (!%p13417_p4)
}
 0xb8a   :  { %s13421_s19 = scalar_lea.hbm %s16932_s13, 256 }
 0xb8b   :  { %p13422_p5 = scmp.ne.s32.totalorder %s16932_s13, %s13421_s19  ;;  %p13425_p6 = scmp.lt.u32.totalorder %s13421_s19, %s16932_s13 }
 0xb8d   :  { %p13427_p7 = pnand %p13425_p6, %p13422_p5 }
 0xb8f   :  { %13430 = shalt.err (!%p13427_p7)
}
 0xb90   :  { %s13437_s7 = smov 128   ;;  %s13438_s23 = smov 8  }
 0xb91   :  { %9888 = dma.vmem_to_hbm [thread:$0]  %s9883_s18, 256, %s16932_s13, [#allocation3], %s13437_s7, %s13437_s7, %s13438_s23  }
 0xb92   :  { %13431 = dma.done.wait [#allocation3], 256  }
 0xb93   :  { %13432 = vsyncadd [#allocation3], 4294967040 }
 0xb94   :  { %9892 = vsyncpa [#allocation3], 1 }

</bundles_post_ra>
